<compile_context>
chip_gen: v5e
topology: v5e:2x2
jax: 0.10.0
libtpu: 0.0.40
codegen_flags: <defaults>
</compile_context>

<pallas_src>
import functools

import jax
import jax.numpy as jnp
from jax import lax
from jax.experimental import pallas as pl
from jax.experimental.pallas import tpu as pltpu

NEG_SLOPE = 0.01  # F.leaky_relu default negative slope


def _conv_mm_kernel(x_ref, w_ref, b_ref, o_ref, *, neg_slope):
    """One (tm, tn) output tile; accumulates over the K grid axis into o_ref."""
    k = pl.program_id(2)

    @pl.when(k == 0)
    def _():
        o_ref[...] = jnp.zeros_like(o_ref)

    o_ref[...] += jnp.dot(x_ref[...], w_ref[...],
                          preferred_element_type=jnp.float32)

    @pl.when(k == pl.num_programs(2) - 1)
    def _():
        y = o_ref[...] + b_ref[...]
        if neg_slope is not None:              # static python flag (traced once)
            y = jnp.where(y >= 0.0, y, neg_slope * y)
        o_ref[...] = y


def _pick_tk(k_dim):
    """Largest K tile (<=1024, multiple of 128) that covers K exactly.

    K must be covered exactly (no ragged K) so garbage never enters the
    accumulation. If K is small or not 128-divisible, take it whole.
    """
    if k_dim % 128 != 0 or k_dim <= 1024:
        return k_dim
    for cand in range(1024, 127, -128):
        if k_dim % cand == 0:
            return cand
    return k_dim


def conv_matmul(xcol, wmat, bias, *, apply_lrelu):
    """(M, K) bf16 @ (K, N) bf16 + bias(f32) [+ leaky_relu] -> (M, N) f32."""
    M, K = xcol.shape
    Kw, N = wmat.shape
    assert K == Kw

    tm = 512 if M > 512 else M          # full-dim blocks are always legal
    tn = 512 if N > 512 else N          # 1024 -> 512 (exact), 32/128/512/1 full
    tk = _pick_tk(K)

    grid = (pl.cdiv(M, tm), pl.cdiv(N, tn), K // tk)

    kernel = functools.partial(
        _conv_mm_kernel, neg_slope=NEG_SLOPE if apply_lrelu else None)

    cost = pl.CostEstimate(
        flops=2 * M * K * N,
        transcendentals=0,
        bytes_accessed=M * K * 2 + K * N * 2 + M * N * 4 + N * 4)

    return pl.pallas_call(
        kernel,
        out_shape=jax.ShapeDtypeStruct((M, N), jnp.float32),
        grid_spec=pltpu.PrefetchScalarGridSpec(
            num_scalar_prefetch=0,
            grid=grid,
            in_specs=[
                pl.BlockSpec((tm, tk), lambda m, n, k: (m, k)),
                pl.BlockSpec((tk, tn), lambda m, n, k: (k, n)),
                pl.BlockSpec((1, tn), lambda m, n, k: (0, n)),
            ],
            out_specs=pl.BlockSpec((tm, tn), lambda m, n, k: (m, n)),
        ),
        compiler_params=pltpu.CompilerParams(
            dimension_semantics=("parallel", "parallel", "arbitrary"),
            vmem_limit_bytes=32 * 1024 * 1024),
        cost_estimate=cost,
    )(xcol, wmat, bias)


def _im2col_h(x, kh, stride, pad):
    """x: (N, H, C) -> ((N*H_out, kh*C), H_out); conv taps only along H."""
    n, h, c = x.shape
    h_out = (h + 2 * pad - kh) // stride + 1
    xp = jnp.pad(x, ((0, 0), (pad, pad), (0, 0)))
    taps = [xp[:, k:k + (h_out - 1) * stride + 1:stride, :] for k in range(kh)]
    xcol = jnp.concatenate(taps, axis=-1)          # (N, H_out, kh*C)
    return xcol.reshape(n * h_out, kh * c), h_out


@functools.partial(jax.jit, static_argnames=("period", "strides"))
def period_discriminator_forward(x, weights, *, period, strides):
    """x: (B, T) f32.  weights: tuple of (w OIHW, bias).  strides: tuple of int.

    Returns (out (B, H_last*period), feature maps in PyTorch NCHW order)."""
    B, T = x.shape
    reshape_dim = (T - 1) // period + 1
    pad_amt = reshape_dim * period - T
    xpad = jnp.pad(x, ((0, 0), (0, pad_amt)))
    xr = xpad.reshape(B, reshape_dim, period)                   # (B, H, W)
    h = jnp.transpose(xr, (0, 2, 1)).reshape(B * period, reshape_dim, 1)

    feature_map = []
    n_layers = len(weights)
    for li, ((w, b), stride) in enumerate(zip(weights, strides)):
        co, ci, kh, _ = w.shape
        is_body = li < n_layers - 1                 # last_conv has no leaky_relu
        # OIHW -> (kh*ci, co): tap-major / channel-minor (matches im2col order)
        wmat = jnp.transpose(w[..., 0], (2, 1, 0)).reshape(kh * ci, co)
        xcol, h_out = _im2col_h(h.astype(jnp.bfloat16), kh, stride, kh // 2)
        y = conv_matmul(xcol, wmat.astype(jnp.bfloat16),
                        b.reshape(1, co).astype(jnp.float32),
                        apply_lrelu=is_body)        # (M, co) f32
        h = y.reshape(B * period, h_out, co)
        # Returned feature maps follow PyTorch NCHW: (B, C_out, H_out, period);
        # the activation feeding the next layer stays channels-last.
        fm = jnp.transpose(h.reshape(B, period, h_out, co), (0, 3, 2, 1))
        feature_map.append(fm)

    # last layer has co == 1; flatten (B, 1, H_last, W) -> (B, H_last*W)
    h_last = h.shape[1]
    out = jnp.transpose(h.reshape(B, period, h_last), (0, 2, 1)).reshape(B, -1)
    return out, feature_map


def ref_forward(x, weights, period, strides):
    """Plain-JAX NCHW f32 reference (mirrors the PyTorch forward)."""
    B, T = x.shape
    rd = (T - 1) // period + 1
    xpad = jnp.pad(x, ((0, 0), (0, rd * period - T)))
    h = xpad.reshape(B, 1, rd, period)
    fms = []
    n_layers = len(weights)
    for li, ((w, b), stride) in enumerate(zip(weights, strides)):
        kh = w.shape[2]
        y = lax.conv_general_dilated(
            h, w, window_strides=(stride, 1),
            padding=((kh // 2, kh // 2), (0, 0)),
            dimension_numbers=('NCHW', 'OIHW', 'NCHW'),
            precision=lax.Precision.HIGHEST)
        y = y + b.reshape(1, -1, 1, 1)
        if li < n_layers - 1:
            y = jnp.where(y >= 0, y, NEG_SLOPE * y)
        h = y
        fms.append(y)
    return h.reshape(B, -1), fms


if __name__ == "__main__":
    period = 4
    B, T = 2, 47          # T not a multiple of period -> exercises the pad path

    # Deterministic parameter init. weight_norm at init is an identity
    # reparametrization (g = ||v||), so it is folded into one effective weight.
    layer_defs = [(1, 32, 5, 3), (32, 128, 5, 3), (128, 512, 5, 3),
                  (512, 1024, 5, 3), (1024, 1024, 5, 1), (1024, 1, 3, 1)]
    key = jax.random.PRNGKey(0)
    weights = []
    strides = []
    for ci, co, kh, st in layer_defs:
        key, kw, kb = jax.random.split(key, 3)
        w = jax.random.normal(kw, (co, ci, kh, 1), jnp.float32) / jnp.sqrt(ci * kh)
        b = 0.01 * jax.random.normal(kb, (co,), jnp.float32)
        weights.append((w, b))
        strides.append(st)
    weights = tuple(weights)
    strides = tuple(strides)

    key, kx = jax.random.split(key)
    x = jax.random.normal(kx, (B, T), jnp.float32)

    out, fmaps = period_discriminator_forward(
        x, weights, period=period, strides=strides)
    out = jax.block_until_ready(out)
    fmaps = [jax.block_until_ready(f) for f in fmaps]

    ref_out, ref_fmaps = ref_forward(x, weights, period, strides)

    def check(a, b, name):
        assert a.shape == b.shape, (name, a.shape, b.shape)
        a = a.astype(jnp.float32)
        b = b.astype(jnp.float32)
        rel_l2 = jnp.sqrt(jnp.sum((a - b) ** 2)) / (jnp.sqrt(jnp.sum(b ** 2)) + 1e-12)
        assert float(rel_l2) < 3e-2, (name, float(rel_l2))
        # loose elementwise bound (kernel runs the MXU in bf16)
        assert jnp.allclose(a, b, atol=1e-1, rtol=1e-1), name

    check(out, ref_out, "out")
    for i, (f, rf) in enumerate(zip(fmaps, ref_fmaps)):
        check(f, rf, f"fmap{i}")

    print("KERNEL_OK")
</pallas_src>

<mosaic_0001>
module attributes {stable_mosaic.version = 11 : i64} {
  func.func @_conv_mm_kernel(%arg0: i32, %arg1: i32, %arg2: i32, %arg3: memref<32x5xbf16, #tpu.memory_space<vmem>>, %arg4: memref<5x32xbf16, #tpu.memory_space<vmem>>, %arg5: memref<1x32xf32, #tpu.memory_space<vmem>>, %arg6: memref<32x32xf32, #tpu.memory_space<vmem>>) attributes {dimension_semantics = [#tpu.dimension_semantics<parallel>, #tpu.dimension_semantics<parallel>, #tpu.dimension_semantics<arbitrary>], iteration_bounds = array<i64: 1, 1, 1>, scalar_prefetch = 0 : i64, scratch_operands = 0 : i64, tpu.core_type = #tpu.core_type<tc>, window_params = [{transform_indices = @transform_0, window_bounds = array<i64: 32, 5>}, {transform_indices = @transform_1, window_bounds = array<i64: 5, 32>}, {transform_indices = @transform_2, window_bounds = array<i64: 1, 32>}, {transform_indices = @transform_3, window_bounds = array<i64: 32, 32>}]} {
    %c0_i32 = arith.constant 0 : i32
    %0 = arith.cmpi eq, %arg2, %c0_i32 : i32
    %1 = arith.extui %0 : i1 to i32
    %c0_i32_0 = arith.constant 0 : i32
    %2 = arith.cmpi ne, %1, %c0_i32_0 : i32
    scf.if %2 {
      %cst_10 = arith.constant 0.000000e+00 : f32
      %12 = vector.broadcast %cst_10 : f32 to vector<32x32xf32>
      %c0_11 = arith.constant 0 : index
      %c0_12 = arith.constant 0 : index
      %13 = vector.load %arg6[%c0_11, %c0_12] : memref<32x32xf32, #tpu.memory_space<vmem>>, vector<32x32xf32>
      tpu.vector_store %arg6[%c0_11, %c0_12], %12 {strides = array<i32>} : memref<32x32xf32, #tpu.memory_space<vmem>>, vector<32x32xf32>,
    } else {
    }
    %c0 = arith.constant 0 : index
    %c0_1 = arith.constant 0 : index
    %3 = vector.load %arg6[%c0, %c0_1] : memref<32x32xf32, #tpu.memory_space<vmem>>, vector<32x32xf32>
    %c0_2 = arith.constant 0 : index
    %c0_3 = arith.constant 0 : index
    %4 = vector.load %arg3[%c0_2, %c0_3] : memref<32x5xbf16, #tpu.memory_space<vmem>>, vector<32x5xbf16>
    %c0_4 = arith.constant 0 : index
    %c0_5 = arith.constant 0 : index
    %5 = vector.load %arg4[%c0_4, %c0_5] : memref<5x32xbf16, #tpu.memory_space<vmem>>, vector<5x32xbf16>
    %cst = arith.constant dense<0.000000e+00> : vector<32x32xf32>
    %6 = tpu.matmul %4, %5, %cst {dimension_numbers = #tpu.dot_dimension_numbers<[1], [0], [0], [1], [0, 0, 1, 1], [], []>} : vector<32x5xbf16>, vector<5x32xbf16>, vector<32x32xf32> -> vector<32x32xf32>
    %7 = arith.addf %3, %6 : vector<32x32xf32>
    %c0_6 = arith.constant 0 : index
    %c0_7 = arith.constant 0 : index
    %8 = vector.load %arg6[%c0_6, %c0_7] : memref<32x32xf32, #tpu.memory_space<vmem>>, vector<32x32xf32>
    tpu.vector_store %arg6[%c0_6, %c0_7], %7 {strides = array<i32>} : memref<32x32xf32, #tpu.memory_space<vmem>>, vector<32x32xf32>,
    %c0_i32_8 = arith.constant 0 : i32
    %9 = arith.cmpi eq, %arg2, %c0_i32_8 : i32
    %10 = arith.extui %9 : i1 to i32
    %c0_i32_9 = arith.constant 0 : i32
    %11 = arith.cmpi ne, %10, %c0_i32_9 : i32
    scf.if %11 {
      %c0_10 = arith.constant 0 : index
      %c0_11 = arith.constant 0 : index
      %12 = vector.load %arg6[%c0_10, %c0_11] : memref<32x32xf32, #tpu.memory_space<vmem>>, vector<32x32xf32>
      %c0_12 = arith.constant 0 : index
      %c0_13 = arith.constant 0 : index
      %13 = vector.load %arg5[%c0_12, %c0_13] : memref<1x32xf32, #tpu.memory_space<vmem>>, vector<1x32xf32>
      %14 = vector.broadcast %13 : vector<1x32xf32> to vector<32x32xf32>
      %15 = arith.addf %12, %14 : vector<32x32xf32>
      %cst_14 = arith.constant 0.000000e+00 : f32
      %16 = vector.broadcast %cst_14 : f32 to vector<32x32xf32>
      %17 = arith.cmpf oge, %15, %16 : vector<32x32xf32>
      %cst_15 = arith.constant 0.00999999977 : f32
      %18 = vector.broadcast %cst_15 : f32 to vector<32x32xf32>
      %19 = arith.mulf %18, %15 : vector<32x32xf32>
      %20 = arith.select %17, %15, %19 : vector<32x32xi1>, vector<32x32xf32>
      %c0_16 = arith.constant 0 : index
      %c0_17 = arith.constant 0 : index
      %21 = vector.load %arg6[%c0_16, %c0_17] : memref<32x32xf32, #tpu.memory_space<vmem>>, vector<32x32xf32>
      tpu.vector_store %arg6[%c0_16, %c0_17], %20 {strides = array<i32>} : memref<32x32xf32, #tpu.memory_space<vmem>>, vector<32x32xf32>,
    } else {
    }
    return
  }
  func.func @transform_0(%arg0: i32, %arg1: i32, %arg2: i32) -> (i32, i32) {
    %c0_i32 = arith.constant 0 : i32
    return %arg0, %arg2 : i32, i32
  }
  func.func @transform_1(%arg0: i32, %arg1: i32, %arg2: i32) -> (i32, i32) {
    %c0_i32 = arith.constant 0 : i32
    return %arg2, %arg1 : i32, i32
  }
  func.func @transform_2(%arg0: i32, %arg1: i32, %arg2: i32) -> (i32, i32) {
    %c0_i32 = arith.constant 0 : i32
    %c0_i32_0 = arith.constant 0 : i32
    return %c0_i32, %arg1 : i32, i32
  }
  func.func @transform_3(%arg0: i32, %arg1: i32, %arg2: i32) -> (i32, i32) {
    %c0_i32 = arith.constant 0 : i32
    return %arg0, %arg1 : i32, i32
  }
}

module attributes {stable_mosaic.version = 11 : i64} {
  func.func @_conv_mm_kernel(%arg0: i32, %arg1: i32, %arg2: i32, %arg3: memref<16x160xbf16, #tpu.memory_space<vmem>>, %arg4: memref<160x128xbf16, #tpu.memory_space<vmem>>, %arg5: memref<1x128xf32, #tpu.memory_space<vmem>>, %arg6: memref<16x128xf32, #tpu.memory_space<vmem>>) attributes {dimension_semantics = [#tpu.dimension_semantics<parallel>, #tpu.dimension_semantics<parallel>, #tpu.dimension_semantics<arbitrary>], iteration_bounds = array<i64: 1, 1, 1>, scalar_prefetch = 0 : i64, scratch_operands = 0 : i64, tpu.core_type = #tpu.core_type<tc>, window_params = [{transform_indices = @transform_0, window_bounds = array<i64: 16, 160>}, {transform_indices = @transform_1, window_bounds = array<i64: 160, 128>}, {transform_indices = @transform_2, window_bounds = array<i64: 1, 128>}, {transform_indices = @transform_3, window_bounds = array<i64: 16, 128>}]} {
    %c0_i32 = arith.constant 0 : i32
    %0 = arith.cmpi eq, %arg2, %c0_i32 : i32
    %1 = arith.extui %0 : i1 to i32
    %c0_i32_0 = arith.constant 0 : i32
    %2 = arith.cmpi ne, %1, %c0_i32_0 : i32
    scf.if %2 {
      %cst_10 = arith.constant 0.000000e+00 : f32
      %12 = vector.broadcast %cst_10 : f32 to vector<16x128xf32>
      %c0_11 = arith.constant 0 : index
      %c0_12 = arith.constant 0 : index
      %13 = vector.load %arg6[%c0_11, %c0_12] : memref<16x128xf32, #tpu.memory_space<vmem>>, vector<16x128xf32>
      tpu.vector_store %arg6[%c0_11, %c0_12], %12 {strides = array<i32>} : memref<16x128xf32, #tpu.memory_space<vmem>>, vector<16x128xf32>,
    } else {
    }
    %c0 = arith.constant 0 : index
    %c0_1 = arith.constant 0 : index
    %3 = vector.load %arg6[%c0, %c0_1] : memref<16x128xf32, #tpu.memory_space<vmem>>, vector<16x128xf32>
    %c0_2 = arith.constant 0 : index
    %c0_3 = arith.constant 0 : index
    %4 = vector.load %arg3[%c0_2, %c0_3] : memref<16x160xbf16, #tpu.memory_space<vmem>>, vector<16x160xbf16>
    %c0_4 = arith.constant 0 : index
    %c0_5 = arith.constant 0 : index
    %5 = vector.load %arg4[%c0_4, %c0_5] : memref<160x128xbf16, #tpu.memory_space<vmem>>, vector<160x128xbf16>
    %cst = arith.constant dense<0.000000e+00> : vector<16x128xf32>
    %6 = tpu.matmul %4, %5, %cst {dimension_numbers = #tpu.dot_dimension_numbers<[1], [0], [0], [1], [0, 0, 1, 1], [], []>} : vector<16x160xbf16>, vector<160x128xbf16>, vector<16x128xf32> -> vector<16x128xf32>
    %7 = arith.addf %3, %6 : vector<16x128xf32>
    %c0_6 = arith.constant 0 : index
    %c0_7 = arith.constant 0 : index
    %8 = vector.load %arg6[%c0_6, %c0_7] : memref<16x128xf32, #tpu.memory_space<vmem>>, vector<16x128xf32>
    tpu.vector_store %arg6[%c0_6, %c0_7], %7 {strides = array<i32>} : memref<16x128xf32, #tpu.memory_space<vmem>>, vector<16x128xf32>,
    %c0_i32_8 = arith.constant 0 : i32
    %9 = arith.cmpi eq, %arg2, %c0_i32_8 : i32
    %10 = arith.extui %9 : i1 to i32
    %c0_i32_9 = arith.constant 0 : i32
    %11 = arith.cmpi ne, %10, %c0_i32_9 : i32
    scf.if %11 {
      %c0_10 = arith.constant 0 : index
      %c0_11 = arith.constant 0 : index
      %12 = vector.load %arg6[%c0_10, %c0_11] : memref<16x128xf32, #tpu.memory_space<vmem>>, vector<16x128xf32>
      %c0_12 = arith.constant 0 : index
      %c0_13 = arith.constant 0 : index
      %13 = vector.load %arg5[%c0_12, %c0_13] : memref<1x128xf32, #tpu.memory_space<vmem>>, vector<1x128xf32>
      %14 = vector.broadcast %13 : vector<1x128xf32> to vector<16x128xf32>
      %15 = arith.addf %12, %14 : vector<16x128xf32>
      %cst_14 = arith.constant 0.000000e+00 : f32
      %16 = vector.broadcast %cst_14 : f32 to vector<16x128xf32>
      %17 = arith.cmpf oge, %15, %16 : vector<16x128xf32>
      %cst_15 = arith.constant 0.00999999977 : f32
      %18 = vector.broadcast %cst_15 : f32 to vector<16x128xf32>
      %19 = arith.mulf %18, %15 : vector<16x128xf32>
      %20 = arith.select %17, %15, %19 : vector<16x128xi1>, vector<16x128xf32>
      %c0_16 = arith.constant 0 : index
      %c0_17 = arith.constant 0 : index
      %21 = vector.load %arg6[%c0_16, %c0_17] : memref<16x128xf32, #tpu.memory_space<vmem>>, vector<16x128xf32>
      tpu.vector_store %arg6[%c0_16, %c0_17], %20 {strides = array<i32>} : memref<16x128xf32, #tpu.memory_space<vmem>>, vector<16x128xf32>,
    } else {
    }
    return
  }
  func.func @transform_0(%arg0: i32, %arg1: i32, %arg2: i32) -> (i32, i32) {
    %c0_i32 = arith.constant 0 : i32
    return %arg0, %arg2 : i32, i32
  }
  func.func @transform_1(%arg0: i32, %arg1: i32, %arg2: i32) -> (i32, i32) {
    %c0_i32 = arith.constant 0 : i32
    return %arg2, %arg1 : i32, i32
  }
  func.func @transform_2(%arg0: i32, %arg1: i32, %arg2: i32) -> (i32, i32) {
    %c0_i32 = arith.constant 0 : i32
    %c0_i32_0 = arith.constant 0 : i32
    return %c0_i32, %arg1 : i32, i32
  }
  func.func @transform_3(%arg0: i32, %arg1: i32, %arg2: i32) -> (i32, i32) {
    %c0_i32 = arith.constant 0 : i32
    return %arg0, %arg1 : i32, i32
  }
}

module attributes {stable_mosaic.version = 11 : i64} {
  func.func @_conv_mm_kernel(%arg0: i32, %arg1: i32, %arg2: i32, %arg3: memref<8x640xbf16, #tpu.memory_space<vmem>>, %arg4: memref<640x512xbf16, #tpu.memory_space<vmem>>, %arg5: memref<1x512xf32, #tpu.memory_space<vmem>>, %arg6: memref<8x512xf32, #tpu.memory_space<vmem>>) attributes {dimension_semantics = [#tpu.dimension_semantics<parallel>, #tpu.dimension_semantics<parallel>, #tpu.dimension_semantics<arbitrary>], iteration_bounds = array<i64: 1, 1, 1>, scalar_prefetch = 0 : i64, scratch_operands = 0 : i64, tpu.core_type = #tpu.core_type<tc>, window_params = [{transform_indices = @transform_0, window_bounds = array<i64: 8, 640>}, {transform_indices = @transform_1, window_bounds = array<i64: 640, 512>}, {transform_indices = @transform_2, window_bounds = array<i64: 1, 512>}, {transform_indices = @transform_3, window_bounds = array<i64: 8, 512>}]} {
    %c0_i32 = arith.constant 0 : i32
    %0 = arith.cmpi eq, %arg2, %c0_i32 : i32
    %1 = arith.extui %0 : i1 to i32
    %c0_i32_0 = arith.constant 0 : i32
    %2 = arith.cmpi ne, %1, %c0_i32_0 : i32
    scf.if %2 {
      %cst_10 = arith.constant 0.000000e+00 : f32
      %12 = vector.broadcast %cst_10 : f32 to vector<8x512xf32>
      %c0_11 = arith.constant 0 : index
      %c0_12 = arith.constant 0 : index
      %13 = vector.load %arg6[%c0_11, %c0_12] : memref<8x512xf32, #tpu.memory_space<vmem>>, vector<8x512xf32>
      tpu.vector_store %arg6[%c0_11, %c0_12], %12 {strides = array<i32>} : memref<8x512xf32, #tpu.memory_space<vmem>>, vector<8x512xf32>,
    } else {
    }
    %c0 = arith.constant 0 : index
    %c0_1 = arith.constant 0 : index
    %3 = vector.load %arg6[%c0, %c0_1] : memref<8x512xf32, #tpu.memory_space<vmem>>, vector<8x512xf32>
    %c0_2 = arith.constant 0 : index
    %c0_3 = arith.constant 0 : index
    %4 = vector.load %arg3[%c0_2, %c0_3] : memref<8x640xbf16, #tpu.memory_space<vmem>>, vector<8x640xbf16>
    %c0_4 = arith.constant 0 : index
    %c0_5 = arith.constant 0 : index
    %5 = vector.load %arg4[%c0_4, %c0_5] : memref<640x512xbf16, #tpu.memory_space<vmem>>, vector<640x512xbf16>
    %cst = arith.constant dense<0.000000e+00> : vector<8x512xf32>
    %6 = tpu.matmul %4, %5, %cst {dimension_numbers = #tpu.dot_dimension_numbers<[1], [0], [0], [1], [0, 0, 1, 1], [], []>} : vector<8x640xbf16>, vector<640x512xbf16>, vector<8x512xf32> -> vector<8x512xf32>
    %7 = arith.addf %3, %6 : vector<8x512xf32>
    %c0_6 = arith.constant 0 : index
    %c0_7 = arith.constant 0 : index
    %8 = vector.load %arg6[%c0_6, %c0_7] : memref<8x512xf32, #tpu.memory_space<vmem>>, vector<8x512xf32>
    tpu.vector_store %arg6[%c0_6, %c0_7], %7 {strides = array<i32>} : memref<8x512xf32, #tpu.memory_space<vmem>>, vector<8x512xf32>,
    %c0_i32_8 = arith.constant 0 : i32
    %9 = arith.cmpi eq, %arg2, %c0_i32_8 : i32
    %10 = arith.extui %9 : i1 to i32
    %c0_i32_9 = arith.constant 0 : i32
    %11 = arith.cmpi ne, %10, %c0_i32_9 : i32
    scf.if %11 {
      %c0_10 = arith.constant 0 : index
      %c0_11 = arith.constant 0 : index
      %12 = vector.load %arg6[%c0_10, %c0_11] : memref<8x512xf32, #tpu.memory_space<vmem>>, vector<8x512xf32>
      %c0_12 = arith.constant 0 : index
      %c0_13 = arith.constant 0 : index
      %13 = vector.load %arg5[%c0_12, %c0_13] : memref<1x512xf32, #tpu.memory_space<vmem>>, vector<1x512xf32>
      %14 = vector.broadcast %13 : vector<1x512xf32> to vector<8x512xf32>
      %15 = arith.addf %12, %14 : vector<8x512xf32>
      %cst_14 = arith.constant 0.000000e+00 : f32
      %16 = vector.broadcast %cst_14 : f32 to vector<8x512xf32>
      %17 = arith.cmpf oge, %15, %16 : vector<8x512xf32>
      %cst_15 = arith.constant 0.00999999977 : f32
      %18 = vector.broadcast %cst_15 : f32 to vector<8x512xf32>
      %19 = arith.mulf %18, %15 : vector<8x512xf32>
      %20 = arith.select %17, %15, %19 : vector<8x512xi1>, vector<8x512xf32>
      %c0_16 = arith.constant 0 : index
      %c0_17 = arith.constant 0 : index
      %21 = vector.load %arg6[%c0_16, %c0_17] : memref<8x512xf32, #tpu.memory_space<vmem>>, vector<8x512xf32>
      tpu.vector_store %arg6[%c0_16, %c0_17], %20 {strides = array<i32>} : memref<8x512xf32, #tpu.memory_space<vmem>>, vector<8x512xf32>,
    } else {
    }
    return
  }
  func.func @transform_0(%arg0: i32, %arg1: i32, %arg2: i32) -> (i32, i32) {
    %c0_i32 = arith.constant 0 : i32
    return %arg0, %arg2 : i32, i32
  }
  func.func @transform_1(%arg0: i32, %arg1: i32, %arg2: i32) -> (i32, i32) {
    %c0_i32 = arith.constant 0 : i32
    return %arg2, %arg1 : i32, i32
  }
  func.func @transform_2(%arg0: i32, %arg1: i32, %arg2: i32) -> (i32, i32) {
    %c0_i32 = arith.constant 0 : i32
    %c0_i32_0 = arith.constant 0 : i32
    return %c0_i32, %arg1 : i32, i32
  }
  func.func @transform_3(%arg0: i32, %arg1: i32, %arg2: i32) -> (i32, i32) {
    %c0_i32 = arith.constant 0 : i32
    return %arg0, %arg1 : i32, i32
  }
}

module attributes {stable_mosaic.version = 11 : i64} {
  func.func @_conv_mm_kernel(%arg0: i32, %arg1: i32, %arg2: i32, %arg3: memref<8x640xbf16, #tpu.memory_space<vmem>>, %arg4: memref<640x512xbf16, #tpu.memory_space<vmem>>, %arg5: memref<1x512xf32, #tpu.memory_space<vmem>>, %arg6: memref<8x512xf32, #tpu.memory_space<vmem>>) attributes {dimension_semantics = [#tpu.dimension_semantics<parallel>, #tpu.dimension_semantics<parallel>, #tpu.dimension_semantics<arbitrary>], iteration_bounds = array<i64: 1, 2, 4>, scalar_prefetch = 0 : i64, scratch_operands = 0 : i64, tpu.core_type = #tpu.core_type<tc>, window_params = [{transform_indices = @transform_0, window_bounds = array<i64: 8, 640>}, {transform_indices = @transform_1, window_bounds = array<i64: 640, 512>}, {transform_indices = @transform_2, window_bounds = array<i64: 1, 512>}, {transform_indices = @transform_3, window_bounds = array<i64: 8, 512>}]} {
    %c0_i32 = arith.constant 0 : i32
    %0 = arith.cmpi eq, %arg2, %c0_i32 : i32
    %1 = arith.extui %0 : i1 to i32
    %c0_i32_0 = arith.constant 0 : i32
    %2 = arith.cmpi ne, %1, %c0_i32_0 : i32
    scf.if %2 {
      %cst_9 = arith.constant 0.000000e+00 : f32
      %12 = vector.broadcast %cst_9 : f32 to vector<8x512xf32>
      %c0_10 = arith.constant 0 : index
      %c0_11 = arith.constant 0 : index
      %13 = vector.load %arg6[%c0_10, %c0_11] : memref<8x512xf32, #tpu.memory_space<vmem>>, vector<8x512xf32>
      tpu.vector_store %arg6[%c0_10, %c0_11], %12 {strides = array<i32>} : memref<8x512xf32, #tpu.memory_space<vmem>>, vector<8x512xf32>,
    } else {
    }
    %c0 = arith.constant 0 : index
    %c0_1 = arith.constant 0 : index
    %3 = vector.load %arg6[%c0, %c0_1] : memref<8x512xf32, #tpu.memory_space<vmem>>, vector<8x512xf32>
    %c0_2 = arith.constant 0 : index
    %c0_3 = arith.constant 0 : index
    %4 = vector.load %arg3[%c0_2, %c0_3] : memref<8x640xbf16, #tpu.memory_space<vmem>>, vector<8x640xbf16>
    %c0_4 = arith.constant 0 : index
    %c0_5 = arith.constant 0 : index
    %5 = vector.load %arg4[%c0_4, %c0_5] : memref<640x512xbf16, #tpu.memory_space<vmem>>, vector<640x512xbf16>
    %cst = arith.constant dense<0.000000e+00> : vector<8x512xf32>
    %6 = tpu.matmul %4, %5, %cst {dimension_numbers = #tpu.dot_dimension_numbers<[1], [0], [0], [1], [0, 0, 1, 1], [], []>} : vector<8x640xbf16>, vector<640x512xbf16>, vector<8x512xf32> -> vector<8x512xf32>
    %7 = arith.addf %3, %6 : vector<8x512xf32>
    %c0_6 = arith.constant 0 : index
    %c0_7 = arith.constant 0 : index
    %8 = vector.load %arg6[%c0_6, %c0_7] : memref<8x512xf32, #tpu.memory_space<vmem>>, vector<8x512xf32>
    tpu.vector_store %arg6[%c0_6, %c0_7], %7 {strides = array<i32>} : memref<8x512xf32, #tpu.memory_space<vmem>>, vector<8x512xf32>,
    %c3_i32 = arith.constant 3 : i32
    %9 = arith.cmpi eq, %arg2, %c3_i32 : i32
    %10 = arith.extui %9 : i1 to i32
    %c0_i32_8 = arith.constant 0 : i32
    %11 = arith.cmpi ne, %10, %c0_i32_8 : i32
    scf.if %11 {
      %c0_9 = arith.constant 0 : index
      %c0_10 = arith.constant 0 : index
      %12 = vector.load %arg6[%c0_9, %c0_10] : memref<8x512xf32, #tpu.memory_space<vmem>>, vector<8x512xf32>
      %c0_11 = arith.constant 0 : index
      %c0_12 = arith.constant 0 : index
      %13 = vector.load %arg5[%c0_11, %c0_12] : memref<1x512xf32, #tpu.memory_space<vmem>>, vector<1x512xf32>
      %14 = vector.broadcast %13 : vector<1x512xf32> to vector<8x512xf32>
      %15 = arith.addf %12, %14 : vector<8x512xf32>
      %cst_13 = arith.constant 0.000000e+00 : f32
      %16 = vector.broadcast %cst_13 : f32 to vector<8x512xf32>
      %17 = arith.cmpf oge, %15, %16 : vector<8x512xf32>
      %cst_14 = arith.constant 0.00999999977 : f32
      %18 = vector.broadcast %cst_14 : f32 to vector<8x512xf32>
      %19 = arith.mulf %18, %15 : vector<8x512xf32>
      %20 = arith.select %17, %15, %19 : vector<8x512xi1>, vector<8x512xf32>
      %c0_15 = arith.constant 0 : index
      %c0_16 = arith.constant 0 : index
      %21 = vector.load %arg6[%c0_15, %c0_16] : memref<8x512xf32, #tpu.memory_space<vmem>>, vector<8x512xf32>
      tpu.vector_store %arg6[%c0_15, %c0_16], %20 {strides = array<i32>} : memref<8x512xf32, #tpu.memory_space<vmem>>, vector<8x512xf32>,
    } else {
    }
    return
  }
  func.func @transform_0(%arg0: i32, %arg1: i32, %arg2: i32) -> (i32, i32) {
    %c0_i32 = arith.constant 0 : i32
    return %arg0, %arg2 : i32, i32
  }
  func.func @transform_1(%arg0: i32, %arg1: i32, %arg2: i32) -> (i32, i32) {
    %c0_i32 = arith.constant 0 : i32
    return %arg2, %arg1 : i32, i32
  }
  func.func @transform_2(%arg0: i32, %arg1: i32, %arg2: i32) -> (i32, i32) {
    %c0_i32 = arith.constant 0 : i32
    %c0_i32_0 = arith.constant 0 : i32
    return %c0_i32, %arg1 : i32, i32
  }
  func.func @transform_3(%arg0: i32, %arg1: i32, %arg2: i32) -> (i32, i32) {
    %c0_i32 = arith.constant 0 : i32
    return %arg0, %arg1 : i32, i32
  }
}

module attributes {stable_mosaic.version = 11 : i64} {
  func.func @_conv_mm_kernel(%arg0: i32, %arg1: i32, %arg2: i32, %arg3: memref<8x1024xbf16, #tpu.memory_space<vmem>>, %arg4: memref<1024x512xbf16, #tpu.memory_space<vmem>>, %arg5: memref<1x512xf32, #tpu.memory_space<vmem>>, %arg6: memref<8x512xf32, #tpu.memory_space<vmem>>) attributes {dimension_semantics = [#tpu.dimension_semantics<parallel>, #tpu.dimension_semantics<parallel>, #tpu.dimension_semantics<arbitrary>], iteration_bounds = array<i64: 1, 2, 5>, scalar_prefetch = 0 : i64, scratch_operands = 0 : i64, tpu.core_type = #tpu.core_type<tc>, window_params = [{transform_indices = @transform_0, window_bounds = array<i64: 8, 1024>}, {transform_indices = @transform_1, window_bounds = array<i64: 1024, 512>}, {transform_indices = @transform_2, window_bounds = array<i64: 1, 512>}, {transform_indices = @transform_3, window_bounds = array<i64: 8, 512>}]} {
    %c0_i32 = arith.constant 0 : i32
    %0 = arith.cmpi eq, %arg2, %c0_i32 : i32
    %1 = arith.extui %0 : i1 to i32
    %c0_i32_0 = arith.constant 0 : i32
    %2 = arith.cmpi ne, %1, %c0_i32_0 : i32
    scf.if %2 {
      %cst_9 = arith.constant 0.000000e+00 : f32
      %12 = vector.broadcast %cst_9 : f32 to vector<8x512xf32>
      %c0_10 = arith.constant 0 : index
      %c0_11 = arith.constant 0 : index
      %13 = vector.load %arg6[%c0_10, %c0_11] : memref<8x512xf32, #tpu.memory_space<vmem>>, vector<8x512xf32>
      tpu.vector_store %arg6[%c0_10, %c0_11], %12 {strides = array<i32>} : memref<8x512xf32, #tpu.memory_space<vmem>>, vector<8x512xf32>,
    } else {
    }
    %c0 = arith.constant 0 : index
    %c0_1 = arith.constant 0 : index
    %3 = vector.load %arg6[%c0, %c0_1] : memref<8x512xf32, #tpu.memory_space<vmem>>, vector<8x512xf32>
    %c0_2 = arith.constant 0 : index
    %c0_3 = arith.constant 0 : index
    %4 = vector.load %arg3[%c0_2, %c0_3] : memref<8x1024xbf16, #tpu.memory_space<vmem>>, vector<8x1024xbf16>
    %c0_4 = arith.constant 0 : index
    %c0_5 = arith.constant 0 : index
    %5 = vector.load %arg4[%c0_4, %c0_5] : memref<1024x512xbf16, #tpu.memory_space<vmem>>, vector<1024x512xbf16>
    %cst = arith.constant dense<0.000000e+00> : vector<8x512xf32>
    %6 = tpu.matmul %4, %5, %cst {dimension_numbers = #tpu.dot_dimension_numbers<[1], [0], [0], [1], [0, 0, 1, 1], [], []>} : vector<8x1024xbf16>, vector<1024x512xbf16>, vector<8x512xf32> -> vector<8x512xf32>
    %7 = arith.addf %3, %6 : vector<8x512xf32>
    %c0_6 = arith.constant 0 : index
    %c0_7 = arith.constant 0 : index
    %8 = vector.load %arg6[%c0_6, %c0_7] : memref<8x512xf32, #tpu.memory_space<vmem>>, vector<8x512xf32>
    tpu.vector_store %arg6[%c0_6, %c0_7], %7 {strides = array<i32>} : memref<8x512xf32, #tpu.memory_space<vmem>>, vector<8x512xf32>,
    %c4_i32 = arith.constant 4 : i32
    %9 = arith.cmpi eq, %arg2, %c4_i32 : i32
    %10 = arith.extui %9 : i1 to i32
    %c0_i32_8 = arith.constant 0 : i32
    %11 = arith.cmpi ne, %10, %c0_i32_8 : i32
    scf.if %11 {
      %c0_9 = arith.constant 0 : index
      %c0_10 = arith.constant 0 : index
      %12 = vector.load %arg6[%c0_9, %c0_10] : memref<8x512xf32, #tpu.memory_space<vmem>>, vector<8x512xf32>
      %c0_11 = arith.constant 0 : index
      %c0_12 = arith.constant 0 : index
      %13 = vector.load %arg5[%c0_11, %c0_12] : memref<1x512xf32, #tpu.memory_space<vmem>>, vector<1x512xf32>
      %14 = vector.broadcast %13 : vector<1x512xf32> to vector<8x512xf32>
      %15 = arith.addf %12, %14 : vector<8x512xf32>
      %cst_13 = arith.constant 0.000000e+00 : f32
      %16 = vector.broadcast %cst_13 : f32 to vector<8x512xf32>
      %17 = arith.cmpf oge, %15, %16 : vector<8x512xf32>
      %cst_14 = arith.constant 0.00999999977 : f32
      %18 = vector.broadcast %cst_14 : f32 to vector<8x512xf32>
      %19 = arith.mulf %18, %15 : vector<8x512xf32>
      %20 = arith.select %17, %15, %19 : vector<8x512xi1>, vector<8x512xf32>
      %c0_15 = arith.constant 0 : index
      %c0_16 = arith.constant 0 : index
      %21 = vector.load %arg6[%c0_15, %c0_16] : memref<8x512xf32, #tpu.memory_space<vmem>>, vector<8x512xf32>
      tpu.vector_store %arg6[%c0_15, %c0_16], %20 {strides = array<i32>} : memref<8x512xf32, #tpu.memory_space<vmem>>, vector<8x512xf32>,
    } else {
    }
    return
  }
  func.func @transform_0(%arg0: i32, %arg1: i32, %arg2: i32) -> (i32, i32) {
    %c0_i32 = arith.constant 0 : i32
    return %arg0, %arg2 : i32, i32
  }
  func.func @transform_1(%arg0: i32, %arg1: i32, %arg2: i32) -> (i32, i32) {
    %c0_i32 = arith.constant 0 : i32
    return %arg2, %arg1 : i32, i32
  }
  func.func @transform_2(%arg0: i32, %arg1: i32, %arg2: i32) -> (i32, i32) {
    %c0_i32 = arith.constant 0 : i32
    %c0_i32_0 = arith.constant 0 : i32
    return %c0_i32, %arg1 : i32, i32
  }
  func.func @transform_3(%arg0: i32, %arg1: i32, %arg2: i32) -> (i32, i32) {
    %c0_i32 = arith.constant 0 : i32
    return %arg0, %arg1 : i32, i32
  }
}

module attributes {stable_mosaic.version = 11 : i64} {
  func.func @_conv_mm_kernel(%arg0: i32, %arg1: i32, %arg2: i32, %arg3: memref<8x1024xbf16, #tpu.memory_space<vmem>>, %arg4: memref<1024x1xbf16, #tpu.memory_space<vmem>>, %arg5: memref<1x1xf32, #tpu.memory_space<vmem>>, %arg6: memref<8x1xf32, #tpu.memory_space<vmem>>) attributes {dimension_semantics = [#tpu.dimension_semantics<parallel>, #tpu.dimension_semantics<parallel>, #tpu.dimension_semantics<arbitrary>], iteration_bounds = array<i64: 1, 1, 3>, scalar_prefetch = 0 : i64, scratch_operands = 0 : i64, tpu.core_type = #tpu.core_type<tc>, window_params = [{transform_indices = @transform_0, window_bounds = array<i64: 8, 1024>}, {transform_indices = @transform_1, window_bounds = array<i64: 1024, 1>}, {transform_indices = @transform_2, window_bounds = array<i64: 1, 1>}, {transform_indices = @transform_3, window_bounds = array<i64: 8, 1>}]} {
    %c0_i32 = arith.constant 0 : i32
    %0 = arith.cmpi eq, %arg2, %c0_i32 : i32
    %1 = arith.extui %0 : i1 to i32
    %c0_i32_0 = arith.constant 0 : i32
    %2 = arith.cmpi ne, %1, %c0_i32_0 : i32
    scf.if %2 {
      %cst_9 = arith.constant 0.000000e+00 : f32
      %12 = vector.broadcast %cst_9 : f32 to vector<8x1xf32>
      %c0_10 = arith.constant 0 : index
      %c0_11 = arith.constant 0 : index
      %13 = vector.load %arg6[%c0_10, %c0_11] : memref<8x1xf32, #tpu.memory_space<vmem>>, vector<8x1xf32>
      tpu.vector_store %arg6[%c0_10, %c0_11], %12 {strides = array<i32>} : memref<8x1xf32, #tpu.memory_space<vmem>>, vector<8x1xf32>,
    } else {
    }
    %c0 = arith.constant 0 : index
    %c0_1 = arith.constant 0 : index
    %3 = vector.load %arg6[%c0, %c0_1] : memref<8x1xf32, #tpu.memory_space<vmem>>, vector<8x1xf32>
    %c0_2 = arith.constant 0 : index
    %c0_3 = arith.constant 0 : index
    %4 = vector.load %arg3[%c0_2, %c0_3] : memref<8x1024xbf16, #tpu.memory_space<vmem>>, vector<8x1024xbf16>
    %c0_4 = arith.constant 0 : index
    %c0_5 = arith.constant 0 : index
    %5 = vector.load %arg4[%c0_4, %c0_5] : memref<1024x1xbf16, #tpu.memory_space<vmem>>, vector<1024x1xbf16>
    %cst = arith.constant dense<0.000000e+00> : vector<8x1xf32>
    %6 = tpu.matmul %4, %5, %cst {dimension_numbers = #tpu.dot_dimension_numbers<[1], [0], [0], [1], [0, 0, 1, 1], [], []>} : vector<8x1024xbf16>, vector<1024x1xbf16>, vector<8x1xf32> -> vector<8x1xf32>
    %7 = arith.addf %3, %6 : vector<8x1xf32>
    %c0_6 = arith.constant 0 : index
    %c0_7 = arith.constant 0 : index
    %8 = vector.load %arg6[%c0_6, %c0_7] : memref<8x1xf32, #tpu.memory_space<vmem>>, vector<8x1xf32>
    tpu.vector_store %arg6[%c0_6, %c0_7], %7 {strides = array<i32>} : memref<8x1xf32, #tpu.memory_space<vmem>>, vector<8x1xf32>,
    %c2_i32 = arith.constant 2 : i32
    %9 = arith.cmpi eq, %arg2, %c2_i32 : i32
    %10 = arith.extui %9 : i1 to i32
    %c0_i32_8 = arith.constant 0 : i32
    %11 = arith.cmpi ne, %10, %c0_i32_8 : i32
    scf.if %11 {
      %c0_9 = arith.constant 0 : index
      %c0_10 = arith.constant 0 : index
      %12 = vector.load %arg6[%c0_9, %c0_10] : memref<8x1xf32, #tpu.memory_space<vmem>>, vector<8x1xf32>
      %c0_11 = arith.constant 0 : index
      %c0_12 = arith.constant 0 : index
      %13 = vector.load %arg5[%c0_11, %c0_12] : memref<1x1xf32, #tpu.memory_space<vmem>>, vector<1x1xf32>
      %14 = vector.broadcast %13 : vector<1x1xf32> to vector<8x1xf32>
      %15 = arith.addf %12, %14 : vector<8x1xf32>
      %c0_13 = arith.constant 0 : index
      %c0_14 = arith.constant 0 : index
      %16 = vector.load %arg6[%c0_13, %c0_14] : memref<8x1xf32, #tpu.memory_space<vmem>>, vector<8x1xf32>
      tpu.vector_store %arg6[%c0_13, %c0_14], %15 {strides = array<i32>} : memref<8x1xf32, #tpu.memory_space<vmem>>, vector<8x1xf32>,
    } else {
    }
    return
  }
  func.func @transform_0(%arg0: i32, %arg1: i32, %arg2: i32) -> (i32, i32) {
    %c0_i32 = arith.constant 0 : i32
    return %arg0, %arg2 : i32, i32
  }
  func.func @transform_1(%arg0: i32, %arg1: i32, %arg2: i32) -> (i32, i32) {
    %c0_i32 = arith.constant 0 : i32
    return %arg2, %arg1 : i32, i32
  }
  func.func @transform_2(%arg0: i32, %arg1: i32, %arg2: i32) -> (i32, i32) {
    %c0_i32 = arith.constant 0 : i32
    %c0_i32_0 = arith.constant 0 : i32
    return %c0_i32, %arg1 : i32, i32
  }
  func.func @transform_3(%arg0: i32, %arg1: i32, %arg2: i32) -> (i32, i32) {
    %c0_i32 = arith.constant 0 : i32
    return %arg0, %arg1 : i32, i32
  }
}

</mosaic_0001>

<bundles_post_ra>
// kernel: period_discriminator_forward.6
= control target key start
LH: loop header
LB: loop body
LE: loop exit
PB: predicated region body
PF: predicated region fallthrough
CT: control target
= control target key end

     0   :  { %8 = vsyncpa [#allocation3], 0  ;;  %s178_s15 = smov [#allocation2]   ;;  %s285_s0 = inlined_call_operand.vmem [shape: bf16[32,5], index: 0, kind: input, shape index: {}]   ;;  %s286_s1 = inlined_call_operand.vmem [shape: bf16[5,32], index: 1, kind: input, shape index: {}]   ;;  %s287_s2 = inlined_call_operand.hbm [shape: f32[1,32], index: 2, kind: input, shape index: {}]   ;;  %s288_s3 = inlined_call_operand.vmem [shape: f32[32,32], index: 3, kind: output, shape index: {}]  }
   0x1   :  { %s18_s14 = sshll.u32 %s287_s2, 4  ;;  %s20_s16 = sshll.u32 %s178_s15, 4  ;;  %s19_s14 = int_to_ptr.hbm [resolvable:$true] %s18_s14  ;;  %s21_s16 = int_to_ptr.vmem [resolvable:$true] %s20_s16 }
   0x2   :  { %23 = dma.hbm_to_vmem [thread:$0]  %s19_s14, 16, %s21_s16, [#allocation3]  }
   0x3   :  { %176 = dma.done.wait [#allocation3], 16  }
   0x4   :  { %177 = vsyncadd [#allocation3], 4294967280  ;;  %vm64_vm0 = vcmask 1041408   ;;  %vm33_vm1 = vcmask 261120   ;;  %vm65_vm2 = vcmask 1042432   ;;  %v179_v0 = vmov 65535  }
   0x5   :  { %v66_v1 = vsel %vm64_vm0, 4294967295, %v179_v0  ;;  %v180_v2 = vmov 0.0   ;;  %v46_v4 = vld [vmem:[%s286_s1] sm:$0x7]  ;;  %v146_v7 = vld [vmem:[%s285_s0 + $0x8] sm:$0xff]  ;;  %vm57_vm3 = vcmask 39936  }
   0x6   :  { %34 = vst.msk [vmem:[%s288_s3] sm:$0xff] %vm33_vm1, %v180_v2  ;;  %v67_v3 = vsel %vm65_vm2, %v66_v1, 0  ;;  %v145_v6 = vld [vmem:[%s285_s0] sm:$0xff] }
   0x7   :  { %35 = vst.msk [vmem:[%s288_s3 + $0x8] sm:$0xff] %vm33_vm1, %v180_v2  ;;  %v69_v5 = vand.u32 %v67_v3, %v46_v4  ;;  %v151_v16 = vld [vmem:[#allocation2] ss:$0 sm:$0xff] }
   0x8   :  { %36 = vst.msk [vmem:[%s288_s3 + $0x10] sm:$0xff] %vm33_vm1, %v180_v2 }
   0x9   :  { %37 = vst.msk [vmem:[%s288_s3 + $0x18] sm:$0xff] %vm33_vm1, %v180_v2  ;;  %78 = vmatpush.bf16.msra.mxu0 %v69_v5  ;;  %147 = vmatpush.bf16.msra.mxu1 %v69_v5 }
   0xc   :  { %143 = vmatmul.msk.bf16.vlgmr.msra.gmra.mxu0 %vm57_vm3, %v145_v6  ;;  %144 = vmatmul.msk.bf16.vlgmr.msra.gmra.mxu1 %vm57_vm3, %v146_v7 }
   0xd   :  { %v38_v8 = vld [vmem:[%s288_s3] sm:$0xff] }
   0xe   :  { %v39_v14 = vld [vmem:[%s288_s3 + $0x8] sm:$0xff] }
   0xf   :  { %v40_v9 = vld [vmem:[%s288_s3 + $0x10] sm:$0xff] }
  0x10   :  { %v41_v15 = vld [vmem:[%s288_s3 + $0x18] sm:$0xff] }
  0x89   :  { %v80_v10 = vpop.f32.mrf.mxu0  ;;  %v85_v11 = vpop.f32.mrf.mxu1 }
  0x8a   :  { %v90_v12 = vadd.f32 %v80_v10, %v38_v8  ;;  %v92_v13 = vadd.f32 %v85_v11, %v40_v9 }
  0x8c   :  { %95 = vst.msk [vmem:[%s288_s3] sm:$0xff] %vm33_vm1, %v90_v12 }
  0x8d   :  { %97 = vst.msk [vmem:[%s288_s3 + $0x10] sm:$0xff] %vm33_vm1, %v92_v13 }
  0x91   :  { %v82_v17 = vpop.f32.mrf.mxu0  ;;  %v87_v18 = vpop.f32.mrf.mxu1 }
  0x92   :  { %v91_v19 = vadd.f32 %v82_v17, %v39_v14  ;;  %v93_v20 = vadd.f32 %v87_v18, %v41_v15 }
  0x93   :  { %v102_v21 = vld [vmem:[%s288_s3] sm:$0xff] }
  0x94   :  { %v110_v22 = vadd.f32 %v151_v16, %v102_v21  ;;  %v104_v23 = vld [vmem:[%s288_s3 + $0x10] sm:$0xff]  ;;  %96 = vst.msk [vmem:[%s288_s3 + $0x8] sm:$0xff] %vm33_vm1, %v91_v19 }
  0x95   :  { %v112_v24 = vadd.f32 %v151_v16, %v104_v23  ;;  %98 = vst.msk [vmem:[%s288_s3 + $0x18] sm:$0xff] %vm33_vm1, %v93_v20 }
  0x96   :  { %vm114_vm4 = vcmp.ge.f32.partialorder %v110_v22, 0.0  ;;  %v118_v25 = vmul.f32 0.01, %v110_v22 }
  0x97   :  { %vm116_vm5 = vcmp.ge.f32.partialorder %v112_v24, 0.0  ;;  %v120_v26 = vmul.f32 0.01, %v112_v24 }
  0x98   :  { %v122_v27 = vsel %vm114_vm4, %v110_v22, %v118_v25 }
  0x99   :  { %126 = vst.msk [vmem:[%s288_s3] sm:$0xff] %vm33_vm1, %v122_v27  ;;  %v124_v28 = vsel %vm116_vm5, %v112_v24, %v120_v26 }
  0x9a   :  { %128 = vst.msk [vmem:[%s288_s3 + $0x10] sm:$0xff] %vm33_vm1, %v124_v28 }
  0x9b   :  { %v103_v29 = vld [vmem:[%s288_s3 + $0x8] sm:$0xff] }
  0x9c   :  { %v111_v30 = vadd.f32 %v151_v16, %v103_v29  ;;  %v105_v31 = vld [vmem:[%s288_s3 + $0x18] sm:$0xff] }
  0x9d   :  { %v113_v32 = vadd.f32 %v151_v16, %v105_v31 }
  0x9e   :  { %vm115_vm6 = vcmp.ge.f32.partialorder %v111_v30, 0.0  ;;  %v119_v33 = vmul.f32 0.01, %v111_v30 }
  0x9f   :  { %vm117_vm7 = vcmp.ge.f32.partialorder %v113_v32, 0.0  ;;  %v121_v34 = vmul.f32 0.01, %v113_v32 }
  0xa0   :  { %v123_v35 = vsel %vm115_vm6, %v111_v30, %v119_v33 }
  0xa1   :  { %127 = vst.msk [vmem:[%s288_s3 + $0x8] sm:$0xff] %vm33_vm1, %v123_v35  ;;  %v125_v36 = vsel %vm117_vm7, %v113_v32, %v121_v34 }
  0xa2   :  { %129 = vst.msk [vmem:[%s288_s3 + $0x18] sm:$0xff] %vm33_vm1, %v125_v36 }
  0xa3   :  { %134 = vsyncpa [#allocation3], 1 }

// kernel: period_discriminator_forward.7
= control target key start
LH: loop header
LB: loop body
LE: loop exit
PB: predicated region body
PF: predicated region fallthrough
CT: control target
= control target key end

     0   :  { %8 = vsyncpa [#allocation3], 0  ;;  %s278_s15 = smov [#allocation2]   ;;  %s350_s0 = inlined_call_operand.vmem [shape: bf16[16,160], index: 0, kind: input, shape index: {}]   ;;  %s351_s1 = inlined_call_operand.vmem [shape: bf16[160,128], index: 1, kind: input, shape index: {}]   ;;  %s352_s2 = inlined_call_operand.hbm [shape: f32[1,128], index: 2, kind: input, shape index: {}]   ;;  %s353_s3 = inlined_call_operand.vmem [shape: f32[16,128], index: 3, kind: output, shape index: {}]  }
   0x1   :  { %s18_s14 = sshll.u32 %s352_s2, 4  ;;  %s20_s16 = sshll.u32 %s278_s15, 4  ;;  %s19_s14 = int_to_ptr.hbm [resolvable:$true] %s18_s14  ;;  %s21_s16 = int_to_ptr.vmem [resolvable:$true] %s20_s16 }
   0x2   :  { %23 = dma.hbm_to_vmem [thread:$0]  %s19_s14, 16, %s21_s16, [#allocation3]  }
   0x3   :  { %276 = dma.done.wait [#allocation3], 16  }
   0x4   :  { %277 = vsyncadd [#allocation3], 4294967280  ;;  %v246_v0 = vld [vmem:[%s351_s1 + $0x38] sm:$0xff]  ;;  %v248_v1 = vld [vmem:[%s351_s1 + $0x48] sm:$0xff]  ;;  %vm128_vm0 = vcmask 261120  }
   0x5   :  { %132 = vmatpush.bf16.msra.mxu0 %v246_v0  ;;  %v245_v2 = vld [vmem:[%s351_s1 + $0x30] sm:$0xff]  ;;  %152 = vmatpush.bf16.msra.mxu1 %v248_v1  ;;  %v247_v3 = vld [vmem:[%s351_s1 + $0x40] sm:$0xff]  ;;  %v192_v5 = vld [vmem:[%s350_s0 + $0x8] sm:$0xf0] }
   0x6   :  { %v237_v4 = vld [vmem:[%s350_s0 + $0x4] sm:$0xf]  ;;  %v244_v6 = vld [vmem:[%s351_s1 + $0x28] sm:$0xff]  ;;  %v242_v9 = vld [vmem:[%s351_s1 + $0x18] sm:$0xff] }
   0x7   :  { %v195_v7 = vor.u32 %v237_v4, %v192_v5  ;;  %v243_v8 = vld [vmem:[%s351_s1 + $0x20] sm:$0xff]  ;;  %v241_v10 = vld [vmem:[%s351_s1 + $0x10] sm:$0xff]  ;;  %v240_v11 = vld [vmem:[%s351_s1 + $0x8] sm:$0xff] }
   0x8   :  { %v239_v12 = vld [vmem:[%s351_s1] sm:$0xff]  ;;  %v238_v14 = vld [vmem:[%s350_s0 + $0x4] sm:$0xf0] }
   0x9   :  { %133 = vmatpush.bf16.msra.mxu0 %v245_v2  ;;  %153 = vmatpush.bf16.msra.mxu1 %v247_v3  ;;  %v190_v13 = vld [vmem:[%s350_s0] sm:$0xf] }
   0xa   :  { %v191_v15 = vor.u32 %v238_v14, %v190_v13  ;;  %v251_v19 = vld [vmem:[#allocation2] ss:$0 sm:$0xff] }
   0xc   :  { %236 = vmatmul.msk.bf16.vlgmr.msra.gmra.mxu1 %vm128_vm0, %v195_v7 }
   0xd   :  { %134 = vmatpush.bf16.msra.mxu0 %v244_v6 }
  0x11   :  { %135 = vmatpush.bf16.msra.mxu0 %v243_v8 }
  0x15   :  { %136 = vmatpush.bf16.msra.mxu0 %v242_v9 }
  0x19   :  { %137 = vmatpush.bf16.msra.mxu0 %v241_v10 }
  0x1d   :  { %138 = vmatpush.bf16.msra.mxu0 %v240_v11 }
  0x21   :  { %139 = vmatpush.bf16.msra.mxu0 %v239_v12 }
  0x24   :  { %140 = vmatmul.bf16.vlgmr.msra.gmra.mxu0 %v191_v15 }
  0x89   :  { %v155_v16 = vpop.f32.mrf.mxu1 }
  0x91   :  { %v157_v22 = vpop.f32.mrf.mxu1 }
  0xa1   :  { %v141_v17 = vpop.f32.mrf.mxu0 }
  0xa2   :  { %v156_v18 = vadd.f32 %v155_v16, %v141_v17 }
  0xa4   :  { %v173_v20 = vadd.f32 %v251_v19, %v156_v18 }
  0xa6   :  { %vm175_vm1 = vcmp.ge.f32.partialorder %v173_v20, 0.0  ;;  %v177_v21 = vmul.f32 0.01, %v173_v20 }
  0xa8   :  { %v179_v24 = vsel %vm175_vm1, %v173_v20, %v177_v21 }
  0xa9   :  { %v143_v23 = vpop.f32.mrf.mxu0  ;;  %181 = vst [vmem:[%s353_s3] sm:$0xff] %v179_v24 }
  0xaa   :  { %v158_v25 = vadd.f32 %v157_v22, %v143_v23 }
  0xac   :  { %v174_v26 = vadd.f32 %v251_v19, %v158_v25 }
  0xae   :  { %vm176_vm2 = vcmp.ge.f32.partialorder %v174_v26, 0.0  ;;  %v178_v27 = vmul.f32 0.01, %v174_v26 }
  0xb0   :  { %v180_v28 = vsel %vm176_vm2, %v174_v26, %v178_v27 }
  0xb1   :  { %182 = vst [vmem:[%s353_s3 + $0x8] sm:$0xff] %v180_v28 }
  0xb2   :  { %187 = vsyncpa [#allocation3], 1 }

// kernel: period_discriminator_forward.8
= control target key start
LH: loop header
LB: loop body
LE: loop exit
PB: predicated region body
PF: predicated region fallthrough
CT: control target
= control target key end

     0   :  { %8 = vsyncpa [#allocation3], 0  ;;  %s2159_s15 = smov [#allocation2]   ;;  %s3200_s0 = inlined_call_operand.vmem [shape: bf16[8,640], index: 0, kind: input, shape index: {}]   ;;  %s3201_s1 = inlined_call_operand.vmem [shape: bf16[640,512], index: 1, kind: input, shape index: {}]   ;;  %s3202_s2 = inlined_call_operand.hbm [shape: f32[1,512], index: 2, kind: input, shape index: {}]   ;;  %s3203_s3 = inlined_call_operand.vmem [shape: f32[8,512], index: 3, kind: output, shape index: {}]  }
   0x1   :  { %s18_s14 = sshll.u32 %s3202_s2, 4  ;;  %s20_s16 = sshll.u32 %s2159_s15, 4  ;;  %s19_s14 = int_to_ptr.hbm [resolvable:$true] %s18_s14  ;;  %s21_s16 = int_to_ptr.vmem [resolvable:$true] %s20_s16 }
   0x2   :  { %23 = dma.hbm_to_vmem [thread:$0]  %s19_s14, 64, %s21_s16, [#allocation3]  }
   0x3   :  { %2157 = dma.done.wait [#allocation3], 64  }
   0x4   :  { %2158 = vsyncadd [#allocation3], 4294967232  ;;  %v1445_v0 = vld [vmem:[%s3201_s1 + $0xe0] sm:$0xf]  ;;  %v2001_v1 = vld [vmem:[%s3201_s1 + $0xec] sm:$0xf0] }
   0x5   :  { %v1573_v2 = vld [vmem:[%s3201_s1 + $0x1e0] sm:$0xf]  ;;  %v1446_v3 = vor.u32 %v2001_v1, %v1445_v0  ;;  %v2033_v4 = vld [vmem:[%s3201_s1 + $0x1ec] sm:$0xf0] }
   0x6   :  { %v1701_v5 = vld [vmem:[%s3201_s1 + $0x2e0] sm:$0xf]  ;;  %v2065_v6 = vld [vmem:[%s3201_s1 + $0x2ec] sm:$0xf0]  ;;  %v1574_v7 = vor.u32 %v2033_v4, %v1573_v2 }
   0x7   :  { %v1702_v8 = vor.u32 %v2065_v6, %v1701_v5  ;;  %v1829_v9 = vld [vmem:[%s3201_s1 + $0x3e0] sm:$0xf]  ;;  %v2097_v10 = vld [vmem:[%s3201_s1 + $0x3ec] sm:$0xf0]  ;;  %1021 = vmatpush.bf16.msra.mxu0 %v1446_v3 }
   0x8   :  { %v1429_v11 = vld [vmem:[%s3201_s1 + $0xc0] sm:$0xf]  ;;  %v1830_v12 = vor.u32 %v2097_v10, %v1829_v9  ;;  %v1997_v13 = vld [vmem:[%s3201_s1 + $0xcc] sm:$0xf0]  ;;  %1034 = vmatpush.bf16.msra.mxu1 %v1574_v7 }
   0x9   :  { %v1557_v14 = vld [vmem:[%s3201_s1 + $0x1c0] sm:$0xf]  ;;  %v2029_v15 = vld [vmem:[%s3201_s1 + $0x1cc] sm:$0xf0]  ;;  %1047 = vmatpush.bf16.msra.mxu2 %v1702_v8  ;;  %v1430_v16 = vor.u32 %v1997_v13, %v1429_v11 }
   0xa   :  { %v1558_v17 = vor.u32 %v2029_v15, %v1557_v14  ;;  %v1685_v18 = vld [vmem:[%s3201_s1 + $0x2c0] sm:$0xf]  ;;  %v2061_v19 = vld [vmem:[%s3201_s1 + $0x2cc] sm:$0xf0]  ;;  %1060 = vmatpush.bf16.msra.mxu3 %v1830_v12 }
   0xb   :  { %v1813_v20 = vld [vmem:[%s3201_s1 + $0x3c0] sm:$0xf]  ;;  %v1686_v21 = vor.u32 %v2061_v19, %v1685_v18  ;;  %v2093_v22 = vld [vmem:[%s3201_s1 + $0x3cc] sm:$0xf0]  ;;  %1022 = vmatpush.bf16.msra.mxu0 %v1430_v16 }
   0xc   :  { %v1413_v23 = vld [vmem:[%s3201_s1 + $0xa0] sm:$0xf]  ;;  %v1993_v24 = vld [vmem:[%s3201_s1 + $0xac] sm:$0xf0]  ;;  %v1814_v25 = vor.u32 %v2093_v22, %v1813_v20  ;;  %1035 = vmatpush.bf16.msra.mxu1 %v1558_v17 }
   0xd   :  { %v1541_v26 = vld [vmem:[%s3201_s1 + $0x1a0] sm:$0xf]  ;;  %v2025_v27 = vld [vmem:[%s3201_s1 + $0x1ac] sm:$0xf0]  ;;  %v1414_v29 = vor.u32 %v1993_v24, %v1413_v23  ;;  %1048 = vmatpush.bf16.msra.mxu2 %v1686_v21 }
   0xe   :  { %v1669_v28 = vld [vmem:[%s3201_s1 + $0x2a0] sm:$0xf]  ;;  %v2057_v30 = vld [vmem:[%s3201_s1 + $0x2ac] sm:$0xf0]  ;;  %v1542_v33 = vor.u32 %v2025_v27, %v1541_v26  ;;  %1061 = vmatpush.bf16.msra.mxu3 %v1814_v25 }
   0xf   :  { %v1797_v31 = vld [vmem:[%s3201_s1 + $0x3a0] sm:$0xf]  ;;  %v2089_v32 = vld [vmem:[%s3201_s1 + $0x3ac] sm:$0xf0]  ;;  %v1670_v34 = vor.u32 %v2057_v30, %v1669_v28  ;;  %1023 = vmatpush.bf16.msra.mxu0 %v1414_v29  ;;  %v1999_v30 = vld [vmem:[%s3201_s1 + $0xe4] sm:$0xf] }
  0x10   :  { %v1397_v35 = vld [vmem:[%s3201_s1 + $0x80] sm:$0xf]  ;;  %v1989_v36 = vld [vmem:[%s3201_s1 + $0x8c] sm:$0xf0]  ;;  %v1798_v38 = vor.u32 %v2089_v32, %v1797_v31  ;;  %1036 = vmatpush.bf16.msra.mxu1 %v1542_v33  ;;  %v1447_v32 = vld [vmem:[%s3201_s1 + $0xf0] sm:$0xf0] }
  0x11   :  { %v1525_v37 = vld [vmem:[%s3201_s1 + $0x180] sm:$0xf]  ;;  %v2021_v39 = vld [vmem:[%s3201_s1 + $0x18c] sm:$0xf0]  ;;  %v1398_v44 = vor.u32 %v1989_v36, %v1397_v35  ;;  %1049 = vmatpush.bf16.msra.mxu2 %v1670_v34  ;;  %v2031_v33 = vld [vmem:[%s3201_s1 + $0x1e4] sm:$0xf] }
  0x12   :  { %v1653_v40 = vld [vmem:[%s3201_s1 + $0x280] sm:$0xf]  ;;  %v2053_v41 = vld [vmem:[%s3201_s1 + $0x28c] sm:$0xf0]  ;;  %v1526_v45 = vor.u32 %v2021_v39, %v1525_v37  ;;  %1062 = vmatpush.bf16.msra.mxu3 %v1798_v38  ;;  %v1575_v34 = vld [vmem:[%s3201_s1 + $0x1f0] sm:$0xf0] }
  0x13   :  { %v1781_v42 = vld [vmem:[%s3201_s1 + $0x380] sm:$0xf]  ;;  %v2085_v43 = vld [vmem:[%s3201_s1 + $0x38c] sm:$0xf0]  ;;  %v1654_v46 = vor.u32 %v2053_v41, %v1653_v40  ;;  %1024 = vmatpush.bf16.msra.mxu0 %v1398_v44  ;;  %v2063_v37 = vld [vmem:[%s3201_s1 + $0x2e4] sm:$0xf]  ;;  %v1450_v41 = vor.u32 %v1999_v30, %v1447_v32 }
  0x14   :  { %v1381_v47 = vld [vmem:[%s3201_s1 + $0x60] sm:$0xf]  ;;  %v1985_v48 = vld [vmem:[%s3201_s1 + $0x6c] sm:$0xf0]  ;;  %v1782_v50 = vor.u32 %v2085_v43, %v1781_v42  ;;  %1037 = vmatpush.bf16.msra.mxu1 %v1526_v45  ;;  %v1703_v38 = vld [vmem:[%s3201_s1 + $0x2f0] sm:$0xf0]  ;;  %v1578_v42 = vor.u32 %v2031_v33, %v1575_v34 }
  0x15   :  { %v1509_v49 = vld [vmem:[%s3201_s1 + $0x160] sm:$0xf]  ;;  %v2017_v51 = vld [vmem:[%s3201_s1 + $0x16c] sm:$0xf0]  ;;  %v1382_v56 = vor.u32 %v1985_v48, %v1381_v47  ;;  %1050 = vmatpush.bf16.msra.mxu2 %v1654_v46  ;;  %v1995_v45 = vld [vmem:[%s3201_s1 + $0xc4] sm:$0xf]  ;;  %v1706_v46 = vor.u32 %v2063_v37, %v1703_v38 }
  0x16   :  { %v1637_v52 = vld [vmem:[%s3201_s1 + $0x260] sm:$0xf]  ;;  %v2049_v53 = vld [vmem:[%s3201_s1 + $0x26c] sm:$0xf0]  ;;  %v1510_v57 = vor.u32 %v2017_v51, %v1509_v49  ;;  %1063 = vmatpush.bf16.msra.mxu3 %v1782_v50  ;;  %v1431_v47 = vld [vmem:[%s3201_s1 + $0xd0] sm:$0xf0] }
  0x17   :  { %v1765_v54 = vld [vmem:[%s3201_s1 + $0x360] sm:$0xf]  ;;  %v2081_v55 = vld [vmem:[%s3201_s1 + $0x36c] sm:$0xf0]  ;;  %v1638_v58 = vor.u32 %v2049_v53, %v1637_v52  ;;  %1025 = vmatpush.bf16.msra.mxu0 %v1382_v56  ;;  %v2027_v48 = vld [vmem:[%s3201_s1 + $0x1c4] sm:$0xf] }
  0x18   :  { %v1365_v59 = vld [vmem:[%s3201_s1 + $0x40] sm:$0xf]  ;;  %v1981_v60 = vld [vmem:[%s3201_s1 + $0x4c] sm:$0xf0]  ;;  %v1766_v62 = vor.u32 %v2081_v55, %v1765_v54  ;;  %1038 = vmatpush.bf16.msra.mxu1 %v1510_v57  ;;  %v1559_v49 = vld [vmem:[%s3201_s1 + $0x1d0] sm:$0xf0]  ;;  %v1434_v54 = vor.u32 %v1995_v45, %v1431_v47 }
  0x19   :  { %v1493_v61 = vld [vmem:[%s3201_s1 + $0x140] sm:$0xf]  ;;  %v2013_v63 = vld [vmem:[%s3201_s1 + $0x14c] sm:$0xf0]  ;;  %v1366_v4 = vor.u32 %v1981_v60, %v1365_v59  ;;  %1051 = vmatpush.bf16.msra.mxu2 %v1638_v58  ;;  %v2059_v50 = vld [vmem:[%s3201_s1 + $0x2c4] sm:$0xf]  ;;  %v1562_v55 = vor.u32 %v2027_v48, %v1559_v49 }
  0x1a   :  { %v1621_v0 = vld [vmem:[%s3201_s1 + $0x240] sm:$0xf]  ;;  %v2045_v1 = vld [vmem:[%s3201_s1 + $0x24c] sm:$0xf0]  ;;  %v1494_v5 = vor.u32 %v2013_v63, %v1493_v61  ;;  %1064 = vmatpush.bf16.msra.mxu3 %v1766_v62  ;;  %v1687_v51 = vld [vmem:[%s3201_s1 + $0x2d0] sm:$0xf0] }
  0x1b   :  { %v1749_v2 = vld [vmem:[%s3201_s1 + $0x340] sm:$0xf]  ;;  %v2077_v3 = vld [vmem:[%s3201_s1 + $0x34c] sm:$0xf0]  ;;  %v1622_v6 = vor.u32 %v2045_v1, %v1621_v0  ;;  %1026 = vmatpush.bf16.msra.mxu0 %v1366_v4  ;;  %v1991_v57 = vld [vmem:[%s3201_s1 + $0xa4] sm:$0xf]  ;;  %v1690_v59 = vor.u32 %v2059_v50, %v1687_v51 }
  0x1c   :  { %v1349_v7 = vld [vmem:[%s3201_s1 + $0x20] sm:$0xf]  ;;  %v1977_v8 = vld [vmem:[%s3201_s1 + $0x2c] sm:$0xf0]  ;;  %v1750_v10 = vor.u32 %v2077_v3, %v1749_v2  ;;  %1039 = vmatpush.bf16.msra.mxu1 %v1494_v5  ;;  %v1415_v60 = vld [vmem:[%s3201_s1 + $0xb0] sm:$0xf0] }
  0x1d   :  { %v1477_v9 = vld [vmem:[%s3201_s1 + $0x120] sm:$0xf]  ;;  %v2009_v11 = vld [vmem:[%s3201_s1 + $0x12c] sm:$0xf0]  ;;  %v1350_v16 = vor.u32 %v1977_v8, %v1349_v7  ;;  %1052 = vmatpush.bf16.msra.mxu2 %v1622_v6  ;;  %v2023_v61 = vld [vmem:[%s3201_s1 + $0x1a4] sm:$0xf]  ;;  %v1418_v7 = vor.u32 %v1991_v57, %v1415_v60 }
  0x1e   :  { %v1605_v12 = vld [vmem:[%s3201_s1 + $0x220] sm:$0xf]  ;;  %v2041_v13 = vld [vmem:[%s3201_s1 + $0x22c] sm:$0xf0]  ;;  %v1478_v19 = vor.u32 %v2009_v11, %v1477_v9  ;;  %1065 = vmatpush.bf16.msra.mxu3 %v1750_v10  ;;  %v1543_v62 = vld [vmem:[%s3201_s1 + $0x1b0] sm:$0xf0] }
  0x1f   :  { %v1733_v14 = vld [vmem:[%s3201_s1 + $0x320] sm:$0xf]  ;;  %v2073_v15 = vld [vmem:[%s3201_s1 + $0x32c] sm:$0xf0]  ;;  %v1606_v20 = vor.u32 %v2041_v13, %v1605_v12  ;;  %1027 = vmatpush.bf16.msra.mxu0 %v1350_v16  ;;  %v2055_v1 = vld [vmem:[%s3201_s1 + $0x2a4] sm:$0xf]  ;;  %v1546_v8 = vor.u32 %v2023_v61, %v1543_v62 }
  0x20   :  { %v1333_v17 = vld [vmem:[%s3201_s1] sm:$0xf]  ;;  %v1973_v18 = vld [vmem:[%s3201_s1 + $0xc] sm:$0xf0]  ;;  %v1734_v24 = vor.u32 %v2073_v15, %v1733_v14  ;;  %1040 = vmatpush.bf16.msra.mxu1 %v1478_v19  ;;  %v1671_v2 = vld [vmem:[%s3201_s1 + $0x2b0] sm:$0xf0] }
  0x21   :  { %v1461_v21 = vld [vmem:[%s3201_s1 + $0x100] sm:$0xf]  ;;  %v2005_v22 = vld [vmem:[%s3201_s1 + $0x10c] sm:$0xf0]  ;;  %v1334_v31 = vor.u32 %v1973_v18, %v1333_v17  ;;  %1053 = vmatpush.bf16.msra.mxu2 %v1606_v20  ;;  %v41_v5 = vld [vmem:[%s3200_s0 + $0x8] sm:$0xff]  ;;  %v1674_v14 = vor.u32 %v2055_v1, %v1671_v2 }
  0x22   :  { %v1589_v23 = vld [vmem:[%s3201_s1 + $0x200] sm:$0xf]  ;;  %v2037_v25 = vld [vmem:[%s3201_s1 + $0x20c] sm:$0xf0]  ;;  %v1462_v35 = vor.u32 %v2005_v22, %v1461_v21  ;;  %1066 = vmatpush.bf16.msra.mxu3 %v1734_v24  ;;  %v1987_v11 = vld [vmem:[%s3201_s1 + $0x84] sm:$0xf]  ;;  %v208_v12 = vunpack.c.l.b16 %v41_v5  ;;  %v209_v13 = vunpack.c.h.b16 %v41_v5 }
  0x23   :  { %v1717_v26 = vld [vmem:[%s3201_s1 + $0x300] sm:$0xf]  ;;  %v2069_v27 = vld [vmem:[%s3201_s1 + $0x30c] sm:$0xf0]  ;;  %v1590_v36 = vor.u32 %v2037_v25, %v1589_v23  ;;  %1028 = vmatpush.bf16.msra.mxu0 %v1334_v31  ;;  %v1399_v15 = vld [vmem:[%s3201_s1 + $0x90] sm:$0xf0] }
  0x24   :  { %v1957_v28 = vld [vmem:[%s3201_s1 + $0x4e0] sm:$0xf]  ;;  %v2129_v29 = vld [vmem:[%s3201_s1 + $0x4ec] sm:$0xf0]  ;;  %v1718_v39 = vor.u32 %v2069_v27, %v1717_v26  ;;  %1041 = vmatpush.bf16.msra.mxu1 %v1462_v35  ;;  %v2019_v16 = vld [vmem:[%s3201_s1 + $0x184] sm:$0xf]  ;;  %v2482_v20 = vpack.c.b16 %v208_v12, %v208_v12  ;;  %v2484_v21 = vpack.c.b16 %v209_v13, %v209_v13  ;;  %v1402_v23 = vor.u32 %v1987_v11, %v1399_v15 }
  0x25   :  { %v1958_v40 = vor.u32 %v2129_v29, %v1957_v28  ;;  %v1941_v43 = vld [vmem:[%s3201_s1 + $0x4c0] sm:$0xf]  ;;  %v2125_v44 = vld [vmem:[%s3201_s1 + $0x4cc] sm:$0xf0]  ;;  %1054 = vmatpush.bf16.msra.mxu2 %v1590_v36  ;;  %v1527_v17 = vld [vmem:[%s3201_s1 + $0x190] sm:$0xf0] }
  0x26   :  { %1067 = vmatpush.bf16.msra.mxu3 %v1718_v39  ;;  %v1942_v52 = vor.u32 %v2125_v44, %v1941_v43  ;;  %v1925_v53 = vld [vmem:[%s3201_s1 + $0x4a0] sm:$0xf]  ;;  %v2121_v56 = vld [vmem:[%s3201_s1 + $0x4ac] sm:$0xf0]  ;;  %v2051_v18 = vld [vmem:[%s3201_s1 + $0x284] sm:$0xf]  ;;  %v1530_v24 = vor.u32 %v2019_v16, %v1527_v17 }
  0x27   :  { %1073 = vmatpush.bf16.msrb.mxu0 %v1958_v40  ;;  %v40_v58 = vld [vmem:[%s3200_s0] sm:$0xff]  ;;  %v1926_v3 = vor.u32 %v2121_v56, %v1925_v53  ;;  %v2117_v10 = vld [vmem:[%s3201_s1 + $0x48c] sm:$0xf0]  ;;  %v1655_v19 = vld [vmem:[%s3201_s1 + $0x290] sm:$0xf0] }
  0x28   :  { %1086 = vmatpush.bf16.msrb.mxu1 %v1450_v41  ;;  %v206_v63 = vunpack.c.l.b16 %v40_v58  ;;  %v207_v0 = vunpack.c.h.b16 %v40_v58  ;;  %v1909_v9 = vld [vmem:[%s3201_s1 + $0x480] sm:$0xf]  ;;  %v2113_v26 = vld [vmem:[%s3201_s1 + $0x46c] sm:$0xf0]  ;;  %v1983_v27 = vld [vmem:[%s3201_s1 + $0x64] sm:$0xf]  ;;  %v1658_v28 = vor.u32 %v2051_v18, %v1655_v19  ;;  %1055 = vmatmul.bf16.vlgmr.msra.gmra.mxu2 %v2482_v20 }
  0x29   :  { %1099 = vmatpush.bf16.msrb.mxu2 %v1578_v42  ;;  %v1910_v22 = vor.u32 %v2117_v10, %v1909_v9  ;;  %v1893_v25 = vld [vmem:[%s3201_s1 + $0x460] sm:$0xf]  ;;  %v1383_v29 = vld [vmem:[%s3201_s1 + $0x70] sm:$0xf0]  ;;  %v2015_v30 = vld [vmem:[%s3201_s1 + $0x164] sm:$0xf]  ;;  %1068 = vmatmul.bf16.vlgmr.msra.gmra.mxu3 %v2484_v21 }
  0x2a   :  { %1112 = vmatpush.bf16.msrb.mxu3 %v1706_v46  ;;  %v2450_v4 = vpack.c.b16 %v206_v63, %v206_v63  ;;  %v2455_v6 = vpack.c.b16 %v207_v0, %v207_v0  ;;  %v1511_v31 = vld [vmem:[%s3201_s1 + $0x170] sm:$0xf0]  ;;  %v2047_v32 = vld [vmem:[%s3201_s1 + $0x264] sm:$0xf]  ;;  %v1894_v34 = vor.u32 %v2113_v26, %v1893_v25  ;;  %v1386_v35 = vor.u32 %v1983_v27, %v1383_v29  ;;  %v1877_v37 = vld [vmem:[%s3201_s1 + $0x440] sm:$0xf] }
  0x2b   :  { %1074 = vmatpush.bf16.msrb.mxu0 %v1942_v52  ;;  %v1639_v33 = vld [vmem:[%s3201_s1 + $0x270] sm:$0xf0]  ;;  %v1514_v36 = vor.u32 %v2015_v30, %v1511_v31  ;;  %v2109_v38 = vld [vmem:[%s3201_s1 + $0x44c] sm:$0xf0]  ;;  %v1979_v39 = vld [vmem:[%s3201_s1 + $0x44] sm:$0xf] }
  0x2c   :  { %1087 = vmatpush.bf16.msrb.mxu1 %v1434_v54  ;;  %1029 = vmatmul.bf16.vlgmr.msra.gmra.mxu0 %v2450_v4  ;;  %v1642_v40 = vor.u32 %v2047_v32, %v1639_v33  ;;  %v1367_v41 = vld [vmem:[%s3201_s1 + $0x50] sm:$0xf0]  ;;  %v2011_v42 = vld [vmem:[%s3201_s1 + $0x144] sm:$0xf]  ;;  %v1878_v46 = vor.u32 %v2109_v38, %v1877_v37  ;;  %v1861_v49 = vld [vmem:[%s3201_s1 + $0x420] sm:$0xf] }
  0x2d   :  { %1100 = vmatpush.bf16.msrb.mxu2 %v1562_v55  ;;  %1042 = vmatmul.bf16.vlgmr.msra.gmra.mxu1 %v2455_v6  ;;  %v1495_v43 = vld [vmem:[%s3201_s1 + $0x150] sm:$0xf0]  ;;  %v2043_v44 = vld [vmem:[%s3201_s1 + $0x244] sm:$0xf]  ;;  %v1370_v47 = vor.u32 %v1979_v39, %v1367_v41  ;;  %v2105_v50 = vld [vmem:[%s3201_s1 + $0x42c] sm:$0xf0] }
  0x2e   :  { %1113 = vmatpush.bf16.msrb.mxu3 %v1690_v59  ;;  %v1623_v45 = vld [vmem:[%s3201_s1 + $0x250] sm:$0xf0]  ;;  %v1498_v48 = vor.u32 %v2011_v42, %v1495_v43  ;;  %v1975_v51 = vld [vmem:[%s3201_s1 + $0x24] sm:$0xf]  ;;  %v1862_v58 = vor.u32 %v2105_v50, %v1861_v49  ;;  %v1845_v59 = vld [vmem:[%s3201_s1 + $0x400] sm:$0xf] }
  0x2f   :  { %1075 = vmatpush.bf16.msrb.mxu0 %v1926_v3  ;;  %v1626_v52 = vor.u32 %v2043_v44, %v1623_v45  ;;  %v1351_v53 = vld [vmem:[%s3201_s1 + $0x30] sm:$0xf0]  ;;  %v2007_v54 = vld [vmem:[%s3201_s1 + $0x124] sm:$0xf]  ;;  %v2101_v60 = vld [vmem:[%s3201_s1 + $0x40c] sm:$0xf0] }
  0x30   :  { %1088 = vmatpush.bf16.msrb.mxu1 %v1418_v7  ;;  %v1479_v55 = vld [vmem:[%s3201_s1 + $0x130] sm:$0xf0]  ;;  %v2039_v56 = vld [vmem:[%s3201_s1 + $0x224] sm:$0xf]  ;;  %v1354_v62 = vor.u32 %v1975_v51, %v1351_v53  ;;  %v42_v2 = vld [vmem:[%s3200_s0 + $0x10] sm:$0xf]  ;;  %v1846_v12 = vor.u32 %v2101_v60, %v1845_v59 }
  0x31   :  { %1101 = vmatpush.bf16.msrb.mxu2 %v1546_v8  ;;  %v1607_v57 = vld [vmem:[%s3201_s1 + $0x230] sm:$0xf0]  ;;  %v1971_v61 = vld [vmem:[%s3201_s1 + $0x4] sm:$0xf]  ;;  %v1482_v63 = vor.u32 %v2007_v54, %v1479_v55  ;;  %v2002_v15 = vld [vmem:[%s3201_s1 + $0xf4] sm:$0xf0]  ;;  %v210_v16 = vunpack.c.l.b16 %v42_v2 }
  0x32   :  { %1114 = vmatpush.bf16.msrb.mxu3 %v1674_v14  ;;  %v1335_v0 = vld [vmem:[%s3201_s1 + $0x10] sm:$0xf0]  ;;  %v2003_v1 = vld [vmem:[%s3201_s1 + $0x104] sm:$0xf]  ;;  %v1610_v3 = vor.u32 %v2039_v56, %v1607_v57  ;;  %v1453_v14 = vld [vmem:[%s3201_s1 + $0xe8] sm:$0xf] }
  0x33   :  { %1076 = vmatpush.bf16.msrb.mxu0 %v1910_v22  ;;  %v1463_v5 = vld [vmem:[%s3201_s1 + $0x110] sm:$0xf0]  ;;  %v2035_v7 = vld [vmem:[%s3201_s1 + $0x204] sm:$0xf]  ;;  %v1338_v17 = vor.u32 %v1971_v61, %v1335_v0  ;;  %v1581_v19 = vld [vmem:[%s3201_s1 + $0x1e8] sm:$0xf]  ;;  %v1454_v26 = vor.u32 %v2002_v15, %v1453_v14 }
  0x34   :  { %1089 = vmatpush.bf16.msrb.mxu1 %v1402_v23  ;;  %v1591_v8 = vld [vmem:[%s3201_s1 + $0x210] sm:$0xf0]  ;;  %v2095_v9 = vld [vmem:[%s3201_s1 + $0x3e4] sm:$0xf]  ;;  %v1466_v18 = vor.u32 %v2003_v1, %v1463_v5  ;;  %v2034_v22 = vld [vmem:[%s3201_s1 + $0x1f4] sm:$0xf0] }
  0x35   :  { %1102 = vmatpush.bf16.msrb.mxu2 %v1530_v24  ;;  %v1831_v10 = vld [vmem:[%s3201_s1 + $0x3f0] sm:$0xf0]  ;;  %v2127_v11 = vld [vmem:[%s3201_s1 + $0x4e4] sm:$0xf]  ;;  %v1594_v23 = vor.u32 %v2035_v7, %v1591_v8  ;;  %v1582_v30 = vor.u32 %v2034_v22, %v1581_v19  ;;  %v1437_v32 = vld [vmem:[%s3201_s1 + $0xc8] sm:$0xf] }
  0x36   :  { %1115 = vmatpush.bf16.msrb.mxu3 %v1658_v28  ;;  %v1959_v13 = vld [vmem:[%s3201_s1 + $0x4f0] sm:$0xf0]  ;;  %v1834_v24 = vor.u32 %v2095_v9, %v1831_v10  ;;  %v2091_v27 = vld [vmem:[%s3201_s1 + $0x3c4] sm:$0xf]  ;;  %v1998_v33 = vld [vmem:[%s3201_s1 + $0xd4] sm:$0xf0] }
  0x37   :  { %1077 = vmatpush.bf16.msrb.mxu0 %v1894_v34  ;;  %v1962_v25 = vor.u32 %v2127_v11, %v1959_v13  ;;  %v1815_v28 = vld [vmem:[%s3201_s1 + $0x3d0] sm:$0xf0]  ;;  %v2123_v29 = vld [vmem:[%s3201_s1 + $0x4c4] sm:$0xf]  ;;  %v2630_v34 = vpack.c.b16 %v210_v16, %v210_v16  ;;  %v1438_v39 = vor.u32 %v1998_v33, %v1437_v32  ;;  %v1421_v45 = vld [vmem:[%s3201_s1 + $0xa8] sm:$0xf] }
  0x38   :  { %1090 = vmatpush.bf16.msrb.mxu1 %v1386_v35  ;;  %v1943_v31 = vld [vmem:[%s3201_s1 + $0x4d0] sm:$0xf0]  ;;  %v1565_v35 = vld [vmem:[%s3201_s1 + $0x1c8] sm:$0xf]  ;;  %v1818_v37 = vor.u32 %v2091_v27, %v1815_v28  ;;  %v2119_v42 = vld [vmem:[%s3201_s1 + $0x4a4] sm:$0xf] }
  0x39   :  { %1103 = vmatpush.bf16.msrb.mxu2 %v1514_v36  ;;  %v2030_v36 = vld [vmem:[%s3201_s1 + $0x1d4] sm:$0xf0]  ;;  %v1946_v38 = vor.u32 %v2123_v29, %v1943_v31  ;;  %v1799_v41 = vld [vmem:[%s3201_s1 + $0x3b0] sm:$0xf0]  ;;  %v2115_v54 = vld [vmem:[%s3201_s1 + $0x484] sm:$0xf] }
  0x3a   :  { %1116 = vmatpush.bf16.msrb.mxu3 %v1642_v40  ;;  %v2087_v40 = vld [vmem:[%s3201_s1 + $0x3a4] sm:$0xf]  ;;  %v1566_v43 = vor.u32 %v2030_v36, %v1565_v35  ;;  %v1927_v44 = vld [vmem:[%s3201_s1 + $0x4b0] sm:$0xf0]  ;;  %v1405_v57 = vld [vmem:[%s3201_s1 + $0x88] sm:$0xf] }
  0x3b   :  { %1078 = vmatpush.bf16.msrb.mxu0 %v1878_v46  ;;  %v1994_v46 = vld [vmem:[%s3201_s1 + $0xb4] sm:$0xf0]  ;;  %v1802_v49 = vor.u32 %v2087_v40, %v1799_v41  ;;  %v1930_v50 = vor.u32 %v2119_v42, %v1927_v44  ;;  %v1783_v53 = vld [vmem:[%s3201_s1 + $0x390] sm:$0xf0]  ;;  %v1533_v59 = vld [vmem:[%s3201_s1 + $0x188] sm:$0xf] }
  0x3c   :  { %1091 = vmatpush.bf16.msrb.mxu1 %v1370_v47  ;;  %v1549_v47 = vld [vmem:[%s3201_s1 + $0x1a8] sm:$0xf]  ;;  %v1422_v51 = vor.u32 %v1994_v46, %v1421_v45  ;;  %v1911_v56 = vld [vmem:[%s3201_s1 + $0x490] sm:$0xf0]  ;;  %v2022_v60 = vld [vmem:[%s3201_s1 + $0x194] sm:$0xf0] }
  0x3d   :  { %1104 = vmatpush.bf16.msrb.mxu2 %v1498_v48  ;;  %v2026_v48 = vld [vmem:[%s3201_s1 + $0x1b4] sm:$0xf0]  ;;  %v2079_v0 = vld [vmem:[%s3201_s1 + $0x364] sm:$0xf]  ;;  %v1767_v1 = vld [vmem:[%s3201_s1 + $0x370] sm:$0xf0] }
  0x3e   :  { %1117 = vmatpush.bf16.msrb.mxu3 %v1626_v52  ;;  %v2083_v52 = vld [vmem:[%s3201_s1 + $0x384] sm:$0xf]  ;;  %v1550_v55 = vor.u32 %v2026_v48, %v1549_v47  ;;  %v1895_v5 = vld [vmem:[%s3201_s1 + $0x470] sm:$0xf0]  ;;  %v1389_v7 = vld [vmem:[%s3201_s1 + $0x68] sm:$0xf]  ;;  %v1770_v11 = vor.u32 %v2079_v0, %v1767_v1 }
  0x3f   :  { %1079 = vmatpush.bf16.msrb.mxu0 %v1862_v58  ;;  %v1990_v58 = vld [vmem:[%s3201_s1 + $0x94] sm:$0xf0]  ;;  %v1786_v61 = vor.u32 %v2083_v52, %v1783_v53  ;;  %v2111_v2 = vld [vmem:[%s3201_s1 + $0x464] sm:$0xf]  ;;  %v1517_v9 = vld [vmem:[%s3201_s1 + $0x168] sm:$0xf] }
  0x40   :  { %1092 = vmatpush.bf16.msrb.mxu1 %v1354_v62  ;;  %v1914_v62 = vor.u32 %v2115_v54, %v1911_v56  ;;  %v1986_v8 = vld [vmem:[%s3201_s1 + $0x74] sm:$0xf0]  ;;  %v2075_v14 = vld [vmem:[%s3201_s1 + $0x344] sm:$0xf]  ;;  %v1751_v15 = vld [vmem:[%s3201_s1 + $0x350] sm:$0xf0] }
  0x41   :  { %1105 = vmatpush.bf16.msrb.mxu2 %v1482_v63  ;;  %v1406_v63 = vor.u32 %v1990_v58, %v1405_v57  ;;  %v2018_v10 = vld [vmem:[%s3201_s1 + $0x174] sm:$0xf0]  ;;  %v1390_v13 = vor.u32 %v1986_v8, %v1389_v7  ;;  %v2107_v16 = vld [vmem:[%s3201_s1 + $0x444] sm:$0xf]  ;;  %v1373_v19 = vld [vmem:[%s3201_s1 + $0x48] sm:$0xf] }
  0x42   :  { %1118 = vmatpush.bf16.msrb.mxu3 %v1610_v3  ;;  %v1534_v3 = vor.u32 %v2022_v60, %v1533_v59  ;;  %v1982_v22 = vld [vmem:[%s3201_s1 + $0x54] sm:$0xf0]  ;;  %v2071_v28 = vld [vmem:[%s3201_s1 + $0x324] sm:$0xf]  ;;  %v1735_v29 = vld [vmem:[%s3201_s1 + $0x330] sm:$0xf0] }
  0x43   :  { %1080 = vmatpush.bf16.msrb.mxu0 %v1846_v12  ;;  %v1898_v12 = vor.u32 %v2111_v2, %v1895_v5  ;;  %v1374_v27 = vor.u32 %v1982_v22, %v1373_v19  ;;  %v1863_v32 = vld [vmem:[%s3201_s1 + $0x430] sm:$0xf0]  ;;  %v1357_v33 = vld [vmem:[%s3201_s1 + $0x28] sm:$0xf]  ;;  %v1978_v35 = vld [vmem:[%s3201_s1 + $0x34] sm:$0xf0] }
  0x44   :  { %1093 = vmatpush.bf16.msrb.mxu1 %v1338_v17  ;;  %v1518_v17 = vor.u32 %v2018_v10, %v1517_v9  ;;  %v1485_v36 = vld [vmem:[%s3201_s1 + $0x128] sm:$0xf]  ;;  %v1719_v40 = vld [vmem:[%s3201_s1 + $0x310] sm:$0xf0]  ;;  %v1358_v42 = vor.u32 %v1978_v35, %v1357_v33  ;;  %v1974_v47 = vld [vmem:[%s3201_s1 + $0x14] sm:$0xf0] }
  0x45   :  { %1106 = vmatpush.bf16.msrb.mxu2 %v1466_v18  ;;  %v1879_v18 = vld [vmem:[%s3201_s1 + $0x450] sm:$0xf0]  ;;  %v1341_v45 = vld [vmem:[%s3201_s1 + $0x8] sm:$0xf]  ;;  %v2098_v54 = vld [vmem:[%s3201_s1 + $0x3f4] sm:$0xf0] }
  0x46   :  { %1119 = vmatpush.bf16.msrb.mxu3 %v1594_v23  ;;  %1081 = vmatmul.bf16.vlgmr.msrb.gmra.mxu0 %v2630_v34  ;;  %v1501_v23 = vld [vmem:[%s3201_s1 + $0x148] sm:$0xf]  ;;  %v1847_v44 = vld [vmem:[%s3201_s1 + $0x410] sm:$0xf0]  ;;  %v2130_v56 = vld [vmem:[%s3201_s1 + $0x4f4] sm:$0xf0]  ;;  %v1342_v58 = vor.u32 %v1974_v47, %v1341_v45 }
  0x47   :  { %1125 = vmatpush.bf16.msra.mxu0 %v1834_v24  ;;  %1094 = vmatmul.bf16.vlgmr.msrb.gmra.mxu1 %v2450_v4  ;;  %v2014_v24 = vld [vmem:[%s3201_s1 + $0x154] sm:$0xf0]  ;;  %v1469_v48 = vld [vmem:[%s3201_s1 + $0x108] sm:$0xf]  ;;  %v2000_v59 = vld [vmem:[%s3201_s1 + $0xec] sm:$0xf] }
  0x48   :  { %1138 = vmatpush.bf16.msra.mxu1 %v1962_v25  ;;  %1107 = vmatmul.bf16.vlgmr.msrb.gmra.mxu2 %v2455_v6  ;;  %v1754_v25 = vor.u32 %v2075_v14, %v1751_v15  ;;  %v1502_v31 = vor.u32 %v2014_v24, %v1501_v23  ;;  %v1837_v52 = vld [vmem:[%s3201_s1 + $0x3e8] sm:$0xf]  ;;  %v1455_v60 = vld [vmem:[%s3201_s1 + $0xf8] sm:$0xf0]  ;;  %v2062_v2 = vld [vmem:[%s3201_s1 + $0x2d4] sm:$0xf0] }
  0x49   :  { %1151 = vmatpush.bf16.msra.mxu2 %v1454_v26  ;;  %1120 = vmatmul.bf16.vlgmr.msrb.gmra.mxu3 %v2482_v20  ;;  %v1882_v26 = vor.u32 %v2107_v16, %v1879_v18  ;;  %v1693_v1 = vld [vmem:[%s3201_s1 + $0x2c8] sm:$0xf]  ;;  %v1458_v5 = vor.u32 %v2000_v59, %v1455_v60  ;;  %v2094_v7 = vld [vmem:[%s3201_s1 + $0x3d4] sm:$0xf0]  ;;  %v1996_v10 = vld [vmem:[%s3201_s1 + $0xcc] sm:$0xf] }
  0x4a   :  { %1164 = vmatpush.bf16.msra.mxu3 %v1582_v30  ;;  %v2103_v30 = vld [vmem:[%s3201_s1 + $0x424] sm:$0xf]  ;;  %v1949_v8 = vld [vmem:[%s3201_s1 + $0x4c8] sm:$0xf]  ;;  %v2126_v9 = vld [vmem:[%s3201_s1 + $0x4d4] sm:$0xf0] }
  0x4b   :  { %1126 = vmatpush.bf16.msra.mxu0 %v1818_v37  ;;  %v2010_v37 = vld [vmem:[%s3201_s1 + $0x134] sm:$0xf0]  ;;  %v1866_v41 = vor.u32 %v2103_v30, %v1863_v32  ;;  %v1950_v14 = vor.u32 %v2126_v9, %v1949_v8  ;;  %v1677_v15 = vld [vmem:[%s3201_s1 + $0x2a8] sm:$0xf]  ;;  %v1992_v24 = vld [vmem:[%s3201_s1 + $0xac] sm:$0xf] }
  0x4c   :  { %1139 = vmatpush.bf16.msra.mxu1 %v1946_v38  ;;  %v1738_v38 = vor.u32 %v2071_v28, %v1735_v29  ;;  %v1486_v46 = vor.u32 %v2010_v37, %v1485_v36  ;;  %v2058_v16 = vld [vmem:[%s3201_s1 + $0x2b4] sm:$0xf0]  ;;  %v1933_v22 = vld [vmem:[%s3201_s1 + $0x4a8] sm:$0xf]  ;;  %v1988_v37 = vld [vmem:[%s3201_s1 + $0x8c] sm:$0xf] }
  0x4d   :  { %1152 = vmatpush.bf16.msra.mxu2 %v1438_v39  ;;  %v2067_v39 = vld [vmem:[%s3201_s1 + $0x304] sm:$0xf]  ;;  %v2090_v19 = vld [vmem:[%s3201_s1 + $0x3b4] sm:$0xf0]  ;;  %v1661_v29 = vld [vmem:[%s3201_s1 + $0x288] sm:$0xf] }
  0x4e   :  { %1165 = vmatpush.bf16.msra.mxu3 %v1566_v43  ;;  %v2099_v43 = vld [vmem:[%s3201_s1 + $0x404] sm:$0xf]  ;;  %v1722_v53 = vor.u32 %v2067_v39, %v1719_v40  ;;  %v2122_v23 = vld [vmem:[%s3201_s1 + $0x4b4] sm:$0xf0]  ;;  %v1917_v35 = vld [vmem:[%s3201_s1 + $0x488] sm:$0xf] }
  0x4f   :  { %1127 = vmatpush.bf16.msra.mxu0 %v1802_v49  ;;  %v2006_v49 = vld [vmem:[%s3201_s1 + $0x114] sm:$0xf0]  ;;  %v1850_v57 = vor.u32 %v2099_v43, %v1847_v44  ;;  %v1934_v28 = vor.u32 %v2122_v23, %v1933_v22  ;;  %v1773_v44 = vld [vmem:[%s3201_s1 + $0x368] sm:$0xf] }
  0x50   :  { %1140 = vmatpush.bf16.msra.mxu1 %v1930_v50  ;;  %v1709_v50 = vld [vmem:[%s3201_s1 + $0x2e8] sm:$0xf]  ;;  %v2054_v30 = vld [vmem:[%s3201_s1 + $0x294] sm:$0xf0] }
  0x51   :  { %1153 = vmatpush.bf16.msra.mxu2 %v1422_v51  ;;  %v2066_v51 = vld [vmem:[%s3201_s1 + $0x2f4] sm:$0xf0]  ;;  %v1662_v39 = vor.u32 %v2054_v30, %v1661_v29  ;;  %v1901_v47 = vld [vmem:[%s3201_s1 + $0x468] sm:$0xf]  ;;  %v2064_v29 = vld [vmem:[%s3201_s1 + $0x2ec] sm:$0xf] }
  0x52   :  { %1166 = vmatpush.bf16.msra.mxu3 %v1550_v55  ;;  %v1965_v55 = vld [vmem:[%s3201_s1 + $0x4e8] sm:$0xf]  ;;  %v2086_v33 = vld [vmem:[%s3201_s1 + $0x394] sm:$0xf0] }
  0x53   :  { %1128 = vmatpush.bf16.msra.mxu0 %v1786_v61  ;;  %v1470_v61 = vor.u32 %v2006_v49, %v1469_v48  ;;  %v1966_v0 = vor.u32 %v2130_v56, %v1965_v55  ;;  %v2118_v36 = vld [vmem:[%s3201_s1 + $0x494] sm:$0xf0]  ;;  %v1984_v49 = vld [vmem:[%s3201_s1 + $0x6c] sm:$0xf]  ;;  %v1757_v56 = vld [vmem:[%s3201_s1 + $0x348] sm:$0xf] }
  0x54   :  { %1141 = vmatpush.bf16.msra.mxu1 %v1914_v62  ;;  %v1710_v62 = vor.u32 %v2066_v51, %v1709_v50  ;;  %v2050_v43 = vld [vmem:[%s3201_s1 + $0x274] sm:$0xf0]  ;;  %v1391_v50 = vld [vmem:[%s3201_s1 + $0x78] sm:$0xf0]  ;;  %v1885_v59 = vld [vmem:[%s3201_s1 + $0x448] sm:$0xf] }
  0x55   :  { %1154 = vmatpush.bf16.msra.mxu2 %v1406_v63  ;;  %v1838_v63 = vor.u32 %v2098_v54, %v1837_v52  ;;  %v2114_v48 = vld [vmem:[%s3201_s1 + $0x474] sm:$0xf0]  ;;  %v1629_v54 = vld [vmem:[%s3201_s1 + $0x248] sm:$0xf] }
  0x56   :  { %1167 = vmatpush.bf16.msra.mxu3 %v1534_v3  ;;  %v1821_v3 = vld [vmem:[%s3201_s1 + $0x3c8] sm:$0xf]  ;;  %v2046_v55 = vld [vmem:[%s3201_s1 + $0x254] sm:$0xf0] }
  0x57   :  { %1129 = vmatpush.bf16.msra.mxu0 %v1770_v11  ;;  %v1439_v11 = vld [vmem:[%s3201_s1 + $0xd8] sm:$0xf0]  ;;  %v2110_v60 = vld [vmem:[%s3201_s1 + $0x454] sm:$0xf0]  ;;  %v1869_v9 = vld [vmem:[%s3201_s1 + $0x428] sm:$0xf] }
  0x58   :  { %1142 = vmatpush.bf16.msra.mxu1 %v1898_v12  ;;  %v1694_v12 = vor.u32 %v2062_v2, %v1693_v1  ;;  %v1442_v18 = vor.u32 %v1996_v10, %v1439_v11  ;;  %v1886_v1 = vor.u32 %v2110_v60, %v1885_v59  ;;  %v1613_v2 = vld [vmem:[%s3201_s1 + $0x228] sm:$0xf]  ;;  %v2074_v8 = vld [vmem:[%s3201_s1 + $0x334] sm:$0xf0]  ;;  %v1976_v11 = vld [vmem:[%s3201_s1 + $0x2c] sm:$0xf] }
  0x59   :  { %1155 = vmatpush.bf16.msra.mxu2 %v1390_v13  ;;  %v1822_v13 = vor.u32 %v2094_v7, %v1821_v3  ;;  %v2042_v3 = vld [vmem:[%s3201_s1 + $0x234] sm:$0xf0]  ;;  %v1853_v22 = vld [vmem:[%s3201_s1 + $0x408] sm:$0xf]  ;;  %v1679_v59 = vld [vmem:[%s3201_s1 + $0x2b8] sm:$0xf0] }
  0x5a   :  { %1168 = vmatpush.bf16.msra.mxu3 %v1518_v17  ;;  %v1805_v17 = vld [vmem:[%s3201_s1 + $0x3a8] sm:$0xf]  ;;  %v2106_v10 = vld [vmem:[%s3201_s1 + $0x434] sm:$0xf0]  ;;  %v2088_v60 = vld [vmem:[%s3201_s1 + $0x3ac] sm:$0xf] }
  0x5b   :  { %1130 = vmatpush.bf16.msra.mxu0 %v1754_v25  ;;  %v1423_v25 = vld [vmem:[%s3201_s1 + $0xb8] sm:$0xf0] }
  0x5c   :  { %1143 = vmatpush.bf16.msra.mxu1 %v1882_v26  ;;  %v1678_v26 = vor.u32 %v2058_v16, %v1677_v15  ;;  %v1426_v32 = vor.u32 %v1992_v24, %v1423_v25  ;;  %v2038_v15 = vld [vmem:[%s3201_s1 + $0x214] sm:$0xf0]  ;;  %v1972_v25 = vld [vmem:[%s3201_s1 + $0xc] sm:$0xf] }
  0x5d   :  { %1156 = vmatpush.bf16.msra.mxu2 %v1374_v27  ;;  %v1806_v27 = vor.u32 %v2090_v19, %v1805_v17  ;;  %v1870_v17 = vor.u32 %v2106_v10, %v1869_v9  ;;  %v2070_v19 = vld [vmem:[%s3201_s1 + $0x314] sm:$0xf0]  ;;  %v2084_v9 = vld [vmem:[%s3201_s1 + $0x38c] sm:$0xf]  ;;  %v1791_v10 = vld [vmem:[%s3201_s1 + $0x398] sm:$0xf0] }
  0x5e   :  { %1169 = vmatpush.bf16.msra.mxu3 %v1502_v31  ;;  %v1789_v31 = vld [vmem:[%s3201_s1 + $0x388] sm:$0xf]  ;;  %v2102_v24 = vld [vmem:[%s3201_s1 + $0x414] sm:$0xf0] }
  0x5f   :  { %1131 = vmatpush.bf16.msra.mxu0 %v1738_v38  ;;  %v1407_v38 = vld [vmem:[%s3201_s1 + $0x98] sm:$0xf0]  ;;  %v1790_v40 = vor.u32 %v2086_v33, %v1789_v31 }
  0x60   :  { %1144 = vmatpush.bf16.msra.mxu1 %v1866_v41  ;;  %v1918_v41 = vor.u32 %v2118_v36, %v1917_v35  ;;  %v1410_v45 = vor.u32 %v1988_v37, %v1407_v38  ;;  %v1711_v31 = vld [vmem:[%s3201_s1 + $0x2f8] sm:$0xf0]  ;;  %v1854_v36 = vor.u32 %v2102_v24, %v1853_v22  ;;  %v2128_v37 = vld [vmem:[%s3201_s1 + $0x4ec] sm:$0xf] }
  0x61   :  { %1157 = vmatpush.bf16.msra.mxu2 %v1358_v42  ;;  %v1645_v42 = vld [vmem:[%s3201_s1 + $0x268] sm:$0xf]  ;;  %v1839_v33 = vld [vmem:[%s3201_s1 + $0x3f8] sm:$0xf0] }
  0x62   :  { %1170 = vmatpush.bf16.msra.mxu3 %v1486_v46  ;;  %v2082_v46 = vld [vmem:[%s3201_s1 + $0x374] sm:$0xf0]  ;;  %v1646_v51 = vor.u32 %v2050_v43, %v1645_v42  ;;  %v1967_v38 = vld [vmem:[%s3201_s1 + $0x4f8] sm:$0xf0]  ;;  %v2028_v43 = vld [vmem:[%s3201_s1 + $0x1cc] sm:$0xf] }
  0x63   :  { %1132 = vmatpush.bf16.msra.mxu0 %v1722_v53  ;;  %v1774_v52 = vor.u32 %v2082_v46, %v1773_v44  ;;  %v1902_v53 = vor.u32 %v2114_v48, %v1901_v47  ;;  %v1567_v44 = vld [vmem:[%s3201_s1 + $0x1d8] sm:$0xf0]  ;;  %v1970_v46 = vor.u32 %v2128_v37, %v1967_v38  ;;  %v2092_v48 = vld [vmem:[%s3201_s1 + $0x3cc] sm:$0xf] }
  0x64   :  { %1145 = vmatpush.bf16.msra.mxu1 %v1850_v57  ;;  %v1394_v57 = vor.u32 %v1984_v49, %v1391_v50  ;;  %v1695_v47 = vld [vmem:[%s3201_s1 + $0x2d8] sm:$0xf0]  ;;  %v2124_v50 = vld [vmem:[%s3201_s1 + $0x4cc] sm:$0xf] }
  0x65   :  { %1158 = vmatpush.bf16.msra.mxu2 %v1342_v58  ;;  %v2078_v58 = vld [vmem:[%s3201_s1 + $0x354] sm:$0xf0]  ;;  %v1823_v49 = vld [vmem:[%s3201_s1 + $0x3d8] sm:$0xf0]  ;;  %v2108_v38 = vld [vmem:[%s3201_s1 + $0x44c] sm:$0xf] }
  0x66   :  { %1171 = vmatpush.bf16.msra.mxu3 %v1470_v61  ;;  %1133 = vmatmul.bf16.vlgmr.msra.gmra.mxu0 %v2484_v21  ;;  %v1980_v61 = vld [vmem:[%s3201_s1 + $0x4c] sm:$0xf]  ;;  %v1647_v22 = vld [vmem:[%s3201_s1 + $0x278] sm:$0xf0] }
  0x67   :  { %1177 = vmatpush.bf16.msrb.mxu0 %v1710_v62  ;;  %1146 = vmatmul.bf16.vlgmr.msra.gmra.mxu1 %v2630_v34  ;;  %v1375_v62 = vld [vmem:[%s3201_s1 + $0x58] sm:$0xf0] }
  0x68   :  { %1190 = vmatpush.bf16.msrb.mxu1 %v1838_v63  ;;  %1159 = vmatmul.bf16.vlgmr.msra.gmra.mxu2 %v2450_v4  ;;  %v1630_v63 = vor.u32 %v2046_v55, %v1629_v54  ;;  %v1378_v7 = vor.u32 %v1980_v61, %v1375_v62  ;;  %v1826_v54 = vor.u32 %v2092_v48, %v1823_v49  ;;  %v2024_v55 = vld [vmem:[%s3201_s1 + $0x1ac] sm:$0xf]  ;;  %v1807_v61 = vld [vmem:[%s3201_s1 + $0x3b8] sm:$0xf0] }
  0x69   :  { %1203 = vmatpush.bf16.msrb.mxu2 %v1966_v0  ;;  %1172 = vmatmul.bf16.vlgmr.msra.gmra.mxu3 %v2455_v6  ;;  %v1758_v0 = vor.u32 %v2078_v58, %v1757_v56  ;;  %v1551_v56 = vld [vmem:[%s3201_s1 + $0x1b8] sm:$0xf0]  ;;  %v2120_v62 = vld [vmem:[%s3201_s1 + $0x4ac] sm:$0xf] }
  0x6a   :  { %1216 = vmatpush.bf16.msrb.mxu3 %v1458_v5  ;;  %v1741_v5 = vld [vmem:[%s3201_s1 + $0x328] sm:$0xf]  ;;  %v1775_v24 = vld [vmem:[%s3201_s1 + $0x378] sm:$0xf0]  ;;  %v2072_v48 = vld [vmem:[%s3201_s1 + $0x32c] sm:$0xf] }
  0x6b   :  { %1178 = vmatpush.bf16.msrb.mxu0 %v1694_v12  ;;  %v1359_v12 = vld [vmem:[%s3201_s1 + $0x38] sm:$0xf0]  ;;  %v1742_v16 = vor.u32 %v2074_v8, %v1741_v5 }
  0x6c   :  { %1191 = vmatpush.bf16.msrb.mxu1 %v1822_v13  ;;  %v1614_v13 = vor.u32 %v2042_v3, %v1613_v2  ;;  %v1362_v23 = vor.u32 %v1976_v11, %v1359_v12  ;;  %v1810_v2 = vor.u32 %v2088_v60, %v1807_v61  ;;  %v2020_v3 = vld [vmem:[%s3201_s1 + $0x18c] sm:$0xf]  ;;  %v1535_v5 = vld [vmem:[%s3201_s1 + $0x198] sm:$0xf0] }
  0x6d   :  { %1204 = vmatpush.bf16.msrb.mxu2 %v1950_v14  ;;  %v1597_v14 = vld [vmem:[%s3201_s1 + $0x208] sm:$0xf]  ;;  %v2116_v11 = vld [vmem:[%s3201_s1 + $0x48c] sm:$0xf]  ;;  %v1919_v12 = vld [vmem:[%s3201_s1 + $0x498] sm:$0xf0] }
  0x6e   :  { %1217 = vmatpush.bf16.msrb.mxu3 %v1442_v18  ;;  %v1725_v18 = vld [vmem:[%s3201_s1 + $0x308] sm:$0xf]  ;;  %v1598_v30 = vor.u32 %v2038_v15, %v1597_v14  ;;  %v1794_v15 = vor.u32 %v2084_v9, %v1791_v10  ;;  %v1759_v37 = vld [vmem:[%s3201_s1 + $0x358] sm:$0xf0]  ;;  %v2068_v60 = vld [vmem:[%s3201_s1 + $0x30c] sm:$0xf] }
  0x6f   :  { %1179 = vmatpush.bf16.msrb.mxu0 %v1678_v26  ;;  %v1343_v26 = vld [vmem:[%s3201_s1 + $0x18] sm:$0xf0]  ;;  %v1726_v35 = vor.u32 %v2070_v19, %v1725_v18  ;;  %v2048_v18 = vld [vmem:[%s3201_s1 + $0x26c] sm:$0xf]  ;;  %v1922_v19 = vor.u32 %v2116_v11, %v1919_v12 }
  0x70   :  { %1192 = vmatpush.bf16.msrb.mxu1 %v1806_v27  ;;  %v2032_v27 = vld [vmem:[%s3201_s1 + $0x1ec] sm:$0xf]  ;;  %v1743_v49 = vld [vmem:[%s3201_s1 + $0x338] sm:$0xf0] }
  0x71   :  { %1205 = vmatpush.bf16.msrb.mxu2 %v1934_v28  ;;  %v1583_v28 = vld [vmem:[%s3201_s1 + $0x1f8] sm:$0xf0] }
  0x72   :  { %1218 = vmatpush.bf16.msrb.mxu3 %v1426_v32  ;;  %v2096_v32 = vld [vmem:[%s3201_s1 + $0x3ec] sm:$0xf]  ;;  %v1727_v61 = vld [vmem:[%s3201_s1 + $0x318] sm:$0xf0] }
  0x73   :  { %1180 = vmatpush.bf16.msrb.mxu0 %v1662_v39  ;;  %v1346_v39 = vor.u32 %v1972_v25, %v1343_v26  ;;  %v1842_v42 = vor.u32 %v2096_v32, %v1839_v33  ;;  %v2112_v25 = vld [vmem:[%s3201_s1 + $0x46c] sm:$0xf]  ;;  %v1903_v26 = vld [vmem:[%s3201_s1 + $0x478] sm:$0xf0] }
  0x74   :  { %1193 = vmatpush.bf16.msrb.mxu1 %v1790_v40  ;;  %v1586_v40 = vor.u32 %v2032_v27, %v1583_v28  ;;  %v1650_v28 = vor.u32 %v2048_v18, %v1647_v22  ;;  %v2044_v32 = vld [vmem:[%s3201_s1 + $0x24c] sm:$0xf]  ;;  %v1906_v33 = vor.u32 %v2112_v25, %v1903_v26 }
  0x75   :  { %1206 = vmatpush.bf16.msrb.mxu2 %v1918_v41  ;;  %v1714_v41 = vor.u32 %v2064_v29, %v1711_v31  ;;  %v1503_v31 = vld [vmem:[%s3201_s1 + $0x158] sm:$0xf0] }
  0x76   :  { %1219 = vmatpush.bf16.msrb.mxu3 %v1410_v45  ;;  %v2060_v45 = vld [vmem:[%s3201_s1 + $0x2cc] sm:$0xf] }
  0x77   :  { %1181 = vmatpush.bf16.msrb.mxu0 %v1646_v51  ;;  %v1951_v51 = vld [vmem:[%s3201_s1 + $0x4d8] sm:$0xf0] }
  0x78   :  { %1194 = vmatpush.bf16.msrb.mxu1 %v1774_v52  ;;  %v1570_v52 = vor.u32 %v2028_v43, %v1567_v44  ;;  %v1954_v58 = vor.u32 %v2124_v50, %v1951_v51  ;;  %v2008_v43 = vld [vmem:[%s3201_s1 + $0x12c] sm:$0xf]  ;;  %v1487_v44 = vld [vmem:[%s3201_s1 + $0x138] sm:$0xf0] }
  0x79   :  { %1207 = vmatpush.bf16.msrb.mxu2 %v1902_v53  ;;  %v1698_v53 = vor.u32 %v2060_v45, %v1695_v47  ;;  %v2040_v45 = vld [vmem:[%s3201_s1 + $0x22c] sm:$0xf]  ;;  %v1615_v47 = vld [vmem:[%s3201_s1 + $0x238] sm:$0xf0] }
  0x7a   :  { %1220 = vmatpush.bf16.msrb.mxu3 %v1394_v57  ;;  %v2056_v57 = vld [vmem:[%s3201_s1 + $0x2ac] sm:$0xf]  ;;  %v1871_v51 = vld [vmem:[%s3201_s1 + $0x438] sm:$0xf0] }
  0x7b   :  { %1182 = vmatpush.bf16.msrb.mxu0 %v1630_v63  ;;  %v1935_v63 = vld [vmem:[%s3201_s1 + $0x4b8] sm:$0xf0]  ;;  %v2104_v50 = vld [vmem:[%s3201_s1 + $0x42c] sm:$0xf] }
  0x7c   :  { %1195 = vmatpush.bf16.msrb.mxu1 %v1758_v0  ;;  %v1554_v0 = vor.u32 %v2024_v55, %v1551_v56  ;;  %v1938_v8 = vor.u32 %v2120_v62, %v1935_v63  ;;  %v2004_v55 = vld [vmem:[%s3201_s1 + $0x10c] sm:$0xf]  ;;  %v1471_v56 = vld [vmem:[%s3201_s1 + $0x118] sm:$0xf0] }
  0x7d   :  { %1208 = vmatpush.bf16.msrb.mxu2 %v1886_v1  ;;  %v1682_v1 = vor.u32 %v2056_v57, %v1679_v59  ;;  %v2036_v57 = vld [vmem:[%s3201_s1 + $0x20c] sm:$0xf]  ;;  %v1599_v59 = vld [vmem:[%s3201_s1 + $0x218] sm:$0xf0] }
  0x7e   :  { %1221 = vmatpush.bf16.msrb.mxu3 %v1378_v7  ;;  %v2052_v7 = vld [vmem:[%s3201_s1 + $0x28c] sm:$0xf]  ;;  %v1855_v63 = vld [vmem:[%s3201_s1 + $0x418] sm:$0xf0] }
  0x7f   :  { %1183 = vmatpush.bf16.msrb.mxu0 %v1614_v13  ;;  %v1538_v13 = vor.u32 %v2020_v3, %v1535_v5  ;;  %v2100_v62 = vld [vmem:[%s3201_s1 + $0x40c] sm:$0xf] }
  0x80   :  { %1196 = vmatpush.bf16.msrb.mxu1 %v1742_v16  ;;  %v2016_v16 = vld [vmem:[%s3201_s1 + $0x16c] sm:$0xf]  ;;  %v1858_v3 = vor.u32 %v2100_v62, %v1855_v63 }
  0x81   :  { %1209 = vmatpush.bf16.msrb.mxu2 %v1870_v17  ;;  %v1519_v17 = vld [vmem:[%s3201_s1 + $0x178] sm:$0xf0] }
  0x82   :  { %1222 = vmatpush.bf16.msrb.mxu3 %v1362_v23  ;;  %v2080_v23 = vld [vmem:[%s3201_s1 + $0x36c] sm:$0xf]  ;;  %v1522_v27 = vor.u32 %v2016_v16, %v1519_v17  ;;  %v3182_v16 = vld [vmem:[#allocation2] sm:$0xf] }
  0x83   :  { %1184 = vmatpush.bf16.msrb.mxu0 %v1598_v30  ;;  %v1778_v29 = vor.u32 %v2080_v23, %v1775_v24  ;;  %v2012_v30 = vld [vmem:[%s3201_s1 + $0x14c] sm:$0xf] }
  0x84   :  { %1197 = vmatpush.bf16.msrb.mxu1 %v1726_v35  ;;  %v1631_v35 = vld [vmem:[%s3201_s1 + $0x258] sm:$0xf0] }
  0x85   :  { %1210 = vmatpush.bf16.msrb.mxu2 %v1854_v36  ;;  %v2076_v36 = vld [vmem:[%s3201_s1 + $0x34c] sm:$0xf] }
  0x86   :  { %1223 = vmatpush.bf16.msrb.mxu3 %v1346_v39  ;;  %1185 = vmatmul.bf16.vlgmr.msrb.gmra.mxu0 %v2482_v20  ;;  %v1887_v39 = vld [vmem:[%s3201_s1 + $0x458] sm:$0xf0] }
  0x87   :  { %1229 = vmatpush.bf16.msra.mxu0 %v1586_v40  ;;  %1198 = vmatmul.bf16.vlgmr.msrb.gmra.mxu1 %v2484_v21  ;;  %v1506_v40 = vor.u32 %v2012_v30, %v1503_v31 }
  0x88   :  { %1242 = vmatpush.bf16.msra.mxu1 %v1714_v41  ;;  %1211 = vmatmul.bf16.vlgmr.msrb.gmra.mxu2 %v2630_v34  ;;  %v1634_v41 = vor.u32 %v2044_v32, %v1631_v35  ;;  %v1299_v35 = vperm.slane %v3182_v16, 1 }
  0x89   :  { %1255 = vmatpush.bf16.msra.mxu2 %v1842_v42  ;;  %1224 = vmatmul.bf16.vlgmr.msrb.gmra.mxu3 %v2450_v4  ;;  %v1663_v4 = vld [vmem:[%s3201_s1 + $0x298] sm:$0xf0]  ;;  %v1762_v42 = vor.u32 %v2076_v36, %v1759_v37 }
  0x8a   :  { %1268 = vmatpush.bf16.msra.mxu3 %v1970_v46  ;;  %v1666_v14 = vor.u32 %v2052_v7, %v1663_v4  ;;  %v1890_v46 = vor.u32 %v2108_v38, %v1887_v39 }
  0x8b   :  { %1230 = vmatpush.bf16.msra.mxu0 %v1570_v52  ;;  %v1490_v52 = vor.u32 %v2008_v43, %v1487_v44 }
  0x8c   :  { %1243 = vmatpush.bf16.msra.mxu1 %v1698_v53  ;;  %v1618_v53 = vor.u32 %v2040_v45, %v1615_v47 }
  0x8d   :  { %1256 = vmatpush.bf16.msra.mxu2 %v1826_v54  ;;  %v1746_v54 = vor.u32 %v2072_v48, %v1743_v49 }
  0x8e   :  { %1269 = vmatpush.bf16.msra.mxu3 %v1954_v58  ;;  %v1874_v58 = vor.u32 %v2104_v50, %v1871_v51 }
  0x8f   :  { %1231 = vmatpush.bf16.msra.mxu0 %v1554_v0  ;;  %v1474_v0 = vor.u32 %v2004_v55, %v1471_v56 }
  0x90   :  { %1244 = vmatpush.bf16.msra.mxu1 %v1682_v1  ;;  %v1602_v1 = vor.u32 %v2036_v57, %v1599_v59 }
  0x91   :  { %1257 = vmatpush.bf16.msra.mxu2 %v1810_v2  ;;  %v1730_v2 = vor.u32 %v2068_v60, %v1727_v61 }
  0x92   :  { %1270 = vmatpush.bf16.msra.mxu3 %v1938_v8 }
  0x93   :  { %1232 = vmatpush.bf16.msra.mxu0 %v1538_v13 }
  0x94   :  { %1245 = vmatpush.bf16.msra.mxu1 %v1666_v14 }
  0x95   :  { %1258 = vmatpush.bf16.msra.mxu2 %v1794_v15 }
  0x96   :  { %1271 = vmatpush.bf16.msra.mxu3 %v1922_v19 }
  0x97   :  { %1233 = vmatpush.bf16.msra.mxu0 %v1522_v27 }
  0x98   :  { %1246 = vmatpush.bf16.msra.mxu1 %v1650_v28 }
  0x99   :  { %1259 = vmatpush.bf16.msra.mxu2 %v1778_v29 }
  0x9a   :  { %1272 = vmatpush.bf16.msra.mxu3 %v1906_v33 }
  0x9b   :  { %1234 = vmatpush.bf16.msra.mxu0 %v1506_v40 }
  0x9c   :  { %1247 = vmatpush.bf16.msra.mxu1 %v1634_v41 }
  0x9d   :  { %1260 = vmatpush.bf16.msra.mxu2 %v1762_v42 }
  0x9e   :  { %1273 = vmatpush.bf16.msra.mxu3 %v1890_v46 }
  0x9f   :  { %1235 = vmatpush.bf16.msra.mxu0 %v1490_v52  ;;  %v1300_v52 = vperm.slane %v3182_v16, 2 }
  0xa0   :  { %1248 = vmatpush.bf16.msra.mxu1 %v1618_v53 }
  0xa1   :  { %1261 = vmatpush.bf16.msra.mxu2 %v1746_v54 }
  0xa2   :  { %1274 = vmatpush.bf16.msra.mxu3 %v1874_v58 }
  0xa3   :  { %1236 = vmatpush.bf16.msra.mxu0 %v1474_v0 }
  0xa4   :  { %1249 = vmatpush.bf16.msra.mxu1 %v1602_v1 }
  0xa5   :  { %1262 = vmatpush.bf16.msra.mxu2 %v1730_v2 }
  0xa6   :  { %1275 = vmatpush.bf16.msra.mxu3 %v1858_v3  ;;  %1237 = vmatmul.bf16.vlgmr.msra.gmra.mxu0 %v2455_v6 }
  0xa7   :  { %1250 = vmatmul.bf16.vlgmr.msra.gmra.mxu1 %v2482_v20  ;;  %v1298_v20 = vperm.slane %v3182_v16, 0 }
  0xa8   :  { %1263 = vmatmul.bf16.vlgmr.msra.gmra.mxu2 %v2484_v21 }
  0xa9   :  { %1276 = vmatmul.bf16.vlgmr.msra.gmra.mxu3 %v2630_v34  ;;  %v1030_v5 = vpop.f32.mrf.mxu0 }
  0xaa   :  { %v1043_v7 = vpop.f32.mrf.mxu1 }
  0xab   :  { %v1056_v9 = vpop.f32.mrf.mxu2  ;;  %v1044_v11 = vadd.f32 %v1043_v7, %v1030_v5 }
  0xac   :  { %v1069_v10 = vpop.f32.mrf.mxu3 }
  0xad   :  { %v1057_v13 = vadd.f32 %v1056_v9, %v1044_v11 }
  0xaf   :  { %v1070_v15 = vadd.f32 %v1069_v10, %v1057_v13 }
  0xb1   :  { %v1032_v8 = vpop.f32.mrf.mxu0 }
  0xb2   :  { %v1045_v4 = vpop.f32.mrf.mxu1 }
  0xb3   :  { %v1058_v12 = vpop.f32.mrf.mxu2  ;;  %v1301_v4 = vperm.slane %v3182_v16, 3 }
  0xb4   :  { %v1071_v14 = vpop.f32.mrf.mxu3 }
  0xc3   :  { %v1082_v6 = vpop.f32.mrf.mxu0 }
  0xc4   :  { %v1083_v17 = vadd.f32 %v1082_v6, %v1070_v15  ;;  %v1095_v21 = vpop.f32.mrf.mxu1 }
  0xc6   :  { %v1306_v18 = vadd.f32 %v1298_v20, %v1083_v17 }
  0xc8   :  { %vm1310_vm0 = vcmp.ge.f32.partialorder %v1306_v18, 0.0  ;;  %v1314_v34 = vmul.f32 0.01, %v1306_v18 }
  0xca   :  { %v1318_v24 = vsel %vm1310_vm0, %v1306_v18, %v1314_v34 }
  0xcb   :  { %v1108_v19 = vpop.f32.mrf.mxu2  ;;  %v1084_v22 = vpop.f32.mrf.mxu0  ;;  %1322 = vst [vmem:[%s3203_s3] sm:$0xff] %v1318_v24 }
  0xcc   :  { %v1121_v23 = vpop.f32.mrf.mxu3  ;;  %v1097_v25 = vpop.f32.mrf.mxu1  ;;  %v1109_v28 = vadd.f32 %v1108_v19, %v1095_v21 }
  0xce   :  { %v1122_v29 = vadd.f32 %v1121_v23, %v1109_v28 }
  0xd3   :  { %v1110_v26 = vpop.f32.mrf.mxu2 }
  0xd4   :  { %v1123_v27 = vpop.f32.mrf.mxu3 }
  0xe3   :  { %v1134_v30 = vpop.f32.mrf.mxu0 }
  0xe4   :  { %v1135_v31 = vadd.f32 %v1134_v30, %v1122_v29  ;;  %v1147_v32 = vpop.f32.mrf.mxu1 }
  0xe6   :  { %v1148_v33 = vadd.f32 %v1147_v32, %v1135_v31 }
  0xe8   :  { %v1307_v36 = vadd.f32 %v1299_v35, %v1148_v33 }
  0xea   :  { %vm1311_vm1 = vcmp.ge.f32.partialorder %v1307_v36, 0.0  ;;  %v1315_v40 = vmul.f32 0.01, %v1307_v36 }
  0xeb   :  { %v1160_v37 = vpop.f32.mrf.mxu2  ;;  %v1136_v38 = vpop.f32.mrf.mxu0 }
  0xec   :  { %v1173_v39 = vpop.f32.mrf.mxu3  ;;  %v1149_v41 = vpop.f32.mrf.mxu1  ;;  %v1319_v42 = vsel %vm1311_vm1, %v1307_v36, %v1315_v40 }
  0xed   :  { %1323 = vst [vmem:[%s3203_s3 + $0x8] sm:$0xff] %v1319_v42  ;;  %v1174_v45 = vadd.f32 %v1173_v39, %v1160_v37 }
  0xf3   :  { %v1162_v43 = vpop.f32.mrf.mxu2 }
  0xf4   :  { %v1175_v44 = vpop.f32.mrf.mxu3 }
 0x103   :  { %v1186_v46 = vpop.f32.mrf.mxu0 }
 0x104   :  { %v1199_v47 = vpop.f32.mrf.mxu1  ;;  %v1187_v48 = vadd.f32 %v1186_v46, %v1174_v45 }
 0x106   :  { %v1200_v49 = vadd.f32 %v1199_v47, %v1187_v48 }
 0x10b   :  { %v1212_v50 = vpop.f32.mrf.mxu2  ;;  %v1188_v54 = vpop.f32.mrf.mxu0 }
 0x10c   :  { %v1213_v51 = vadd.f32 %v1212_v50, %v1200_v49  ;;  %v1225_v53 = vpop.f32.mrf.mxu3  ;;  %v1201_v55 = vpop.f32.mrf.mxu1 }
 0x10e   :  { %v1308_v56 = vadd.f32 %v1300_v52, %v1213_v51 }
 0x110   :  { %vm1312_vm2 = vcmp.ge.f32.partialorder %v1308_v56, 0.0  ;;  %v1316_v57 = vmul.f32 0.01, %v1308_v56 }
 0x112   :  { %v1320_v59 = vsel %vm1312_vm2, %v1308_v56, %v1316_v57 }
 0x113   :  { %v1214_v58 = vpop.f32.mrf.mxu2  ;;  %1324 = vst [vmem:[%s3203_s3 + $0x10] sm:$0xff] %v1320_v59 }
 0x114   :  { %v1227_v60 = vpop.f32.mrf.mxu3 }
 0x123   :  { %v1238_v61 = vpop.f32.mrf.mxu0 }
 0x124   :  { %v1251_v62 = vpop.f32.mrf.mxu1  ;;  %v1239_v63 = vadd.f32 %v1238_v61, %v1225_v53 }
 0x126   :  { %v1252_v0 = vadd.f32 %v1251_v62, %v1239_v63 }
 0x12b   :  { %v1264_v1 = vpop.f32.mrf.mxu2  ;;  %v1240_v5 = vpop.f32.mrf.mxu0 }
 0x12c   :  { %v1265_v2 = vadd.f32 %v1264_v1, %v1252_v0  ;;  %v1277_v3 = vpop.f32.mrf.mxu3  ;;  %v1253_v7 = vpop.f32.mrf.mxu1 }
 0x12e   :  { %v1278_v8 = vadd.f32 %v1277_v3, %v1265_v2 }
 0x130   :  { %v1309_v9 = vadd.f32 %v1301_v4, %v1278_v8 }
 0x132   :  { %vm1313_vm3 = vcmp.ge.f32.partialorder %v1309_v9, 0.0  ;;  %v1317_v11 = vmul.f32 0.01, %v1309_v9 }
 0x133   :  { %v1266_v10 = vpop.f32.mrf.mxu2 }
 0x134   :  { %v1279_v12 = vpop.f32.mrf.mxu3  ;;  %v1321_v13 = vsel %vm1313_vm3, %v1309_v9, %v1317_v11 }
 0x135   :  { %1325 = vst [vmem:[%s3203_s3 + $0x18] sm:$0xff] %v1321_v13 }
 0x136   :  { %1330 = vsyncpa [#allocation3], 1 }

// kernel: period_discriminator_forward.9
= control target key start
LH: loop header
LB: loop body
LE: loop exit
PB: predicated region body
PF: predicated region fallthrough
CT: control target
= control target key end

     0   :  { %s2976_s12 = smov 0   ;;  %s2978_s13 = smov 0   ;;  %s3785_s0 = inlined_call_operand.vmem [shape: bf16[8,2560], index: 0, kind: input, shape index: {}]   ;;  %s3786_s1 = inlined_call_operand.vmem [shape: bf16[2560,1024], index: 1, kind: input, shape index: {}]   ;;  %s3787_s2 = inlined_call_operand.vmem [shape: f32[1,1024], index: 2, kind: input, shape index: {}]   ;;  %s3788_s3 = inlined_call_operand.vmem [shape: f32[8,1024], index: 3, kind: output, shape index: {}]  }
   0x1   :  { %s2980_s14 = smov 0   ;;  %s2982_s15 = smov 0  }
   0x2   :  { %s2984_s16 = smov 0   ;;  %s2986_s17 = smov 0  }
   0x3   :  { %s2988_s18 = smov 0  }
   0x4 LB: > { %s25_s19 = sadd.s32 1, %s2945_s16  ;;  %s28_s20 = sadd.s32 1, %s2949_s17  ;;  %s2953_s18 = sphi %s2988_s18, %s13_s18   ;;  %s2949_s17 = sphi %s2986_s17, %s3794_s17   ;;  %s2945_s16 = sphi %s2984_s16, %s3793_s16   ;;  %s2941_s15 = sphi %s2982_s15, %s3792_s15   ;;  %s2937_s14 = sphi %s2980_s14, %s3791_s14   ;;  %s2933_s13 = sphi %s2978_s13, %s3790_s13   ;;  %s2929_s12 = sphi %s2976_s12, %s3789_s12  }
   0x5   : > { %p26_p0 = scmp.ge.s32.totalorder %s25_s19, 4  ;;  %p76_p1 = scmp.ne.s32.totalorder %s2933_s13, %s2929_s12 }
   0x6   : > { %p77_p2 = scmp.eq.s32.totalorder %s2953_s18, 0  ;;  %s69_s24 = sadd.s32 1, %s2933_s13 }
   0x7   : > { %s3796_s19 = smov (%p26_p0, %s25_s19), 0  ;;  %s3798_s20 = smov (!%p26_p0, %s28_s20), %s2949_s17 }
   0x8   : > { %p78_p3 = por %p77_p2, %p76_p1  ;;  %p30_p4 = scmp.ge.s32.totalorder %s3798_s20, 2 }
   0x9   : > { %s64_s21 = ssub.s32 %s2945_s16, %s3796_s19  ;;  %p2026_p6 = scmp.ge.s32.totalorder %s2953_s18, 8 }
   0xa   : > { %s3800_s20 = smov (%p30_p4, %s3798_s20), 0 }
   0xb   : > { %s65_s22 = ssub.s32 %s2949_s17, %s3800_s20  ;;  %156 = sbr.rel (%p2026_p6) target bundleno = 184 (0xb8), region = 16 }
   0xc   : > { %s66_s23 = sor.u32 %s65_s22, %s64_s21 }
   0xd   : > { %p67_p5 = scmp.eq.s32.totalorder %s66_s23, 0 }
   0xf   : > { %s3027_s25 = scalar_select %p67_p5, %s2933_s13, %s69_s24  }
  0x10   : > { %172 = sbr.rel (!%p78_p3) target bundleno = 184 (0xb8), region = 24  ;;  %s174_s26 = sand.u32 (%p78_p3), 1, %s2933_s13  }
  0x11   : > { %s2840_s27 = smul.u32 (%p78_p3), 1280, %s174_s26  ;;  %s2027_s28 = sshll.u32 (%p78_p3), %s2949_s17, 2 }
  0x12   : > { %s2679_s29 = smul.u32 (%p78_p3), 640, %s2945_s16 }
  0x13   : > { %s3041_s8 = scalar_lea.vmem (%p78_p3), [#allocation2], %s2840_s27 }
  0x14   : > { %s180_s30 = sadd.s32 (%p78_p3), %s2679_s29, %s2027_s28 }
  0x15   : > { %s2029_s4 = sshll.u32 %s180_s30, 2 }
  0x16   : > { %s3036_s7 = scalar_lea.vmem %s3786_s1, %s2029_s4 }
  0x17   : > { %v195_v0 = vld [vmem:[%s3036_s7] sm:$0xff]  ;;  %v197_v1 = vld [vmem:[%s3036_s7 + $0x8] sm:$0xff] }
  0x18   : > { %v199_v2 = vld [vmem:[%s3036_s7 + $0x20] sm:$0xff]  ;;  %196 = vst [vmem:[%s3041_s8] sm:$0xff] %v195_v0  ;;  %v201_v3 = vld [vmem:[%s3036_s7 + $0x28] sm:$0xff] }
  0x19   : > { %198 = vst [vmem:[%s3041_s8 + $0x8] sm:$0xff] %v197_v1  ;;  %v203_v4 = vld [vmem:[%s3036_s7 + $0x40] sm:$0xff]  ;;  %v205_v5 = vld [vmem:[%s3036_s7 + $0x48] sm:$0xff] }
  0x1a   : > { %200 = vst [vmem:[%s3041_s8 + $0x10] sm:$0xff] %v199_v2  ;;  %v207_v6 = vld [vmem:[%s3036_s7 + $0x60] sm:$0xff]  ;;  %v209_v7 = vld [vmem:[%s3036_s7 + $0x68] sm:$0xff] }
  0x1b   : > { %202 = vst [vmem:[%s3041_s8 + $0x18] sm:$0xff] %v201_v3  ;;  %v211_v8 = vld [vmem:[%s3036_s7 + $0x80] sm:$0xff]  ;;  %v213_v9 = vld [vmem:[%s3036_s7 + $0x88] sm:$0xff] }
  0x1c   : > { %204 = vst [vmem:[%s3041_s8 + $0x20] sm:$0xff] %v203_v4  ;;  %v215_v10 = vld [vmem:[%s3036_s7 + $0xa0] sm:$0xff]  ;;  %v217_v11 = vld [vmem:[%s3036_s7 + $0xa8] sm:$0xff] }
  0x1d   : > { %206 = vst [vmem:[%s3041_s8 + $0x28] sm:$0xff] %v205_v5  ;;  %v219_v12 = vld [vmem:[%s3036_s7 + $0xc0] sm:$0xff]  ;;  %v221_v13 = vld [vmem:[%s3036_s7 + $0xc8] sm:$0xff] }
  0x1e   : > { %208 = vst [vmem:[%s3041_s8 + $0x30] sm:$0xff] %v207_v6  ;;  %v223_v14 = vld [vmem:[%s3036_s7 + $0xe0] sm:$0xff]  ;;  %v225_v15 = vld [vmem:[%s3036_s7 + $0xe8] sm:$0xff] }
  0x1f   : > { %210 = vst [vmem:[%s3041_s8 + $0x38] sm:$0xff] %v209_v7  ;;  %v227_v16 = vld [vmem:[%s3036_s7 + $0x100] sm:$0xff]  ;;  %v229_v17 = vld [vmem:[%s3036_s7 + $0x108] sm:$0xff] }
  0x20   : > { %212 = vst [vmem:[%s3041_s8 + $0x40] sm:$0xff] %v211_v8  ;;  %v231_v18 = vld [vmem:[%s3036_s7 + $0x120] sm:$0xff]  ;;  %v233_v19 = vld [vmem:[%s3036_s7 + $0x128] sm:$0xff] }
  0x21   : > { %214 = vst [vmem:[%s3041_s8 + $0x48] sm:$0xff] %v213_v9  ;;  %v235_v20 = vld [vmem:[%s3036_s7 + $0x140] sm:$0xff]  ;;  %v237_v21 = vld [vmem:[%s3036_s7 + $0x148] sm:$0xff] }
  0x22   : > { %216 = vst [vmem:[%s3041_s8 + $0x50] sm:$0xff] %v215_v10  ;;  %v239_v22 = vld [vmem:[%s3036_s7 + $0x160] sm:$0xff]  ;;  %v241_v23 = vld [vmem:[%s3036_s7 + $0x168] sm:$0xff] }
  0x23   : > { %218 = vst [vmem:[%s3041_s8 + $0x58] sm:$0xff] %v217_v11  ;;  %v243_v24 = vld [vmem:[%s3036_s7 + $0x180] sm:$0xff]  ;;  %v245_v25 = vld [vmem:[%s3036_s7 + $0x188] sm:$0xff] }
  0x24   : > { %220 = vst [vmem:[%s3041_s8 + $0x60] sm:$0xff] %v219_v12  ;;  %v247_v26 = vld [vmem:[%s3036_s7 + $0x1a0] sm:$0xff]  ;;  %v249_v27 = vld [vmem:[%s3036_s7 + $0x1a8] sm:$0xff] }
  0x25   : > { %222 = vst [vmem:[%s3041_s8 + $0x68] sm:$0xff] %v221_v13  ;;  %v251_v28 = vld [vmem:[%s3036_s7 + $0x1c0] sm:$0xff]  ;;  %v253_v29 = vld [vmem:[%s3036_s7 + $0x1c8] sm:$0xff] }
  0x26   : > { %224 = vst [vmem:[%s3041_s8 + $0x70] sm:$0xff] %v223_v14  ;;  %v255_v30 = vld [vmem:[%s3036_s7 + $0x1e0] sm:$0xff]  ;;  %v257_v31 = vld [vmem:[%s3036_s7 + $0x1e8] sm:$0xff] }
  0x27   : > { %226 = vst [vmem:[%s3041_s8 + $0x78] sm:$0xff] %v225_v15  ;;  %v259_v32 = vld [vmem:[%s3036_s7 + $0x200] sm:$0xff]  ;;  %v261_v33 = vld [vmem:[%s3036_s7 + $0x208] sm:$0xff] }
  0x28   : > { %228 = vst [vmem:[%s3041_s8 + $0x80] sm:$0xff] %v227_v16  ;;  %v263_v34 = vld [vmem:[%s3036_s7 + $0x220] sm:$0xff]  ;;  %v265_v35 = vld [vmem:[%s3036_s7 + $0x228] sm:$0xff] }
  0x29   : > { %230 = vst [vmem:[%s3041_s8 + $0x88] sm:$0xff] %v229_v17  ;;  %v267_v36 = vld [vmem:[%s3036_s7 + $0x240] sm:$0xff]  ;;  %v269_v37 = vld [vmem:[%s3036_s7 + $0x248] sm:$0xff] }
  0x2a   : > { %232 = vst [vmem:[%s3041_s8 + $0x90] sm:$0xff] %v231_v18  ;;  %v271_v38 = vld [vmem:[%s3036_s7 + $0x260] sm:$0xff]  ;;  %v273_v39 = vld [vmem:[%s3036_s7 + $0x268] sm:$0xff] }
  0x2b   : > { %234 = vst [vmem:[%s3041_s8 + $0x98] sm:$0xff] %v233_v19  ;;  %v275_v40 = vld [vmem:[%s3036_s7 + $0x280] sm:$0xff]  ;;  %v277_v41 = vld [vmem:[%s3036_s7 + $0x288] sm:$0xff] }
  0x2c   : > { %236 = vst [vmem:[%s3041_s8 + $0xa0] sm:$0xff] %v235_v20  ;;  %v279_v42 = vld [vmem:[%s3036_s7 + $0x2a0] sm:$0xff]  ;;  %v281_v43 = vld [vmem:[%s3036_s7 + $0x2a8] sm:$0xff] }
  0x2d   : > { %238 = vst [vmem:[%s3041_s8 + $0xa8] sm:$0xff] %v237_v21  ;;  %v283_v44 = vld [vmem:[%s3036_s7 + $0x2c0] sm:$0xff]  ;;  %v285_v45 = vld [vmem:[%s3036_s7 + $0x2c8] sm:$0xff] }
  0x2e   : > { %240 = vst [vmem:[%s3041_s8 + $0xb0] sm:$0xff] %v239_v22  ;;  %v287_v46 = vld [vmem:[%s3036_s7 + $0x2e0] sm:$0xff]  ;;  %v289_v47 = vld [vmem:[%s3036_s7 + $0x2e8] sm:$0xff] }
  0x2f   : > { %242 = vst [vmem:[%s3041_s8 + $0xb8] sm:$0xff] %v241_v23  ;;  %v291_v48 = vld [vmem:[%s3036_s7 + $0x300] sm:$0xff]  ;;  %v293_v49 = vld [vmem:[%s3036_s7 + $0x308] sm:$0xff] }
  0x30   : > { %244 = vst [vmem:[%s3041_s8 + $0xc0] sm:$0xff] %v243_v24  ;;  %v295_v50 = vld [vmem:[%s3036_s7 + $0x320] sm:$0xff]  ;;  %v297_v51 = vld [vmem:[%s3036_s7 + $0x328] sm:$0xff] }
  0x31   : > { %246 = vst [vmem:[%s3041_s8 + $0xc8] sm:$0xff] %v245_v25  ;;  %v299_v52 = vld [vmem:[%s3036_s7 + $0x340] sm:$0xff]  ;;  %v301_v53 = vld [vmem:[%s3036_s7 + $0x348] sm:$0xff] }
  0x32   : > { %248 = vst [vmem:[%s3041_s8 + $0xd0] sm:$0xff] %v247_v26  ;;  %v303_v54 = vld [vmem:[%s3036_s7 + $0x360] sm:$0xff]  ;;  %v305_v55 = vld [vmem:[%s3036_s7 + $0x368] sm:$0xff] }
  0x33   : > { %250 = vst [vmem:[%s3041_s8 + $0xd8] sm:$0xff] %v249_v27  ;;  %v307_v56 = vld [vmem:[%s3036_s7 + $0x380] sm:$0xff]  ;;  %v309_v57 = vld [vmem:[%s3036_s7 + $0x388] sm:$0xff] }
  0x34   : > { %252 = vst [vmem:[%s3041_s8 + $0xe0] sm:$0xff] %v251_v28  ;;  %v311_v58 = vld [vmem:[%s3036_s7 + $0x3a0] sm:$0xff]  ;;  %v313_v59 = vld [vmem:[%s3036_s7 + $0x3a8] sm:$0xff] }
  0x35   : > { %254 = vst [vmem:[%s3041_s8 + $0xe8] sm:$0xff] %v253_v29  ;;  %v315_v60 = vld [vmem:[%s3036_s7 + $0x3c0] sm:$0xff]  ;;  %v317_v61 = vld [vmem:[%s3036_s7 + $0x3c8] sm:$0xff] }
  0x36   : > { %256 = vst [vmem:[%s3041_s8 + $0xf0] sm:$0xff] %v255_v30  ;;  %v319_v62 = vld [vmem:[%s3036_s7 + $0x3e0] sm:$0xff]  ;;  %v321_v63 = vld [vmem:[%s3036_s7 + $0x3e8] sm:$0xff] }
  0x37   : > { %258 = vst [vmem:[%s3041_s8 + $0xf8] sm:$0xff] %v257_v31  ;;  %v323_v0 = vld [vmem:[%s3036_s7 + $0x400] sm:$0xff]  ;;  %v325_v1 = vld [vmem:[%s3036_s7 + $0x408] sm:$0xff] }
  0x38   : > { %260 = vst [vmem:[%s3041_s8 + $0x100] sm:$0xff] %v259_v32  ;;  %v327_v2 = vld [vmem:[%s3036_s7 + $0x420] sm:$0xff]  ;;  %v329_v3 = vld [vmem:[%s3036_s7 + $0x428] sm:$0xff] }
  0x39   : > { %262 = vst [vmem:[%s3041_s8 + $0x108] sm:$0xff] %v261_v33  ;;  %v331_v4 = vld [vmem:[%s3036_s7 + $0x440] sm:$0xff]  ;;  %v333_v5 = vld [vmem:[%s3036_s7 + $0x448] sm:$0xff] }
  0x3a   : > { %264 = vst [vmem:[%s3041_s8 + $0x110] sm:$0xff] %v263_v34  ;;  %v335_v6 = vld [vmem:[%s3036_s7 + $0x460] sm:$0xff]  ;;  %v337_v7 = vld [vmem:[%s3036_s7 + $0x468] sm:$0xff] }
  0x3b   : > { %266 = vst [vmem:[%s3041_s8 + $0x118] sm:$0xff] %v265_v35  ;;  %v339_v8 = vld [vmem:[%s3036_s7 + $0x480] sm:$0xff]  ;;  %v341_v9 = vld [vmem:[%s3036_s7 + $0x488] sm:$0xff] }
  0x3c   : > { %268 = vst [vmem:[%s3041_s8 + $0x120] sm:$0xff] %v267_v36  ;;  %v343_v10 = vld [vmem:[%s3036_s7 + $0x4a0] sm:$0xff]  ;;  %v345_v11 = vld [vmem:[%s3036_s7 + $0x4a8] sm:$0xff] }
  0x3d   : > { %270 = vst [vmem:[%s3041_s8 + $0x128] sm:$0xff] %v269_v37  ;;  %v347_v12 = vld [vmem:[%s3036_s7 + $0x4c0] sm:$0xff]  ;;  %v349_v13 = vld [vmem:[%s3036_s7 + $0x4c8] sm:$0xff] }
  0x3e   : > { %272 = vst [vmem:[%s3041_s8 + $0x130] sm:$0xff] %v271_v38  ;;  %v351_v14 = vld [vmem:[%s3036_s7 + $0x4e0] sm:$0xff]  ;;  %v353_v15 = vld [vmem:[%s3036_s7 + $0x4e8] sm:$0xff] }
  0x3f   : > { %274 = vst [vmem:[%s3041_s8 + $0x138] sm:$0xff] %v273_v39  ;;  %v355_v16 = vld [vmem:[%s3036_s7 + $0x500] sm:$0xff]  ;;  %v357_v17 = vld [vmem:[%s3036_s7 + $0x508] sm:$0xff] }
  0x40   : > { %276 = vst [vmem:[%s3041_s8 + $0x140] sm:$0xff] %v275_v40  ;;  %v359_v18 = vld [vmem:[%s3036_s7 + $0x520] sm:$0xff]  ;;  %v361_v19 = vld [vmem:[%s3036_s7 + $0x528] sm:$0xff] }
  0x41   : > { %278 = vst [vmem:[%s3041_s8 + $0x148] sm:$0xff] %v277_v41  ;;  %v363_v20 = vld [vmem:[%s3036_s7 + $0x540] sm:$0xff]  ;;  %v365_v21 = vld [vmem:[%s3036_s7 + $0x548] sm:$0xff] }
  0x42   : > { %280 = vst [vmem:[%s3041_s8 + $0x150] sm:$0xff] %v279_v42  ;;  %v367_v22 = vld [vmem:[%s3036_s7 + $0x560] sm:$0xff]  ;;  %v369_v23 = vld [vmem:[%s3036_s7 + $0x568] sm:$0xff] }
  0x43   : > { %282 = vst [vmem:[%s3041_s8 + $0x158] sm:$0xff] %v281_v43  ;;  %v371_v24 = vld [vmem:[%s3036_s7 + $0x580] sm:$0xff]  ;;  %v373_v25 = vld [vmem:[%s3036_s7 + $0x588] sm:$0xff] }
  0x44   : > { %284 = vst [vmem:[%s3041_s8 + $0x160] sm:$0xff] %v283_v44  ;;  %v375_v26 = vld [vmem:[%s3036_s7 + $0x5a0] sm:$0xff]  ;;  %v377_v27 = vld [vmem:[%s3036_s7 + $0x5a8] sm:$0xff] }
  0x45   : > { %286 = vst [vmem:[%s3041_s8 + $0x168] sm:$0xff] %v285_v45  ;;  %v379_v28 = vld [vmem:[%s3036_s7 + $0x5c0] sm:$0xff]  ;;  %v381_v29 = vld [vmem:[%s3036_s7 + $0x5c8] sm:$0xff] }
  0x46   : > { %288 = vst [vmem:[%s3041_s8 + $0x170] sm:$0xff] %v287_v46  ;;  %v383_v30 = vld [vmem:[%s3036_s7 + $0x5e0] sm:$0xff]  ;;  %v385_v31 = vld [vmem:[%s3036_s7 + $0x5e8] sm:$0xff] }
  0x47   : > { %290 = vst [vmem:[%s3041_s8 + $0x178] sm:$0xff] %v289_v47  ;;  %v387_v32 = vld [vmem:[%s3036_s7 + $0x600] sm:$0xff]  ;;  %v389_v33 = vld [vmem:[%s3036_s7 + $0x608] sm:$0xff] }
  0x48   : > { %292 = vst [vmem:[%s3041_s8 + $0x180] sm:$0xff] %v291_v48  ;;  %v391_v34 = vld [vmem:[%s3036_s7 + $0x620] sm:$0xff]  ;;  %v393_v35 = vld [vmem:[%s3036_s7 + $0x628] sm:$0xff] }
  0x49   : > { %294 = vst [vmem:[%s3041_s8 + $0x188] sm:$0xff] %v293_v49  ;;  %v395_v36 = vld [vmem:[%s3036_s7 + $0x640] sm:$0xff]  ;;  %v397_v37 = vld [vmem:[%s3036_s7 + $0x648] sm:$0xff] }
  0x4a   : > { %296 = vst [vmem:[%s3041_s8 + $0x190] sm:$0xff] %v295_v50  ;;  %v399_v38 = vld [vmem:[%s3036_s7 + $0x660] sm:$0xff]  ;;  %v401_v39 = vld [vmem:[%s3036_s7 + $0x668] sm:$0xff] }
  0x4b   : > { %298 = vst [vmem:[%s3041_s8 + $0x198] sm:$0xff] %v297_v51  ;;  %v403_v40 = vld [vmem:[%s3036_s7 + $0x680] sm:$0xff]  ;;  %v405_v41 = vld [vmem:[%s3036_s7 + $0x688] sm:$0xff] }
  0x4c   : > { %300 = vst [vmem:[%s3041_s8 + $0x1a0] sm:$0xff] %v299_v52  ;;  %v407_v42 = vld [vmem:[%s3036_s7 + $0x6a0] sm:$0xff]  ;;  %v409_v43 = vld [vmem:[%s3036_s7 + $0x6a8] sm:$0xff] }
  0x4d   : > { %302 = vst [vmem:[%s3041_s8 + $0x1a8] sm:$0xff] %v301_v53  ;;  %v411_v44 = vld [vmem:[%s3036_s7 + $0x6c0] sm:$0xff]  ;;  %v413_v45 = vld [vmem:[%s3036_s7 + $0x6c8] sm:$0xff] }
  0x4e   : > { %304 = vst [vmem:[%s3041_s8 + $0x1b0] sm:$0xff] %v303_v54  ;;  %v415_v46 = vld [vmem:[%s3036_s7 + $0x6e0] sm:$0xff]  ;;  %v417_v47 = vld [vmem:[%s3036_s7 + $0x6e8] sm:$0xff] }
  0x4f   : > { %306 = vst [vmem:[%s3041_s8 + $0x1b8] sm:$0xff] %v305_v55  ;;  %v419_v48 = vld [vmem:[%s3036_s7 + $0x700] sm:$0xff]  ;;  %v421_v49 = vld [vmem:[%s3036_s7 + $0x708] sm:$0xff] }
  0x50   : > { %308 = vst [vmem:[%s3041_s8 + $0x1c0] sm:$0xff] %v307_v56  ;;  %v423_v50 = vld [vmem:[%s3036_s7 + $0x720] sm:$0xff]  ;;  %v425_v51 = vld [vmem:[%s3036_s7 + $0x728] sm:$0xff] }
  0x51   : > { %310 = vst [vmem:[%s3041_s8 + $0x1c8] sm:$0xff] %v309_v57  ;;  %v427_v52 = vld [vmem:[%s3036_s7 + $0x740] sm:$0xff]  ;;  %v429_v53 = vld [vmem:[%s3036_s7 + $0x748] sm:$0xff] }
  0x52   : > { %312 = vst [vmem:[%s3041_s8 + $0x1d0] sm:$0xff] %v311_v58  ;;  %v431_v54 = vld [vmem:[%s3036_s7 + $0x760] sm:$0xff]  ;;  %v433_v55 = vld [vmem:[%s3036_s7 + $0x768] sm:$0xff] }
  0x53   : > { %314 = vst [vmem:[%s3041_s8 + $0x1d8] sm:$0xff] %v313_v59  ;;  %v435_v56 = vld [vmem:[%s3036_s7 + $0x780] sm:$0xff]  ;;  %v437_v57 = vld [vmem:[%s3036_s7 + $0x788] sm:$0xff] }
  0x54   : > { %316 = vst [vmem:[%s3041_s8 + $0x1e0] sm:$0xff] %v315_v60  ;;  %v439_v58 = vld [vmem:[%s3036_s7 + $0x7a0] sm:$0xff]  ;;  %v441_v59 = vld [vmem:[%s3036_s7 + $0x7a8] sm:$0xff] }
  0x55   : > { %318 = vst [vmem:[%s3041_s8 + $0x1e8] sm:$0xff] %v317_v61  ;;  %v443_v60 = vld [vmem:[%s3036_s7 + $0x7c0] sm:$0xff]  ;;  %v445_v61 = vld [vmem:[%s3036_s7 + $0x7c8] sm:$0xff] }
  0x56   : > { %320 = vst [vmem:[%s3041_s8 + $0x1f0] sm:$0xff] %v319_v62  ;;  %v447_v62 = vld [vmem:[%s3036_s7 + $0x7e0] sm:$0xff] }
  0x57   : > { %322 = vst [vmem:[%s3041_s8 + $0x1f8] sm:$0xff] %v321_v63  ;;  %v449_v63 = vld [vmem:[%s3036_s7 + $0x7e8] sm:$0xff] }
  0x58   : > { %324 = vst [vmem:[%s3041_s8 + $0x200] sm:$0xff] %v323_v0  ;;  %v451_v0 = vld [vmem:[%s3036_s7 + $0x800] sm:$0xff] }
  0x59   : > { %326 = vst [vmem:[%s3041_s8 + $0x208] sm:$0xff] %v325_v1  ;;  %v453_v1 = vld [vmem:[%s3036_s7 + $0x808] sm:$0xff] }
  0x5a   : > { %328 = vst [vmem:[%s3041_s8 + $0x210] sm:$0xff] %v327_v2  ;;  %v455_v2 = vld [vmem:[%s3036_s7 + $0x820] sm:$0xff] }
  0x5b   : > { %330 = vst [vmem:[%s3041_s8 + $0x218] sm:$0xff] %v329_v3  ;;  %v457_v3 = vld [vmem:[%s3036_s7 + $0x828] sm:$0xff] }
  0x5c   : > { %332 = vst [vmem:[%s3041_s8 + $0x220] sm:$0xff] %v331_v4  ;;  %v459_v4 = vld [vmem:[%s3036_s7 + $0x840] sm:$0xff] }
  0x5d   : > { %334 = vst [vmem:[%s3041_s8 + $0x228] sm:$0xff] %v333_v5  ;;  %v461_v5 = vld [vmem:[%s3036_s7 + $0x848] sm:$0xff] }
  0x5e   : > { %336 = vst [vmem:[%s3041_s8 + $0x230] sm:$0xff] %v335_v6  ;;  %v463_v6 = vld [vmem:[%s3036_s7 + $0x860] sm:$0xff] }
  0x5f   : > { %338 = vst [vmem:[%s3041_s8 + $0x238] sm:$0xff] %v337_v7  ;;  %v465_v7 = vld [vmem:[%s3036_s7 + $0x868] sm:$0xff] }
  0x60   : > { %340 = vst [vmem:[%s3041_s8 + $0x240] sm:$0xff] %v339_v8  ;;  %v467_v8 = vld [vmem:[%s3036_s7 + $0x880] sm:$0xff] }
  0x61   : > { %342 = vst [vmem:[%s3041_s8 + $0x248] sm:$0xff] %v341_v9  ;;  %v469_v9 = vld [vmem:[%s3036_s7 + $0x888] sm:$0xff] }
  0x62   : > { %344 = vst [vmem:[%s3041_s8 + $0x250] sm:$0xff] %v343_v10  ;;  %v471_v10 = vld [vmem:[%s3036_s7 + $0x8a0] sm:$0xff] }
  0x63   : > { %346 = vst [vmem:[%s3041_s8 + $0x258] sm:$0xff] %v345_v11  ;;  %v473_v11 = vld [vmem:[%s3036_s7 + $0x8a8] sm:$0xff] }
  0x64   : > { %348 = vst [vmem:[%s3041_s8 + $0x260] sm:$0xff] %v347_v12  ;;  %v475_v12 = vld [vmem:[%s3036_s7 + $0x8c0] sm:$0xff] }
  0x65   : > { %350 = vst [vmem:[%s3041_s8 + $0x268] sm:$0xff] %v349_v13  ;;  %v477_v13 = vld [vmem:[%s3036_s7 + $0x8c8] sm:$0xff] }
  0x66   : > { %352 = vst [vmem:[%s3041_s8 + $0x270] sm:$0xff] %v351_v14  ;;  %v479_v14 = vld [vmem:[%s3036_s7 + $0x8e0] sm:$0xff] }
  0x67   : > { %354 = vst [vmem:[%s3041_s8 + $0x278] sm:$0xff] %v353_v15  ;;  %v481_v15 = vld [vmem:[%s3036_s7 + $0x8e8] sm:$0xff] }
  0x68   : > { %356 = vst [vmem:[%s3041_s8 + $0x280] sm:$0xff] %v355_v16  ;;  %v483_v16 = vld [vmem:[%s3036_s7 + $0x900] sm:$0xff] }
  0x69   : > { %358 = vst [vmem:[%s3041_s8 + $0x288] sm:$0xff] %v357_v17  ;;  %v485_v17 = vld [vmem:[%s3036_s7 + $0x908] sm:$0xff] }
  0x6a   : > { %360 = vst [vmem:[%s3041_s8 + $0x290] sm:$0xff] %v359_v18  ;;  %v487_v18 = vld [vmem:[%s3036_s7 + $0x920] sm:$0xff] }
  0x6b   : > { %362 = vst [vmem:[%s3041_s8 + $0x298] sm:$0xff] %v361_v19  ;;  %v489_v19 = vld [vmem:[%s3036_s7 + $0x928] sm:$0xff] }
  0x6c   : > { %364 = vst [vmem:[%s3041_s8 + $0x2a0] sm:$0xff] %v363_v20  ;;  %v491_v20 = vld [vmem:[%s3036_s7 + $0x940] sm:$0xff] }
  0x6d   : > { %366 = vst [vmem:[%s3041_s8 + $0x2a8] sm:$0xff] %v365_v21  ;;  %v493_v21 = vld [vmem:[%s3036_s7 + $0x948] sm:$0xff] }
  0x6e   : > { %368 = vst [vmem:[%s3041_s8 + $0x2b0] sm:$0xff] %v367_v22  ;;  %v495_v22 = vld [vmem:[%s3036_s7 + $0x960] sm:$0xff] }
  0x6f   : > { %370 = vst [vmem:[%s3041_s8 + $0x2b8] sm:$0xff] %v369_v23  ;;  %v497_v23 = vld [vmem:[%s3036_s7 + $0x968] sm:$0xff] }
  0x70   : > { %372 = vst [vmem:[%s3041_s8 + $0x2c0] sm:$0xff] %v371_v24  ;;  %v499_v24 = vld [vmem:[%s3036_s7 + $0x980] sm:$0xff] }
  0x71   : > { %374 = vst [vmem:[%s3041_s8 + $0x2c8] sm:$0xff] %v373_v25  ;;  %v501_v25 = vld [vmem:[%s3036_s7 + $0x988] sm:$0xff] }
  0x72   : > { %376 = vst [vmem:[%s3041_s8 + $0x2d0] sm:$0xff] %v375_v26  ;;  %v503_v26 = vld [vmem:[%s3036_s7 + $0x9a0] sm:$0xff] }
  0x73   : > { %378 = vst [vmem:[%s3041_s8 + $0x2d8] sm:$0xff] %v377_v27  ;;  %v505_v27 = vld [vmem:[%s3036_s7 + $0x9a8] sm:$0xff] }
  0x74   : > { %380 = vst [vmem:[%s3041_s8 + $0x2e0] sm:$0xff] %v379_v28  ;;  %v507_v28 = vld [vmem:[%s3036_s7 + $0x9c0] sm:$0xff] }
  0x75   : > { %382 = vst [vmem:[%s3041_s8 + $0x2e8] sm:$0xff] %v381_v29  ;;  %v509_v29 = vld [vmem:[%s3036_s7 + $0x9c8] sm:$0xff] }
  0x76   : > { %384 = vst [vmem:[%s3041_s8 + $0x2f0] sm:$0xff] %v383_v30  ;;  %v511_v30 = vld [vmem:[%s3036_s7 + $0x9e0] sm:$0xff] }
  0x77   : > { %386 = vst [vmem:[%s3041_s8 + $0x2f8] sm:$0xff] %v385_v31  ;;  %v513_v31 = vld [vmem:[%s3036_s7 + $0x9e8] sm:$0xff] }
  0x78   : > { %388 = vst [vmem:[%s3041_s8 + $0x300] sm:$0xff] %v387_v32 }
  0x79   : > { %390 = vst [vmem:[%s3041_s8 + $0x308] sm:$0xff] %v389_v33 }
  0x7a   : > { %392 = vst [vmem:[%s3041_s8 + $0x310] sm:$0xff] %v391_v34 }
  0x7b   : > { %394 = vst [vmem:[%s3041_s8 + $0x318] sm:$0xff] %v393_v35 }
  0x7c   : > { %396 = vst [vmem:[%s3041_s8 + $0x320] sm:$0xff] %v395_v36 }
  0x7d   : > { %398 = vst [vmem:[%s3041_s8 + $0x328] sm:$0xff] %v397_v37 }
  0x7e   : > { %400 = vst [vmem:[%s3041_s8 + $0x330] sm:$0xff] %v399_v38 }
  0x7f   : > { %402 = vst [vmem:[%s3041_s8 + $0x338] sm:$0xff] %v401_v39 }
  0x80   : > { %404 = vst [vmem:[%s3041_s8 + $0x340] sm:$0xff] %v403_v40 }
  0x81   : > { %406 = vst [vmem:[%s3041_s8 + $0x348] sm:$0xff] %v405_v41 }
  0x82   : > { %408 = vst [vmem:[%s3041_s8 + $0x350] sm:$0xff] %v407_v42 }
  0x83   : > { %410 = vst [vmem:[%s3041_s8 + $0x358] sm:$0xff] %v409_v43 }
  0x84   : > { %412 = vst [vmem:[%s3041_s8 + $0x360] sm:$0xff] %v411_v44 }
  0x85   : > { %414 = vst [vmem:[%s3041_s8 + $0x368] sm:$0xff] %v413_v45 }
  0x86   : > { %416 = vst [vmem:[%s3041_s8 + $0x370] sm:$0xff] %v415_v46 }
  0x87   : > { %418 = vst [vmem:[%s3041_s8 + $0x378] sm:$0xff] %v417_v47 }
  0x88   : > { %420 = vst [vmem:[%s3041_s8 + $0x380] sm:$0xff] %v419_v48 }
  0x89   : > { %422 = vst [vmem:[%s3041_s8 + $0x388] sm:$0xff] %v421_v49 }
  0x8a   : > { %424 = vst [vmem:[%s3041_s8 + $0x390] sm:$0xff] %v423_v50 }
  0x8b   : > { %426 = vst [vmem:[%s3041_s8 + $0x398] sm:$0xff] %v425_v51 }
  0x8c   : > { %428 = vst [vmem:[%s3041_s8 + $0x3a0] sm:$0xff] %v427_v52 }
  0x8d   : > { %430 = vst [vmem:[%s3041_s8 + $0x3a8] sm:$0xff] %v429_v53 }
  0x8e   : > { %432 = vst [vmem:[%s3041_s8 + $0x3b0] sm:$0xff] %v431_v54 }
  0x8f   : > { %434 = vst [vmem:[%s3041_s8 + $0x3b8] sm:$0xff] %v433_v55 }
  0x90   : > { %436 = vst [vmem:[%s3041_s8 + $0x3c0] sm:$0xff] %v435_v56 }
  0x91   : > { %438 = vst [vmem:[%s3041_s8 + $0x3c8] sm:$0xff] %v437_v57 }
  0x92   : > { %440 = vst [vmem:[%s3041_s8 + $0x3d0] sm:$0xff] %v439_v58 }
  0x93   : > { %442 = vst [vmem:[%s3041_s8 + $0x3d8] sm:$0xff] %v441_v59 }
  0x94   : > { %444 = vst [vmem:[%s3041_s8 + $0x3e0] sm:$0xff] %v443_v60 }
  0x95   : > { %446 = vst [vmem:[%s3041_s8 + $0x3e8] sm:$0xff] %v445_v61 }
  0x96   : > { %448 = vst [vmem:[%s3041_s8 + $0x3f0] sm:$0xff] %v447_v62 }
  0x97   : > { %450 = vst [vmem:[%s3041_s8 + $0x3f8] sm:$0xff] %v449_v63 }
  0x98   : > { %452 = vst [vmem:[%s3041_s8 + $0x400] sm:$0xff] %v451_v0 }
  0x99   : > { %454 = vst [vmem:[%s3041_s8 + $0x408] sm:$0xff] %v453_v1 }
  0x9a   : > { %456 = vst [vmem:[%s3041_s8 + $0x410] sm:$0xff] %v455_v2 }
  0x9b   : > { %458 = vst [vmem:[%s3041_s8 + $0x418] sm:$0xff] %v457_v3 }
  0x9c   : > { %460 = vst [vmem:[%s3041_s8 + $0x420] sm:$0xff] %v459_v4 }
  0x9d   : > { %462 = vst [vmem:[%s3041_s8 + $0x428] sm:$0xff] %v461_v5 }
  0x9e   : > { %464 = vst [vmem:[%s3041_s8 + $0x430] sm:$0xff] %v463_v6 }
  0x9f   : > { %466 = vst [vmem:[%s3041_s8 + $0x438] sm:$0xff] %v465_v7 }
  0xa0   : > { %468 = vst [vmem:[%s3041_s8 + $0x440] sm:$0xff] %v467_v8 }
  0xa1   : > { %470 = vst [vmem:[%s3041_s8 + $0x448] sm:$0xff] %v469_v9 }
  0xa2   : > { %472 = vst [vmem:[%s3041_s8 + $0x450] sm:$0xff] %v471_v10 }
  0xa3   : > { %474 = vst [vmem:[%s3041_s8 + $0x458] sm:$0xff] %v473_v11 }
  0xa4   : > { %476 = vst [vmem:[%s3041_s8 + $0x460] sm:$0xff] %v475_v12 }
  0xa5   : > { %478 = vst [vmem:[%s3041_s8 + $0x468] sm:$0xff] %v477_v13 }
  0xa6   : > { %480 = vst [vmem:[%s3041_s8 + $0x470] sm:$0xff] %v479_v14 }
  0xa7   : > { %482 = vst [vmem:[%s3041_s8 + $0x478] sm:$0xff] %v481_v15 }
  0xa8   : > { %484 = vst [vmem:[%s3041_s8 + $0x480] sm:$0xff] %v483_v16 }
  0xa9   : > { %486 = vst [vmem:[%s3041_s8 + $0x488] sm:$0xff] %v485_v17 }
  0xaa   : > { %488 = vst [vmem:[%s3041_s8 + $0x490] sm:$0xff] %v487_v18 }
  0xab   : > { %490 = vst [vmem:[%s3041_s8 + $0x498] sm:$0xff] %v489_v19 }
  0xac   : > { %492 = vst [vmem:[%s3041_s8 + $0x4a0] sm:$0xff] %v491_v20 }
  0xad   : > { %494 = vst [vmem:[%s3041_s8 + $0x4a8] sm:$0xff] %v493_v21 }
  0xae   : > { %496 = vst [vmem:[%s3041_s8 + $0x4b0] sm:$0xff] %v495_v22 }
  0xaf   : > { %498 = vst [vmem:[%s3041_s8 + $0x4b8] sm:$0xff] %v497_v23 }
  0xb0   : > { %500 = vst [vmem:[%s3041_s8 + $0x4c0] sm:$0xff] %v499_v24 }
  0xb1   : > { %502 = vst [vmem:[%s3041_s8 + $0x4c8] sm:$0xff] %v501_v25 }
  0xb2   : > { %504 = vst [vmem:[%s3041_s8 + $0x4d0] sm:$0xff] %v503_v26 }
  0xb3   : > { %506 = vst [vmem:[%s3041_s8 + $0x4d8] sm:$0xff] %v505_v27 }
  0xb4   : > { %508 = vst [vmem:[%s3041_s8 + $0x4e0] sm:$0xff] %v507_v28 }
  0xb5   : > { %510 = vst [vmem:[%s3041_s8 + $0x4e8] sm:$0xff] %v509_v29 }
  0xb6   : > { %512 = vst [vmem:[%s3041_s8 + $0x4f0] sm:$0xff] %v511_v30 }
  0xb7   : > { %514 = vst [vmem:[%s3041_s8 + $0x4f8] sm:$0xff] %v513_v31 }
  0xb8 PF: > { %p2030_p7 = scmp.ge.s32.totalorder %s2953_s18, 1  ;;  %p527_p8 = scmp.lt.s32.totalorder %s2953_s18, 9 }
  0xba   : > { %p528_p9 = pnand %p2030_p7, %p527_p8 }
  0xbb   : > { %s534_s9 = sand.u32 (!%p528_p9), 1, %s2929_s12   ;;  %s574_s10 = smul.u32 (!%p528_p9), 5, %s2937_s14 }
  0xbc   : > { %531 = sbr.rel (%p528_p9) target bundleno = 524 (0x20c), region = 51  ;;  %s2032_s21 = sshll.u32 (!%p528_p9), %s2941_s15, 2 }
  0xbd   : > { %s2841_s11 = smul.u32 (!%p528_p9), 1280, %s534_s9  ;;  %p577_p10 = scmp.lt.s32.totalorder (!%p528_p9), %s574_s10, 19 }
  0xbe   : > { %p587_p11 = scmp.lt.s32.totalorder (!%p528_p9), %s2032_s21, 7  ;;  %p2035_p12 = scmp.ne.s32.totalorder (!%p528_p9), %s2937_s14, 0 }
  0xbf   : > { %s3382_s5 = scalar_lea.vmem (!%p528_p9), [#allocation2], %s2841_s11 }
  0xc1   : > { %s3802_s10 = smov (!%p577_p10, %s574_s10), 19  ;;  %s3804_s21 = smov (!%p587_p11, %s2032_s21), 7 }
  0xc2   : > { %s2031_s22 = sshll.u32 %s3802_s10, 2  ;;  %s589_s12 = scalar_lea.vmem %s3787_s2, %s3804_s21 }
  0xc3   : > { %s3370_s26 = scalar_lea.vmem %s3785_s0, %s2031_s22  ;;  %s2034_s29 = sshll.u32 %s3804_s21, 3 }
  0xc4   : > { %s3380_s4 = scalar_lea.vmem %s3788_s3, %s2034_s29  ;;  %604 = sbr.rel (%p2035_p12) target bundleno = 206 (0xce), region = 59 }
  0xc9   : > { %v2955_v32 = vmov 0.0  }
  0xca   : > { %605 = vst [vmem:[%s3380_s4] sm:$0xff] %v2955_v32 }
  0xcb   : > { %606 = vst [vmem:[%s3380_s4 + $0x8] sm:$0xff] %v2955_v32 }
  0xcc   : > { %607 = vst [vmem:[%s3380_s4 + $0x10] sm:$0xff] %v2955_v32 }
  0xcd   : > { %608 = vst [vmem:[%s3380_s4 + $0x18] sm:$0xff] %v2955_v32 }
  0xce PF: > { %v2150_v33 = vld [vmem:[%s3382_s5 + $0xe0] sm:$0xf]  ;;  %v2710_v34 = vld [vmem:[%s3382_s5 + $0xec] sm:$0xf0]  ;;  %p2676_p13 = scmp.ne.s32.totalorder %s2937_s14, 3 }
  0xcf   : > { %v2278_v35 = vld [vmem:[%s3382_s5 + $0x1e0] sm:$0xf]  ;;  %v2151_v36 = vor.u32 %v2710_v34, %v2150_v33  ;;  %v2742_v37 = vld [vmem:[%s3382_s5 + $0x1ec] sm:$0xf0] }
  0xd0   : > { %v2406_v38 = vld [vmem:[%s3382_s5 + $0x2e0] sm:$0xf]  ;;  %v2774_v39 = vld [vmem:[%s3382_s5 + $0x2ec] sm:$0xf0]  ;;  %v2279_v40 = vor.u32 %v2742_v37, %v2278_v35 }
  0xd1   : > { %v2407_v41 = vor.u32 %v2774_v39, %v2406_v38  ;;  %v2534_v42 = vld [vmem:[%s3382_s5 + $0x3e0] sm:$0xf]  ;;  %v2806_v43 = vld [vmem:[%s3382_s5 + $0x3ec] sm:$0xf0]  ;;  %1594 = vmatpush.bf16.msra.mxu0 %v2151_v36 }
  0xd2   : > { %v2134_v44 = vld [vmem:[%s3382_s5 + $0xc0] sm:$0xf]  ;;  %v2535_v45 = vor.u32 %v2806_v43, %v2534_v42  ;;  %v2706_v46 = vld [vmem:[%s3382_s5 + $0xcc] sm:$0xf0]  ;;  %1607 = vmatpush.bf16.msra.mxu1 %v2279_v40 }
  0xd3   : > { %v2262_v47 = vld [vmem:[%s3382_s5 + $0x1c0] sm:$0xf]  ;;  %v2738_v48 = vld [vmem:[%s3382_s5 + $0x1cc] sm:$0xf0]  ;;  %1620 = vmatpush.bf16.msra.mxu2 %v2407_v41  ;;  %v2135_v49 = vor.u32 %v2706_v46, %v2134_v44 }
  0xd4   : > { %v2263_v50 = vor.u32 %v2738_v48, %v2262_v47  ;;  %v2390_v51 = vld [vmem:[%s3382_s5 + $0x2c0] sm:$0xf]  ;;  %v2770_v52 = vld [vmem:[%s3382_s5 + $0x2cc] sm:$0xf0]  ;;  %1633 = vmatpush.bf16.msra.mxu3 %v2535_v45 }
  0xd5   : > { %v2518_v53 = vld [vmem:[%s3382_s5 + $0x3c0] sm:$0xf]  ;;  %v2391_v54 = vor.u32 %v2770_v52, %v2390_v51  ;;  %v2802_v55 = vld [vmem:[%s3382_s5 + $0x3cc] sm:$0xf0]  ;;  %1595 = vmatpush.bf16.msra.mxu0 %v2135_v49 }
  0xd6   : > { %v2118_v56 = vld [vmem:[%s3382_s5 + $0xa0] sm:$0xf]  ;;  %v2702_v57 = vld [vmem:[%s3382_s5 + $0xac] sm:$0xf0]  ;;  %v2519_v58 = vor.u32 %v2802_v55, %v2518_v53  ;;  %1608 = vmatpush.bf16.msra.mxu1 %v2263_v50 }
  0xd7   : > { %v2246_v59 = vld [vmem:[%s3382_s5 + $0x1a0] sm:$0xf]  ;;  %v2734_v60 = vld [vmem:[%s3382_s5 + $0x1ac] sm:$0xf0]  ;;  %v2119_v62 = vor.u32 %v2702_v57, %v2118_v56  ;;  %1621 = vmatpush.bf16.msra.mxu2 %v2391_v54 }
  0xd8   : > { %v2374_v61 = vld [vmem:[%s3382_s5 + $0x2a0] sm:$0xf]  ;;  %v2766_v63 = vld [vmem:[%s3382_s5 + $0x2ac] sm:$0xf0]  ;;  %v2247_v2 = vor.u32 %v2734_v60, %v2246_v59  ;;  %1634 = vmatpush.bf16.msra.mxu3 %v2519_v58 }
  0xd9   : > { %v2502_v0 = vld [vmem:[%s3382_s5 + $0x3a0] sm:$0xf]  ;;  %v2798_v1 = vld [vmem:[%s3382_s5 + $0x3ac] sm:$0xf0]  ;;  %v2375_v3 = vor.u32 %v2766_v63, %v2374_v61  ;;  %1596 = vmatpush.bf16.msra.mxu0 %v2119_v62  ;;  %v2708_v63 = vld [vmem:[%s3382_s5 + $0xe4] sm:$0xf] }
  0xda   : > { %v2102_v4 = vld [vmem:[%s3382_s5 + $0x80] sm:$0xf]  ;;  %v2698_v5 = vld [vmem:[%s3382_s5 + $0x8c] sm:$0xf0]  ;;  %v2503_v7 = vor.u32 %v2798_v1, %v2502_v0  ;;  %1609 = vmatpush.bf16.msra.mxu1 %v2247_v2  ;;  %v2152_v1 = vld [vmem:[%s3382_s5 + $0xf0] sm:$0xf0] }
  0xdb   : > { %v2230_v6 = vld [vmem:[%s3382_s5 + $0x180] sm:$0xf]  ;;  %v2730_v8 = vld [vmem:[%s3382_s5 + $0x18c] sm:$0xf0]  ;;  %v2103_v13 = vor.u32 %v2698_v5, %v2102_v4  ;;  %1622 = vmatpush.bf16.msra.mxu2 %v2375_v3  ;;  %v2740_v2 = vld [vmem:[%s3382_s5 + $0x1e4] sm:$0xf] }
  0xdc   : > { %v2358_v9 = vld [vmem:[%s3382_s5 + $0x280] sm:$0xf]  ;;  %v2762_v10 = vld [vmem:[%s3382_s5 + $0x28c] sm:$0xf0]  ;;  %v2231_v14 = vor.u32 %v2730_v8, %v2230_v6  ;;  %1635 = vmatpush.bf16.msra.mxu3 %v2503_v7  ;;  %v2280_v3 = vld [vmem:[%s3382_s5 + $0x1f0] sm:$0xf0] }
  0xdd   : > { %v2486_v11 = vld [vmem:[%s3382_s5 + $0x380] sm:$0xf]  ;;  %v2794_v12 = vld [vmem:[%s3382_s5 + $0x38c] sm:$0xf0]  ;;  %v2359_v15 = vor.u32 %v2762_v10, %v2358_v9  ;;  %1597 = vmatpush.bf16.msra.mxu0 %v2103_v13  ;;  %v2772_v6 = vld [vmem:[%s3382_s5 + $0x2e4] sm:$0xf]  ;;  %v2155_v10 = vor.u32 %v2708_v63, %v2152_v1 }
  0xde   : > { %v2086_v16 = vld [vmem:[%s3382_s5 + $0x60] sm:$0xf]  ;;  %v2694_v17 = vld [vmem:[%s3382_s5 + $0x6c] sm:$0xf0]  ;;  %v2487_v19 = vor.u32 %v2794_v12, %v2486_v11  ;;  %1610 = vmatpush.bf16.msra.mxu1 %v2231_v14  ;;  %v2408_v7 = vld [vmem:[%s3382_s5 + $0x2f0] sm:$0xf0]  ;;  %v2283_v11 = vor.u32 %v2740_v2, %v2280_v3 }
  0xdf   : > { %v2214_v18 = vld [vmem:[%s3382_s5 + $0x160] sm:$0xf]  ;;  %v2726_v20 = vld [vmem:[%s3382_s5 + $0x16c] sm:$0xf0]  ;;  %v2087_v25 = vor.u32 %v2694_v17, %v2086_v16  ;;  %1623 = vmatpush.bf16.msra.mxu2 %v2359_v15  ;;  %v2704_v14 = vld [vmem:[%s3382_s5 + $0xc4] sm:$0xf]  ;;  %v2411_v15 = vor.u32 %v2772_v6, %v2408_v7 }
  0xe0   : > { %v2342_v21 = vld [vmem:[%s3382_s5 + $0x260] sm:$0xf]  ;;  %v2758_v22 = vld [vmem:[%s3382_s5 + $0x26c] sm:$0xf0]  ;;  %v2215_v26 = vor.u32 %v2726_v20, %v2214_v18  ;;  %1636 = vmatpush.bf16.msra.mxu3 %v2487_v19  ;;  %v2136_v16 = vld [vmem:[%s3382_s5 + $0xd0] sm:$0xf0] }
  0xe1   : > { %v2470_v23 = vld [vmem:[%s3382_s5 + $0x360] sm:$0xf]  ;;  %v2790_v24 = vld [vmem:[%s3382_s5 + $0x36c] sm:$0xf0]  ;;  %v2343_v27 = vor.u32 %v2758_v22, %v2342_v21  ;;  %1598 = vmatpush.bf16.msra.mxu0 %v2087_v25  ;;  %v2736_v17 = vld [vmem:[%s3382_s5 + $0x1c4] sm:$0xf] }
  0xe2   : > { %v2070_v28 = vld [vmem:[%s3382_s5 + $0x40] sm:$0xf]  ;;  %v2690_v29 = vld [vmem:[%s3382_s5 + $0x4c] sm:$0xf0]  ;;  %v2471_v31 = vor.u32 %v2790_v24, %v2470_v23  ;;  %1611 = vmatpush.bf16.msra.mxu1 %v2215_v26  ;;  %v2264_v18 = vld [vmem:[%s3382_s5 + $0x1d0] sm:$0xf0]  ;;  %v2139_v23 = vor.u32 %v2704_v14, %v2136_v16 }
  0xe3   : > { %v2198_v30 = vld [vmem:[%s3382_s5 + $0x140] sm:$0xf]  ;;  %v2722_v32 = vld [vmem:[%s3382_s5 + $0x14c] sm:$0xf0]  ;;  %v2071_v37 = vor.u32 %v2690_v29, %v2070_v28  ;;  %1624 = vmatpush.bf16.msra.mxu2 %v2343_v27  ;;  %v2768_v19 = vld [vmem:[%s3382_s5 + $0x2c4] sm:$0xf]  ;;  %v2267_v24 = vor.u32 %v2736_v17, %v2264_v18 }
  0xe4   : > { %v2326_v33 = vld [vmem:[%s3382_s5 + $0x240] sm:$0xf]  ;;  %v2754_v34 = vld [vmem:[%s3382_s5 + $0x24c] sm:$0xf0]  ;;  %v2199_v38 = vor.u32 %v2722_v32, %v2198_v30  ;;  %1637 = vmatpush.bf16.msra.mxu3 %v2471_v31  ;;  %v2392_v20 = vld [vmem:[%s3382_s5 + $0x2d0] sm:$0xf0] }
  0xe5   : > { %v2454_v35 = vld [vmem:[%s3382_s5 + $0x340] sm:$0xf]  ;;  %v2786_v36 = vld [vmem:[%s3382_s5 + $0x34c] sm:$0xf0]  ;;  %v2327_v39 = vor.u32 %v2754_v34, %v2326_v33  ;;  %1599 = vmatpush.bf16.msra.mxu0 %v2071_v37  ;;  %v2700_v26 = vld [vmem:[%s3382_s5 + $0xa4] sm:$0xf]  ;;  %v2395_v28 = vor.u32 %v2768_v19, %v2392_v20 }
  0xe6   : > { %v2054_v40 = vld [vmem:[%s3382_s5 + $0x20] sm:$0xf]  ;;  %v2686_v41 = vld [vmem:[%s3382_s5 + $0x2c] sm:$0xf0]  ;;  %v2455_v43 = vor.u32 %v2786_v36, %v2454_v35  ;;  %1612 = vmatpush.bf16.msra.mxu1 %v2199_v38  ;;  %v2120_v27 = vld [vmem:[%s3382_s5 + $0xb0] sm:$0xf0] }
  0xe7   : > { %v2182_v42 = vld [vmem:[%s3382_s5 + $0x120] sm:$0xf]  ;;  %v2718_v44 = vld [vmem:[%s3382_s5 + $0x12c] sm:$0xf0]  ;;  %v2055_v49 = vor.u32 %v2686_v41, %v2054_v40  ;;  %1625 = vmatpush.bf16.msra.mxu2 %v2327_v39  ;;  %v2732_v29 = vld [vmem:[%s3382_s5 + $0x1a4] sm:$0xf]  ;;  %v2123_v34 = vor.u32 %v2700_v26, %v2120_v27 }
  0xe8   : > { %v2310_v45 = vld [vmem:[%s3382_s5 + $0x220] sm:$0xf]  ;;  %v2750_v46 = vld [vmem:[%s3382_s5 + $0x22c] sm:$0xf0]  ;;  %v2183_v52 = vor.u32 %v2718_v44, %v2182_v42  ;;  %1638 = vmatpush.bf16.msra.mxu3 %v2455_v43  ;;  %v2248_v30 = vld [vmem:[%s3382_s5 + $0x1b0] sm:$0xf0] }
  0xe9   : > { %v2438_v47 = vld [vmem:[%s3382_s5 + $0x320] sm:$0xf]  ;;  %v2782_v48 = vld [vmem:[%s3382_s5 + $0x32c] sm:$0xf0]  ;;  %v2311_v53 = vor.u32 %v2750_v46, %v2310_v45  ;;  %1600 = vmatpush.bf16.msra.mxu0 %v2055_v49  ;;  %v2764_v31 = vld [vmem:[%s3382_s5 + $0x2a4] sm:$0xf]  ;;  %v2251_v37 = vor.u32 %v2732_v29, %v2248_v30 }
  0xea   : > { %v2038_v50 = vld [vmem:[%s3382_s5] sm:$0xf]  ;;  %v2682_v51 = vld [vmem:[%s3382_s5 + $0xc] sm:$0xf0]  ;;  %v2439_v57 = vor.u32 %v2782_v48, %v2438_v47  ;;  %1613 = vmatpush.bf16.msra.mxu1 %v2183_v52  ;;  %v2376_v32 = vld [vmem:[%s3382_s5 + $0x2b0] sm:$0xf0] }
  0xeb   : > { %v2166_v54 = vld [vmem:[%s3382_s5 + $0x100] sm:$0xf]  ;;  %v2714_v55 = vld [vmem:[%s3382_s5 + $0x10c] sm:$0xf0]  ;;  %v2039_v0 = vor.u32 %v2682_v51, %v2038_v50  ;;  %1626 = vmatpush.bf16.msra.mxu2 %v2311_v53  ;;  %v614_v36 = vld [vmem:[%s3370_s26 + $0x8] sm:$0xff]  ;;  %v2379_v44 = vor.u32 %v2764_v31, %v2376_v32 }
  0xec   : > { %v2294_v56 = vld [vmem:[%s3382_s5 + $0x200] sm:$0xf]  ;;  %v2746_v58 = vld [vmem:[%s3382_s5 + $0x20c] sm:$0xf0]  ;;  %v2167_v4 = vor.u32 %v2714_v55, %v2166_v54  ;;  %1639 = vmatpush.bf16.msra.mxu3 %v2439_v57  ;;  %v2696_v40 = vld [vmem:[%s3382_s5 + $0x84] sm:$0xf]  ;;  %v781_v42 = vunpack.c.l.b16 %v614_v36  ;;  %v782_v43 = vunpack.c.h.b16 %v614_v36 }
  0xed   : > { %v2422_v59 = vld [vmem:[%s3382_s5 + $0x300] sm:$0xf]  ;;  %v2778_v60 = vld [vmem:[%s3382_s5 + $0x30c] sm:$0xf0]  ;;  %v2295_v5 = vor.u32 %v2746_v58, %v2294_v56  ;;  %1601 = vmatpush.bf16.msra.mxu0 %v2039_v0  ;;  %v2104_v45 = vld [vmem:[%s3382_s5 + $0x90] sm:$0xf0] }
  0xee   : > { %v2662_v61 = vld [vmem:[%s3382_s5 + $0x4e0] sm:$0xf]  ;;  %v2838_v62 = vld [vmem:[%s3382_s5 + $0x4ec] sm:$0xf0]  ;;  %v2423_v8 = vor.u32 %v2778_v60, %v2422_v59  ;;  %1614 = vmatpush.bf16.msra.mxu1 %v2167_v4  ;;  %v2728_v46 = vld [vmem:[%s3382_s5 + $0x184] sm:$0xf]  ;;  %v3489_v52 = vpack.c.b16 %v781_v42, %v781_v42  ;;  %v3491_v53 = vpack.c.b16 %v782_v43, %v782_v43  ;;  %v2107_v56 = vor.u32 %v2696_v40, %v2104_v45 }
  0xef   : > { %v2663_v9 = vor.u32 %v2838_v62, %v2662_v61  ;;  %v2646_v12 = vld [vmem:[%s3382_s5 + $0x4c0] sm:$0xf]  ;;  %v2834_v13 = vld [vmem:[%s3382_s5 + $0x4cc] sm:$0xf0]  ;;  %1627 = vmatpush.bf16.msra.mxu2 %v2295_v5  ;;  %v2232_v47 = vld [vmem:[%s3382_s5 + $0x190] sm:$0xf0] }
  0xf0   : > { %1640 = vmatpush.bf16.msra.mxu3 %v2423_v8  ;;  %v2647_v21 = vor.u32 %v2834_v13, %v2646_v12  ;;  %v2630_v22 = vld [vmem:[%s3382_s5 + $0x4a0] sm:$0xf]  ;;  %v2830_v25 = vld [vmem:[%s3382_s5 + $0x4ac] sm:$0xf0]  ;;  %v2760_v49 = vld [vmem:[%s3382_s5 + $0x284] sm:$0xf]  ;;  %v2235_v57 = vor.u32 %v2728_v46, %v2232_v47 }
  0xf1   : > { %1646 = vmatpush.bf16.msrb.mxu0 %v2663_v9  ;;  %v2631_v33 = vor.u32 %v2830_v25, %v2630_v22  ;;  %v613_v35 = vld [vmem:[%s3370_s26] sm:$0xff]  ;;  %v2826_v39 = vld [vmem:[%s3382_s5 + $0x48c] sm:$0xf0]  ;;  %v2360_v50 = vld [vmem:[%s3382_s5 + $0x290] sm:$0xf0] }
  0xf2   : > { %1659 = vmatpush.bf16.msrb.mxu1 %v2155_v10  ;;  %v2614_v38 = vld [vmem:[%s3382_s5 + $0x480] sm:$0xf]  ;;  %v779_v41 = vunpack.c.l.b16 %v613_v35  ;;  %v780_v48 = vunpack.c.h.b16 %v613_v35  ;;  %v2822_v59 = vld [vmem:[%s3382_s5 + $0x46c] sm:$0xf0]  ;;  %v2692_v60 = vld [vmem:[%s3382_s5 + $0x64] sm:$0xf]  ;;  %v2363_v61 = vor.u32 %v2760_v49, %v2360_v50  ;;  %1628 = vmatmul.bf16.vlgmr.msra.gmra.mxu2 %v3489_v52 }
  0xf3   : > { %1672 = vmatpush.bf16.msrb.mxu2 %v2283_v11  ;;  %v2615_v54 = vor.u32 %v2826_v39, %v2614_v38  ;;  %v2598_v58 = vld [vmem:[%s3382_s5 + $0x460] sm:$0xf]  ;;  %v2088_v62 = vld [vmem:[%s3382_s5 + $0x70] sm:$0xf0]  ;;  %v2724_v63 = vld [vmem:[%s3382_s5 + $0x164] sm:$0xf]  ;;  %1641 = vmatmul.bf16.vlgmr.msra.gmra.mxu3 %v3491_v53 }
  0xf4   : > { %1685 = vmatpush.bf16.msrb.mxu3 %v2411_v15  ;;  %v3487_v51 = vpack.c.b16 %v779_v41, %v779_v41  ;;  %v3493_v55 = vpack.c.b16 %v780_v48, %v780_v48  ;;  %v2216_v0 = vld [vmem:[%s3382_s5 + $0x170] sm:$0xf0]  ;;  %v2756_v1 = vld [vmem:[%s3382_s5 + $0x264] sm:$0xf]  ;;  %v2599_v3 = vor.u32 %v2822_v59, %v2598_v58  ;;  %v2091_v4 = vor.u32 %v2692_v60, %v2088_v62  ;;  %v2582_v6 = vld [vmem:[%s3382_s5 + $0x440] sm:$0xf] }
  0xf5   : > { %1647 = vmatpush.bf16.msrb.mxu0 %v2647_v21  ;;  %v2344_v2 = vld [vmem:[%s3382_s5 + $0x270] sm:$0xf0]  ;;  %v2219_v5 = vor.u32 %v2724_v63, %v2216_v0  ;;  %v2818_v7 = vld [vmem:[%s3382_s5 + $0x44c] sm:$0xf0]  ;;  %v2688_v8 = vld [vmem:[%s3382_s5 + $0x44] sm:$0xf] }
  0xf6   : > { %1660 = vmatpush.bf16.msrb.mxu1 %v2139_v23  ;;  %1602 = vmatmul.bf16.vlgmr.msra.gmra.mxu0 %v3487_v51  ;;  %v2347_v9 = vor.u32 %v2756_v1, %v2344_v2  ;;  %v2072_v10 = vld [vmem:[%s3382_s5 + $0x50] sm:$0xf0]  ;;  %v2720_v11 = vld [vmem:[%s3382_s5 + $0x144] sm:$0xf]  ;;  %v2583_v15 = vor.u32 %v2818_v7, %v2582_v6  ;;  %v2566_v18 = vld [vmem:[%s3382_s5 + $0x420] sm:$0xf] }
  0xf7   : > { %1673 = vmatpush.bf16.msrb.mxu2 %v2267_v24  ;;  %1615 = vmatmul.bf16.vlgmr.msra.gmra.mxu1 %v3493_v55  ;;  %v2200_v12 = vld [vmem:[%s3382_s5 + $0x150] sm:$0xf0]  ;;  %v2752_v13 = vld [vmem:[%s3382_s5 + $0x244] sm:$0xf]  ;;  %v2075_v16 = vor.u32 %v2688_v8, %v2072_v10  ;;  %v2814_v19 = vld [vmem:[%s3382_s5 + $0x42c] sm:$0xf0] }
  0xf8   : > { %1686 = vmatpush.bf16.msrb.mxu3 %v2395_v28  ;;  %v2328_v14 = vld [vmem:[%s3382_s5 + $0x250] sm:$0xf0]  ;;  %v2203_v17 = vor.u32 %v2720_v11, %v2200_v12  ;;  %v2684_v20 = vld [vmem:[%s3382_s5 + $0x24] sm:$0xf]  ;;  %v2567_v27 = vor.u32 %v2814_v19, %v2566_v18  ;;  %v2550_v28 = vld [vmem:[%s3382_s5 + $0x400] sm:$0xf] }
  0xf9   : > { %1648 = vmatpush.bf16.msrb.mxu0 %v2631_v33  ;;  %v2331_v21 = vor.u32 %v2752_v13, %v2328_v14  ;;  %v2056_v22 = vld [vmem:[%s3382_s5 + $0x30] sm:$0xf0]  ;;  %v2716_v23 = vld [vmem:[%s3382_s5 + $0x124] sm:$0xf]  ;;  %v2810_v29 = vld [vmem:[%s3382_s5 + $0x40c] sm:$0xf0] }
  0xfa   : > { %1661 = vmatpush.bf16.msrb.mxu1 %v2123_v34  ;;  %v2184_v24 = vld [vmem:[%s3382_s5 + $0x130] sm:$0xf0]  ;;  %v2748_v25 = vld [vmem:[%s3382_s5 + $0x224] sm:$0xf]  ;;  %v2059_v31 = vor.u32 %v2684_v20, %v2056_v22  ;;  %v615_v35 = vld [vmem:[%s3370_s26 + $0x10] sm:$0xf]  ;;  %v2551_v43 = vor.u32 %v2810_v29, %v2550_v28 }
  0xfb   : > { %1674 = vmatpush.bf16.msrb.mxu2 %v2251_v37  ;;  %v2312_v26 = vld [vmem:[%s3382_s5 + $0x230] sm:$0xf0]  ;;  %v2680_v30 = vld [vmem:[%s3382_s5 + $0x4] sm:$0xf]  ;;  %v2187_v32 = vor.u32 %v2716_v23, %v2184_v24  ;;  %v2158_v45 = vld [vmem:[%s3382_s5 + $0xe8] sm:$0xf]  ;;  %v783_v47 = vunpack.c.l.b16 %v615_v35 }
  0xfc   : > { %1687 = vmatpush.bf16.msrb.mxu3 %v2379_v44  ;;  %v2040_v33 = vld [vmem:[%s3382_s5 + $0x10] sm:$0xf0]  ;;  %v2712_v34 = vld [vmem:[%s3382_s5 + $0x104] sm:$0xf]  ;;  %v2315_v36 = vor.u32 %v2748_v25, %v2312_v26  ;;  %v2711_v46 = vld [vmem:[%s3382_s5 + $0xf4] sm:$0xf0] }
  0xfd   : > { %1649 = vmatpush.bf16.msrb.mxu0 %v2615_v54  ;;  %v2168_v37 = vld [vmem:[%s3382_s5 + $0x110] sm:$0xf0]  ;;  %v2744_v38 = vld [vmem:[%s3382_s5 + $0x204] sm:$0xf]  ;;  %v2043_v48 = vor.u32 %v2680_v30, %v2040_v33  ;;  %v2286_v50 = vld [vmem:[%s3382_s5 + $0x1e8] sm:$0xf]  ;;  %v2159_v59 = vor.u32 %v2711_v46, %v2158_v45 }
  0xfe   : > { %1662 = vmatpush.bf16.msrb.mxu1 %v2107_v56  ;;  %v2296_v39 = vld [vmem:[%s3382_s5 + $0x210] sm:$0xf0]  ;;  %v2804_v40 = vld [vmem:[%s3382_s5 + $0x3e4] sm:$0xf]  ;;  %v2171_v49 = vor.u32 %v2712_v34, %v2168_v37  ;;  %v2743_v54 = vld [vmem:[%s3382_s5 + $0x1f4] sm:$0xf0] }
  0xff   : > { %1675 = vmatpush.bf16.msrb.mxu2 %v2235_v57  ;;  %v2536_v41 = vld [vmem:[%s3382_s5 + $0x3f0] sm:$0xf0]  ;;  %v2836_v42 = vld [vmem:[%s3382_s5 + $0x4e4] sm:$0xf]  ;;  %v2299_v56 = vor.u32 %v2744_v38, %v2296_v39  ;;  %v2287_v63 = vor.u32 %v2743_v54, %v2286_v50  ;;  %v2142_v1 = vld [vmem:[%s3382_s5 + $0xc8] sm:$0xf] }
 0x100   : > { %1688 = vmatpush.bf16.msrb.mxu3 %v2363_v61  ;;  %v2664_v44 = vld [vmem:[%s3382_s5 + $0x4f0] sm:$0xf0]  ;;  %v2539_v57 = vor.u32 %v2804_v40, %v2536_v41  ;;  %v2800_v60 = vld [vmem:[%s3382_s5 + $0x3c4] sm:$0xf]  ;;  %v2707_v2 = vld [vmem:[%s3382_s5 + $0xd4] sm:$0xf0] }
 0x101   : > { %1650 = vmatpush.bf16.msrb.mxu0 %v2599_v3  ;;  %v2667_v58 = vor.u32 %v2836_v42, %v2664_v44  ;;  %v2520_v61 = vld [vmem:[%s3382_s5 + $0x3d0] sm:$0xf0]  ;;  %v2832_v62 = vld [vmem:[%s3382_s5 + $0x4c4] sm:$0xf]  ;;  %v3546_v3 = vpack.c.b16 %v783_v47, %v783_v47  ;;  %v2143_v8 = vor.u32 %v2707_v2, %v2142_v1  ;;  %v2126_v14 = vld [vmem:[%s3382_s5 + $0xa8] sm:$0xf] }
 0x102   : > { %1663 = vmatpush.bf16.msrb.mxu1 %v2091_v4  ;;  %v2648_v0 = vld [vmem:[%s3382_s5 + $0x4d0] sm:$0xf0]  ;;  %v2270_v4 = vld [vmem:[%s3382_s5 + $0x1c8] sm:$0xf]  ;;  %v2523_v6 = vor.u32 %v2800_v60, %v2520_v61  ;;  %v2828_v11 = vld [vmem:[%s3382_s5 + $0x4a4] sm:$0xf] }
 0x103   : > { %1676 = vmatpush.bf16.msrb.mxu2 %v2219_v5  ;;  %v2739_v5 = vld [vmem:[%s3382_s5 + $0x1d4] sm:$0xf0]  ;;  %v2651_v7 = vor.u32 %v2832_v62, %v2648_v0  ;;  %v2504_v10 = vld [vmem:[%s3382_s5 + $0x3b0] sm:$0xf0]  ;;  %v2824_v23 = vld [vmem:[%s3382_s5 + $0x484] sm:$0xf] }
 0x104   : > { %1689 = vmatpush.bf16.msrb.mxu3 %v2347_v9  ;;  %v2796_v9 = vld [vmem:[%s3382_s5 + $0x3a4] sm:$0xf]  ;;  %v2271_v12 = vor.u32 %v2739_v5, %v2270_v4  ;;  %v2632_v13 = vld [vmem:[%s3382_s5 + $0x4b0] sm:$0xf0]  ;;  %v2110_v26 = vld [vmem:[%s3382_s5 + $0x88] sm:$0xf] }
 0x105   : > { %1651 = vmatpush.bf16.msrb.mxu0 %v2583_v15  ;;  %v2703_v15 = vld [vmem:[%s3382_s5 + $0xb4] sm:$0xf0]  ;;  %v2507_v18 = vor.u32 %v2796_v9, %v2504_v10  ;;  %v2635_v19 = vor.u32 %v2828_v11, %v2632_v13  ;;  %v2488_v22 = vld [vmem:[%s3382_s5 + $0x390] sm:$0xf0]  ;;  %v2238_v28 = vld [vmem:[%s3382_s5 + $0x188] sm:$0xf] }
 0x106   : > { %1664 = vmatpush.bf16.msrb.mxu1 %v2075_v16  ;;  %v2254_v16 = vld [vmem:[%s3382_s5 + $0x1a8] sm:$0xf]  ;;  %v2127_v20 = vor.u32 %v2703_v15, %v2126_v14  ;;  %v2616_v25 = vld [vmem:[%s3382_s5 + $0x490] sm:$0xf0]  ;;  %v2731_v29 = vld [vmem:[%s3382_s5 + $0x194] sm:$0xf0] }
 0x107   : > { %1677 = vmatpush.bf16.msrb.mxu2 %v2203_v17  ;;  %v2735_v17 = vld [vmem:[%s3382_s5 + $0x1b4] sm:$0xf0]  ;;  %v2788_v33 = vld [vmem:[%s3382_s5 + $0x364] sm:$0xf]  ;;  %v2472_v34 = vld [vmem:[%s3382_s5 + $0x370] sm:$0xf0] }
 0x108   : > { %1690 = vmatpush.bf16.msrb.mxu3 %v2331_v21  ;;  %v2792_v21 = vld [vmem:[%s3382_s5 + $0x384] sm:$0xf]  ;;  %v2255_v24 = vor.u32 %v2735_v17, %v2254_v16  ;;  %v2600_v37 = vld [vmem:[%s3382_s5 + $0x470] sm:$0xf0]  ;;  %v2094_v38 = vld [vmem:[%s3382_s5 + $0x68] sm:$0xf]  ;;  %v2475_v42 = vor.u32 %v2788_v33, %v2472_v34 }
 0x109   : > { %1652 = vmatpush.bf16.msrb.mxu0 %v2567_v27  ;;  %v2699_v27 = vld [vmem:[%s3382_s5 + $0x94] sm:$0xf0]  ;;  %v2491_v30 = vor.u32 %v2792_v21, %v2488_v22  ;;  %v2820_v35 = vld [vmem:[%s3382_s5 + $0x464] sm:$0xf]  ;;  %v2222_v40 = vld [vmem:[%s3382_s5 + $0x168] sm:$0xf] }
 0x10a   : > { %1665 = vmatpush.bf16.msrb.mxu1 %v2059_v31  ;;  %v2619_v31 = vor.u32 %v2824_v23, %v2616_v25  ;;  %v2695_v39 = vld [vmem:[%s3382_s5 + $0x74] sm:$0xf0]  ;;  %v2784_v45 = vld [vmem:[%s3382_s5 + $0x344] sm:$0xf]  ;;  %v2456_v46 = vld [vmem:[%s3382_s5 + $0x350] sm:$0xf0] }
 0x10b   : > { %1678 = vmatpush.bf16.msrb.mxu2 %v2187_v32  ;;  %v2111_v32 = vor.u32 %v2699_v27, %v2110_v26  ;;  %v2727_v41 = vld [vmem:[%s3382_s5 + $0x174] sm:$0xf0]  ;;  %v2095_v44 = vor.u32 %v2695_v39, %v2094_v38  ;;  %v2816_v47 = vld [vmem:[%s3382_s5 + $0x444] sm:$0xf]  ;;  %v2078_v50 = vld [vmem:[%s3382_s5 + $0x48] sm:$0xf] }
 0x10c   : > { %1691 = vmatpush.bf16.msrb.mxu3 %v2315_v36  ;;  %v2239_v36 = vor.u32 %v2731_v29, %v2238_v28  ;;  %v2691_v54 = vld [vmem:[%s3382_s5 + $0x54] sm:$0xf0]  ;;  %v2780_v61 = vld [vmem:[%s3382_s5 + $0x324] sm:$0xf]  ;;  %v2440_v62 = vld [vmem:[%s3382_s5 + $0x330] sm:$0xf0] }
 0x10d   : > { %1653 = vmatpush.bf16.msrb.mxu0 %v2551_v43  ;;  %v2603_v43 = vor.u32 %v2820_v35, %v2600_v37  ;;  %v2079_v60 = vor.u32 %v2691_v54, %v2078_v50  ;;  %v2568_v1 = vld [vmem:[%s3382_s5 + $0x430] sm:$0xf0]  ;;  %v2062_v2 = vld [vmem:[%s3382_s5 + $0x28] sm:$0xf]  ;;  %v2687_v4 = vld [vmem:[%s3382_s5 + $0x34] sm:$0xf0] }
 0x10e   : > { %1666 = vmatpush.bf16.msrb.mxu1 %v2043_v48  ;;  %v2223_v48 = vor.u32 %v2727_v41, %v2222_v40  ;;  %v2190_v5 = vld [vmem:[%s3382_s5 + $0x128] sm:$0xf]  ;;  %v2424_v9 = vld [vmem:[%s3382_s5 + $0x310] sm:$0xf0]  ;;  %v2063_v11 = vor.u32 %v2687_v4, %v2062_v2  ;;  %v2683_v16 = vld [vmem:[%s3382_s5 + $0x14] sm:$0xf0] }
 0x10f   : > { %1679 = vmatpush.bf16.msrb.mxu2 %v2171_v49  ;;  %v2584_v49 = vld [vmem:[%s3382_s5 + $0x450] sm:$0xf0]  ;;  %v2046_v14 = vld [vmem:[%s3382_s5 + $0x8] sm:$0xf]  ;;  %v2807_v23 = vld [vmem:[%s3382_s5 + $0x3f4] sm:$0xf0] }
 0x110   : > { %1692 = vmatpush.bf16.msrb.mxu3 %v2299_v56  ;;  %1654 = vmatmul.bf16.vlgmr.msrb.gmra.mxu0 %v3546_v3  ;;  %v2206_v56 = vld [vmem:[%s3382_s5 + $0x148] sm:$0xf]  ;;  %v2552_v13 = vld [vmem:[%s3382_s5 + $0x410] sm:$0xf0]  ;;  %v2839_v25 = vld [vmem:[%s3382_s5 + $0x4f4] sm:$0xf0]  ;;  %v2047_v27 = vor.u32 %v2683_v16, %v2046_v14 }
 0x111   : > { %1698 = vmatpush.bf16.msra.mxu0 %v2539_v57  ;;  %1667 = vmatmul.bf16.vlgmr.msrb.gmra.mxu1 %v3487_v51  ;;  %v2723_v57 = vld [vmem:[%s3382_s5 + $0x154] sm:$0xf0]  ;;  %v2174_v17 = vld [vmem:[%s3382_s5 + $0x108] sm:$0xf]  ;;  %v2709_v28 = vld [vmem:[%s3382_s5 + $0xec] sm:$0xf] }
 0x112   : > { %1711 = vmatpush.bf16.msra.mxu1 %v2667_v58  ;;  %1680 = vmatmul.bf16.vlgmr.msrb.gmra.mxu2 %v3493_v55  ;;  %v2459_v58 = vor.u32 %v2784_v45, %v2456_v46  ;;  %v2207_v0 = vor.u32 %v2723_v57, %v2206_v56  ;;  %v2542_v21 = vld [vmem:[%s3382_s5 + $0x3e8] sm:$0xf]  ;;  %v2160_v29 = vld [vmem:[%s3382_s5 + $0xf8] sm:$0xf0]  ;;  %v2771_v35 = vld [vmem:[%s3382_s5 + $0x2d4] sm:$0xf0] }
 0x113   : > { %1724 = vmatpush.bf16.msra.mxu2 %v2159_v59  ;;  %1693 = vmatmul.bf16.vlgmr.msrb.gmra.mxu3 %v3489_v52  ;;  %v2587_v59 = vor.u32 %v2816_v47, %v2584_v49  ;;  %v2398_v34 = vld [vmem:[%s3382_s5 + $0x2c8] sm:$0xf]  ;;  %v2163_v37 = vor.u32 %v2709_v28, %v2160_v29  ;;  %v2803_v38 = vld [vmem:[%s3382_s5 + $0x3d4] sm:$0xf0]  ;;  %v2705_v41 = vld [vmem:[%s3382_s5 + $0xcc] sm:$0xf] }
 0x114   : > { %1737 = vmatpush.bf16.msra.mxu3 %v2287_v63  ;;  %v2812_v63 = vld [vmem:[%s3382_s5 + $0x424] sm:$0xf]  ;;  %v2654_v39 = vld [vmem:[%s3382_s5 + $0x4c8] sm:$0xf]  ;;  %v2835_v40 = vld [vmem:[%s3382_s5 + $0x4d4] sm:$0xf0] }
 0x115   : > { %1699 = vmatpush.bf16.msra.mxu0 %v2523_v6  ;;  %v2719_v6 = vld [vmem:[%s3382_s5 + $0x134] sm:$0xf0]  ;;  %v2571_v10 = vor.u32 %v2812_v63, %v2568_v1  ;;  %v2655_v45 = vor.u32 %v2835_v40, %v2654_v39  ;;  %v2382_v46 = vld [vmem:[%s3382_s5 + $0x2a8] sm:$0xf]  ;;  %v2701_v57 = vld [vmem:[%s3382_s5 + $0xac] sm:$0xf] }
 0x116   : > { %1712 = vmatpush.bf16.msra.mxu1 %v2651_v7  ;;  %v2443_v7 = vor.u32 %v2780_v61, %v2440_v62  ;;  %v2191_v15 = vor.u32 %v2719_v6, %v2190_v5  ;;  %v2767_v47 = vld [vmem:[%s3382_s5 + $0x2b4] sm:$0xf0]  ;;  %v2638_v54 = vld [vmem:[%s3382_s5 + $0x4a8] sm:$0xf]  ;;  %v2697_v6 = vld [vmem:[%s3382_s5 + $0x8c] sm:$0xf] }
 0x117   : > { %1725 = vmatpush.bf16.msra.mxu2 %v2143_v8  ;;  %v2776_v8 = vld [vmem:[%s3382_s5 + $0x304] sm:$0xf]  ;;  %v2799_v50 = vld [vmem:[%s3382_s5 + $0x3b4] sm:$0xf0]  ;;  %v2366_v62 = vld [vmem:[%s3382_s5 + $0x288] sm:$0xf] }
 0x118   : > { %1738 = vmatpush.bf16.msra.mxu3 %v2271_v12  ;;  %v2808_v12 = vld [vmem:[%s3382_s5 + $0x404] sm:$0xf]  ;;  %v2427_v22 = vor.u32 %v2776_v8, %v2424_v9  ;;  %v2831_v56 = vld [vmem:[%s3382_s5 + $0x4b4] sm:$0xf0]  ;;  %v2622_v4 = vld [vmem:[%s3382_s5 + $0x488] sm:$0xf] }
 0x119   : > { %1700 = vmatpush.bf16.msra.mxu0 %v2507_v18  ;;  %v2715_v18 = vld [vmem:[%s3382_s5 + $0x114] sm:$0xf0]  ;;  %v2555_v26 = vor.u32 %v2808_v12, %v2552_v13  ;;  %v2639_v61 = vor.u32 %v2831_v56, %v2638_v54  ;;  %v2478_v13 = vld [vmem:[%s3382_s5 + $0x368] sm:$0xf] }
 0x11a   : > { %1713 = vmatpush.bf16.msra.mxu1 %v2635_v19  ;;  %v2414_v19 = vld [vmem:[%s3382_s5 + $0x2e8] sm:$0xf]  ;;  %v2763_v63 = vld [vmem:[%s3382_s5 + $0x294] sm:$0xf0] }
 0x11b   : > { %1726 = vmatpush.bf16.msra.mxu2 %v2127_v20  ;;  %v2775_v20 = vld [vmem:[%s3382_s5 + $0x2f4] sm:$0xf0]  ;;  %v2367_v8 = vor.u32 %v2763_v63, %v2366_v62  ;;  %v2606_v16 = vld [vmem:[%s3382_s5 + $0x468] sm:$0xf]  ;;  %v2773_v62 = vld [vmem:[%s3382_s5 + $0x2ec] sm:$0xf] }
 0x11c   : > { %1739 = vmatpush.bf16.msra.mxu3 %v2255_v24  ;;  %v2670_v24 = vld [vmem:[%s3382_s5 + $0x4e8] sm:$0xf]  ;;  %v2795_v2 = vld [vmem:[%s3382_s5 + $0x394] sm:$0xf0] }
 0x11d   : > { %1701 = vmatpush.bf16.msra.mxu0 %v2491_v30  ;;  %v2175_v30 = vor.u32 %v2715_v18, %v2174_v17  ;;  %v2671_v33 = vor.u32 %v2839_v25, %v2670_v24  ;;  %v2827_v5 = vld [vmem:[%s3382_s5 + $0x494] sm:$0xf0]  ;;  %v2693_v18 = vld [vmem:[%s3382_s5 + $0x6c] sm:$0xf]  ;;  %v2462_v25 = vld [vmem:[%s3382_s5 + $0x348] sm:$0xf] }
 0x11e   : > { %1714 = vmatpush.bf16.msra.mxu1 %v2619_v31  ;;  %v2415_v31 = vor.u32 %v2775_v20, %v2414_v19  ;;  %v2759_v12 = vld [vmem:[%s3382_s5 + $0x274] sm:$0xf0]  ;;  %v2096_v19 = vld [vmem:[%s3382_s5 + $0x78] sm:$0xf0]  ;;  %v2590_v28 = vld [vmem:[%s3382_s5 + $0x448] sm:$0xf] }
 0x11f   : > { %1727 = vmatpush.bf16.msra.mxu2 %v2111_v32  ;;  %v2543_v32 = vor.u32 %v2807_v23, %v2542_v21  ;;  %v2823_v17 = vld [vmem:[%s3382_s5 + $0x474] sm:$0xf0]  ;;  %v2334_v23 = vld [vmem:[%s3382_s5 + $0x248] sm:$0xf] }
 0x120   : > { %1740 = vmatpush.bf16.msra.mxu3 %v2239_v36  ;;  %v2526_v36 = vld [vmem:[%s3382_s5 + $0x3c8] sm:$0xf]  ;;  %v2755_v24 = vld [vmem:[%s3382_s5 + $0x254] sm:$0xf0] }
 0x121   : > { %1702 = vmatpush.bf16.msra.mxu0 %v2475_v42  ;;  %v2144_v42 = vld [vmem:[%s3382_s5 + $0xd8] sm:$0xf0]  ;;  %v2819_v29 = vld [vmem:[%s3382_s5 + $0x454] sm:$0xf0]  ;;  %v2574_v40 = vld [vmem:[%s3382_s5 + $0x428] sm:$0xf] }
 0x122   : > { %1715 = vmatpush.bf16.msra.mxu1 %v2603_v43  ;;  %v2399_v43 = vor.u32 %v2771_v35, %v2398_v34  ;;  %v2147_v49 = vor.u32 %v2705_v41, %v2144_v42  ;;  %v2591_v34 = vor.u32 %v2819_v29, %v2590_v28  ;;  %v2318_v35 = vld [vmem:[%s3382_s5 + $0x228] sm:$0xf]  ;;  %v2783_v39 = vld [vmem:[%s3382_s5 + $0x334] sm:$0xf0]  ;;  %v2685_v42 = vld [vmem:[%s3382_s5 + $0x2c] sm:$0xf] }
 0x123   : > { %1728 = vmatpush.bf16.msra.mxu2 %v2095_v44  ;;  %v2527_v44 = vor.u32 %v2803_v38, %v2526_v36  ;;  %v2751_v36 = vld [vmem:[%s3382_s5 + $0x234] sm:$0xf0]  ;;  %v2558_v54 = vld [vmem:[%s3382_s5 + $0x408] sm:$0xf]  ;;  %v2384_v28 = vld [vmem:[%s3382_s5 + $0x2b8] sm:$0xf0] }
 0x124   : > { %1741 = vmatpush.bf16.msra.mxu3 %v2223_v48  ;;  %v2510_v48 = vld [vmem:[%s3382_s5 + $0x3a8] sm:$0xf]  ;;  %v2815_v41 = vld [vmem:[%s3382_s5 + $0x434] sm:$0xf0]  ;;  %v2797_v29 = vld [vmem:[%s3382_s5 + $0x3ac] sm:$0xf] }
 0x125   : > { %1703 = vmatpush.bf16.msra.mxu0 %v2459_v58  ;;  %v2128_v58 = vld [vmem:[%s3382_s5 + $0xb8] sm:$0xf0] }
 0x126   : > { %1716 = vmatpush.bf16.msra.mxu1 %v2587_v59  ;;  %v2383_v59 = vor.u32 %v2767_v47, %v2382_v46  ;;  %v2131_v1 = vor.u32 %v2701_v57, %v2128_v58  ;;  %v2747_v46 = vld [vmem:[%s3382_s5 + $0x214] sm:$0xf0]  ;;  %v2681_v58 = vld [vmem:[%s3382_s5 + $0xc] sm:$0xf] }
 0x127   : > { %1729 = vmatpush.bf16.msra.mxu2 %v2079_v60  ;;  %v2511_v60 = vor.u32 %v2799_v50, %v2510_v48  ;;  %v2575_v48 = vor.u32 %v2815_v41, %v2574_v40  ;;  %v2779_v50 = vld [vmem:[%s3382_s5 + $0x314] sm:$0xf0]  ;;  %v2793_v40 = vld [vmem:[%s3382_s5 + $0x38c] sm:$0xf]  ;;  %v2496_v41 = vld [vmem:[%s3382_s5 + $0x398] sm:$0xf0] }
 0x128   : > { %1742 = vmatpush.bf16.msra.mxu3 %v2207_v0  ;;  %v2494_v0 = vld [vmem:[%s3382_s5 + $0x388] sm:$0xf]  ;;  %v2811_v57 = vld [vmem:[%s3382_s5 + $0x414] sm:$0xf0] }
 0x129   : > { %1704 = vmatpush.bf16.msra.mxu0 %v2443_v7  ;;  %v2112_v7 = vld [vmem:[%s3382_s5 + $0x98] sm:$0xf0]  ;;  %v2495_v9 = vor.u32 %v2795_v2, %v2494_v0 }
 0x12a   : > { %1717 = vmatpush.bf16.msra.mxu1 %v2571_v10  ;;  %v2623_v10 = vor.u32 %v2827_v5, %v2622_v4  ;;  %v2115_v14 = vor.u32 %v2697_v6, %v2112_v7  ;;  %v2416_v0 = vld [vmem:[%s3382_s5 + $0x2f8] sm:$0xf0]  ;;  %v2559_v5 = vor.u32 %v2811_v57, %v2558_v54  ;;  %v2837_v6 = vld [vmem:[%s3382_s5 + $0x4ec] sm:$0xf] }
 0x12b   : > { %1730 = vmatpush.bf16.msra.mxu2 %v2063_v11  ;;  %v2350_v11 = vld [vmem:[%s3382_s5 + $0x268] sm:$0xf]  ;;  %v2544_v2 = vld [vmem:[%s3382_s5 + $0x3f8] sm:$0xf0] }
 0x12c   : > { %1743 = vmatpush.bf16.msra.mxu3 %v2191_v15  ;;  %v2791_v15 = vld [vmem:[%s3382_s5 + $0x374] sm:$0xf0]  ;;  %v2351_v20 = vor.u32 %v2759_v12, %v2350_v11  ;;  %v2672_v7 = vld [vmem:[%s3382_s5 + $0x4f8] sm:$0xf0]  ;;  %v2737_v12 = vld [vmem:[%s3382_s5 + $0x1cc] sm:$0xf] }
 0x12d   : > { %1705 = vmatpush.bf16.msra.mxu0 %v2427_v22  ;;  %v2479_v21 = vor.u32 %v2791_v15, %v2478_v13  ;;  %v2607_v22 = vor.u32 %v2823_v17, %v2606_v16  ;;  %v2272_v13 = vld [vmem:[%s3382_s5 + $0x1d8] sm:$0xf0]  ;;  %v2675_v15 = vor.u32 %v2837_v6, %v2672_v7  ;;  %v2801_v17 = vld [vmem:[%s3382_s5 + $0x3cc] sm:$0xf] }
 0x12e   : > { %1718 = vmatpush.bf16.msra.mxu1 %v2555_v26  ;;  %v2099_v26 = vor.u32 %v2693_v18, %v2096_v19  ;;  %v2400_v16 = vld [vmem:[%s3382_s5 + $0x2d8] sm:$0xf0]  ;;  %v2833_v19 = vld [vmem:[%s3382_s5 + $0x4cc] sm:$0xf] }
 0x12f   : > { %1731 = vmatpush.bf16.msra.mxu2 %v2047_v27  ;;  %v2787_v27 = vld [vmem:[%s3382_s5 + $0x354] sm:$0xf0]  ;;  %v2528_v18 = vld [vmem:[%s3382_s5 + $0x3d8] sm:$0xf0]  ;;  %v2817_v7 = vld [vmem:[%s3382_s5 + $0x44c] sm:$0xf] }
 0x130   : > { %1744 = vmatpush.bf16.msra.mxu3 %v2175_v30  ;;  %1706 = vmatmul.bf16.vlgmr.msra.gmra.mxu0 %v3491_v53  ;;  %v2689_v30 = vld [vmem:[%s3382_s5 + $0x4c] sm:$0xf]  ;;  %v2352_v54 = vld [vmem:[%s3382_s5 + $0x278] sm:$0xf0] }
 0x131   : > { %1750 = vmatpush.bf16.msrb.mxu0 %v2415_v31  ;;  %1719 = vmatmul.bf16.vlgmr.msra.gmra.mxu1 %v3546_v3  ;;  %v2080_v31 = vld [vmem:[%s3382_s5 + $0x58] sm:$0xf0] }
 0x132   : > { %1763 = vmatpush.bf16.msrb.mxu1 %v2543_v32  ;;  %1732 = vmatmul.bf16.vlgmr.msra.gmra.mxu2 %v3487_v51  ;;  %v2335_v32 = vor.u32 %v2755_v24, %v2334_v23  ;;  %v2083_v38 = vor.u32 %v2689_v30, %v2080_v31  ;;  %v2531_v23 = vor.u32 %v2801_v17, %v2528_v18  ;;  %v2733_v24 = vld [vmem:[%s3382_s5 + $0x1ac] sm:$0xf]  ;;  %v2512_v30 = vld [vmem:[%s3382_s5 + $0x3b8] sm:$0xf0] }
 0x133   : > { %1776 = vmatpush.bf16.msrb.mxu2 %v2671_v33  ;;  %1745 = vmatmul.bf16.vlgmr.msra.gmra.mxu3 %v3493_v55  ;;  %v2463_v33 = vor.u32 %v2787_v27, %v2462_v25  ;;  %v2256_v25 = vld [vmem:[%s3382_s5 + $0x1b8] sm:$0xf0]  ;;  %v2829_v31 = vld [vmem:[%s3382_s5 + $0x4ac] sm:$0xf] }
 0x134   : > { %1789 = vmatpush.bf16.msrb.mxu3 %v2163_v37  ;;  %v2446_v37 = vld [vmem:[%s3382_s5 + $0x328] sm:$0xf]  ;;  %v2480_v57 = vld [vmem:[%s3382_s5 + $0x378] sm:$0xf0]  ;;  %v2781_v17 = vld [vmem:[%s3382_s5 + $0x32c] sm:$0xf] }
 0x135   : > { %1751 = vmatpush.bf16.msrb.mxu0 %v2399_v43  ;;  %v2064_v43 = vld [vmem:[%s3382_s5 + $0x38] sm:$0xf0]  ;;  %v2447_v47 = vor.u32 %v2783_v39, %v2446_v37 }
 0x136   : > { %1764 = vmatpush.bf16.msrb.mxu1 %v2527_v44  ;;  %v2319_v44 = vor.u32 %v2751_v36, %v2318_v35  ;;  %v2067_v56 = vor.u32 %v2685_v42, %v2064_v43  ;;  %v2515_v35 = vor.u32 %v2797_v29, %v2512_v30  ;;  %v2729_v36 = vld [vmem:[%s3382_s5 + $0x18c] sm:$0xf]  ;;  %v2240_v37 = vld [vmem:[%s3382_s5 + $0x198] sm:$0xf0] }
 0x137   : > { %1777 = vmatpush.bf16.msrb.mxu2 %v2655_v45  ;;  %v2302_v45 = vld [vmem:[%s3382_s5 + $0x208] sm:$0xf]  ;;  %v2368_v39 = vld [vmem:[%s3382_s5 + $0x298] sm:$0xf0]  ;;  %v2825_v42 = vld [vmem:[%s3382_s5 + $0x48c] sm:$0xf] }
 0x138   : > { %1790 = vmatpush.bf16.msrb.mxu3 %v2147_v49  ;;  %v2430_v49 = vld [vmem:[%s3382_s5 + $0x308] sm:$0xf]  ;;  %v2303_v63 = vor.u32 %v2747_v46, %v2302_v45  ;;  %v2624_v43 = vld [vmem:[%s3382_s5 + $0x498] sm:$0xf0]  ;;  %v2499_v46 = vor.u32 %v2793_v40, %v2496_v41  ;;  %v2777_v29 = vld [vmem:[%s3382_s5 + $0x30c] sm:$0xf] }
 0x139   : > { %1752 = vmatpush.bf16.msrb.mxu0 %v2383_v59  ;;  %v2048_v59 = vld [vmem:[%s3382_s5 + $0x18] sm:$0xf0]  ;;  %v2431_v4 = vor.u32 %v2779_v50, %v2430_v49  ;;  %v2757_v49 = vld [vmem:[%s3382_s5 + $0x26c] sm:$0xf]  ;;  %v2627_v50 = vor.u32 %v2825_v42, %v2624_v43 }
 0x13a   : > { %1765 = vmatpush.bf16.msrb.mxu1 %v2511_v60  ;;  %v2741_v60 = vld [vmem:[%s3382_s5 + $0x1ec] sm:$0xf]  ;;  %v2464_v6 = vld [vmem:[%s3382_s5 + $0x358] sm:$0xf0] }
 0x13b   : > { %1778 = vmatpush.bf16.msrb.mxu2 %v2639_v61  ;;  %v2288_v61 = vld [vmem:[%s3382_s5 + $0x1f8] sm:$0xf0] }
 0x13c   : > { %1791 = vmatpush.bf16.msrb.mxu3 %v2131_v1  ;;  %v2805_v1 = vld [vmem:[%s3382_s5 + $0x3ec] sm:$0xf]  ;;  %v2448_v18 = vld [vmem:[%s3382_s5 + $0x338] sm:$0xf0] }
 0x13d   : > { %1753 = vmatpush.bf16.msrb.mxu0 %v2367_v8  ;;  %v2051_v8 = vor.u32 %v2681_v58, %v2048_v59  ;;  %v2547_v11 = vor.u32 %v2805_v1, %v2544_v2  ;;  %v2821_v58 = vld [vmem:[%s3382_s5 + $0x46c] sm:$0xf]  ;;  %v2608_v59 = vld [vmem:[%s3382_s5 + $0x478] sm:$0xf0] }
 0x13e   : > { %1766 = vmatpush.bf16.msrb.mxu1 %v2495_v9  ;;  %v2291_v9 = vor.u32 %v2741_v60, %v2288_v61  ;;  %v2355_v61 = vor.u32 %v2757_v49, %v2352_v54  ;;  %v2753_v1 = vld [vmem:[%s3382_s5 + $0x24c] sm:$0xf]  ;;  %v2611_v2 = vor.u32 %v2821_v58, %v2608_v59  ;;  %v2432_v30 = vld [vmem:[%s3382_s5 + $0x318] sm:$0xf0] }
 0x13f   : > { %1779 = vmatpush.bf16.msrb.mxu2 %v2623_v10  ;;  %v2419_v10 = vor.u32 %v2773_v62, %v2416_v0  ;;  %v2208_v0 = vld [vmem:[%s3382_s5 + $0x158] sm:$0xf0] }
 0x140   : > { %1792 = vmatpush.bf16.msrb.mxu3 %v2115_v14  ;;  %v2769_v14 = vld [vmem:[%s3382_s5 + $0x2cc] sm:$0xf]  ;;  %v612_v49 = vld [vmem:[%s3380_s4 + $0x18] sm:$0xff] }
 0x141   : > { %1754 = vmatpush.bf16.msrb.mxu0 %v2351_v20  ;;  %v2656_v20 = vld [vmem:[%s3382_s5 + $0x4d8] sm:$0xf0] }
 0x142   : > { %1767 = vmatpush.bf16.msrb.mxu1 %v2479_v21  ;;  %v2275_v21 = vor.u32 %v2737_v12, %v2272_v13  ;;  %v2659_v27 = vor.u32 %v2833_v19, %v2656_v20  ;;  %v2717_v12 = vld [vmem:[%s3382_s5 + $0x12c] sm:$0xf]  ;;  %v2192_v13 = vld [vmem:[%s3382_s5 + $0x138] sm:$0xf0] }
 0x143   : > { %1780 = vmatpush.bf16.msrb.mxu2 %v2607_v22  ;;  %v2403_v22 = vor.u32 %v2769_v14, %v2400_v16  ;;  %v2749_v14 = vld [vmem:[%s3382_s5 + $0x22c] sm:$0xf]  ;;  %v2320_v16 = vld [vmem:[%s3382_s5 + $0x238] sm:$0xf0] }
 0x144   : > { %1793 = vmatpush.bf16.msrb.mxu3 %v2099_v26  ;;  %v2765_v26 = vld [vmem:[%s3382_s5 + $0x2ac] sm:$0xf]  ;;  %v2576_v20 = vld [vmem:[%s3382_s5 + $0x438] sm:$0xf0] }
 0x145   : > { %1755 = vmatpush.bf16.msrb.mxu0 %v2335_v32  ;;  %v2640_v32 = vld [vmem:[%s3382_s5 + $0x4b8] sm:$0xf0]  ;;  %v2813_v19 = vld [vmem:[%s3382_s5 + $0x42c] sm:$0xf] }
 0x146   : > { %1768 = vmatpush.bf16.msrb.mxu1 %v2463_v33  ;;  %v2259_v33 = vor.u32 %v2733_v24, %v2256_v25  ;;  %v2713_v24 = vld [vmem:[%s3382_s5 + $0x10c] sm:$0xf]  ;;  %v2176_v25 = vld [vmem:[%s3382_s5 + $0x118] sm:$0xf0] }
 0x147   : > { %1781 = vmatpush.bf16.msrb.mxu2 %v2591_v34  ;;  %v2387_v34 = vor.u32 %v2765_v26, %v2384_v28  ;;  %v2745_v26 = vld [vmem:[%s3382_s5 + $0x20c] sm:$0xf]  ;;  %v2304_v28 = vld [vmem:[%s3382_s5 + $0x218] sm:$0xf0] }
 0x148   : > { %1794 = vmatpush.bf16.msrb.mxu3 %v2083_v38  ;;  %v2761_v38 = vld [vmem:[%s3382_s5 + $0x28c] sm:$0xf] }
 0x149   : > { %1756 = vmatpush.bf16.msrb.mxu0 %v2319_v44  ;;  %v2243_v44 = vor.u32 %v2729_v36, %v2240_v37  ;;  %v2371_v45 = vor.u32 %v2761_v38, %v2368_v39 }
 0x14a   : > { %1769 = vmatpush.bf16.msrb.mxu1 %v2447_v47  ;;  %v2725_v47 = vld [vmem:[%s3382_s5 + $0x16c] sm:$0xf] }
 0x14b   : > { %1782 = vmatpush.bf16.msrb.mxu2 %v2575_v48  ;;  %v2224_v48 = vld [vmem:[%s3382_s5 + $0x178] sm:$0xf0] }
 0x14c   : > { %1795 = vmatpush.bf16.msrb.mxu3 %v2067_v56  ;;  %v2789_v56 = vld [vmem:[%s3382_s5 + $0x36c] sm:$0xf]  ;;  %v2227_v60 = vor.u32 %v2725_v47, %v2224_v48  ;;  %v611_v48 = vld [vmem:[%s3380_s4 + $0x10] sm:$0xff] }
 0x14d   : > { %1757 = vmatpush.bf16.msrb.mxu0 %v2303_v63  ;;  %v2483_v62 = vor.u32 %v2789_v56, %v2480_v57  ;;  %v2721_v63 = vld [vmem:[%s3382_s5 + $0x14c] sm:$0xf] }
 0x14e   : > { %1770 = vmatpush.bf16.msrb.mxu1 %v2431_v4  ;;  %v2336_v4 = vld [vmem:[%s3382_s5 + $0x258] sm:$0xf0] }
 0x14f   : > { %1783 = vmatpush.bf16.msrb.mxu2 %v2559_v5  ;;  %v2785_v5 = vld [vmem:[%s3382_s5 + $0x34c] sm:$0xf] }
 0x150   : > { %1796 = vmatpush.bf16.msrb.mxu3 %v2051_v8  ;;  %1758 = vmatmul.bf16.vlgmr.msrb.gmra.mxu0 %v3489_v52  ;;  %v2592_v8 = vld [vmem:[%s3382_s5 + $0x458] sm:$0xf0] }
 0x151   : > { %1802 = vmatpush.bf16.msra.mxu0 %v2291_v9  ;;  %1771 = vmatmul.bf16.vlgmr.msrb.gmra.mxu1 %v3491_v53  ;;  %v2211_v9 = vor.u32 %v2721_v63, %v2208_v0 }
 0x152   : > { %1815 = vmatpush.bf16.msra.mxu1 %v2419_v10  ;;  %1784 = vmatmul.bf16.vlgmr.msrb.gmra.mxu2 %v3546_v3  ;;  %v2339_v10 = vor.u32 %v2753_v1, %v2336_v4 }
 0x153   : > { %1828 = vmatpush.bf16.msra.mxu2 %v2547_v11  ;;  %1797 = vmatmul.bf16.vlgmr.msrb.gmra.mxu3 %v3487_v51  ;;  %v2643_v51 = vor.u32 %v2829_v31, %v2640_v32  ;;  %v2467_v11 = vor.u32 %v2785_v5, %v2464_v6  ;;  %v2809_v31 = vld [vmem:[%s3382_s5 + $0x40c] sm:$0xf]  ;;  %v2560_v32 = vld [vmem:[%s3382_s5 + $0x418] sm:$0xf0] }
 0x154   : > { %1841 = vmatpush.bf16.msra.mxu3 %v2675_v15  ;;  %v2595_v15 = vor.u32 %v2817_v7, %v2592_v8  ;;  %v2563_v36 = vor.u32 %v2809_v31, %v2560_v32 }
 0x155   : > { %1803 = vmatpush.bf16.msra.mxu0 %v2275_v21  ;;  %v2195_v21 = vor.u32 %v2717_v12, %v2192_v13 }
 0x156   : > { %1816 = vmatpush.bf16.msra.mxu1 %v2403_v22  ;;  %v2323_v22 = vor.u32 %v2749_v14, %v2320_v16 }
 0x157   : > { %1829 = vmatpush.bf16.msra.mxu2 %v2531_v23  ;;  %v2451_v23 = vor.u32 %v2781_v17, %v2448_v18 }
 0x158   : > { %1842 = vmatpush.bf16.msra.mxu3 %v2659_v27  ;;  %v2579_v27 = vor.u32 %v2813_v19, %v2576_v20 }
 0x159   : > { %1804 = vmatpush.bf16.msra.mxu0 %v2259_v33  ;;  %v2179_v33 = vor.u32 %v2713_v24, %v2176_v25 }
 0x15a   : > { %1817 = vmatpush.bf16.msra.mxu1 %v2387_v34  ;;  %v2307_v34 = vor.u32 %v2745_v26, %v2304_v28 }
 0x15b   : > { %1830 = vmatpush.bf16.msra.mxu2 %v2515_v35  ;;  %v2435_v35 = vor.u32 %v2777_v29, %v2432_v30 }
 0x15c   : > { %1843 = vmatpush.bf16.msra.mxu3 %v2643_v51 }
 0x15d   : > { %1805 = vmatpush.bf16.msra.mxu0 %v2243_v44 }
 0x15e   : > { %1818 = vmatpush.bf16.msra.mxu1 %v2371_v45 }
 0x15f   : > { %1831 = vmatpush.bf16.msra.mxu2 %v2499_v46 }
 0x160   : > { %1844 = vmatpush.bf16.msra.mxu3 %v2627_v50 }
 0x161   : > { %1806 = vmatpush.bf16.msra.mxu0 %v2227_v60 }
 0x162   : > { %1819 = vmatpush.bf16.msra.mxu1 %v2355_v61 }
 0x163   : > { %1832 = vmatpush.bf16.msra.mxu2 %v2483_v62 }
 0x164   : > { %1845 = vmatpush.bf16.msra.mxu3 %v2611_v2 }
 0x165   : > { %1807 = vmatpush.bf16.msra.mxu0 %v2211_v9 }
 0x166   : > { %1820 = vmatpush.bf16.msra.mxu1 %v2339_v10 }
 0x167   : > { %1833 = vmatpush.bf16.msra.mxu2 %v2467_v11 }
 0x168   : > { %1846 = vmatpush.bf16.msra.mxu3 %v2595_v15 }
 0x169   : > { %1808 = vmatpush.bf16.msra.mxu0 %v2195_v21 }
 0x16a   : > { %1821 = vmatpush.bf16.msra.mxu1 %v2323_v22 }
 0x16b   : > { %1834 = vmatpush.bf16.msra.mxu2 %v2451_v23 }
 0x16c   : > { %1847 = vmatpush.bf16.msra.mxu3 %v2579_v27 }
 0x16d   : > { %1809 = vmatpush.bf16.msra.mxu0 %v2179_v33 }
 0x16e   : > { %1822 = vmatpush.bf16.msra.mxu1 %v2307_v34 }
 0x16f   : > { %1835 = vmatpush.bf16.msra.mxu2 %v2435_v35 }
 0x170   : > { %1848 = vmatpush.bf16.msra.mxu3 %v2563_v36  ;;  %1810 = vmatmul.bf16.vlgmr.msra.gmra.mxu0 %v3493_v55 }
 0x171   : > { %1823 = vmatmul.bf16.vlgmr.msra.gmra.mxu1 %v3489_v52  ;;  %v609_v52 = vld [vmem:[%s3380_s4] sm:$0xff] }
 0x172   : > { %1836 = vmatmul.bf16.vlgmr.msra.gmra.mxu2 %v3491_v53 }
 0x173   : > { %1849 = vmatmul.bf16.vlgmr.msra.gmra.mxu3 %v3546_v3  ;;  %v1603_v37 = vpop.f32.mrf.mxu0  ;;  %v610_v3 = vld [vmem:[%s3380_s4 + $0x8] sm:$0xff] }
 0x174   : > { %v1616_v38 = vpop.f32.mrf.mxu1 }
 0x175   : > { %v1629_v51 = vpop.f32.mrf.mxu2  ;;  %v1617_v42 = vadd.f32 %v1616_v38, %v1603_v37 }
 0x176   : > { %v1642_v39 = vpop.f32.mrf.mxu3 }
 0x177   : > { %v1630_v43 = vadd.f32 %v1629_v51, %v1617_v42 }
 0x179   : > { %v1643_v45 = vadd.f32 %v1642_v39, %v1630_v43 }
 0x17b   : > { %v1605_v40 = vpop.f32.mrf.mxu0 }
 0x17c   : > { %v1618_v41 = vpop.f32.mrf.mxu1 }
 0x17d   : > { %v1631_v44 = vpop.f32.mrf.mxu2 }
 0x17e   : > { %v1644_v55 = vpop.f32.mrf.mxu3 }
 0x18d   : > { %v1655_v46 = vpop.f32.mrf.mxu0 }
 0x18e   : > { %v1656_v53 = vadd.f32 %v1655_v46, %v1643_v45  ;;  %v1668_v47 = vpop.f32.mrf.mxu1 }
 0x190   : > { %v1854_v50 = vadd.f32 %v1656_v53, %v609_v52 }
 0x192   : > { %1858 = vst [vmem:[%s3380_s4] sm:$0xff] %v1854_v50 }
 0x195   : > { %v1681_v54 = vpop.f32.mrf.mxu2  ;;  %v1657_v57 = vpop.f32.mrf.mxu0 }
 0x196   : > { %v1694_v56 = vpop.f32.mrf.mxu3  ;;  %v1670_v58 = vpop.f32.mrf.mxu1  ;;  %v1682_v61 = vadd.f32 %v1681_v54, %v1668_v47 }
 0x198   : > { %v1695_v62 = vadd.f32 %v1694_v56, %v1682_v61 }
 0x19d   : > { %v1683_v59 = vpop.f32.mrf.mxu2 }
 0x19e   : > { %v1696_v60 = vpop.f32.mrf.mxu3 }
 0x1ad   : > { %v1707_v63 = vpop.f32.mrf.mxu0 }
 0x1ae   : > { %v1708_v0 = vadd.f32 %v1707_v63, %v1695_v62  ;;  %v1720_v1 = vpop.f32.mrf.mxu1 }
 0x1b0   : > { %v1721_v2 = vadd.f32 %v1720_v1, %v1708_v0 }
 0x1b2   : > { %v1855_v4 = vadd.f32 %v1721_v2, %v610_v3 }
 0x1b4   : > { %1859 = vst [vmem:[%s3380_s4 + $0x8] sm:$0xff] %v1855_v4 }
 0x1b5   : > { %v1733_v5 = vpop.f32.mrf.mxu2  ;;  %v1709_v7 = vpop.f32.mrf.mxu0 }
 0x1b6   : > { %v1746_v6 = vpop.f32.mrf.mxu3  ;;  %v1722_v8 = vpop.f32.mrf.mxu1 }
 0x1b7   : > { %v1747_v11 = vadd.f32 %v1746_v6, %v1733_v5 }
 0x1bd   : > { %v1735_v9 = vpop.f32.mrf.mxu2 }
 0x1be   : > { %v1748_v10 = vpop.f32.mrf.mxu3 }
 0x1cd   : > { %v1759_v12 = vpop.f32.mrf.mxu0 }
 0x1ce   : > { %v1760_v13 = vadd.f32 %v1759_v12, %v1747_v11  ;;  %v1772_v14 = vpop.f32.mrf.mxu1 }
 0x1d0   : > { %v1773_v15 = vadd.f32 %v1772_v14, %v1760_v13 }
 0x1d5   : > { %v1785_v16 = vpop.f32.mrf.mxu2  ;;  %v1761_v20 = vpop.f32.mrf.mxu0 }
 0x1d6   : > { %v1786_v17 = vadd.f32 %v1785_v16, %v1773_v15  ;;  %v1798_v18 = vpop.f32.mrf.mxu3  ;;  %v1774_v21 = vpop.f32.mrf.mxu1 }
 0x1d8   : > { %v1856_v19 = vadd.f32 %v1786_v17, %v611_v48 }
 0x1da   : > { %1860 = vst [vmem:[%s3380_s4 + $0x10] sm:$0xff] %v1856_v19 }
 0x1dd   : > { %v1787_v22 = vpop.f32.mrf.mxu2 }
 0x1de   : > { %v1800_v23 = vpop.f32.mrf.mxu3 }
 0x1ed   : > { %v1811_v24 = vpop.f32.mrf.mxu0 }
 0x1ee   : > { %v1824_v25 = vpop.f32.mrf.mxu1  ;;  %v1812_v26 = vadd.f32 %v1811_v24, %v1798_v18 }
 0x1f0   : > { %v1825_v27 = vadd.f32 %v1824_v25, %v1812_v26 }
 0x1f5   : > { %v1837_v28 = vpop.f32.mrf.mxu2  ;;  %v1813_v31 = vpop.f32.mrf.mxu0 }
 0x1f6   : > { %v1838_v29 = vadd.f32 %v1837_v28, %v1825_v27  ;;  %v1850_v30 = vpop.f32.mrf.mxu3  ;;  %v1826_v32 = vpop.f32.mrf.mxu1 }
 0x1f8   : > { %v1851_v33 = vadd.f32 %v1850_v30, %v1838_v29 }
 0x1fa   : > { %v1857_v34 = vadd.f32 %v1851_v33, %v612_v49  ;;  %1865 = sbr.rel (%p2676_p13) target bundleno = 524 (0x20c), region = 63 }
 0x1fc   : > { %1861 = vst [vmem:[%s3380_s4 + $0x18] sm:$0xff] %v1857_v34 }
 0x1fd   : > { %v1839_v35 = vpop.f32.mrf.mxu2 }
 0x1fe   : > { %v1852_v36 = vpop.f32.mrf.mxu3 }
 0x1ff   : > { %v1866_v37 = vld [vmem:[%s3380_s4] sm:$0xff]  ;;  %v1867_v38 = vld [vmem:[%s3380_s4 + $0x8] sm:$0xff]  ;;  %v1868_v51 = vld [vmem:[%s3380_s4 + $0x10] sm:$0xff] }
 0x200   : > { %v1870_v40 = vld [vmem:[%s589_s12] sm:$0xf] }
 0x201   : > { %v1872_v41 = vperm.slane %v1870_v40, 0  ;;  %v1873_v42 = vperm.slane %v1870_v40, 1  ;;  %v1874_v43 = vperm.slane %v1870_v40, 2  ;;  %v1875_v44 = vperm.slane %v1870_v40, 3 }
 0x203   : > { %v1869_v39 = vld [vmem:[%s3380_s4 + $0x18] sm:$0xff]  ;;  %v1880_v55 = vadd.f32 %v1872_v41, %v1866_v37  ;;  %v1881_v45 = vadd.f32 %v1873_v42, %v1867_v38  ;;  %v1882_v52 = vadd.f32 %v1874_v43, %v1868_v51 }
 0x204   : > { %v1883_v46 = vadd.f32 %v1875_v44, %v1869_v39 }
 0x205   : > { %vm1884_vm0 = vcmp.ge.f32.partialorder %v1880_v55, 0.0  ;;  %v1888_v53 = vmul.f32 0.01, %v1880_v55  ;;  %vm1885_vm1 = vcmp.ge.f32.partialorder %v1881_v45, 0.0  ;;  %v1889_v47 = vmul.f32 0.01, %v1881_v45 }
 0x206   : > { %vm1886_vm2 = vcmp.ge.f32.partialorder %v1882_v52, 0.0  ;;  %v1890_v3 = vmul.f32 0.01, %v1882_v52  ;;  %vm1887_vm3 = vcmp.ge.f32.partialorder %v1883_v46, 0.0  ;;  %v1891_v48 = vmul.f32 0.01, %v1883_v46 }
 0x207   : > { %v1892_v49 = vsel %vm1884_vm0, %v1880_v55, %v1888_v53  ;;  %v1893_v50 = vsel %vm1885_vm1, %v1881_v45, %v1889_v47 }
 0x208   : > { %1896 = vst [vmem:[%s3380_s4] sm:$0xff] %v1892_v49  ;;  %v1894_v54 = vsel %vm1886_vm2, %v1882_v52, %v1890_v3  ;;  %v1895_v56 = vsel %vm1887_vm3, %v1883_v46, %v1891_v48 }
 0x209   : > { %1897 = vst [vmem:[%s3380_s4 + $0x8] sm:$0xff] %v1893_v50 }
 0x20a   : > { %1898 = vst [vmem:[%s3380_s4 + $0x10] sm:$0xff] %v1894_v54 }
 0x20b   : > { %1899 = vst [vmem:[%s3380_s4 + $0x18] sm:$0xff] %v1895_v56 }
 0x20c PF: > { %s13_s18 = sadd.s32 1, %s2953_s18   ;;  %s3789_s12 = smov %s2933_s13 }
 0x20d   : > { %p10_p0 = scmp.ge.s32.totalorder %s13_s18, 10   ;;  %s3790_s13 = smov %s3027_s25 }
 0x20e   : > { %s3791_s14 = smov %s2945_s16  ;;  %s3792_s15 = smov %s2949_s17 }
 0x20f   : > { %s3793_s16 = smov %s3796_s19  ;;  %s3794_s17 = smov %s3800_s20 }
 0x210   :  { %12 = sbr.rel (!%p10_p0) target bundleno = 4 (0x4), region = 104 }

// kernel: period_discriminator_forward.10
= control target key start
LH: loop header
LB: loop body
LE: loop exit
PB: predicated region body
PF: predicated region fallthrough
CT: control target
= control target key end

     0   :  { %s4393_s12 = smov 0   ;;  %s4395_s13 = smov 0   ;;  %s5626_s0 = inlined_call_operand.vmem [shape: bf16[8,5120], index: 0, kind: input, shape index: {}]   ;;  %s5627_s1 = inlined_call_operand.vmem [shape: bf16[5120,1024], index: 1, kind: input, shape index: {}]   ;;  %s5628_s2 = inlined_call_operand.vmem [shape: f32[1,1024], index: 2, kind: input, shape index: {}]   ;;  %s5629_s3 = inlined_call_operand.vmem [shape: f32[8,1024], index: 3, kind: output, shape index: {}]  }
   0x1   :  { %s4397_s14 = smov 0   ;;  %s4399_s15 = smov 0  }
   0x2   :  { %s4401_s16 = smov 0   ;;  %s4403_s17 = smov 0  }
   0x3   :  { %s4405_s18 = smov 0  }
   0x4 LB: > { %s25_s19 = sadd.s32 1, %s4362_s16  ;;  %s28_s20 = sadd.s32 1, %s4366_s17  ;;  %s4370_s18 = sphi %s4405_s18, %s13_s18   ;;  %s4366_s17 = sphi %s4403_s17, %s5635_s17   ;;  %s4362_s16 = sphi %s4401_s16, %s5634_s16   ;;  %s4358_s15 = sphi %s4399_s15, %s5633_s15   ;;  %s4354_s14 = sphi %s4397_s14, %s5632_s14   ;;  %s4350_s13 = sphi %s4395_s13, %s5631_s13   ;;  %s4346_s12 = sphi %s4393_s12, %s5630_s12  }
   0x5   : > { %p26_p0 = scmp.ge.s32.totalorder %s25_s19, 5  ;;  %p76_p1 = scmp.ne.s32.totalorder %s4350_s13, %s4346_s12 }
   0x6   : > { %p77_p2 = scmp.eq.s32.totalorder %s4370_s18, 0  ;;  %s69_s24 = sadd.s32 1, %s4350_s13 }
   0x7   : > { %s5637_s19 = smov (%p26_p0, %s25_s19), 0  ;;  %s5639_s20 = smov (!%p26_p0, %s28_s20), %s4366_s17 }
   0x8   : > { %p78_p3 = por %p77_p2, %p76_p1  ;;  %p30_p4 = scmp.ge.s32.totalorder %s5639_s20, 2 }
   0x9   : > { %s64_s21 = ssub.s32 %s4362_s16, %s5637_s19  ;;  %p2961_p6 = scmp.ge.s32.totalorder %s4370_s18, 10 }
   0xa   : > { %s5641_s20 = smov (%p30_p4, %s5639_s20), 0 }
   0xb   : > { %s65_s22 = ssub.s32 %s4366_s17, %s5641_s20  ;;  %156 = sbr.rel (%p2961_p6) target bundleno = 279 (0x117), region = 16 }
   0xc   : > { %s66_s23 = sor.u32 %s65_s22, %s64_s21 }
   0xd   : > { %p67_p5 = scmp.eq.s32.totalorder %s66_s23, 0 }
   0xf   : > { %s4444_s25 = scalar_select %p67_p5, %s4350_s13, %s69_s24  }
  0x10   : > { %172 = sbr.rel (!%p78_p3) target bundleno = 279 (0x117), region = 24  ;;  %s174_s26 = sand.u32 (%p78_p3), 1, %s4350_s13  }
  0x11   : > { %s2964_s27 = sshll.u32 (%p78_p3), %s4366_s17, 2  ;;  %s2962_s28 = sshll.u32 (%p78_p3), %s174_s26, 11 }
  0x12   : > { %s4002_s29 = sshll.u32 (%p78_p3), %s4362_s16, 10  ;;  %s4458_s8 = scalar_lea.vmem (%p78_p3), [#allocation2], %s2962_s28 }
  0x13   : > { %s180_s30 = sadd.s32 (%p78_p3), %s4002_s29, %s2964_s27 }
  0x14   : > { %s2966_s4 = sshll.u32 (%p78_p3), %s180_s30, 2 }
  0x15   : > { %s4453_s7 = scalar_lea.vmem %s5627_s1, %s2966_s4 }
  0x16   : > { %v195_v0 = vld [vmem:[%s4453_s7] sm:$0xff]  ;;  %v197_v1 = vld [vmem:[%s4453_s7 + $0x8] sm:$0xff] }
  0x17   : > { %v199_v2 = vld [vmem:[%s4453_s7 + $0x20] sm:$0xff]  ;;  %196 = vst [vmem:[%s4458_s8] sm:$0xff] %v195_v0  ;;  %v201_v3 = vld [vmem:[%s4453_s7 + $0x28] sm:$0xff] }
  0x18   : > { %198 = vst [vmem:[%s4458_s8 + $0x8] sm:$0xff] %v197_v1  ;;  %v203_v4 = vld [vmem:[%s4453_s7 + $0x40] sm:$0xff]  ;;  %v205_v5 = vld [vmem:[%s4453_s7 + $0x48] sm:$0xff] }
  0x19   : > { %200 = vst [vmem:[%s4458_s8 + $0x10] sm:$0xff] %v199_v2  ;;  %v207_v6 = vld [vmem:[%s4453_s7 + $0x60] sm:$0xff]  ;;  %v209_v7 = vld [vmem:[%s4453_s7 + $0x68] sm:$0xff] }
  0x1a   : > { %202 = vst [vmem:[%s4458_s8 + $0x18] sm:$0xff] %v201_v3  ;;  %v211_v8 = vld [vmem:[%s4453_s7 + $0x80] sm:$0xff]  ;;  %v213_v9 = vld [vmem:[%s4453_s7 + $0x88] sm:$0xff] }
  0x1b   : > { %204 = vst [vmem:[%s4458_s8 + $0x20] sm:$0xff] %v203_v4  ;;  %v215_v10 = vld [vmem:[%s4453_s7 + $0xa0] sm:$0xff]  ;;  %v217_v11 = vld [vmem:[%s4453_s7 + $0xa8] sm:$0xff] }
  0x1c   : > { %206 = vst [vmem:[%s4458_s8 + $0x28] sm:$0xff] %v205_v5  ;;  %v219_v12 = vld [vmem:[%s4453_s7 + $0xc0] sm:$0xff]  ;;  %v221_v13 = vld [vmem:[%s4453_s7 + $0xc8] sm:$0xff] }
  0x1d   : > { %208 = vst [vmem:[%s4458_s8 + $0x30] sm:$0xff] %v207_v6  ;;  %v223_v14 = vld [vmem:[%s4453_s7 + $0xe0] sm:$0xff]  ;;  %v225_v15 = vld [vmem:[%s4453_s7 + $0xe8] sm:$0xff] }
  0x1e   : > { %210 = vst [vmem:[%s4458_s8 + $0x38] sm:$0xff] %v209_v7  ;;  %v227_v16 = vld [vmem:[%s4453_s7 + $0x100] sm:$0xff]  ;;  %v229_v17 = vld [vmem:[%s4453_s7 + $0x108] sm:$0xff] }
  0x1f   : > { %212 = vst [vmem:[%s4458_s8 + $0x40] sm:$0xff] %v211_v8  ;;  %v231_v18 = vld [vmem:[%s4453_s7 + $0x120] sm:$0xff]  ;;  %v233_v19 = vld [vmem:[%s4453_s7 + $0x128] sm:$0xff] }
  0x20   : > { %214 = vst [vmem:[%s4458_s8 + $0x48] sm:$0xff] %v213_v9  ;;  %v235_v20 = vld [vmem:[%s4453_s7 + $0x140] sm:$0xff]  ;;  %v237_v21 = vld [vmem:[%s4453_s7 + $0x148] sm:$0xff] }
  0x21   : > { %216 = vst [vmem:[%s4458_s8 + $0x50] sm:$0xff] %v215_v10  ;;  %v239_v22 = vld [vmem:[%s4453_s7 + $0x160] sm:$0xff]  ;;  %v241_v23 = vld [vmem:[%s4453_s7 + $0x168] sm:$0xff] }
  0x22   : > { %218 = vst [vmem:[%s4458_s8 + $0x58] sm:$0xff] %v217_v11  ;;  %v243_v24 = vld [vmem:[%s4453_s7 + $0x180] sm:$0xff]  ;;  %v245_v25 = vld [vmem:[%s4453_s7 + $0x188] sm:$0xff] }
  0x23   : > { %220 = vst [vmem:[%s4458_s8 + $0x60] sm:$0xff] %v219_v12  ;;  %v247_v26 = vld [vmem:[%s4453_s7 + $0x1a0] sm:$0xff]  ;;  %v249_v27 = vld [vmem:[%s4453_s7 + $0x1a8] sm:$0xff] }
  0x24   : > { %222 = vst [vmem:[%s4458_s8 + $0x68] sm:$0xff] %v221_v13  ;;  %v251_v28 = vld [vmem:[%s4453_s7 + $0x1c0] sm:$0xff]  ;;  %v253_v29 = vld [vmem:[%s4453_s7 + $0x1c8] sm:$0xff] }
  0x25   : > { %224 = vst [vmem:[%s4458_s8 + $0x70] sm:$0xff] %v223_v14  ;;  %v255_v30 = vld [vmem:[%s4453_s7 + $0x1e0] sm:$0xff]  ;;  %v257_v31 = vld [vmem:[%s4453_s7 + $0x1e8] sm:$0xff] }
  0x26   : > { %226 = vst [vmem:[%s4458_s8 + $0x78] sm:$0xff] %v225_v15  ;;  %v259_v32 = vld [vmem:[%s4453_s7 + $0x200] sm:$0xff]  ;;  %v261_v33 = vld [vmem:[%s4453_s7 + $0x208] sm:$0xff] }
  0x27   : > { %228 = vst [vmem:[%s4458_s8 + $0x80] sm:$0xff] %v227_v16  ;;  %v263_v34 = vld [vmem:[%s4453_s7 + $0x220] sm:$0xff]  ;;  %v265_v35 = vld [vmem:[%s4453_s7 + $0x228] sm:$0xff] }
  0x28   : > { %230 = vst [vmem:[%s4458_s8 + $0x88] sm:$0xff] %v229_v17  ;;  %v267_v36 = vld [vmem:[%s4453_s7 + $0x240] sm:$0xff]  ;;  %v269_v37 = vld [vmem:[%s4453_s7 + $0x248] sm:$0xff] }
  0x29   : > { %232 = vst [vmem:[%s4458_s8 + $0x90] sm:$0xff] %v231_v18  ;;  %v271_v38 = vld [vmem:[%s4453_s7 + $0x260] sm:$0xff]  ;;  %v273_v39 = vld [vmem:[%s4453_s7 + $0x268] sm:$0xff] }
  0x2a   : > { %234 = vst [vmem:[%s4458_s8 + $0x98] sm:$0xff] %v233_v19  ;;  %v275_v40 = vld [vmem:[%s4453_s7 + $0x280] sm:$0xff]  ;;  %v277_v41 = vld [vmem:[%s4453_s7 + $0x288] sm:$0xff] }
  0x2b   : > { %236 = vst [vmem:[%s4458_s8 + $0xa0] sm:$0xff] %v235_v20  ;;  %v279_v42 = vld [vmem:[%s4453_s7 + $0x2a0] sm:$0xff]  ;;  %v281_v43 = vld [vmem:[%s4453_s7 + $0x2a8] sm:$0xff] }
  0x2c   : > { %238 = vst [vmem:[%s4458_s8 + $0xa8] sm:$0xff] %v237_v21  ;;  %v283_v44 = vld [vmem:[%s4453_s7 + $0x2c0] sm:$0xff]  ;;  %v285_v45 = vld [vmem:[%s4453_s7 + $0x2c8] sm:$0xff] }
  0x2d   : > { %240 = vst [vmem:[%s4458_s8 + $0xb0] sm:$0xff] %v239_v22  ;;  %v287_v46 = vld [vmem:[%s4453_s7 + $0x2e0] sm:$0xff]  ;;  %v289_v47 = vld [vmem:[%s4453_s7 + $0x2e8] sm:$0xff] }
  0x2e   : > { %242 = vst [vmem:[%s4458_s8 + $0xb8] sm:$0xff] %v241_v23  ;;  %v291_v48 = vld [vmem:[%s4453_s7 + $0x300] sm:$0xff]  ;;  %v293_v49 = vld [vmem:[%s4453_s7 + $0x308] sm:$0xff] }
  0x2f   : > { %244 = vst [vmem:[%s4458_s8 + $0xc0] sm:$0xff] %v243_v24  ;;  %v295_v50 = vld [vmem:[%s4453_s7 + $0x320] sm:$0xff]  ;;  %v297_v51 = vld [vmem:[%s4453_s7 + $0x328] sm:$0xff] }
  0x30   : > { %246 = vst [vmem:[%s4458_s8 + $0xc8] sm:$0xff] %v245_v25  ;;  %v299_v52 = vld [vmem:[%s4453_s7 + $0x340] sm:$0xff]  ;;  %v301_v53 = vld [vmem:[%s4453_s7 + $0x348] sm:$0xff] }
  0x31   : > { %248 = vst [vmem:[%s4458_s8 + $0xd0] sm:$0xff] %v247_v26  ;;  %v303_v54 = vld [vmem:[%s4453_s7 + $0x360] sm:$0xff]  ;;  %v305_v55 = vld [vmem:[%s4453_s7 + $0x368] sm:$0xff] }
  0x32   : > { %250 = vst [vmem:[%s4458_s8 + $0xd8] sm:$0xff] %v249_v27  ;;  %v307_v56 = vld [vmem:[%s4453_s7 + $0x380] sm:$0xff]  ;;  %v309_v57 = vld [vmem:[%s4453_s7 + $0x388] sm:$0xff] }
  0x33   : > { %252 = vst [vmem:[%s4458_s8 + $0xe0] sm:$0xff] %v251_v28  ;;  %v311_v58 = vld [vmem:[%s4453_s7 + $0x3a0] sm:$0xff]  ;;  %v313_v59 = vld [vmem:[%s4453_s7 + $0x3a8] sm:$0xff] }
  0x34   : > { %254 = vst [vmem:[%s4458_s8 + $0xe8] sm:$0xff] %v253_v29  ;;  %v315_v60 = vld [vmem:[%s4453_s7 + $0x3c0] sm:$0xff]  ;;  %v317_v61 = vld [vmem:[%s4453_s7 + $0x3c8] sm:$0xff] }
  0x35   : > { %256 = vst [vmem:[%s4458_s8 + $0xf0] sm:$0xff] %v255_v30  ;;  %v319_v62 = vld [vmem:[%s4453_s7 + $0x3e0] sm:$0xff]  ;;  %v321_v63 = vld [vmem:[%s4453_s7 + $0x3e8] sm:$0xff] }
  0x36   : > { %258 = vst [vmem:[%s4458_s8 + $0xf8] sm:$0xff] %v257_v31  ;;  %v323_v0 = vld [vmem:[%s4453_s7 + $0x400] sm:$0xff]  ;;  %v325_v1 = vld [vmem:[%s4453_s7 + $0x408] sm:$0xff] }
  0x37   : > { %260 = vst [vmem:[%s4458_s8 + $0x100] sm:$0xff] %v259_v32  ;;  %v327_v2 = vld [vmem:[%s4453_s7 + $0x420] sm:$0xff]  ;;  %v329_v3 = vld [vmem:[%s4453_s7 + $0x428] sm:$0xff] }
  0x38   : > { %262 = vst [vmem:[%s4458_s8 + $0x108] sm:$0xff] %v261_v33  ;;  %v331_v4 = vld [vmem:[%s4453_s7 + $0x440] sm:$0xff]  ;;  %v333_v5 = vld [vmem:[%s4453_s7 + $0x448] sm:$0xff] }
  0x39   : > { %264 = vst [vmem:[%s4458_s8 + $0x110] sm:$0xff] %v263_v34  ;;  %v335_v6 = vld [vmem:[%s4453_s7 + $0x460] sm:$0xff]  ;;  %v337_v7 = vld [vmem:[%s4453_s7 + $0x468] sm:$0xff] }
  0x3a   : > { %266 = vst [vmem:[%s4458_s8 + $0x118] sm:$0xff] %v265_v35  ;;  %v339_v8 = vld [vmem:[%s4453_s7 + $0x480] sm:$0xff]  ;;  %v341_v9 = vld [vmem:[%s4453_s7 + $0x488] sm:$0xff] }
  0x3b   : > { %268 = vst [vmem:[%s4458_s8 + $0x120] sm:$0xff] %v267_v36  ;;  %v343_v10 = vld [vmem:[%s4453_s7 + $0x4a0] sm:$0xff]  ;;  %v345_v11 = vld [vmem:[%s4453_s7 + $0x4a8] sm:$0xff] }
  0x3c   : > { %270 = vst [vmem:[%s4458_s8 + $0x128] sm:$0xff] %v269_v37  ;;  %v347_v12 = vld [vmem:[%s4453_s7 + $0x4c0] sm:$0xff]  ;;  %v349_v13 = vld [vmem:[%s4453_s7 + $0x4c8] sm:$0xff] }
  0x3d   : > { %272 = vst [vmem:[%s4458_s8 + $0x130] sm:$0xff] %v271_v38  ;;  %v351_v14 = vld [vmem:[%s4453_s7 + $0x4e0] sm:$0xff]  ;;  %v353_v15 = vld [vmem:[%s4453_s7 + $0x4e8] sm:$0xff] }
  0x3e   : > { %274 = vst [vmem:[%s4458_s8 + $0x138] sm:$0xff] %v273_v39  ;;  %v355_v16 = vld [vmem:[%s4453_s7 + $0x500] sm:$0xff]  ;;  %v357_v17 = vld [vmem:[%s4453_s7 + $0x508] sm:$0xff] }
  0x3f   : > { %276 = vst [vmem:[%s4458_s8 + $0x140] sm:$0xff] %v275_v40  ;;  %v359_v18 = vld [vmem:[%s4453_s7 + $0x520] sm:$0xff]  ;;  %v361_v19 = vld [vmem:[%s4453_s7 + $0x528] sm:$0xff] }
  0x40   : > { %278 = vst [vmem:[%s4458_s8 + $0x148] sm:$0xff] %v277_v41  ;;  %v363_v20 = vld [vmem:[%s4453_s7 + $0x540] sm:$0xff]  ;;  %v365_v21 = vld [vmem:[%s4453_s7 + $0x548] sm:$0xff] }
  0x41   : > { %280 = vst [vmem:[%s4458_s8 + $0x150] sm:$0xff] %v279_v42  ;;  %v367_v22 = vld [vmem:[%s4453_s7 + $0x560] sm:$0xff]  ;;  %v369_v23 = vld [vmem:[%s4453_s7 + $0x568] sm:$0xff] }
  0x42   : > { %282 = vst [vmem:[%s4458_s8 + $0x158] sm:$0xff] %v281_v43  ;;  %v371_v24 = vld [vmem:[%s4453_s7 + $0x580] sm:$0xff]  ;;  %v373_v25 = vld [vmem:[%s4453_s7 + $0x588] sm:$0xff] }
  0x43   : > { %284 = vst [vmem:[%s4458_s8 + $0x160] sm:$0xff] %v283_v44  ;;  %v375_v26 = vld [vmem:[%s4453_s7 + $0x5a0] sm:$0xff]  ;;  %v377_v27 = vld [vmem:[%s4453_s7 + $0x5a8] sm:$0xff] }
  0x44   : > { %286 = vst [vmem:[%s4458_s8 + $0x168] sm:$0xff] %v285_v45  ;;  %v379_v28 = vld [vmem:[%s4453_s7 + $0x5c0] sm:$0xff]  ;;  %v381_v29 = vld [vmem:[%s4453_s7 + $0x5c8] sm:$0xff] }
  0x45   : > { %288 = vst [vmem:[%s4458_s8 + $0x170] sm:$0xff] %v287_v46  ;;  %v383_v30 = vld [vmem:[%s4453_s7 + $0x5e0] sm:$0xff]  ;;  %v385_v31 = vld [vmem:[%s4453_s7 + $0x5e8] sm:$0xff] }
  0x46   : > { %290 = vst [vmem:[%s4458_s8 + $0x178] sm:$0xff] %v289_v47  ;;  %v387_v32 = vld [vmem:[%s4453_s7 + $0x600] sm:$0xff]  ;;  %v389_v33 = vld [vmem:[%s4453_s7 + $0x608] sm:$0xff] }
  0x47   : > { %292 = vst [vmem:[%s4458_s8 + $0x180] sm:$0xff] %v291_v48  ;;  %v391_v34 = vld [vmem:[%s4453_s7 + $0x620] sm:$0xff]  ;;  %v393_v35 = vld [vmem:[%s4453_s7 + $0x628] sm:$0xff] }
  0x48   : > { %294 = vst [vmem:[%s4458_s8 + $0x188] sm:$0xff] %v293_v49  ;;  %v395_v36 = vld [vmem:[%s4453_s7 + $0x640] sm:$0xff]  ;;  %v397_v37 = vld [vmem:[%s4453_s7 + $0x648] sm:$0xff] }
  0x49   : > { %296 = vst [vmem:[%s4458_s8 + $0x190] sm:$0xff] %v295_v50  ;;  %v399_v38 = vld [vmem:[%s4453_s7 + $0x660] sm:$0xff]  ;;  %v401_v39 = vld [vmem:[%s4453_s7 + $0x668] sm:$0xff] }
  0x4a   : > { %298 = vst [vmem:[%s4458_s8 + $0x198] sm:$0xff] %v297_v51  ;;  %v403_v40 = vld [vmem:[%s4453_s7 + $0x680] sm:$0xff]  ;;  %v405_v41 = vld [vmem:[%s4453_s7 + $0x688] sm:$0xff] }
  0x4b   : > { %300 = vst [vmem:[%s4458_s8 + $0x1a0] sm:$0xff] %v299_v52  ;;  %v407_v42 = vld [vmem:[%s4453_s7 + $0x6a0] sm:$0xff]  ;;  %v409_v43 = vld [vmem:[%s4453_s7 + $0x6a8] sm:$0xff] }
  0x4c   : > { %302 = vst [vmem:[%s4458_s8 + $0x1a8] sm:$0xff] %v301_v53  ;;  %v411_v44 = vld [vmem:[%s4453_s7 + $0x6c0] sm:$0xff]  ;;  %v413_v45 = vld [vmem:[%s4453_s7 + $0x6c8] sm:$0xff] }
  0x4d   : > { %304 = vst [vmem:[%s4458_s8 + $0x1b0] sm:$0xff] %v303_v54  ;;  %v415_v46 = vld [vmem:[%s4453_s7 + $0x6e0] sm:$0xff]  ;;  %v417_v47 = vld [vmem:[%s4453_s7 + $0x6e8] sm:$0xff] }
  0x4e   : > { %306 = vst [vmem:[%s4458_s8 + $0x1b8] sm:$0xff] %v305_v55  ;;  %v419_v48 = vld [vmem:[%s4453_s7 + $0x700] sm:$0xff]  ;;  %v421_v49 = vld [vmem:[%s4453_s7 + $0x708] sm:$0xff] }
  0x4f   : > { %308 = vst [vmem:[%s4458_s8 + $0x1c0] sm:$0xff] %v307_v56  ;;  %v423_v50 = vld [vmem:[%s4453_s7 + $0x720] sm:$0xff]  ;;  %v425_v51 = vld [vmem:[%s4453_s7 + $0x728] sm:$0xff] }
  0x50   : > { %310 = vst [vmem:[%s4458_s8 + $0x1c8] sm:$0xff] %v309_v57  ;;  %v427_v52 = vld [vmem:[%s4453_s7 + $0x740] sm:$0xff]  ;;  %v429_v53 = vld [vmem:[%s4453_s7 + $0x748] sm:$0xff] }
  0x51   : > { %312 = vst [vmem:[%s4458_s8 + $0x1d0] sm:$0xff] %v311_v58  ;;  %v431_v54 = vld [vmem:[%s4453_s7 + $0x760] sm:$0xff]  ;;  %v433_v55 = vld [vmem:[%s4453_s7 + $0x768] sm:$0xff] }
  0x52   : > { %314 = vst [vmem:[%s4458_s8 + $0x1d8] sm:$0xff] %v313_v59  ;;  %v435_v56 = vld [vmem:[%s4453_s7 + $0x780] sm:$0xff]  ;;  %v437_v57 = vld [vmem:[%s4453_s7 + $0x788] sm:$0xff] }
  0x53   : > { %316 = vst [vmem:[%s4458_s8 + $0x1e0] sm:$0xff] %v315_v60  ;;  %v439_v58 = vld [vmem:[%s4453_s7 + $0x7a0] sm:$0xff]  ;;  %v441_v59 = vld [vmem:[%s4453_s7 + $0x7a8] sm:$0xff] }
  0x54   : > { %318 = vst [vmem:[%s4458_s8 + $0x1e8] sm:$0xff] %v317_v61  ;;  %v443_v60 = vld [vmem:[%s4453_s7 + $0x7c0] sm:$0xff]  ;;  %v445_v61 = vld [vmem:[%s4453_s7 + $0x7c8] sm:$0xff] }
  0x55   : > { %320 = vst [vmem:[%s4458_s8 + $0x1f0] sm:$0xff] %v319_v62  ;;  %v447_v62 = vld [vmem:[%s4453_s7 + $0x7e0] sm:$0xff] }
  0x56   : > { %322 = vst [vmem:[%s4458_s8 + $0x1f8] sm:$0xff] %v321_v63  ;;  %v449_v63 = vld [vmem:[%s4453_s7 + $0x7e8] sm:$0xff] }
  0x57   : > { %324 = vst [vmem:[%s4458_s8 + $0x200] sm:$0xff] %v323_v0  ;;  %v451_v0 = vld [vmem:[%s4453_s7 + $0x800] sm:$0xff] }
  0x58   : > { %326 = vst [vmem:[%s4458_s8 + $0x208] sm:$0xff] %v325_v1  ;;  %v453_v1 = vld [vmem:[%s4453_s7 + $0x808] sm:$0xff] }
  0x59   : > { %328 = vst [vmem:[%s4458_s8 + $0x210] sm:$0xff] %v327_v2  ;;  %v455_v2 = vld [vmem:[%s4453_s7 + $0x820] sm:$0xff] }
  0x5a   : > { %330 = vst [vmem:[%s4458_s8 + $0x218] sm:$0xff] %v329_v3  ;;  %v457_v3 = vld [vmem:[%s4453_s7 + $0x828] sm:$0xff] }
  0x5b   : > { %332 = vst [vmem:[%s4458_s8 + $0x220] sm:$0xff] %v331_v4  ;;  %v459_v4 = vld [vmem:[%s4453_s7 + $0x840] sm:$0xff] }
  0x5c   : > { %334 = vst [vmem:[%s4458_s8 + $0x228] sm:$0xff] %v333_v5  ;;  %v461_v5 = vld [vmem:[%s4453_s7 + $0x848] sm:$0xff] }
  0x5d   : > { %336 = vst [vmem:[%s4458_s8 + $0x230] sm:$0xff] %v335_v6  ;;  %v463_v6 = vld [vmem:[%s4453_s7 + $0x860] sm:$0xff] }
  0x5e   : > { %338 = vst [vmem:[%s4458_s8 + $0x238] sm:$0xff] %v337_v7  ;;  %v465_v7 = vld [vmem:[%s4453_s7 + $0x868] sm:$0xff] }
  0x5f   : > { %340 = vst [vmem:[%s4458_s8 + $0x240] sm:$0xff] %v339_v8  ;;  %v467_v8 = vld [vmem:[%s4453_s7 + $0x880] sm:$0xff] }
  0x60   : > { %342 = vst [vmem:[%s4458_s8 + $0x248] sm:$0xff] %v341_v9  ;;  %v469_v9 = vld [vmem:[%s4453_s7 + $0x888] sm:$0xff] }
  0x61   : > { %344 = vst [vmem:[%s4458_s8 + $0x250] sm:$0xff] %v343_v10  ;;  %v471_v10 = vld [vmem:[%s4453_s7 + $0x8a0] sm:$0xff] }
  0x62   : > { %346 = vst [vmem:[%s4458_s8 + $0x258] sm:$0xff] %v345_v11  ;;  %v473_v11 = vld [vmem:[%s4453_s7 + $0x8a8] sm:$0xff] }
  0x63   : > { %348 = vst [vmem:[%s4458_s8 + $0x260] sm:$0xff] %v347_v12  ;;  %v475_v12 = vld [vmem:[%s4453_s7 + $0x8c0] sm:$0xff] }
  0x64   : > { %350 = vst [vmem:[%s4458_s8 + $0x268] sm:$0xff] %v349_v13  ;;  %v477_v13 = vld [vmem:[%s4453_s7 + $0x8c8] sm:$0xff] }
  0x65   : > { %352 = vst [vmem:[%s4458_s8 + $0x270] sm:$0xff] %v351_v14  ;;  %v479_v14 = vld [vmem:[%s4453_s7 + $0x8e0] sm:$0xff] }
  0x66   : > { %354 = vst [vmem:[%s4458_s8 + $0x278] sm:$0xff] %v353_v15  ;;  %v481_v15 = vld [vmem:[%s4453_s7 + $0x8e8] sm:$0xff] }
  0x67   : > { %356 = vst [vmem:[%s4458_s8 + $0x280] sm:$0xff] %v355_v16  ;;  %v483_v16 = vld [vmem:[%s4453_s7 + $0x900] sm:$0xff] }
  0x68   : > { %358 = vst [vmem:[%s4458_s8 + $0x288] sm:$0xff] %v357_v17  ;;  %v485_v17 = vld [vmem:[%s4453_s7 + $0x908] sm:$0xff] }
  0x69   : > { %360 = vst [vmem:[%s4458_s8 + $0x290] sm:$0xff] %v359_v18  ;;  %v487_v18 = vld [vmem:[%s4453_s7 + $0x920] sm:$0xff] }
  0x6a   : > { %362 = vst [vmem:[%s4458_s8 + $0x298] sm:$0xff] %v361_v19  ;;  %v489_v19 = vld [vmem:[%s4453_s7 + $0x928] sm:$0xff] }
  0x6b   : > { %364 = vst [vmem:[%s4458_s8 + $0x2a0] sm:$0xff] %v363_v20  ;;  %v491_v20 = vld [vmem:[%s4453_s7 + $0x940] sm:$0xff] }
  0x6c   : > { %366 = vst [vmem:[%s4458_s8 + $0x2a8] sm:$0xff] %v365_v21  ;;  %v493_v21 = vld [vmem:[%s4453_s7 + $0x948] sm:$0xff] }
  0x6d   : > { %368 = vst [vmem:[%s4458_s8 + $0x2b0] sm:$0xff] %v367_v22  ;;  %v495_v22 = vld [vmem:[%s4453_s7 + $0x960] sm:$0xff] }
  0x6e   : > { %370 = vst [vmem:[%s4458_s8 + $0x2b8] sm:$0xff] %v369_v23  ;;  %v497_v23 = vld [vmem:[%s4453_s7 + $0x968] sm:$0xff] }
  0x6f   : > { %372 = vst [vmem:[%s4458_s8 + $0x2c0] sm:$0xff] %v371_v24  ;;  %v499_v24 = vld [vmem:[%s4453_s7 + $0x980] sm:$0xff] }
  0x70   : > { %374 = vst [vmem:[%s4458_s8 + $0x2c8] sm:$0xff] %v373_v25  ;;  %v501_v25 = vld [vmem:[%s4453_s7 + $0x988] sm:$0xff] }
  0x71   : > { %376 = vst [vmem:[%s4458_s8 + $0x2d0] sm:$0xff] %v375_v26  ;;  %v503_v26 = vld [vmem:[%s4453_s7 + $0x9a0] sm:$0xff] }
  0x72   : > { %378 = vst [vmem:[%s4458_s8 + $0x2d8] sm:$0xff] %v377_v27  ;;  %v505_v27 = vld [vmem:[%s4453_s7 + $0x9a8] sm:$0xff] }
  0x73   : > { %380 = vst [vmem:[%s4458_s8 + $0x2e0] sm:$0xff] %v379_v28  ;;  %v507_v28 = vld [vmem:[%s4453_s7 + $0x9c0] sm:$0xff] }
  0x74   : > { %382 = vst [vmem:[%s4458_s8 + $0x2e8] sm:$0xff] %v381_v29  ;;  %v509_v29 = vld [vmem:[%s4453_s7 + $0x9c8] sm:$0xff] }
  0x75   : > { %384 = vst [vmem:[%s4458_s8 + $0x2f0] sm:$0xff] %v383_v30  ;;  %v511_v30 = vld [vmem:[%s4453_s7 + $0x9e0] sm:$0xff] }
  0x76   : > { %386 = vst [vmem:[%s4458_s8 + $0x2f8] sm:$0xff] %v385_v31  ;;  %v513_v31 = vld [vmem:[%s4453_s7 + $0x9e8] sm:$0xff] }
  0x77   : > { %388 = vst [vmem:[%s4458_s8 + $0x300] sm:$0xff] %v387_v32  ;;  %v515_v32 = vld [vmem:[%s4453_s7 + $0xa00] sm:$0xff] }
  0x78   : > { %390 = vst [vmem:[%s4458_s8 + $0x308] sm:$0xff] %v389_v33  ;;  %v517_v33 = vld [vmem:[%s4453_s7 + $0xa08] sm:$0xff] }
  0x79   : > { %392 = vst [vmem:[%s4458_s8 + $0x310] sm:$0xff] %v391_v34  ;;  %v519_v34 = vld [vmem:[%s4453_s7 + $0xa20] sm:$0xff] }
  0x7a   : > { %394 = vst [vmem:[%s4458_s8 + $0x318] sm:$0xff] %v393_v35  ;;  %v521_v35 = vld [vmem:[%s4453_s7 + $0xa28] sm:$0xff] }
  0x7b   : > { %396 = vst [vmem:[%s4458_s8 + $0x320] sm:$0xff] %v395_v36  ;;  %v523_v36 = vld [vmem:[%s4453_s7 + $0xa40] sm:$0xff] }
  0x7c   : > { %398 = vst [vmem:[%s4458_s8 + $0x328] sm:$0xff] %v397_v37  ;;  %v525_v37 = vld [vmem:[%s4453_s7 + $0xa48] sm:$0xff] }
  0x7d   : > { %400 = vst [vmem:[%s4458_s8 + $0x330] sm:$0xff] %v399_v38  ;;  %v527_v38 = vld [vmem:[%s4453_s7 + $0xa60] sm:$0xff] }
  0x7e   : > { %402 = vst [vmem:[%s4458_s8 + $0x338] sm:$0xff] %v401_v39  ;;  %v529_v39 = vld [vmem:[%s4453_s7 + $0xa68] sm:$0xff] }
  0x7f   : > { %404 = vst [vmem:[%s4458_s8 + $0x340] sm:$0xff] %v403_v40  ;;  %v531_v40 = vld [vmem:[%s4453_s7 + $0xa80] sm:$0xff] }
  0x80   : > { %406 = vst [vmem:[%s4458_s8 + $0x348] sm:$0xff] %v405_v41  ;;  %v533_v41 = vld [vmem:[%s4453_s7 + $0xa88] sm:$0xff] }
  0x81   : > { %408 = vst [vmem:[%s4458_s8 + $0x350] sm:$0xff] %v407_v42  ;;  %v535_v42 = vld [vmem:[%s4453_s7 + $0xaa0] sm:$0xff] }
  0x82   : > { %410 = vst [vmem:[%s4458_s8 + $0x358] sm:$0xff] %v409_v43  ;;  %v537_v43 = vld [vmem:[%s4453_s7 + $0xaa8] sm:$0xff] }
  0x83   : > { %412 = vst [vmem:[%s4458_s8 + $0x360] sm:$0xff] %v411_v44  ;;  %v539_v44 = vld [vmem:[%s4453_s7 + $0xac0] sm:$0xff] }
  0x84   : > { %414 = vst [vmem:[%s4458_s8 + $0x368] sm:$0xff] %v413_v45  ;;  %v541_v45 = vld [vmem:[%s4453_s7 + $0xac8] sm:$0xff] }
  0x85   : > { %416 = vst [vmem:[%s4458_s8 + $0x370] sm:$0xff] %v415_v46  ;;  %v543_v46 = vld [vmem:[%s4453_s7 + $0xae0] sm:$0xff] }
  0x86   : > { %418 = vst [vmem:[%s4458_s8 + $0x378] sm:$0xff] %v417_v47  ;;  %v545_v47 = vld [vmem:[%s4453_s7 + $0xae8] sm:$0xff] }
  0x87   : > { %420 = vst [vmem:[%s4458_s8 + $0x380] sm:$0xff] %v419_v48  ;;  %v547_v48 = vld [vmem:[%s4453_s7 + $0xb00] sm:$0xff] }
  0x88   : > { %422 = vst [vmem:[%s4458_s8 + $0x388] sm:$0xff] %v421_v49  ;;  %v549_v49 = vld [vmem:[%s4453_s7 + $0xb08] sm:$0xff] }
  0x89   : > { %424 = vst [vmem:[%s4458_s8 + $0x390] sm:$0xff] %v423_v50  ;;  %v551_v50 = vld [vmem:[%s4453_s7 + $0xb20] sm:$0xff] }
  0x8a   : > { %426 = vst [vmem:[%s4458_s8 + $0x398] sm:$0xff] %v425_v51  ;;  %v553_v51 = vld [vmem:[%s4453_s7 + $0xb28] sm:$0xff] }
  0x8b   : > { %428 = vst [vmem:[%s4458_s8 + $0x3a0] sm:$0xff] %v427_v52  ;;  %v555_v52 = vld [vmem:[%s4453_s7 + $0xb40] sm:$0xff] }
  0x8c   : > { %430 = vst [vmem:[%s4458_s8 + $0x3a8] sm:$0xff] %v429_v53  ;;  %v557_v53 = vld [vmem:[%s4453_s7 + $0xb48] sm:$0xff] }
  0x8d   : > { %432 = vst [vmem:[%s4458_s8 + $0x3b0] sm:$0xff] %v431_v54  ;;  %v559_v54 = vld [vmem:[%s4453_s7 + $0xb60] sm:$0xff] }
  0x8e   : > { %434 = vst [vmem:[%s4458_s8 + $0x3b8] sm:$0xff] %v433_v55  ;;  %v561_v55 = vld [vmem:[%s4453_s7 + $0xb68] sm:$0xff] }
  0x8f   : > { %436 = vst [vmem:[%s4458_s8 + $0x3c0] sm:$0xff] %v435_v56  ;;  %v563_v56 = vld [vmem:[%s4453_s7 + $0xb80] sm:$0xff] }
  0x90   : > { %438 = vst [vmem:[%s4458_s8 + $0x3c8] sm:$0xff] %v437_v57  ;;  %v565_v57 = vld [vmem:[%s4453_s7 + $0xb88] sm:$0xff] }
  0x91   : > { %440 = vst [vmem:[%s4458_s8 + $0x3d0] sm:$0xff] %v439_v58  ;;  %v567_v58 = vld [vmem:[%s4453_s7 + $0xba0] sm:$0xff] }
  0x92   : > { %442 = vst [vmem:[%s4458_s8 + $0x3d8] sm:$0xff] %v441_v59  ;;  %v569_v59 = vld [vmem:[%s4453_s7 + $0xba8] sm:$0xff] }
  0x93   : > { %444 = vst [vmem:[%s4458_s8 + $0x3e0] sm:$0xff] %v443_v60  ;;  %v571_v60 = vld [vmem:[%s4453_s7 + $0xbc0] sm:$0xff] }
  0x94   : > { %446 = vst [vmem:[%s4458_s8 + $0x3e8] sm:$0xff] %v445_v61  ;;  %v573_v61 = vld [vmem:[%s4453_s7 + $0xbc8] sm:$0xff] }
  0x95   : > { %448 = vst [vmem:[%s4458_s8 + $0x3f0] sm:$0xff] %v447_v62  ;;  %v575_v62 = vld [vmem:[%s4453_s7 + $0xbe0] sm:$0xff] }
  0x96   : > { %450 = vst [vmem:[%s4458_s8 + $0x3f8] sm:$0xff] %v449_v63  ;;  %v577_v63 = vld [vmem:[%s4453_s7 + $0xbe8] sm:$0xff] }
  0x97   : > { %452 = vst [vmem:[%s4458_s8 + $0x400] sm:$0xff] %v451_v0  ;;  %v579_v0 = vld [vmem:[%s4453_s7 + $0xc00] sm:$0xff] }
  0x98   : > { %454 = vst [vmem:[%s4458_s8 + $0x408] sm:$0xff] %v453_v1  ;;  %v581_v1 = vld [vmem:[%s4453_s7 + $0xc08] sm:$0xff] }
  0x99   : > { %456 = vst [vmem:[%s4458_s8 + $0x410] sm:$0xff] %v455_v2  ;;  %v583_v2 = vld [vmem:[%s4453_s7 + $0xc20] sm:$0xff] }
  0x9a   : > { %458 = vst [vmem:[%s4458_s8 + $0x418] sm:$0xff] %v457_v3  ;;  %v585_v3 = vld [vmem:[%s4453_s7 + $0xc28] sm:$0xff] }
  0x9b   : > { %460 = vst [vmem:[%s4458_s8 + $0x420] sm:$0xff] %v459_v4  ;;  %v587_v4 = vld [vmem:[%s4453_s7 + $0xc40] sm:$0xff] }
  0x9c   : > { %462 = vst [vmem:[%s4458_s8 + $0x428] sm:$0xff] %v461_v5  ;;  %v589_v5 = vld [vmem:[%s4453_s7 + $0xc48] sm:$0xff] }
  0x9d   : > { %464 = vst [vmem:[%s4458_s8 + $0x430] sm:$0xff] %v463_v6  ;;  %v591_v6 = vld [vmem:[%s4453_s7 + $0xc60] sm:$0xff] }
  0x9e   : > { %466 = vst [vmem:[%s4458_s8 + $0x438] sm:$0xff] %v465_v7  ;;  %v593_v7 = vld [vmem:[%s4453_s7 + $0xc68] sm:$0xff] }
  0x9f   : > { %468 = vst [vmem:[%s4458_s8 + $0x440] sm:$0xff] %v467_v8  ;;  %v595_v8 = vld [vmem:[%s4453_s7 + $0xc80] sm:$0xff] }
  0xa0   : > { %470 = vst [vmem:[%s4458_s8 + $0x448] sm:$0xff] %v469_v9  ;;  %v597_v9 = vld [vmem:[%s4453_s7 + $0xc88] sm:$0xff] }
  0xa1   : > { %472 = vst [vmem:[%s4458_s8 + $0x450] sm:$0xff] %v471_v10  ;;  %v599_v10 = vld [vmem:[%s4453_s7 + $0xca0] sm:$0xff] }
  0xa2   : > { %474 = vst [vmem:[%s4458_s8 + $0x458] sm:$0xff] %v473_v11  ;;  %v601_v11 = vld [vmem:[%s4453_s7 + $0xca8] sm:$0xff] }
  0xa3   : > { %476 = vst [vmem:[%s4458_s8 + $0x460] sm:$0xff] %v475_v12  ;;  %v603_v12 = vld [vmem:[%s4453_s7 + $0xcc0] sm:$0xff] }
  0xa4   : > { %478 = vst [vmem:[%s4458_s8 + $0x468] sm:$0xff] %v477_v13  ;;  %v605_v13 = vld [vmem:[%s4453_s7 + $0xcc8] sm:$0xff] }
  0xa5   : > { %480 = vst [vmem:[%s4458_s8 + $0x470] sm:$0xff] %v479_v14  ;;  %v607_v14 = vld [vmem:[%s4453_s7 + $0xce0] sm:$0xff] }
  0xa6   : > { %482 = vst [vmem:[%s4458_s8 + $0x478] sm:$0xff] %v481_v15  ;;  %v609_v15 = vld [vmem:[%s4453_s7 + $0xce8] sm:$0xff] }
  0xa7   : > { %484 = vst [vmem:[%s4458_s8 + $0x480] sm:$0xff] %v483_v16  ;;  %v611_v16 = vld [vmem:[%s4453_s7 + $0xd00] sm:$0xff] }
  0xa8   : > { %486 = vst [vmem:[%s4458_s8 + $0x488] sm:$0xff] %v485_v17  ;;  %v613_v17 = vld [vmem:[%s4453_s7 + $0xd08] sm:$0xff] }
  0xa9   : > { %488 = vst [vmem:[%s4458_s8 + $0x490] sm:$0xff] %v487_v18  ;;  %v615_v18 = vld [vmem:[%s4453_s7 + $0xd20] sm:$0xff] }
  0xaa   : > { %490 = vst [vmem:[%s4458_s8 + $0x498] sm:$0xff] %v489_v19  ;;  %v617_v19 = vld [vmem:[%s4453_s7 + $0xd28] sm:$0xff] }
  0xab   : > { %492 = vst [vmem:[%s4458_s8 + $0x4a0] sm:$0xff] %v491_v20  ;;  %v619_v20 = vld [vmem:[%s4453_s7 + $0xd40] sm:$0xff] }
  0xac   : > { %494 = vst [vmem:[%s4458_s8 + $0x4a8] sm:$0xff] %v493_v21  ;;  %v621_v21 = vld [vmem:[%s4453_s7 + $0xd48] sm:$0xff] }
  0xad   : > { %496 = vst [vmem:[%s4458_s8 + $0x4b0] sm:$0xff] %v495_v22  ;;  %v623_v22 = vld [vmem:[%s4453_s7 + $0xd60] sm:$0xff] }
  0xae   : > { %498 = vst [vmem:[%s4458_s8 + $0x4b8] sm:$0xff] %v497_v23  ;;  %v625_v23 = vld [vmem:[%s4453_s7 + $0xd68] sm:$0xff] }
  0xaf   : > { %500 = vst [vmem:[%s4458_s8 + $0x4c0] sm:$0xff] %v499_v24  ;;  %v627_v24 = vld [vmem:[%s4453_s7 + $0xd80] sm:$0xff] }
  0xb0   : > { %502 = vst [vmem:[%s4458_s8 + $0x4c8] sm:$0xff] %v501_v25  ;;  %v629_v25 = vld [vmem:[%s4453_s7 + $0xd88] sm:$0xff] }
  0xb1   : > { %504 = vst [vmem:[%s4458_s8 + $0x4d0] sm:$0xff] %v503_v26  ;;  %v631_v26 = vld [vmem:[%s4453_s7 + $0xda0] sm:$0xff] }
  0xb2   : > { %506 = vst [vmem:[%s4458_s8 + $0x4d8] sm:$0xff] %v505_v27  ;;  %v633_v27 = vld [vmem:[%s4453_s7 + $0xda8] sm:$0xff] }
  0xb3   : > { %508 = vst [vmem:[%s4458_s8 + $0x4e0] sm:$0xff] %v507_v28  ;;  %v635_v28 = vld [vmem:[%s4453_s7 + $0xdc0] sm:$0xff] }
  0xb4   : > { %510 = vst [vmem:[%s4458_s8 + $0x4e8] sm:$0xff] %v509_v29  ;;  %v637_v29 = vld [vmem:[%s4453_s7 + $0xdc8] sm:$0xff] }
  0xb5   : > { %512 = vst [vmem:[%s4458_s8 + $0x4f0] sm:$0xff] %v511_v30  ;;  %v639_v30 = vld [vmem:[%s4453_s7 + $0xde0] sm:$0xff] }
  0xb6   : > { %514 = vst [vmem:[%s4458_s8 + $0x4f8] sm:$0xff] %v513_v31  ;;  %v641_v31 = vld [vmem:[%s4453_s7 + $0xde8] sm:$0xff] }
  0xb7   : > { %516 = vst [vmem:[%s4458_s8 + $0x500] sm:$0xff] %v515_v32  ;;  %v643_v32 = vld [vmem:[%s4453_s7 + $0xe00] sm:$0xff] }
  0xb8   : > { %518 = vst [vmem:[%s4458_s8 + $0x508] sm:$0xff] %v517_v33  ;;  %v645_v33 = vld [vmem:[%s4453_s7 + $0xe08] sm:$0xff] }
  0xb9   : > { %520 = vst [vmem:[%s4458_s8 + $0x510] sm:$0xff] %v519_v34  ;;  %v647_v34 = vld [vmem:[%s4453_s7 + $0xe20] sm:$0xff] }
  0xba   : > { %522 = vst [vmem:[%s4458_s8 + $0x518] sm:$0xff] %v521_v35  ;;  %v649_v35 = vld [vmem:[%s4453_s7 + $0xe28] sm:$0xff] }
  0xbb   : > { %524 = vst [vmem:[%s4458_s8 + $0x520] sm:$0xff] %v523_v36  ;;  %v651_v36 = vld [vmem:[%s4453_s7 + $0xe40] sm:$0xff] }
  0xbc   : > { %526 = vst [vmem:[%s4458_s8 + $0x528] sm:$0xff] %v525_v37  ;;  %v653_v37 = vld [vmem:[%s4453_s7 + $0xe48] sm:$0xff] }
  0xbd   : > { %528 = vst [vmem:[%s4458_s8 + $0x530] sm:$0xff] %v527_v38  ;;  %v655_v38 = vld [vmem:[%s4453_s7 + $0xe60] sm:$0xff] }
  0xbe   : > { %530 = vst [vmem:[%s4458_s8 + $0x538] sm:$0xff] %v529_v39  ;;  %v657_v39 = vld [vmem:[%s4453_s7 + $0xe68] sm:$0xff] }
  0xbf   : > { %532 = vst [vmem:[%s4458_s8 + $0x540] sm:$0xff] %v531_v40  ;;  %v659_v40 = vld [vmem:[%s4453_s7 + $0xe80] sm:$0xff] }
  0xc0   : > { %534 = vst [vmem:[%s4458_s8 + $0x548] sm:$0xff] %v533_v41  ;;  %v661_v41 = vld [vmem:[%s4453_s7 + $0xe88] sm:$0xff] }
  0xc1   : > { %536 = vst [vmem:[%s4458_s8 + $0x550] sm:$0xff] %v535_v42  ;;  %v663_v42 = vld [vmem:[%s4453_s7 + $0xea0] sm:$0xff] }
  0xc2   : > { %538 = vst [vmem:[%s4458_s8 + $0x558] sm:$0xff] %v537_v43  ;;  %v665_v43 = vld [vmem:[%s4453_s7 + $0xea8] sm:$0xff] }
  0xc3   : > { %540 = vst [vmem:[%s4458_s8 + $0x560] sm:$0xff] %v539_v44  ;;  %v667_v44 = vld [vmem:[%s4453_s7 + $0xec0] sm:$0xff] }
  0xc4   : > { %542 = vst [vmem:[%s4458_s8 + $0x568] sm:$0xff] %v541_v45  ;;  %v669_v45 = vld [vmem:[%s4453_s7 + $0xec8] sm:$0xff] }
  0xc5   : > { %544 = vst [vmem:[%s4458_s8 + $0x570] sm:$0xff] %v543_v46  ;;  %v671_v46 = vld [vmem:[%s4453_s7 + $0xee0] sm:$0xff] }
  0xc6   : > { %546 = vst [vmem:[%s4458_s8 + $0x578] sm:$0xff] %v545_v47  ;;  %v673_v47 = vld [vmem:[%s4453_s7 + $0xee8] sm:$0xff] }
  0xc7   : > { %548 = vst [vmem:[%s4458_s8 + $0x580] sm:$0xff] %v547_v48  ;;  %v675_v48 = vld [vmem:[%s4453_s7 + $0xf00] sm:$0xff] }
  0xc8   : > { %550 = vst [vmem:[%s4458_s8 + $0x588] sm:$0xff] %v549_v49  ;;  %v677_v49 = vld [vmem:[%s4453_s7 + $0xf08] sm:$0xff] }
  0xc9   : > { %552 = vst [vmem:[%s4458_s8 + $0x590] sm:$0xff] %v551_v50  ;;  %v679_v50 = vld [vmem:[%s4453_s7 + $0xf20] sm:$0xff] }
  0xca   : > { %554 = vst [vmem:[%s4458_s8 + $0x598] sm:$0xff] %v553_v51  ;;  %v681_v51 = vld [vmem:[%s4453_s7 + $0xf28] sm:$0xff] }
  0xcb   : > { %556 = vst [vmem:[%s4458_s8 + $0x5a0] sm:$0xff] %v555_v52  ;;  %v683_v52 = vld [vmem:[%s4453_s7 + $0xf40] sm:$0xff] }
  0xcc   : > { %558 = vst [vmem:[%s4458_s8 + $0x5a8] sm:$0xff] %v557_v53  ;;  %v685_v53 = vld [vmem:[%s4453_s7 + $0xf48] sm:$0xff] }
  0xcd   : > { %560 = vst [vmem:[%s4458_s8 + $0x5b0] sm:$0xff] %v559_v54  ;;  %v687_v54 = vld [vmem:[%s4453_s7 + $0xf60] sm:$0xff] }
  0xce   : > { %562 = vst [vmem:[%s4458_s8 + $0x5b8] sm:$0xff] %v561_v55  ;;  %v689_v55 = vld [vmem:[%s4453_s7 + $0xf68] sm:$0xff] }
  0xcf   : > { %564 = vst [vmem:[%s4458_s8 + $0x5c0] sm:$0xff] %v563_v56  ;;  %v691_v56 = vld [vmem:[%s4453_s7 + $0xf80] sm:$0xff] }
  0xd0   : > { %566 = vst [vmem:[%s4458_s8 + $0x5c8] sm:$0xff] %v565_v57  ;;  %v693_v57 = vld [vmem:[%s4453_s7 + $0xf88] sm:$0xff] }
  0xd1   : > { %568 = vst [vmem:[%s4458_s8 + $0x5d0] sm:$0xff] %v567_v58  ;;  %v695_v58 = vld [vmem:[%s4453_s7 + $0xfa0] sm:$0xff] }
  0xd2   : > { %570 = vst [vmem:[%s4458_s8 + $0x5d8] sm:$0xff] %v569_v59  ;;  %v697_v59 = vld [vmem:[%s4453_s7 + $0xfa8] sm:$0xff] }
  0xd3   : > { %572 = vst [vmem:[%s4458_s8 + $0x5e0] sm:$0xff] %v571_v60  ;;  %v699_v60 = vld [vmem:[%s4453_s7 + $0xfc0] sm:$0xff] }
  0xd4   : > { %574 = vst [vmem:[%s4458_s8 + $0x5e8] sm:$0xff] %v573_v61  ;;  %v701_v61 = vld [vmem:[%s4453_s7 + $0xfc8] sm:$0xff] }
  0xd5   : > { %576 = vst [vmem:[%s4458_s8 + $0x5f0] sm:$0xff] %v575_v62  ;;  %v703_v62 = vld [vmem:[%s4453_s7 + $0xfe0] sm:$0xff] }
  0xd6   : > { %578 = vst [vmem:[%s4458_s8 + $0x5f8] sm:$0xff] %v577_v63  ;;  %v705_v63 = vld [vmem:[%s4453_s7 + $0xfe8] sm:$0xff] }
  0xd7   : > { %580 = vst [vmem:[%s4458_s8 + $0x600] sm:$0xff] %v579_v0 }
  0xd8   : > { %582 = vst [vmem:[%s4458_s8 + $0x608] sm:$0xff] %v581_v1 }
  0xd9   : > { %584 = vst [vmem:[%s4458_s8 + $0x610] sm:$0xff] %v583_v2 }
  0xda   : > { %586 = vst [vmem:[%s4458_s8 + $0x618] sm:$0xff] %v585_v3 }
  0xdb   : > { %588 = vst [vmem:[%s4458_s8 + $0x620] sm:$0xff] %v587_v4 }
  0xdc   : > { %590 = vst [vmem:[%s4458_s8 + $0x628] sm:$0xff] %v589_v5 }
  0xdd   : > { %592 = vst [vmem:[%s4458_s8 + $0x630] sm:$0xff] %v591_v6 }
  0xde   : > { %594 = vst [vmem:[%s4458_s8 + $0x638] sm:$0xff] %v593_v7 }
  0xdf   : > { %596 = vst [vmem:[%s4458_s8 + $0x640] sm:$0xff] %v595_v8 }
  0xe0   : > { %598 = vst [vmem:[%s4458_s8 + $0x648] sm:$0xff] %v597_v9 }
  0xe1   : > { %600 = vst [vmem:[%s4458_s8 + $0x650] sm:$0xff] %v599_v10 }
  0xe2   : > { %602 = vst [vmem:[%s4458_s8 + $0x658] sm:$0xff] %v601_v11 }
  0xe3   : > { %604 = vst [vmem:[%s4458_s8 + $0x660] sm:$0xff] %v603_v12 }
  0xe4   : > { %606 = vst [vmem:[%s4458_s8 + $0x668] sm:$0xff] %v605_v13 }
  0xe5   : > { %608 = vst [vmem:[%s4458_s8 + $0x670] sm:$0xff] %v607_v14 }
  0xe6   : > { %610 = vst [vmem:[%s4458_s8 + $0x678] sm:$0xff] %v609_v15 }
  0xe7   : > { %612 = vst [vmem:[%s4458_s8 + $0x680] sm:$0xff] %v611_v16 }
  0xe8   : > { %614 = vst [vmem:[%s4458_s8 + $0x688] sm:$0xff] %v613_v17 }
  0xe9   : > { %616 = vst [vmem:[%s4458_s8 + $0x690] sm:$0xff] %v615_v18 }
  0xea   : > { %618 = vst [vmem:[%s4458_s8 + $0x698] sm:$0xff] %v617_v19 }
  0xeb   : > { %620 = vst [vmem:[%s4458_s8 + $0x6a0] sm:$0xff] %v619_v20 }
  0xec   : > { %622 = vst [vmem:[%s4458_s8 + $0x6a8] sm:$0xff] %v621_v21 }
  0xed   : > { %624 = vst [vmem:[%s4458_s8 + $0x6b0] sm:$0xff] %v623_v22 }
  0xee   : > { %626 = vst [vmem:[%s4458_s8 + $0x6b8] sm:$0xff] %v625_v23 }
  0xef   : > { %628 = vst [vmem:[%s4458_s8 + $0x6c0] sm:$0xff] %v627_v24 }
  0xf0   : > { %630 = vst [vmem:[%s4458_s8 + $0x6c8] sm:$0xff] %v629_v25 }
  0xf1   : > { %632 = vst [vmem:[%s4458_s8 + $0x6d0] sm:$0xff] %v631_v26 }
  0xf2   : > { %634 = vst [vmem:[%s4458_s8 + $0x6d8] sm:$0xff] %v633_v27 }
  0xf3   : > { %636 = vst [vmem:[%s4458_s8 + $0x6e0] sm:$0xff] %v635_v28 }
  0xf4   : > { %638 = vst [vmem:[%s4458_s8 + $0x6e8] sm:$0xff] %v637_v29 }
  0xf5   : > { %640 = vst [vmem:[%s4458_s8 + $0x6f0] sm:$0xff] %v639_v30 }
  0xf6   : > { %642 = vst [vmem:[%s4458_s8 + $0x6f8] sm:$0xff] %v641_v31 }
  0xf7   : > { %644 = vst [vmem:[%s4458_s8 + $0x700] sm:$0xff] %v643_v32 }
  0xf8   : > { %646 = vst [vmem:[%s4458_s8 + $0x708] sm:$0xff] %v645_v33 }
  0xf9   : > { %648 = vst [vmem:[%s4458_s8 + $0x710] sm:$0xff] %v647_v34 }
  0xfa   : > { %650 = vst [vmem:[%s4458_s8 + $0x718] sm:$0xff] %v649_v35 }
  0xfb   : > { %652 = vst [vmem:[%s4458_s8 + $0x720] sm:$0xff] %v651_v36 }
  0xfc   : > { %654 = vst [vmem:[%s4458_s8 + $0x728] sm:$0xff] %v653_v37 }
  0xfd   : > { %656 = vst [vmem:[%s4458_s8 + $0x730] sm:$0xff] %v655_v38 }
  0xfe   : > { %658 = vst [vmem:[%s4458_s8 + $0x738] sm:$0xff] %v657_v39 }
  0xff   : > { %660 = vst [vmem:[%s4458_s8 + $0x740] sm:$0xff] %v659_v40 }
 0x100   : > { %662 = vst [vmem:[%s4458_s8 + $0x748] sm:$0xff] %v661_v41 }
 0x101   : > { %664 = vst [vmem:[%s4458_s8 + $0x750] sm:$0xff] %v663_v42 }
 0x102   : > { %666 = vst [vmem:[%s4458_s8 + $0x758] sm:$0xff] %v665_v43 }
 0x103   : > { %668 = vst [vmem:[%s4458_s8 + $0x760] sm:$0xff] %v667_v44 }
 0x104   : > { %670 = vst [vmem:[%s4458_s8 + $0x768] sm:$0xff] %v669_v45 }
 0x105   : > { %672 = vst [vmem:[%s4458_s8 + $0x770] sm:$0xff] %v671_v46 }
 0x106   : > { %674 = vst [vmem:[%s4458_s8 + $0x778] sm:$0xff] %v673_v47 }
 0x107   : > { %676 = vst [vmem:[%s4458_s8 + $0x780] sm:$0xff] %v675_v48 }
 0x108   : > { %678 = vst [vmem:[%s4458_s8 + $0x788] sm:$0xff] %v677_v49 }
 0x109   : > { %680 = vst [vmem:[%s4458_s8 + $0x790] sm:$0xff] %v679_v50 }
 0x10a   : > { %682 = vst [vmem:[%s4458_s8 + $0x798] sm:$0xff] %v681_v51 }
 0x10b   : > { %684 = vst [vmem:[%s4458_s8 + $0x7a0] sm:$0xff] %v683_v52 }
 0x10c   : > { %686 = vst [vmem:[%s4458_s8 + $0x7a8] sm:$0xff] %v685_v53 }
 0x10d   : > { %688 = vst [vmem:[%s4458_s8 + $0x7b0] sm:$0xff] %v687_v54 }
 0x10e   : > { %690 = vst [vmem:[%s4458_s8 + $0x7b8] sm:$0xff] %v689_v55 }
 0x10f   : > { %692 = vst [vmem:[%s4458_s8 + $0x7c0] sm:$0xff] %v691_v56 }
 0x110   : > { %694 = vst [vmem:[%s4458_s8 + $0x7c8] sm:$0xff] %v693_v57 }
 0x111   : > { %696 = vst [vmem:[%s4458_s8 + $0x7d0] sm:$0xff] %v695_v58 }
 0x112   : > { %698 = vst [vmem:[%s4458_s8 + $0x7d8] sm:$0xff] %v697_v59 }
 0x113   : > { %700 = vst [vmem:[%s4458_s8 + $0x7e0] sm:$0xff] %v699_v60 }
 0x114   : > { %702 = vst [vmem:[%s4458_s8 + $0x7e8] sm:$0xff] %v701_v61 }
 0x115   : > { %704 = vst [vmem:[%s4458_s8 + $0x7f0] sm:$0xff] %v703_v62 }
 0x116   : > { %706 = vst [vmem:[%s4458_s8 + $0x7f8] sm:$0xff] %v705_v63 }
 0x117 PF: > { %p2967_p7 = scmp.ge.s32.totalorder %s4370_s18, 1  ;;  %p719_p8 = scmp.lt.s32.totalorder %s4370_s18, 11 }
 0x119   : > { %p720_p9 = pnand %p2967_p7, %p719_p8 }
 0x11a   : > { %s726_s9 = sand.u32 (!%p720_p9), 1, %s4346_s12   ;;  %s2969_s10 = sshll.u32 (!%p720_p9), %s4354_s14, 3 }
 0x11b   : > { %723 = sbr.rel (%p720_p9) target bundleno = 716 (0x2cc), region = 51  ;;  %s2968_s11 = sshll.u32 (!%p720_p9), %s726_s9, 11 }
 0x11c   : > { %p769_p10 = scmp.lt.s32.totalorder (!%p720_p9), %s2969_s10, 39  ;;  %s2971_s21 = sshll.u32 (!%p720_p9), %s4358_s15, 2 }
 0x11d   : > { %p779_p11 = scmp.lt.s32.totalorder (!%p720_p9), %s2971_s21, 7  ;;  %s4991_s5 = scalar_lea.vmem (!%p720_p9), [#allocation2], %s2968_s11 }
 0x11e   : > { %p2974_p12 = scmp.ne.s32.totalorder (!%p720_p9), %s4354_s14, 0 }
 0x120   : > { %s5643_s10 = smov (!%p769_p10, %s2969_s10), 39  ;;  %s5645_s21 = smov (!%p779_p11, %s2971_s21), 7 }
 0x121   : > { %s2970_s22 = sshll.u32 %s5643_s10, 2  ;;  %s781_s12 = scalar_lea.vmem %s5628_s2, %s5645_s21 }
 0x122   : > { %s4977_s26 = scalar_lea.vmem %s5626_s0, %s2970_s22  ;;  %s2973_s29 = sshll.u32 %s5645_s21, 3 }
 0x123   : > { %s4989_s15 = scalar_lea.vmem %s5629_s3, %s2973_s29  ;;  %796 = sbr.rel (%p2974_p12) target bundleno = 301 (0x12d), region = 59 }
 0x128   : > { %v4372_v0 = vmov 0.0  }
 0x129   : > { %797 = vst [vmem:[%s4989_s15] sm:$0xff] %v4372_v0 }
 0x12a   : > { %798 = vst [vmem:[%s4989_s15 + $0x8] sm:$0xff] %v4372_v0 }
 0x12b   : > { %799 = vst [vmem:[%s4989_s15 + $0x10] sm:$0xff] %v4372_v0 }
 0x12c   : > { %800 = vst [vmem:[%s4989_s15 + $0x18] sm:$0xff] %v4372_v0 }
 0x12d PF: > { %v3089_v1 = vld [vmem:[%s4991_s5 + $0xe0] sm:$0xf]  ;;  %v4033_v2 = vld [vmem:[%s4991_s5 + $0xec] sm:$0xf0]  ;;  %p3999_p13 = scmp.ne.s32.totalorder %s4354_s14, 4 }
 0x12e   : > { %v3217_v3 = vld [vmem:[%s4991_s5 + $0x1e0] sm:$0xf]  ;;  %v3090_v4 = vor.u32 %v4033_v2, %v3089_v1  ;;  %v4065_v5 = vld [vmem:[%s4991_s5 + $0x1ec] sm:$0xf0] }
 0x12f   : > { %v3345_v6 = vld [vmem:[%s4991_s5 + $0x2e0] sm:$0xf]  ;;  %v4097_v7 = vld [vmem:[%s4991_s5 + $0x2ec] sm:$0xf0]  ;;  %v3218_v8 = vor.u32 %v4065_v5, %v3217_v3 }
 0x130   : > { %v3346_v9 = vor.u32 %v4097_v7, %v3345_v6  ;;  %v3473_v10 = vld [vmem:[%s4991_s5 + $0x3e0] sm:$0xf]  ;;  %v4129_v11 = vld [vmem:[%s4991_s5 + $0x3ec] sm:$0xf0]  ;;  %2373 = vmatpush.bf16.msra.mxu0 %v3090_v4 }
 0x131   : > { %v3073_v12 = vld [vmem:[%s4991_s5 + $0xc0] sm:$0xf]  ;;  %v3474_v13 = vor.u32 %v4129_v11, %v3473_v10  ;;  %v4029_v14 = vld [vmem:[%s4991_s5 + $0xcc] sm:$0xf0]  ;;  %2386 = vmatpush.bf16.msra.mxu1 %v3218_v8 }
 0x132   : > { %v3201_v15 = vld [vmem:[%s4991_s5 + $0x1c0] sm:$0xf]  ;;  %v4061_v16 = vld [vmem:[%s4991_s5 + $0x1cc] sm:$0xf0]  ;;  %2399 = vmatpush.bf16.msra.mxu2 %v3346_v9  ;;  %v3074_v17 = vor.u32 %v4029_v14, %v3073_v12 }
 0x133   : > { %v3202_v18 = vor.u32 %v4061_v16, %v3201_v15  ;;  %v3329_v19 = vld [vmem:[%s4991_s5 + $0x2c0] sm:$0xf]  ;;  %v4093_v20 = vld [vmem:[%s4991_s5 + $0x2cc] sm:$0xf0]  ;;  %2412 = vmatpush.bf16.msra.mxu3 %v3474_v13 }
 0x134   : > { %v3457_v21 = vld [vmem:[%s4991_s5 + $0x3c0] sm:$0xf]  ;;  %v3330_v22 = vor.u32 %v4093_v20, %v3329_v19  ;;  %v4125_v23 = vld [vmem:[%s4991_s5 + $0x3cc] sm:$0xf0]  ;;  %2374 = vmatpush.bf16.msra.mxu0 %v3074_v17 }
 0x135   : > { %v3057_v24 = vld [vmem:[%s4991_s5 + $0xa0] sm:$0xf]  ;;  %v4025_v25 = vld [vmem:[%s4991_s5 + $0xac] sm:$0xf0]  ;;  %v3458_v26 = vor.u32 %v4125_v23, %v3457_v21  ;;  %2387 = vmatpush.bf16.msra.mxu1 %v3202_v18 }
 0x136   : > { %v3185_v27 = vld [vmem:[%s4991_s5 + $0x1a0] sm:$0xf]  ;;  %v4057_v28 = vld [vmem:[%s4991_s5 + $0x1ac] sm:$0xf0]  ;;  %v3058_v30 = vor.u32 %v4025_v25, %v3057_v24  ;;  %2400 = vmatpush.bf16.msra.mxu2 %v3330_v22 }
 0x137   : > { %v3313_v29 = vld [vmem:[%s4991_s5 + $0x2a0] sm:$0xf]  ;;  %v4089_v31 = vld [vmem:[%s4991_s5 + $0x2ac] sm:$0xf0]  ;;  %v3186_v34 = vor.u32 %v4057_v28, %v3185_v27  ;;  %2413 = vmatpush.bf16.msra.mxu3 %v3458_v26 }
 0x138   : > { %v3441_v32 = vld [vmem:[%s4991_s5 + $0x3a0] sm:$0xf]  ;;  %v4121_v33 = vld [vmem:[%s4991_s5 + $0x3ac] sm:$0xf0]  ;;  %v3314_v35 = vor.u32 %v4089_v31, %v3313_v29  ;;  %2375 = vmatpush.bf16.msra.mxu0 %v3058_v30 }
 0x139   : > { %v3041_v36 = vld [vmem:[%s4991_s5 + $0x80] sm:$0xf]  ;;  %v4021_v37 = vld [vmem:[%s4991_s5 + $0x8c] sm:$0xf0]  ;;  %v3442_v39 = vor.u32 %v4121_v33, %v3441_v32  ;;  %2388 = vmatpush.bf16.msra.mxu1 %v3186_v34 }
 0x13a   : > { %v3169_v38 = vld [vmem:[%s4991_s5 + $0x180] sm:$0xf]  ;;  %v4053_v40 = vld [vmem:[%s4991_s5 + $0x18c] sm:$0xf0]  ;;  %v3042_v45 = vor.u32 %v4021_v37, %v3041_v36  ;;  %2401 = vmatpush.bf16.msra.mxu2 %v3314_v35 }
 0x13b   : > { %v3297_v41 = vld [vmem:[%s4991_s5 + $0x280] sm:$0xf]  ;;  %v4085_v42 = vld [vmem:[%s4991_s5 + $0x28c] sm:$0xf0]  ;;  %v3170_v46 = vor.u32 %v4053_v40, %v3169_v38  ;;  %2414 = vmatpush.bf16.msra.mxu3 %v3442_v39 }
 0x13c   : > { %v3425_v43 = vld [vmem:[%s4991_s5 + $0x380] sm:$0xf]  ;;  %v4117_v44 = vld [vmem:[%s4991_s5 + $0x38c] sm:$0xf0]  ;;  %v3298_v47 = vor.u32 %v4085_v42, %v3297_v41  ;;  %2376 = vmatpush.bf16.msra.mxu0 %v3042_v45 }
 0x13d   : > { %v3025_v48 = vld [vmem:[%s4991_s5 + $0x60] sm:$0xf]  ;;  %v4017_v49 = vld [vmem:[%s4991_s5 + $0x6c] sm:$0xf0]  ;;  %v3426_v51 = vor.u32 %v4117_v44, %v3425_v43  ;;  %2389 = vmatpush.bf16.msra.mxu1 %v3170_v46 }
 0x13e   : > { %v3153_v50 = vld [vmem:[%s4991_s5 + $0x160] sm:$0xf]  ;;  %v4049_v52 = vld [vmem:[%s4991_s5 + $0x16c] sm:$0xf0]  ;;  %v3026_v57 = vor.u32 %v4017_v49, %v3025_v48  ;;  %2402 = vmatpush.bf16.msra.mxu2 %v3298_v47 }
 0x13f   : > { %v3281_v53 = vld [vmem:[%s4991_s5 + $0x260] sm:$0xf]  ;;  %v4081_v54 = vld [vmem:[%s4991_s5 + $0x26c] sm:$0xf0]  ;;  %v3154_v58 = vor.u32 %v4049_v52, %v3153_v50  ;;  %2415 = vmatpush.bf16.msra.mxu3 %v3426_v51 }
 0x140   : > { %v3409_v55 = vld [vmem:[%s4991_s5 + $0x360] sm:$0xf]  ;;  %v4113_v56 = vld [vmem:[%s4991_s5 + $0x36c] sm:$0xf0]  ;;  %v3282_v59 = vor.u32 %v4081_v54, %v3281_v53  ;;  %2377 = vmatpush.bf16.msra.mxu0 %v3026_v57 }
 0x141   : > { %v3009_v60 = vld [vmem:[%s4991_s5 + $0x40] sm:$0xf]  ;;  %v4013_v61 = vld [vmem:[%s4991_s5 + $0x4c] sm:$0xf0]  ;;  %v3410_v63 = vor.u32 %v4113_v56, %v3409_v55  ;;  %2390 = vmatpush.bf16.msra.mxu1 %v3154_v58 }
 0x142   : > { %v3137_v62 = vld [vmem:[%s4991_s5 + $0x140] sm:$0xf]  ;;  %v4045_v0 = vld [vmem:[%s4991_s5 + $0x14c] sm:$0xf0]  ;;  %v3010_v5 = vor.u32 %v4013_v61, %v3009_v60  ;;  %2403 = vmatpush.bf16.msra.mxu2 %v3282_v59  ;;  %v806_v59 = vld [vmem:[%s4977_s26 + $0x8] sm:$0xff] }
 0x143   : > { %v3265_v1 = vld [vmem:[%s4991_s5 + $0x240] sm:$0xf]  ;;  %v4077_v2 = vld [vmem:[%s4991_s5 + $0x24c] sm:$0xf0]  ;;  %v3138_v6 = vor.u32 %v4045_v0, %v3137_v62  ;;  %2416 = vmatpush.bf16.msra.mxu3 %v3410_v63  ;;  %v1071_v0 = vunpack.c.l.b16 %v806_v59 }
 0x144   : > { %v3393_v3 = vld [vmem:[%s4991_s5 + $0x340] sm:$0xf]  ;;  %v4109_v4 = vld [vmem:[%s4991_s5 + $0x34c] sm:$0xf0]  ;;  %v3266_v7 = vor.u32 %v4077_v2, %v3265_v1  ;;  %2378 = vmatpush.bf16.msra.mxu0 %v3010_v5  ;;  %v1072_v1 = vunpack.c.h.b16 %v806_v59 }
 0x145   : > { %v2993_v8 = vld [vmem:[%s4991_s5 + $0x20] sm:$0xf]  ;;  %v4009_v9 = vld [vmem:[%s4991_s5 + $0x2c] sm:$0xf0]  ;;  %v3394_v11 = vor.u32 %v4109_v4, %v3393_v3  ;;  %2391 = vmatpush.bf16.msra.mxu1 %v3138_v6  ;;  %v5087_v5 = vpack.c.b16 %v1071_v0, %v1071_v0 }
 0x146   : > { %v3121_v10 = vld [vmem:[%s4991_s5 + $0x120] sm:$0xf]  ;;  %v4041_v12 = vld [vmem:[%s4991_s5 + $0x12c] sm:$0xf0]  ;;  %v2994_v17 = vor.u32 %v4009_v9, %v2993_v8  ;;  %2404 = vmatpush.bf16.msra.mxu2 %v3266_v7  ;;  %v5090_v7 = vpack.c.b16 %v1072_v1, %v1072_v1 }
 0x147   : > { %v3249_v13 = vld [vmem:[%s4991_s5 + $0x220] sm:$0xf]  ;;  %v4073_v14 = vld [vmem:[%s4991_s5 + $0x22c] sm:$0xf0]  ;;  %v3122_v20 = vor.u32 %v4041_v12, %v3121_v10  ;;  %2417 = vmatpush.bf16.msra.mxu3 %v3394_v11 }
 0x148   : > { %v3377_v15 = vld [vmem:[%s4991_s5 + $0x320] sm:$0xf]  ;;  %v4105_v16 = vld [vmem:[%s4991_s5 + $0x32c] sm:$0xf0]  ;;  %v3250_v21 = vor.u32 %v4073_v14, %v3249_v13  ;;  %2379 = vmatpush.bf16.msra.mxu0 %v2994_v17 }
 0x149   : > { %v2977_v18 = vld [vmem:[%s4991_s5] sm:$0xf]  ;;  %v4005_v19 = vld [vmem:[%s4991_s5 + $0xc] sm:$0xf0]  ;;  %v3378_v25 = vor.u32 %v4105_v16, %v3377_v15  ;;  %2392 = vmatpush.bf16.msra.mxu1 %v3122_v20 }
 0x14a   : > { %v3105_v22 = vld [vmem:[%s4991_s5 + $0x100] sm:$0xf]  ;;  %v4037_v23 = vld [vmem:[%s4991_s5 + $0x10c] sm:$0xf0]  ;;  %v2978_v32 = vor.u32 %v4005_v19, %v2977_v18  ;;  %2405 = vmatpush.bf16.msra.mxu2 %v3250_v21 }
 0x14b   : > { %v3233_v24 = vld [vmem:[%s4991_s5 + $0x200] sm:$0xf]  ;;  %v4069_v26 = vld [vmem:[%s4991_s5 + $0x20c] sm:$0xf0]  ;;  %v3106_v36 = vor.u32 %v4037_v23, %v3105_v22  ;;  %2418 = vmatpush.bf16.msra.mxu3 %v3378_v25 }
 0x14c   : > { %v3361_v27 = vld [vmem:[%s4991_s5 + $0x300] sm:$0xf]  ;;  %v4101_v28 = vld [vmem:[%s4991_s5 + $0x30c] sm:$0xf0]  ;;  %v3234_v37 = vor.u32 %v4069_v26, %v3233_v24  ;;  %2380 = vmatpush.bf16.msra.mxu0 %v2978_v32 }
 0x14d   : > { %v3601_v29 = vld [vmem:[%s4991_s5 + $0x4e0] sm:$0xf]  ;;  %v4161_v30 = vld [vmem:[%s4991_s5 + $0x4ec] sm:$0xf0]  ;;  %v3362_v40 = vor.u32 %v4101_v28, %v3361_v27  ;;  %2393 = vmatpush.bf16.msra.mxu1 %v3106_v36 }
 0x14e   : > { %v3729_v31 = vld [vmem:[%s4991_s5 + $0x5e0] sm:$0xf]  ;;  %v4193_v33 = vld [vmem:[%s4991_s5 + $0x5ec] sm:$0xf0]  ;;  %v3602_v41 = vor.u32 %v4161_v30, %v3601_v29  ;;  %2406 = vmatpush.bf16.msra.mxu2 %v3234_v37 }
 0x14f   : > { %v3857_v34 = vld [vmem:[%s4991_s5 + $0x6e0] sm:$0xf]  ;;  %v4225_v35 = vld [vmem:[%s4991_s5 + $0x6ec] sm:$0xf0]  ;;  %v3730_v42 = vor.u32 %v4193_v33, %v3729_v31  ;;  %2419 = vmatpush.bf16.msra.mxu3 %v3362_v40 }
 0x150   : > { %v3985_v38 = vld [vmem:[%s4991_s5 + $0x7e0] sm:$0xf]  ;;  %v4257_v39 = vld [vmem:[%s4991_s5 + $0x7ec] sm:$0xf0]  ;;  %v3858_v43 = vor.u32 %v4225_v35, %v3857_v34  ;;  %2425 = vmatpush.bf16.msrb.mxu0 %v3602_v41 }
 0x151   : > { %v3585_v44 = vld [vmem:[%s4991_s5 + $0x4c0] sm:$0xf]  ;;  %v4157_v45 = vld [vmem:[%s4991_s5 + $0x4cc] sm:$0xf0]  ;;  %v3986_v47 = vor.u32 %v4257_v39, %v3985_v38  ;;  %2438 = vmatpush.bf16.msrb.mxu1 %v3730_v42  ;;  %2407 = vmatmul.bf16.vlgmr.msra.gmra.mxu2 %v5087_v5 }
 0x152   : > { %v3713_v46 = vld [vmem:[%s4991_s5 + $0x5c0] sm:$0xf]  ;;  %v4189_v48 = vld [vmem:[%s4991_s5 + $0x5cc] sm:$0xf0]  ;;  %v3586_v53 = vor.u32 %v4157_v45, %v3585_v44  ;;  %2451 = vmatpush.bf16.msrb.mxu2 %v3858_v43  ;;  %2420 = vmatmul.bf16.vlgmr.msra.gmra.mxu3 %v5090_v7 }
 0x153   : > { %v3841_v49 = vld [vmem:[%s4991_s5 + $0x6c0] sm:$0xf]  ;;  %v4221_v50 = vld [vmem:[%s4991_s5 + $0x6cc] sm:$0xf0]  ;;  %v3714_v55 = vor.u32 %v4189_v48, %v3713_v46  ;;  %2464 = vmatpush.bf16.msrb.mxu3 %v3986_v47 }
 0x154   : > { %v3969_v51 = vld [vmem:[%s4991_s5 + $0x7c0] sm:$0xf]  ;;  %v4253_v52 = vld [vmem:[%s4991_s5 + $0x7cc] sm:$0xf0]  ;;  %v3842_v56 = vor.u32 %v4221_v50, %v3841_v49  ;;  %2426 = vmatpush.bf16.msrb.mxu0 %v3586_v53 }
 0x155   : > { %v3569_v54 = vld [vmem:[%s4991_s5 + $0x4a0] sm:$0xf]  ;;  %v4153_v57 = vld [vmem:[%s4991_s5 + $0x4ac] sm:$0xf0]  ;;  %v3970_v60 = vor.u32 %v4253_v52, %v3969_v51  ;;  %2439 = vmatpush.bf16.msrb.mxu1 %v3714_v55 }
 0x156   : > { %v3697_v58 = vld [vmem:[%s4991_s5 + $0x5a0] sm:$0xf]  ;;  %v4185_v61 = vld [vmem:[%s4991_s5 + $0x5ac] sm:$0xf0]  ;;  %v3570_v4 = vor.u32 %v4153_v57, %v3569_v54  ;;  %2452 = vmatpush.bf16.msrb.mxu2 %v3842_v56 }
 0x157   : > { %v3825_v62 = vld [vmem:[%s4991_s5 + $0x6a0] sm:$0xf]  ;;  %v4217_v63 = vld [vmem:[%s4991_s5 + $0x6ac] sm:$0xf0]  ;;  %v3698_v8 = vor.u32 %v4185_v61, %v3697_v58  ;;  %2465 = vmatpush.bf16.msrb.mxu3 %v3970_v60 }
 0x158   : > { %v3953_v2 = vld [vmem:[%s4991_s5 + $0x7a0] sm:$0xf]  ;;  %v4249_v3 = vld [vmem:[%s4991_s5 + $0x7ac] sm:$0xf0]  ;;  %v3826_v9 = vor.u32 %v4217_v63, %v3825_v62  ;;  %2427 = vmatpush.bf16.msrb.mxu0 %v3570_v4  ;;  %v808_v4 = vld [vmem:[%s4977_s26 + $0x18] sm:$0xff] }
 0x159   : > { %v805_v6 = vld [vmem:[%s4977_s26] sm:$0xff]  ;;  %v4149_v11 = vld [vmem:[%s4991_s5 + $0x48c] sm:$0xf0]  ;;  %v3954_v15 = vor.u32 %v4249_v3, %v3953_v2  ;;  %2440 = vmatpush.bf16.msrb.mxu1 %v3698_v8 }
 0x15a   : > { %v3553_v10 = vld [vmem:[%s4991_s5 + $0x480] sm:$0xf]  ;;  %v1069_v13 = vunpack.c.l.b16 %v805_v6  ;;  %v1070_v14 = vunpack.c.h.b16 %v805_v6  ;;  %v4181_v16 = vld [vmem:[%s4991_s5 + $0x58c] sm:$0xf0]  ;;  %2453 = vmatpush.bf16.msrb.mxu2 %v3826_v9 }
 0x15b   : > { %v3681_v12 = vld [vmem:[%s4991_s5 + $0x580] sm:$0xf]  ;;  %v4213_v18 = vld [vmem:[%s4991_s5 + $0x68c] sm:$0xf0]  ;;  %v3554_v23 = vor.u32 %v4149_v11, %v3553_v10  ;;  %2466 = vmatpush.bf16.msrb.mxu3 %v3954_v15  ;;  %v4031_v11 = vld [vmem:[%s4991_s5 + $0xe4] sm:$0xf] }
 0x15c   : > { %v3809_v17 = vld [vmem:[%s4991_s5 + $0x680] sm:$0xf]  ;;  %v4245_v20 = vld [vmem:[%s4991_s5 + $0x78c] sm:$0xf0]  ;;  %v5101_v21 = vpack.c.b16 %v1069_v13, %v1069_v13  ;;  %v5104_v22 = vpack.c.b16 %v1070_v14, %v1070_v14  ;;  %v3682_v24 = vor.u32 %v4181_v16, %v3681_v12  ;;  %v3091_v12 = vld [vmem:[%s4991_s5 + $0xf0] sm:$0xf0] }
 0x15d   : > { %v3937_v19 = vld [vmem:[%s4991_s5 + $0x780] sm:$0xf]  ;;  %v3810_v25 = vor.u32 %v4213_v18, %v3809_v17  ;;  %v4145_v27 = vld [vmem:[%s4991_s5 + $0x46c] sm:$0xf0]  ;;  %2428 = vmatpush.bf16.msrb.mxu0 %v3554_v23  ;;  %v4063_v13 = vld [vmem:[%s4991_s5 + $0x1e4] sm:$0xf]  ;;  %v1075_v18 = vunpack.c.l.b16 %v808_v4 }
 0x15e   : > { %v3537_v26 = vld [vmem:[%s4991_s5 + $0x460] sm:$0xf]  ;;  %v3938_v29 = vor.u32 %v4245_v20, %v3937_v19  ;;  %v4177_v30 = vld [vmem:[%s4991_s5 + $0x56c] sm:$0xf0]  ;;  %2381 = vmatmul.bf16.vlgmr.msra.gmra.mxu0 %v5101_v21  ;;  %2394 = vmatmul.bf16.vlgmr.msra.gmra.mxu1 %v5104_v22  ;;  %v3219_v15 = vld [vmem:[%s4991_s5 + $0x1f0] sm:$0xf0] }
 0x15f   : > { %v3665_v28 = vld [vmem:[%s4991_s5 + $0x560] sm:$0xf]  ;;  %v4209_v32 = vld [vmem:[%s4991_s5 + $0x66c] sm:$0xf0]  ;;  %v3538_v35 = vor.u32 %v4145_v27, %v3537_v26  ;;  %2441 = vmatpush.bf16.msrb.mxu1 %v3682_v24  ;;  %2454 = vmatpush.bf16.msrb.mxu2 %v3810_v25  ;;  %v4095_v16 = vld [vmem:[%s4991_s5 + $0x2e4] sm:$0xf]  ;;  %v1076_v26 = vunpack.c.h.b16 %v808_v4 }
 0x160   : > { %v3793_v31 = vld [vmem:[%s4991_s5 + $0x660] sm:$0xf]  ;;  %v4241_v34 = vld [vmem:[%s4991_s5 + $0x76c] sm:$0xf0]  ;;  %v3666_v36 = vor.u32 %v4177_v30, %v3665_v28  ;;  %2467 = vmatpush.bf16.msrb.mxu3 %v3938_v29  ;;  %v3347_v17 = vld [vmem:[%s4991_s5 + $0x2f0] sm:$0xf0]  ;;  %v3094_v28 = vor.u32 %v4031_v11, %v3091_v12  ;;  %v3222_v30 = vor.u32 %v4063_v13, %v3219_v15 }
 0x161   : > { %v3921_v33 = vld [vmem:[%s4991_s5 + $0x760] sm:$0xf]  ;;  %v3794_v37 = vor.u32 %v4209_v32, %v3793_v31  ;;  %v4141_v39 = vld [vmem:[%s4991_s5 + $0x44c] sm:$0xf0]  ;;  %2429 = vmatpush.bf16.msrb.mxu0 %v3538_v35  ;;  %v4127_v23 = vld [vmem:[%s4991_s5 + $0x3e4] sm:$0xf]  ;;  %v3350_v31 = vor.u32 %v4095_v16, %v3347_v17 }
 0x162   : > { %v3521_v38 = vld [vmem:[%s4991_s5 + $0x440] sm:$0xf]  ;;  %v3922_v41 = vor.u32 %v4241_v34, %v3921_v33  ;;  %v4173_v42 = vld [vmem:[%s4991_s5 + $0x54c] sm:$0xf0]  ;;  %v3475_v24 = vld [vmem:[%s4991_s5 + $0x3f0] sm:$0xf0] }
 0x163   : > { %v3649_v40 = vld [vmem:[%s4991_s5 + $0x540] sm:$0xf]  ;;  %v4205_v44 = vld [vmem:[%s4991_s5 + $0x64c] sm:$0xf0]  ;;  %v3522_v47 = vor.u32 %v4141_v39, %v3521_v38  ;;  %2442 = vmatpush.bf16.msrb.mxu1 %v3666_v36  ;;  %2455 = vmatpush.bf16.msrb.mxu2 %v3794_v37  ;;  %v4027_v32 = vld [vmem:[%s4991_s5 + $0xc4] sm:$0xf]  ;;  %v3478_v35 = vor.u32 %v4127_v23, %v3475_v24  ;;  %v5156_v39 = vpack.c.b16 %v1075_v18, %v1075_v18 }
 0x164   : > { %v3777_v43 = vld [vmem:[%s4991_s5 + $0x640] sm:$0xf]  ;;  %v4237_v46 = vld [vmem:[%s4991_s5 + $0x74c] sm:$0xf0]  ;;  %v3650_v48 = vor.u32 %v4173_v42, %v3649_v40  ;;  %2468 = vmatpush.bf16.msrb.mxu3 %v3922_v41  ;;  %v3075_v33 = vld [vmem:[%s4991_s5 + $0xd0] sm:$0xf0] }
 0x165   : > { %v3905_v45 = vld [vmem:[%s4991_s5 + $0x740] sm:$0xf]  ;;  %v3778_v49 = vor.u32 %v4205_v44, %v3777_v43  ;;  %v4137_v51 = vld [vmem:[%s4991_s5 + $0x42c] sm:$0xf0]  ;;  %2430 = vmatpush.bf16.msrb.mxu0 %v3522_v47  ;;  %v4059_v34 = vld [vmem:[%s4991_s5 + $0x1c4] sm:$0xf]  ;;  %v5162_v43 = vpack.c.b16 %v1076_v26, %v1076_v26  ;;  %v3078_v44 = vor.u32 %v4027_v32, %v3075_v33 }
 0x166   : > { %v3505_v50 = vld [vmem:[%s4991_s5 + $0x420] sm:$0xf]  ;;  %v3906_v53 = vor.u32 %v4237_v46, %v3905_v45  ;;  %v4169_v54 = vld [vmem:[%s4991_s5 + $0x52c] sm:$0xf0]  ;;  %v3203_v36 = vld [vmem:[%s4991_s5 + $0x1d0] sm:$0xf0] }
 0x167   : > { %v3633_v52 = vld [vmem:[%s4991_s5 + $0x520] sm:$0xf]  ;;  %v4201_v56 = vld [vmem:[%s4991_s5 + $0x62c] sm:$0xf0]  ;;  %v3506_v60 = vor.u32 %v4137_v51, %v3505_v50  ;;  %2443 = vmatpush.bf16.msrb.mxu1 %v3650_v48  ;;  %2456 = vmatpush.bf16.msrb.mxu2 %v3778_v49  ;;  %v4091_v37 = vld [vmem:[%s4991_s5 + $0x2c4] sm:$0xf]  ;;  %v3206_v46 = vor.u32 %v4059_v34, %v3203_v36 }
 0x168   : > { %v3761_v55 = vld [vmem:[%s4991_s5 + $0x620] sm:$0xf]  ;;  %v4233_v58 = vld [vmem:[%s4991_s5 + $0x72c] sm:$0xf0]  ;;  %v3634_v0 = vor.u32 %v4169_v54, %v3633_v52  ;;  %2469 = vmatpush.bf16.msrb.mxu3 %v3906_v53  ;;  %v3331_v38 = vld [vmem:[%s4991_s5 + $0x2d0] sm:$0xf0] }
 0x169   : > { %v3889_v57 = vld [vmem:[%s4991_s5 + $0x720] sm:$0xf]  ;;  %v4133_v61 = vld [vmem:[%s4991_s5 + $0x40c] sm:$0xf0]  ;;  %v3762_v1 = vor.u32 %v4201_v56, %v3761_v55  ;;  %2431 = vmatpush.bf16.msrb.mxu0 %v3506_v60  ;;  %v4123_v40 = vld [vmem:[%s4991_s5 + $0x3c4] sm:$0xf]  ;;  %v3334_v47 = vor.u32 %v4091_v37, %v3331_v38 }
 0x16a   : > { %v3489_v59 = vld [vmem:[%s4991_s5 + $0x400] sm:$0xf]  ;;  %v4165_v63 = vld [vmem:[%s4991_s5 + $0x50c] sm:$0xf0]  ;;  %v3890_v6 = vor.u32 %v4233_v58, %v3889_v57  ;;  %v3459_v41 = vld [vmem:[%s4991_s5 + $0x3d0] sm:$0xf0] }
 0x16b   : > { %v3617_v62 = vld [vmem:[%s4991_s5 + $0x500] sm:$0xf]  ;;  %v4197_v3 = vld [vmem:[%s4991_s5 + $0x60c] sm:$0xf0]  ;;  %v3490_v14 = vor.u32 %v4133_v61, %v3489_v59  ;;  %2444 = vmatpush.bf16.msrb.mxu1 %v3634_v0  ;;  %2457 = vmatpush.bf16.msrb.mxu2 %v3762_v1  ;;  %v4023_v48 = vld [vmem:[%s4991_s5 + $0xa4] sm:$0xf]  ;;  %v3462_v51 = vor.u32 %v4123_v40, %v3459_v41 }
 0x16c   : > { %v3745_v2 = vld [vmem:[%s4991_s5 + $0x600] sm:$0xf]  ;;  %v4229_v9 = vld [vmem:[%s4991_s5 + $0x70c] sm:$0xf0]  ;;  %v3618_v19 = vor.u32 %v4165_v63, %v3617_v62  ;;  %2470 = vmatpush.bf16.msrb.mxu3 %v3890_v6  ;;  %v3059_v49 = vld [vmem:[%s4991_s5 + $0xb0] sm:$0xf0] }
 0x16d   : > { %v3873_v8 = vld [vmem:[%s4991_s5 + $0x700] sm:$0xf]  ;;  %v807_v10 = vld [vmem:[%s4977_s26 + $0x10] sm:$0xff]  ;;  %v3746_v20 = vor.u32 %v4197_v3, %v3745_v2  ;;  %2432 = vmatpush.bf16.msrb.mxu0 %v3490_v14  ;;  %v4055_v50 = vld [vmem:[%s4991_s5 + $0x1a4] sm:$0xf]  ;;  %v3062_v57 = vor.u32 %v4023_v48, %v3059_v49 }
 0x16e   : > { %v1073_v25 = vunpack.c.l.b16 %v807_v10  ;;  %v3874_v27 = vor.u32 %v4229_v9, %v3873_v8  ;;  %v1074_v29 = vunpack.c.h.b16 %v807_v10  ;;  %v3187_v52 = vld [vmem:[%s4991_s5 + $0x1b0] sm:$0xf0]  ;;  %v4087_v53 = vld [vmem:[%s4991_s5 + $0x2a4] sm:$0xf] }
 0x16f   : > { %2445 = vmatpush.bf16.msrb.mxu1 %v3618_v19  ;;  %2458 = vmatpush.bf16.msrb.mxu2 %v3746_v20  ;;  %v3315_v54 = vld [vmem:[%s4991_s5 + $0x2b0] sm:$0xf0]  ;;  %v4119_v55 = vld [vmem:[%s4991_s5 + $0x3a4] sm:$0xf]  ;;  %v3190_v58 = vor.u32 %v4055_v50, %v3187_v52 }
 0x170   : > { %v5160_v42 = vpack.c.b16 %v1073_v25, %v1073_v25  ;;  %2471 = vmatpush.bf16.msrb.mxu3 %v3874_v27  ;;  %v5164_v45 = vpack.c.b16 %v1074_v29, %v1074_v29  ;;  %v3443_v56 = vld [vmem:[%s4991_s5 + $0x3b0] sm:$0xf0]  ;;  %v3318_v59 = vor.u32 %v4087_v53, %v3315_v54  ;;  %v4019_v60 = vld [vmem:[%s4991_s5 + $0x84] sm:$0xf] }
 0x171   : > { %2477 = vmatpush.bf16.msra.mxu0 %v3094_v28  ;;  %v3043_v61 = vld [vmem:[%s4991_s5 + $0x90] sm:$0xf0]  ;;  %v4051_v62 = vld [vmem:[%s4991_s5 + $0x184] sm:$0xf]  ;;  %v3446_v63 = vor.u32 %v4119_v55, %v3443_v56 }
 0x172   : > { %2459 = vmatmul.bf16.vlgmr.msrb.gmra.mxu2 %v5156_v39  ;;  %2433 = vmatmul.bf16.vlgmr.msrb.gmra.mxu0 %v5160_v42  ;;  %v3171_v0 = vld [vmem:[%s4991_s5 + $0x190] sm:$0xf0]  ;;  %v4083_v1 = vld [vmem:[%s4991_s5 + $0x284] sm:$0xf]  ;;  %v3046_v6 = vor.u32 %v4019_v60, %v3043_v61 }
 0x173   : > { %2490 = vmatpush.bf16.msra.mxu1 %v3222_v30  ;;  %2503 = vmatpush.bf16.msra.mxu2 %v3350_v31  ;;  %v3299_v2 = vld [vmem:[%s4991_s5 + $0x290] sm:$0xf0]  ;;  %v4115_v3 = vld [vmem:[%s4991_s5 + $0x384] sm:$0xf]  ;;  %v3174_v8 = vor.u32 %v4051_v62, %v3171_v0 }
 0x174   : > { %2516 = vmatpush.bf16.msra.mxu3 %v3478_v35  ;;  %2446 = vmatmul.bf16.vlgmr.msrb.gmra.mxu1 %v5164_v45  ;;  %v3427_v4 = vld [vmem:[%s4991_s5 + $0x390] sm:$0xf0]  ;;  %v3302_v9 = vor.u32 %v4083_v1, %v3299_v2  ;;  %v4015_v10 = vld [vmem:[%s4991_s5 + $0x64] sm:$0xf] }
 0x175   : > { %2472 = vmatmul.bf16.vlgmr.msrb.gmra.mxu3 %v5162_v43  ;;  %2478 = vmatpush.bf16.msra.mxu0 %v3078_v44  ;;  %v3027_v11 = vld [vmem:[%s4991_s5 + $0x70] sm:$0xf0]  ;;  %v4047_v12 = vld [vmem:[%s4991_s5 + $0x164] sm:$0xf]  ;;  %v3430_v13 = vor.u32 %v4115_v3, %v3427_v4 }
 0x176   : > { %v3155_v14 = vld [vmem:[%s4991_s5 + $0x170] sm:$0xf0]  ;;  %v4079_v15 = vld [vmem:[%s4991_s5 + $0x264] sm:$0xf]  ;;  %v3030_v19 = vor.u32 %v4015_v10, %v3027_v11 }
 0x177   : > { %2491 = vmatpush.bf16.msra.mxu1 %v3206_v46  ;;  %2504 = vmatpush.bf16.msra.mxu2 %v3334_v47  ;;  %v3283_v16 = vld [vmem:[%s4991_s5 + $0x270] sm:$0xf0]  ;;  %v4111_v17 = vld [vmem:[%s4991_s5 + $0x364] sm:$0xf]  ;;  %v3158_v20 = vor.u32 %v4047_v12, %v3155_v14 }
 0x178   : > { %2517 = vmatpush.bf16.msra.mxu3 %v3462_v51  ;;  %v3411_v18 = vld [vmem:[%s4991_s5 + $0x370] sm:$0xf0]  ;;  %v3286_v23 = vor.u32 %v4079_v15, %v3283_v16  ;;  %v4011_v24 = vld [vmem:[%s4991_s5 + $0x44] sm:$0xf] }
 0x179   : > { %2479 = vmatpush.bf16.msra.mxu0 %v3062_v57  ;;  %v3011_v25 = vld [vmem:[%s4991_s5 + $0x50] sm:$0xf0]  ;;  %v4043_v26 = vld [vmem:[%s4991_s5 + $0x144] sm:$0xf]  ;;  %v3414_v27 = vor.u32 %v4111_v17, %v3411_v18 }
 0x17a   : > { %v3139_v28 = vld [vmem:[%s4991_s5 + $0x150] sm:$0xf0]  ;;  %v4075_v29 = vld [vmem:[%s4991_s5 + $0x244] sm:$0xf]  ;;  %v3014_v33 = vor.u32 %v4011_v24, %v3011_v25 }
 0x17b   : > { %2492 = vmatpush.bf16.msra.mxu1 %v3190_v58  ;;  %2505 = vmatpush.bf16.msra.mxu2 %v3318_v59  ;;  %v3267_v30 = vld [vmem:[%s4991_s5 + $0x250] sm:$0xf0]  ;;  %v4107_v31 = vld [vmem:[%s4991_s5 + $0x344] sm:$0xf]  ;;  %v3142_v34 = vor.u32 %v4043_v26, %v3139_v28 }
 0x17c   : > { %2518 = vmatpush.bf16.msra.mxu3 %v3446_v63  ;;  %v3395_v32 = vld [vmem:[%s4991_s5 + $0x350] sm:$0xf0]  ;;  %v3270_v35 = vor.u32 %v4075_v29, %v3267_v30  ;;  %v4007_v36 = vld [vmem:[%s4991_s5 + $0x24] sm:$0xf] }
 0x17d   : > { %2480 = vmatpush.bf16.msra.mxu0 %v3046_v6  ;;  %v2995_v37 = vld [vmem:[%s4991_s5 + $0x30] sm:$0xf0]  ;;  %v4039_v38 = vld [vmem:[%s4991_s5 + $0x124] sm:$0xf]  ;;  %v3398_v40 = vor.u32 %v4107_v31, %v3395_v32 }
 0x17e   : > { %v3123_v41 = vld [vmem:[%s4991_s5 + $0x130] sm:$0xf0]  ;;  %v4071_v44 = vld [vmem:[%s4991_s5 + $0x224] sm:$0xf]  ;;  %v2998_v49 = vor.u32 %v4007_v36, %v2995_v37 }
 0x17f   : > { %2493 = vmatpush.bf16.msra.mxu1 %v3174_v8  ;;  %2506 = vmatpush.bf16.msra.mxu2 %v3302_v9  ;;  %v3251_v46 = vld [vmem:[%s4991_s5 + $0x230] sm:$0xf0]  ;;  %v4103_v47 = vld [vmem:[%s4991_s5 + $0x324] sm:$0xf]  ;;  %v3126_v52 = vor.u32 %v4039_v38, %v3123_v41 }
 0x180   : > { %2519 = vmatpush.bf16.msra.mxu3 %v3430_v13  ;;  %v3379_v48 = vld [vmem:[%s4991_s5 + $0x330] sm:$0xf0]  ;;  %v4003_v50 = vld [vmem:[%s4991_s5 + $0x4] sm:$0xf]  ;;  %v3254_v53 = vor.u32 %v4071_v44, %v3251_v46 }
 0x181   : > { %2481 = vmatpush.bf16.msra.mxu0 %v3030_v19  ;;  %v2979_v51 = vld [vmem:[%s4991_s5 + $0x10] sm:$0xf0]  ;;  %v4035_v54 = vld [vmem:[%s4991_s5 + $0x104] sm:$0xf]  ;;  %v3382_v57 = vor.u32 %v4103_v47, %v3379_v48 }
 0x182   : > { %v3107_v55 = vld [vmem:[%s4991_s5 + $0x110] sm:$0xf0]  ;;  %v4067_v56 = vld [vmem:[%s4991_s5 + $0x204] sm:$0xf]  ;;  %v2982_v0 = vor.u32 %v4003_v50, %v2979_v51 }
 0x183   : > { %2494 = vmatpush.bf16.msra.mxu1 %v3158_v20  ;;  %2507 = vmatpush.bf16.msra.mxu2 %v3286_v23  ;;  %v3235_v58 = vld [vmem:[%s4991_s5 + $0x210] sm:$0xf0]  ;;  %v4099_v59 = vld [vmem:[%s4991_s5 + $0x304] sm:$0xf]  ;;  %v3110_v4 = vor.u32 %v4035_v54, %v3107_v55 }
 0x184   : > { %2520 = vmatpush.bf16.msra.mxu3 %v3414_v27  ;;  %v3363_v60 = vld [vmem:[%s4991_s5 + $0x310] sm:$0xf0]  ;;  %v4159_v61 = vld [vmem:[%s4991_s5 + $0x4e4] sm:$0xf]  ;;  %v3238_v6 = vor.u32 %v4067_v56, %v3235_v58 }
 0x185   : > { %2482 = vmatpush.bf16.msra.mxu0 %v3014_v33  ;;  %v3603_v62 = vld [vmem:[%s4991_s5 + $0x4f0] sm:$0xf0]  ;;  %v4191_v63 = vld [vmem:[%s4991_s5 + $0x5e4] sm:$0xf]  ;;  %v3366_v10 = vor.u32 %v4099_v59, %v3363_v60 }
 0x186   : > { %v3731_v1 = vld [vmem:[%s4991_s5 + $0x5f0] sm:$0xf0]  ;;  %v4223_v2 = vld [vmem:[%s4991_s5 + $0x6e4] sm:$0xf]  ;;  %v3606_v11 = vor.u32 %v4159_v61, %v3603_v62 }
 0x187   : > { %2495 = vmatpush.bf16.msra.mxu1 %v3142_v34  ;;  %2508 = vmatpush.bf16.msra.mxu2 %v3270_v35  ;;  %v3859_v3 = vld [vmem:[%s4991_s5 + $0x6f0] sm:$0xf0]  ;;  %v4255_v8 = vld [vmem:[%s4991_s5 + $0x7e4] sm:$0xf]  ;;  %v3734_v12 = vor.u32 %v4191_v63, %v3731_v1 }
 0x188   : > { %2521 = vmatpush.bf16.msra.mxu3 %v3398_v40  ;;  %v3987_v9 = vld [vmem:[%s4991_s5 + $0x7f0] sm:$0xf0]  ;;  %v3862_v13 = vor.u32 %v4223_v2, %v3859_v3  ;;  %v4155_v14 = vld [vmem:[%s4991_s5 + $0x4c4] sm:$0xf] }
 0x189   : > { %2483 = vmatpush.bf16.msra.mxu0 %v2998_v49  ;;  %v3587_v15 = vld [vmem:[%s4991_s5 + $0x4d0] sm:$0xf0]  ;;  %v4187_v16 = vld [vmem:[%s4991_s5 + $0x5c4] sm:$0xf]  ;;  %v3990_v17 = vor.u32 %v4255_v8, %v3987_v9 }
 0x18a   : > { %v3715_v18 = vld [vmem:[%s4991_s5 + $0x5d0] sm:$0xf0]  ;;  %v4219_v19 = vld [vmem:[%s4991_s5 + $0x6c4] sm:$0xf]  ;;  %v3590_v25 = vor.u32 %v4155_v14, %v3587_v15 }
 0x18b   : > { %2496 = vmatpush.bf16.msra.mxu1 %v3126_v52  ;;  %2509 = vmatpush.bf16.msra.mxu2 %v3254_v53  ;;  %v3843_v20 = vld [vmem:[%s4991_s5 + $0x6d0] sm:$0xf0]  ;;  %v4251_v23 = vld [vmem:[%s4991_s5 + $0x7c4] sm:$0xf]  ;;  %v3718_v26 = vor.u32 %v4187_v16, %v3715_v18 }
 0x18c   : > { %2522 = vmatpush.bf16.msra.mxu3 %v3382_v57  ;;  %v3971_v24 = vld [vmem:[%s4991_s5 + $0x7d0] sm:$0xf0]  ;;  %v3846_v27 = vor.u32 %v4219_v19, %v3843_v20  ;;  %v4151_v28 = vld [vmem:[%s4991_s5 + $0x4a4] sm:$0xf] }
 0x18d   : > { %2484 = vmatpush.bf16.msra.mxu0 %v2982_v0  ;;  %v3571_v29 = vld [vmem:[%s4991_s5 + $0x4b0] sm:$0xf0]  ;;  %v4183_v30 = vld [vmem:[%s4991_s5 + $0x5a4] sm:$0xf]  ;;  %v3974_v31 = vor.u32 %v4251_v23, %v3971_v24 }
 0x18e   : > { %v3699_v32 = vld [vmem:[%s4991_s5 + $0x5b0] sm:$0xf0]  ;;  %v4215_v33 = vld [vmem:[%s4991_s5 + $0x6a4] sm:$0xf]  ;;  %v3574_v37 = vor.u32 %v4151_v28, %v3571_v29 }
 0x18f   : > { %2497 = vmatpush.bf16.msra.mxu1 %v3110_v4  ;;  %2510 = vmatpush.bf16.msra.mxu2 %v3238_v6  ;;  %v3827_v34 = vld [vmem:[%s4991_s5 + $0x6b0] sm:$0xf0]  ;;  %v4247_v35 = vld [vmem:[%s4991_s5 + $0x7a4] sm:$0xf]  ;;  %v3702_v38 = vor.u32 %v4183_v30, %v3699_v32 }
 0x190   : > { %2523 = vmatpush.bf16.msra.mxu3 %v3366_v10  ;;  %v3955_v36 = vld [vmem:[%s4991_s5 + $0x7b0] sm:$0xf0]  ;;  %2485 = vmatmul.bf16.vlgmr.msra.gmra.mxu0 %v5101_v21  ;;  %v3830_v40 = vor.u32 %v4215_v33, %v3827_v34  ;;  %v4147_v41 = vld [vmem:[%s4991_s5 + $0x484] sm:$0xf] }
 0x191   : > { %2529 = vmatpush.bf16.msrb.mxu0 %v3606_v11  ;;  %v3555_v44 = vld [vmem:[%s4991_s5 + $0x490] sm:$0xf0]  ;;  %v4179_v46 = vld [vmem:[%s4991_s5 + $0x584] sm:$0xf]  ;;  %v3958_v47 = vor.u32 %v4247_v35, %v3955_v36 }
 0x192   : > { %2511 = vmatmul.bf16.vlgmr.msra.gmra.mxu2 %v5087_v5  ;;  %2498 = vmatmul.bf16.vlgmr.msra.gmra.mxu1 %v5104_v22  ;;  %v3683_v48 = vld [vmem:[%s4991_s5 + $0x590] sm:$0xf0]  ;;  %v4211_v49 = vld [vmem:[%s4991_s5 + $0x684] sm:$0xf]  ;;  %v3558_v53 = vor.u32 %v4147_v41, %v3555_v44  ;;  %v3097_v44 = vld [vmem:[%s4991_s5 + $0xe8] sm:$0xf] }
 0x193   : > { %2542 = vmatpush.bf16.msrb.mxu1 %v3734_v12  ;;  %2555 = vmatpush.bf16.msrb.mxu2 %v3862_v13  ;;  %v3811_v50 = vld [vmem:[%s4991_s5 + $0x690] sm:$0xf0]  ;;  %v4243_v51 = vld [vmem:[%s4991_s5 + $0x784] sm:$0xf]  ;;  %v3686_v54 = vor.u32 %v4179_v46, %v3683_v48  ;;  %v4034_v46 = vld [vmem:[%s4991_s5 + $0xf4] sm:$0xf0] }
 0x194   : > { %2568 = vmatpush.bf16.msrb.mxu3 %v3990_v17  ;;  %v3939_v52 = vld [vmem:[%s4991_s5 + $0x790] sm:$0xf0]  ;;  %v3814_v55 = vor.u32 %v4211_v49, %v3811_v50  ;;  %v4143_v56 = vld [vmem:[%s4991_s5 + $0x464] sm:$0xf]  ;;  %v4066_v49 = vld [vmem:[%s4991_s5 + $0x1f4] sm:$0xf0] }
 0x195   : > { %2524 = vmatmul.bf16.vlgmr.msra.gmra.mxu3 %v5090_v7  ;;  %2530 = vmatpush.bf16.msrb.mxu0 %v3590_v25  ;;  %v3539_v57 = vld [vmem:[%s4991_s5 + $0x470] sm:$0xf0]  ;;  %v4175_v58 = vld [vmem:[%s4991_s5 + $0x564] sm:$0xf]  ;;  %v3942_v59 = vor.u32 %v4243_v51, %v3939_v52  ;;  %v3353_v50 = vld [vmem:[%s4991_s5 + $0x2e8] sm:$0xf] }
 0x196   : > { %v3667_v60 = vld [vmem:[%s4991_s5 + $0x570] sm:$0xf0]  ;;  %v4207_v61 = vld [vmem:[%s4991_s5 + $0x664] sm:$0xf]  ;;  %v3542_v1 = vor.u32 %v4143_v56, %v3539_v57  ;;  %v4098_v51 = vld [vmem:[%s4991_s5 + $0x2f4] sm:$0xf0]  ;;  %v3098_v57 = vor.u32 %v4034_v46, %v3097_v44 }
 0x197   : > { %2543 = vmatpush.bf16.msrb.mxu1 %v3718_v26  ;;  %2556 = vmatpush.bf16.msrb.mxu2 %v3846_v27  ;;  %v3795_v62 = vld [vmem:[%s4991_s5 + $0x670] sm:$0xf0]  ;;  %v4239_v63 = vld [vmem:[%s4991_s5 + $0x764] sm:$0xf]  ;;  %v3670_v2 = vor.u32 %v4175_v58, %v3667_v60  ;;  %v3081_v60 = vld [vmem:[%s4991_s5 + $0xc8] sm:$0xf] }
 0x198   : > { %2569 = vmatpush.bf16.msrb.mxu3 %v3974_v31  ;;  %v3923_v0 = vld [vmem:[%s4991_s5 + $0x770] sm:$0xf0]  ;;  %v3798_v3 = vor.u32 %v4207_v61, %v3795_v62  ;;  %v4139_v4 = vld [vmem:[%s4991_s5 + $0x444] sm:$0xf]  ;;  %v4030_v61 = vld [vmem:[%s4991_s5 + $0xd4] sm:$0xf0] }
 0x199   : > { %2531 = vmatpush.bf16.msrb.mxu0 %v3574_v37  ;;  %v3523_v6 = vld [vmem:[%s4991_s5 + $0x450] sm:$0xf0]  ;;  %v4171_v8 = vld [vmem:[%s4991_s5 + $0x544] sm:$0xf]  ;;  %v3926_v9 = vor.u32 %v4239_v63, %v3923_v0  ;;  %v3209_v62 = vld [vmem:[%s4991_s5 + $0x1c8] sm:$0xf] }
 0x19a   : > { %v3651_v10 = vld [vmem:[%s4991_s5 + $0x550] sm:$0xf0]  ;;  %v4203_v11 = vld [vmem:[%s4991_s5 + $0x644] sm:$0xf]  ;;  %v3526_v15 = vor.u32 %v4139_v4, %v3523_v6  ;;  %v4062_v0 = vld [vmem:[%s4991_s5 + $0x1d4] sm:$0xf0]  ;;  %v3082_v6 = vor.u32 %v4030_v61, %v3081_v60 }
 0x19b   : > { %2544 = vmatpush.bf16.msrb.mxu1 %v3702_v38  ;;  %2557 = vmatpush.bf16.msrb.mxu2 %v3830_v40  ;;  %v3779_v12 = vld [vmem:[%s4991_s5 + $0x650] sm:$0xf0]  ;;  %v4235_v13 = vld [vmem:[%s4991_s5 + $0x744] sm:$0xf]  ;;  %v3654_v16 = vor.u32 %v4171_v8, %v3651_v10  ;;  %v4126_v4 = vld [vmem:[%s4991_s5 + $0x3d4] sm:$0xf0]  ;;  %v3210_v8 = vor.u32 %v4062_v0, %v3209_v62 }
 0x19c   : > { %2570 = vmatpush.bf16.msrb.mxu3 %v3958_v47  ;;  %v3907_v14 = vld [vmem:[%s4991_s5 + $0x750] sm:$0xf0]  ;;  %v3782_v17 = vor.u32 %v4203_v11, %v3779_v12  ;;  %v4135_v18 = vld [vmem:[%s4991_s5 + $0x424] sm:$0xf]  ;;  %v3225_v47 = vld [vmem:[%s4991_s5 + $0x1e8] sm:$0xf] }
 0x19d   : > { %2532 = vmatpush.bf16.msrb.mxu0 %v3558_v53  ;;  %v3507_v19 = vld [vmem:[%s4991_s5 + $0x430] sm:$0xf0]  ;;  %v4167_v20 = vld [vmem:[%s4991_s5 + $0x524] sm:$0xf]  ;;  %v3910_v23 = vor.u32 %v4235_v13, %v3907_v14  ;;  %v3226_v58 = vor.u32 %v4066_v49, %v3225_v47  ;;  %v3065_v10 = vld [vmem:[%s4991_s5 + $0xa8] sm:$0xf] }
 0x19e   : > { %v3635_v24 = vld [vmem:[%s4991_s5 + $0x530] sm:$0xf0]  ;;  %v4199_v25 = vld [vmem:[%s4991_s5 + $0x624] sm:$0xf]  ;;  %v3510_v29 = vor.u32 %v4135_v18, %v3507_v19  ;;  %v4026_v11 = vld [vmem:[%s4991_s5 + $0xb4] sm:$0xf0] }
 0x19f   : > { %2545 = vmatpush.bf16.msrb.mxu1 %v3686_v54  ;;  %2558 = vmatpush.bf16.msrb.mxu2 %v3814_v55  ;;  %v3763_v26 = vld [vmem:[%s4991_s5 + $0x630] sm:$0xf0]  ;;  %v4231_v27 = vld [vmem:[%s4991_s5 + $0x724] sm:$0xf]  ;;  %v3638_v32 = vor.u32 %v4167_v20, %v3635_v24  ;;  %v3481_v54 = vld [vmem:[%s4991_s5 + $0x3e8] sm:$0xf]  ;;  %v3066_v19 = vor.u32 %v4026_v11, %v3065_v10 }
 0x1a0   : > { %2571 = vmatpush.bf16.msrb.mxu3 %v3942_v59  ;;  %v3891_v28 = vld [vmem:[%s4991_s5 + $0x730] sm:$0xf0]  ;;  %v4131_v30 = vld [vmem:[%s4991_s5 + $0x404] sm:$0xf]  ;;  %v3766_v33 = vor.u32 %v4199_v25, %v3763_v26  ;;  %v4130_v55 = vld [vmem:[%s4991_s5 + $0x3f4] sm:$0xf0]  ;;  %v3354_v59 = vor.u32 %v4098_v51, %v3353_v50 }
 0x1a1   : > { %2533 = vmatpush.bf16.msrb.mxu0 %v3542_v1  ;;  %v3491_v31 = vld [vmem:[%s4991_s5 + $0x410] sm:$0xf0]  ;;  %v4163_v34 = vld [vmem:[%s4991_s5 + $0x504] sm:$0xf]  ;;  %v3894_v37 = vor.u32 %v4231_v27, %v3891_v28  ;;  %v3482_v63 = vor.u32 %v4130_v55, %v3481_v54  ;;  %v3337_v1 = vld [vmem:[%s4991_s5 + $0x2c8] sm:$0xf] }
 0x1a2   : > { %v3619_v35 = vld [vmem:[%s4991_s5 + $0x510] sm:$0xf0]  ;;  %v4195_v36 = vld [vmem:[%s4991_s5 + $0x604] sm:$0xf]  ;;  %v3494_v48 = vor.u32 %v4131_v30, %v3491_v31  ;;  %v3193_v12 = vld [vmem:[%s4991_s5 + $0x1a8] sm:$0xf] }
 0x1a3   : > { %2546 = vmatpush.bf16.msrb.mxu1 %v3670_v2  ;;  %2559 = vmatpush.bf16.msrb.mxu2 %v3798_v3  ;;  %v3747_v38 = vld [vmem:[%s4991_s5 + $0x610] sm:$0xf0]  ;;  %v4227_v40 = vld [vmem:[%s4991_s5 + $0x704] sm:$0xf]  ;;  %v3622_v52 = vor.u32 %v4163_v34, %v3619_v35  ;;  %v4094_v2 = vld [vmem:[%s4991_s5 + $0x2d4] sm:$0xf0] }
 0x1a4   : > { %2572 = vmatpush.bf16.msrb.mxu3 %v3926_v9  ;;  %v3875_v41 = vld [vmem:[%s4991_s5 + $0x710] sm:$0xf0]  ;;  %v3750_v53 = vor.u32 %v4195_v36, %v3747_v38  ;;  %v3465_v3 = vld [vmem:[%s4991_s5 + $0x3c8] sm:$0xf]  ;;  %v3338_v9 = vor.u32 %v4094_v2, %v3337_v1  ;;  %v4058_v14 = vld [vmem:[%s4991_s5 + $0x1b4] sm:$0xf0] }
 0x1a5   : > { %2534 = vmatpush.bf16.msrb.mxu0 %v3526_v15  ;;  %v3878_v56 = vor.u32 %v4227_v40, %v3875_v41  ;;  %v3466_v13 = vor.u32 %v4126_v4, %v3465_v3  ;;  %v3321_v15 = vld [vmem:[%s4991_s5 + $0x2a8] sm:$0xf]  ;;  %v4122_v18 = vld [vmem:[%s4991_s5 + $0x3b4] sm:$0xf0]  ;;  %v3194_v20 = vor.u32 %v4058_v14, %v3193_v12 }
 0x1a6   : > { %v3049_v24 = vld [vmem:[%s4991_s5 + $0x88] sm:$0xf]  ;;  %v4022_v25 = vld [vmem:[%s4991_s5 + $0x94] sm:$0xf0] }
 0x1a7   : > { %2547 = vmatpush.bf16.msrb.mxu1 %v3654_v16  ;;  %2560 = vmatpush.bf16.msrb.mxu2 %v3782_v17  ;;  %v4090_v16 = vld [vmem:[%s4991_s5 + $0x2b4] sm:$0xf0]  ;;  %v3449_v17 = vld [vmem:[%s4991_s5 + $0x3a8] sm:$0xf] }
 0x1a8   : > { %2573 = vmatpush.bf16.msrb.mxu3 %v3910_v23  ;;  %v3322_v23 = vor.u32 %v4090_v16, %v3321_v15  ;;  %v3177_v26 = vld [vmem:[%s4991_s5 + $0x188] sm:$0xf]  ;;  %v3450_v27 = vor.u32 %v4122_v18, %v3449_v17  ;;  %v4054_v28 = vld [vmem:[%s4991_s5 + $0x194] sm:$0xf0] }
 0x1a9   : > { %2535 = vmatpush.bf16.msrb.mxu0 %v3510_v29  ;;  %v3305_v29 = vld [vmem:[%s4991_s5 + $0x288] sm:$0xf]  ;;  %v4086_v30 = vld [vmem:[%s4991_s5 + $0x294] sm:$0xf0]  ;;  %v3178_v34 = vor.u32 %v4054_v28, %v3177_v26 }
 0x1aa   : > { %v3433_v31 = vld [vmem:[%s4991_s5 + $0x388] sm:$0xf]  ;;  %v3306_v35 = vor.u32 %v4086_v30, %v3305_v29  ;;  %v4050_v41 = vld [vmem:[%s4991_s5 + $0x174] sm:$0xf0] }
 0x1ab   : > { %2548 = vmatpush.bf16.msrb.mxu1 %v3638_v32  ;;  %2561 = vmatpush.bf16.msrb.mxu2 %v3766_v33  ;;  %v4118_v32 = vld [vmem:[%s4991_s5 + $0x394] sm:$0xf0]  ;;  %v3050_v33 = vor.u32 %v4022_v25, %v3049_v24  ;;  %v3033_v36 = vld [vmem:[%s4991_s5 + $0x68] sm:$0xf] }
 0x1ac   : > { %2574 = vmatpush.bf16.msrb.mxu3 %v3894_v37  ;;  %v4018_v37 = vld [vmem:[%s4991_s5 + $0x74] sm:$0xf0]  ;;  %v3161_v38 = vld [vmem:[%s4991_s5 + $0x168] sm:$0xf]  ;;  %v3434_v40 = vor.u32 %v4118_v32, %v3433_v31 }
 0x1ad   : > { %2536 = vmatpush.bf16.msrb.mxu0 %v3494_v48  ;;  %v3289_v44 = vld [vmem:[%s4991_s5 + $0x268] sm:$0xf]  ;;  %v4082_v46 = vld [vmem:[%s4991_s5 + $0x274] sm:$0xf0]  ;;  %v3034_v49 = vor.u32 %v4018_v37, %v3033_v36  ;;  %v3162_v50 = vor.u32 %v4050_v41, %v3161_v38 }
 0x1ae   : > { %v3417_v47 = vld [vmem:[%s4991_s5 + $0x368] sm:$0xf]  ;;  %v4114_v48 = vld [vmem:[%s4991_s5 + $0x374] sm:$0xf0]  ;;  %v3290_v51 = vor.u32 %v4082_v46, %v3289_v44 }
 0x1af   : > { %2549 = vmatpush.bf16.msrb.mxu1 %v3622_v52  ;;  %2562 = vmatpush.bf16.msrb.mxu2 %v3750_v53  ;;  %v3017_v52 = vld [vmem:[%s4991_s5 + $0x48] sm:$0xf]  ;;  %v4014_v53 = vld [vmem:[%s4991_s5 + $0x54] sm:$0xf0]  ;;  %v3418_v55 = vor.u32 %v4114_v48, %v3417_v47 }
 0x1b0   : > { %2575 = vmatpush.bf16.msrb.mxu3 %v3878_v56  ;;  %2537 = vmatmul.bf16.vlgmr.msrb.gmra.mxu0 %v5160_v42  ;;  %v3145_v54 = vld [vmem:[%s4991_s5 + $0x148] sm:$0xf]  ;;  %v4046_v56 = vld [vmem:[%s4991_s5 + $0x154] sm:$0xf0]  ;;  %v3018_v61 = vor.u32 %v4014_v53, %v3017_v52 }
 0x1b1   : > { %2581 = vmatpush.bf16.msra.mxu0 %v3098_v57  ;;  %v3273_v57 = vld [vmem:[%s4991_s5 + $0x248] sm:$0xf]  ;;  %v4110_v60 = vld [vmem:[%s4991_s5 + $0x354] sm:$0xf0]  ;;  %v3146_v62 = vor.u32 %v4046_v56, %v3145_v54 }
 0x1b2   : > { %2563 = vmatmul.bf16.vlgmr.msrb.gmra.mxu2 %v5156_v39  ;;  %2550 = vmatmul.bf16.vlgmr.msrb.gmra.mxu1 %v5164_v45  ;;  %v3001_v0 = vld [vmem:[%s4991_s5 + $0x28] sm:$0xf]  ;;  %v4010_v1 = vld [vmem:[%s4991_s5 + $0x34] sm:$0xf0] }
 0x1b3   : > { %2594 = vmatpush.bf16.msra.mxu1 %v3226_v58  ;;  %2607 = vmatpush.bf16.msra.mxu2 %v3354_v59  ;;  %v4078_v58 = vld [vmem:[%s4991_s5 + $0x254] sm:$0xf0]  ;;  %v3401_v59 = vld [vmem:[%s4991_s5 + $0x348] sm:$0xf]  ;;  %v3002_v11 = vor.u32 %v4010_v1, %v3001_v0 }
 0x1b4   : > { %2620 = vmatpush.bf16.msra.mxu3 %v3482_v63  ;;  %v3274_v63 = vor.u32 %v4078_v58, %v3273_v57  ;;  %v3129_v2 = vld [vmem:[%s4991_s5 + $0x128] sm:$0xf]  ;;  %v3402_v3 = vor.u32 %v4110_v60, %v3401_v59  ;;  %v4042_v4 = vld [vmem:[%s4991_s5 + $0x134] sm:$0xf0] }
 0x1b5   : > { %2576 = vmatmul.bf16.vlgmr.msrb.gmra.mxu3 %v5162_v43  ;;  %2582 = vmatpush.bf16.msra.mxu0 %v3082_v6  ;;  %v3257_v6 = vld [vmem:[%s4991_s5 + $0x228] sm:$0xf]  ;;  %v4106_v10 = vld [vmem:[%s4991_s5 + $0x334] sm:$0xf0]  ;;  %v3130_v14 = vor.u32 %v4042_v4, %v3129_v2 }
 0x1b6   : > { %v2985_v12 = vld [vmem:[%s4991_s5 + $0x8] sm:$0xf]  ;;  %v4038_v17 = vld [vmem:[%s4991_s5 + $0x114] sm:$0xf0] }
 0x1b7   : > { %2595 = vmatpush.bf16.msra.mxu1 %v3210_v8  ;;  %2608 = vmatpush.bf16.msra.mxu2 %v3338_v9  ;;  %v4074_v8 = vld [vmem:[%s4991_s5 + $0x234] sm:$0xf0]  ;;  %v3385_v9 = vld [vmem:[%s4991_s5 + $0x328] sm:$0xf] }
 0x1b8   : > { %2621 = vmatpush.bf16.msra.mxu3 %v3466_v13  ;;  %v4006_v13 = vld [vmem:[%s4991_s5 + $0x14] sm:$0xf0]  ;;  %v3258_v15 = vor.u32 %v4074_v8, %v3257_v6  ;;  %v3113_v16 = vld [vmem:[%s4991_s5 + $0x108] sm:$0xf] }
 0x1b9   : > { %2583 = vmatpush.bf16.msra.mxu0 %v3066_v19  ;;  %v3241_v18 = vld [vmem:[%s4991_s5 + $0x208] sm:$0xf]  ;;  %v3386_v19 = vor.u32 %v4106_v10, %v3385_v9  ;;  %v4102_v24 = vld [vmem:[%s4991_s5 + $0x314] sm:$0xf0]  ;;  %v2986_v28 = vor.u32 %v4006_v13, %v2985_v12  ;;  %v3114_v32 = vor.u32 %v4038_v17, %v3113_v16 }
 0x1ba   : > { %v3609_v25 = vld [vmem:[%s4991_s5 + $0x4e8] sm:$0xf]  ;;  %v4162_v26 = vld [vmem:[%s4991_s5 + $0x4f4] sm:$0xf0] }
 0x1bb   : > { %2596 = vmatpush.bf16.msra.mxu1 %v3194_v20  ;;  %2609 = vmatpush.bf16.msra.mxu2 %v3322_v23  ;;  %v4070_v20 = vld [vmem:[%s4991_s5 + $0x214] sm:$0xf0]  ;;  %v3369_v23 = vld [vmem:[%s4991_s5 + $0x308] sm:$0xf]  ;;  %v3610_v37 = vor.u32 %v4162_v26, %v3609_v25 }
 0x1bc   : > { %2622 = vmatpush.bf16.msra.mxu3 %v3450_v27  ;;  %v3737_v27 = vld [vmem:[%s4991_s5 + $0x5e8] sm:$0xf]  ;;  %v4194_v29 = vld [vmem:[%s4991_s5 + $0x5f4] sm:$0xf0]  ;;  %v3370_v36 = vor.u32 %v4102_v24, %v3369_v23 }
 0x1bd   : > { %2584 = vmatpush.bf16.msra.mxu0 %v3050_v33  ;;  %v3865_v30 = vld [vmem:[%s4991_s5 + $0x6e8] sm:$0xf]  ;;  %v4226_v31 = vld [vmem:[%s4991_s5 + $0x6f4] sm:$0xf0]  ;;  %v3242_v33 = vor.u32 %v4070_v20, %v3241_v18  ;;  %v3738_v38 = vor.u32 %v4194_v29, %v3737_v27 }
 0x1be   : > { %v3593_v41 = vld [vmem:[%s4991_s5 + $0x4c8] sm:$0xf]  ;;  %v4158_v44 = vld [vmem:[%s4991_s5 + $0x4d4] sm:$0xf0] }
 0x1bf   : > { %2597 = vmatpush.bf16.msra.mxu1 %v3178_v34  ;;  %2610 = vmatpush.bf16.msra.mxu2 %v3306_v35  ;;  %v3993_v34 = vld [vmem:[%s4991_s5 + $0x7e8] sm:$0xf]  ;;  %v4258_v35 = vld [vmem:[%s4991_s5 + $0x7f4] sm:$0xf0]  ;;  %v3594_v53 = vor.u32 %v4158_v44, %v3593_v41 }
 0x1c0   : > { %2623 = vmatpush.bf16.msra.mxu3 %v3434_v40  ;;  %v3866_v40 = vor.u32 %v4226_v31, %v3865_v30  ;;  %v3721_v46 = vld [vmem:[%s4991_s5 + $0x5c8] sm:$0xf]  ;;  %v3994_v47 = vor.u32 %v4258_v35, %v3993_v34  ;;  %v4190_v48 = vld [vmem:[%s4991_s5 + $0x5d4] sm:$0xf0] }
 0x1c1   : > { %2585 = vmatpush.bf16.msra.mxu0 %v3034_v49  ;;  %v3849_v49 = vld [vmem:[%s4991_s5 + $0x6c8] sm:$0xf]  ;;  %v4254_v52 = vld [vmem:[%s4991_s5 + $0x7d4] sm:$0xf0]  ;;  %v3722_v54 = vor.u32 %v4190_v48, %v3721_v46 }
 0x1c2   : > { %v3577_v56 = vld [vmem:[%s4991_s5 + $0x4a8] sm:$0xf]  ;;  %v4154_v57 = vld [vmem:[%s4991_s5 + $0x4b4] sm:$0xf0] }
 0x1c3   : > { %2598 = vmatpush.bf16.msra.mxu1 %v3162_v50  ;;  %2611 = vmatpush.bf16.msra.mxu2 %v3290_v51  ;;  %v4222_v50 = vld [vmem:[%s4991_s5 + $0x6d4] sm:$0xf0]  ;;  %v3977_v51 = vld [vmem:[%s4991_s5 + $0x7c8] sm:$0xf]  ;;  %v3578_v1 = vor.u32 %v4154_v57, %v3577_v56 }
 0x1c4   : > { %2624 = vmatpush.bf16.msra.mxu3 %v3418_v55  ;;  %v3850_v55 = vor.u32 %v4222_v50, %v3849_v49  ;;  %v3705_v58 = vld [vmem:[%s4991_s5 + $0x5a8] sm:$0xf]  ;;  %v3978_v59 = vor.u32 %v4254_v52, %v3977_v51  ;;  %v4186_v60 = vld [vmem:[%s4991_s5 + $0x5b4] sm:$0xf0] }
 0x1c5   : > { %2586 = vmatpush.bf16.msra.mxu0 %v3018_v61  ;;  %v3833_v61 = vld [vmem:[%s4991_s5 + $0x6a8] sm:$0xf]  ;;  %v4250_v0 = vld [vmem:[%s4991_s5 + $0x7b4] sm:$0xf0]  ;;  %v3706_v2 = vor.u32 %v4186_v60, %v3705_v58 }
 0x1c6   : > { %v3561_v4 = vld [vmem:[%s4991_s5 + $0x488] sm:$0xf]  ;;  %v4150_v6 = vld [vmem:[%s4991_s5 + $0x494] sm:$0xf0] }
 0x1c7   : > { %2599 = vmatpush.bf16.msra.mxu1 %v3146_v62  ;;  %2612 = vmatpush.bf16.msra.mxu2 %v3274_v63  ;;  %v4218_v62 = vld [vmem:[%s4991_s5 + $0x6b4] sm:$0xf0]  ;;  %v3961_v63 = vld [vmem:[%s4991_s5 + $0x7a8] sm:$0xf] }
 0x1c8   : > { %2625 = vmatpush.bf16.msra.mxu3 %v3402_v3  ;;  %v3834_v3 = vor.u32 %v4218_v62, %v3833_v61  ;;  %v3689_v8 = vld [vmem:[%s4991_s5 + $0x588] sm:$0xf]  ;;  %v3962_v9 = vor.u32 %v4250_v0, %v3961_v63  ;;  %v4182_v10 = vld [vmem:[%s4991_s5 + $0x594] sm:$0xf0] }
 0x1c9   : > { %2587 = vmatpush.bf16.msra.mxu0 %v3002_v11  ;;  %v3817_v11 = vld [vmem:[%s4991_s5 + $0x688] sm:$0xf]  ;;  %v4214_v12 = vld [vmem:[%s4991_s5 + $0x694] sm:$0xf0]  ;;  %v3690_v16 = vor.u32 %v4182_v10, %v3689_v8 }
 0x1ca   : > { %v3945_v13 = vld [vmem:[%s4991_s5 + $0x788] sm:$0xf]  ;;  %v3818_v17 = vor.u32 %v4214_v12, %v3817_v11  ;;  %v4178_v24 = vld [vmem:[%s4991_s5 + $0x574] sm:$0xf0]  ;;  %v4032_v11 = vld [vmem:[%s4991_s5 + $0xec] sm:$0xf] }
 0x1cb   : > { %2600 = vmatpush.bf16.msra.mxu1 %v3130_v14  ;;  %2613 = vmatpush.bf16.msra.mxu2 %v3258_v15  ;;  %v4246_v14 = vld [vmem:[%s4991_s5 + $0x794] sm:$0xf0]  ;;  %v3562_v15 = vor.u32 %v4150_v6, %v3561_v4  ;;  %v3545_v18 = vld [vmem:[%s4991_s5 + $0x468] sm:$0xf]  ;;  %v3099_v12 = vld [vmem:[%s4991_s5 + $0xf8] sm:$0xf0] }
 0x1cc   : > { %2626 = vmatpush.bf16.msra.mxu3 %v3386_v19  ;;  %v4146_v19 = vld [vmem:[%s4991_s5 + $0x474] sm:$0xf0]  ;;  %v3673_v20 = vld [vmem:[%s4991_s5 + $0x568] sm:$0xf]  ;;  %v3946_v23 = vor.u32 %v4246_v14, %v3945_v13  ;;  %v4064_v13 = vld [vmem:[%s4991_s5 + $0x1ec] sm:$0xf] }
 0x1cd   : > { %2588 = vmatpush.bf16.msra.mxu0 %v2986_v28  ;;  %v3801_v25 = vld [vmem:[%s4991_s5 + $0x668] sm:$0xf]  ;;  %v4210_v26 = vld [vmem:[%s4991_s5 + $0x674] sm:$0xf0]  ;;  %v3546_v29 = vor.u32 %v4146_v19, %v3545_v18  ;;  %v3674_v30 = vor.u32 %v4178_v24, %v3673_v20  ;;  %v3355_v18 = vld [vmem:[%s4991_s5 + $0x2f8] sm:$0xf0] }
 0x1ce   : > { %v3929_v27 = vld [vmem:[%s4991_s5 + $0x768] sm:$0xf]  ;;  %v4242_v28 = vld [vmem:[%s4991_s5 + $0x774] sm:$0xf0]  ;;  %v3802_v31 = vor.u32 %v4210_v26, %v3801_v25  ;;  %v4128_v24 = vld [vmem:[%s4991_s5 + $0x3ec] sm:$0xf] }
 0x1cf   : > { %2601 = vmatpush.bf16.msra.mxu1 %v3114_v32  ;;  %2614 = vmatpush.bf16.msra.mxu2 %v3242_v33  ;;  %v3529_v32 = vld [vmem:[%s4991_s5 + $0x448] sm:$0xf]  ;;  %v4142_v33 = vld [vmem:[%s4991_s5 + $0x454] sm:$0xf0]  ;;  %v3930_v35 = vor.u32 %v4242_v28, %v3929_v27  ;;  %v3483_v25 = vld [vmem:[%s4991_s5 + $0x3f8] sm:$0xf0]  ;;  %v3102_v28 = vor.u32 %v4032_v11, %v3099_v12 }
 0x1d0   : > { %2627 = vmatpush.bf16.msra.mxu3 %v3370_v36  ;;  %2589 = vmatmul.bf16.vlgmr.msra.gmra.mxu0 %v5101_v21  ;;  %v3657_v34 = vld [vmem:[%s4991_s5 + $0x548] sm:$0xf]  ;;  %v4174_v36 = vld [vmem:[%s4991_s5 + $0x554] sm:$0xf0]  ;;  %v3530_v46 = vor.u32 %v4142_v33, %v3529_v32  ;;  %v4028_v33 = vld [vmem:[%s4991_s5 + $0xcc] sm:$0xf] }
 0x1d1   : > { %2633 = vmatpush.bf16.msrb.mxu0 %v3610_v37  ;;  %v3785_v37 = vld [vmem:[%s4991_s5 + $0x648] sm:$0xf]  ;;  %v4238_v41 = vld [vmem:[%s4991_s5 + $0x754] sm:$0xf0]  ;;  %v3658_v48 = vor.u32 %v4174_v36, %v3657_v34  ;;  %v3083_v34 = vld [vmem:[%s4991_s5 + $0xd8] sm:$0xf0]  ;;  %v3486_v36 = vor.u32 %v4128_v24, %v3483_v25 }
 0x1d2   : > { %2615 = vmatmul.bf16.vlgmr.msra.gmra.mxu2 %v5087_v5  ;;  %2602 = vmatmul.bf16.vlgmr.msra.gmra.mxu1 %v5104_v22  ;;  %v3513_v50 = vld [vmem:[%s4991_s5 + $0x428] sm:$0xf]  ;;  %v4138_v51 = vld [vmem:[%s4991_s5 + $0x434] sm:$0xf0]  ;;  %v3291_v24 = vld [vmem:[%s4991_s5 + $0x278] sm:$0xf0] }
 0x1d3   : > { %2646 = vmatpush.bf16.msrb.mxu1 %v3738_v38  ;;  %2659 = vmatpush.bf16.msrb.mxu2 %v3866_v40  ;;  %v4206_v38 = vld [vmem:[%s4991_s5 + $0x654] sm:$0xf0]  ;;  %v3913_v40 = vld [vmem:[%s4991_s5 + $0x748] sm:$0xf]  ;;  %v3514_v61 = vor.u32 %v4138_v51, %v3513_v50  ;;  %v4024_v50 = vld [vmem:[%s4991_s5 + $0xac] sm:$0xf] }
 0x1d4   : > { %2672 = vmatpush.bf16.msrb.mxu3 %v3994_v47  ;;  %v3786_v49 = vor.u32 %v4206_v38, %v3785_v37  ;;  %v3641_v52 = vld [vmem:[%s4991_s5 + $0x528] sm:$0xf]  ;;  %v4202_v57 = vld [vmem:[%s4991_s5 + $0x634] sm:$0xf0]  ;;  %v3211_v37 = vld [vmem:[%s4991_s5 + $0x1d8] sm:$0xf0] }
 0x1d5   : > { %2628 = vmatmul.bf16.vlgmr.msra.gmra.mxu3 %v5090_v7  ;;  %2634 = vmatpush.bf16.msrb.mxu0 %v3594_v53  ;;  %v5409_v53 = vpop.f32.mrf.mxu2  ;;  %v3769_v56 = vld [vmem:[%s4991_s5 + $0x628] sm:$0xf]  ;;  %v5414_v58 = vpop.f32.mrf.mxu3  ;;  %v4234_v60 = vld [vmem:[%s4991_s5 + $0x734] sm:$0xf0]  ;;  %v4092_v38 = vld [vmem:[%s4991_s5 + $0x2cc] sm:$0xf] }
 0x1d6   : > { %v3497_v62 = vld [vmem:[%s4991_s5 + $0x408] sm:$0xf]  ;;  %v4134_v63 = vld [vmem:[%s4991_s5 + $0x414] sm:$0xf0]  ;;  %v3067_v51 = vld [vmem:[%s4991_s5 + $0xb8] sm:$0xf0] }
 0x1d7   : > { %2647 = vmatpush.bf16.msrb.mxu1 %v3722_v54  ;;  %2660 = vmatpush.bf16.msrb.mxu2 %v3850_v55  ;;  %v3914_v54 = vor.u32 %v4238_v41, %v3913_v40  ;;  %v4170_v55 = vld [vmem:[%s4991_s5 + $0x534] sm:$0xf0]  ;;  %v3753_v4 = vld [vmem:[%s4991_s5 + $0x608] sm:$0xf]  ;;  %v3339_v40 = vld [vmem:[%s4991_s5 + $0x2d8] sm:$0xf0] }
 0x1d8   : > { %2673 = vmatpush.bf16.msrb.mxu3 %v3978_v59  ;;  %v3897_v59 = vld [vmem:[%s4991_s5 + $0x728] sm:$0xf]  ;;  %v3642_v0 = vor.u32 %v4170_v55, %v3641_v52  ;;  %v4198_v8 = vld [vmem:[%s4991_s5 + $0x614] sm:$0xf0]  ;;  %v4124_v41 = vld [vmem:[%s4991_s5 + $0x3cc] sm:$0xf] }
 0x1d9   : > { %2635 = vmatpush.bf16.msrb.mxu0 %v3578_v1  ;;  %v3770_v1 = vor.u32 %v4202_v57, %v3769_v56  ;;  %v3898_v6 = vor.u32 %v4234_v60, %v3897_v59  ;;  %v4230_v10 = vld [vmem:[%s4991_s5 + $0x714] sm:$0xf0]  ;;  %v4056_v52 = vld [vmem:[%s4991_s5 + $0x1ac] sm:$0xf]  ;;  %v3195_v55 = vld [vmem:[%s4991_s5 + $0x1b8] sm:$0xf0]  ;;  %v3070_v60 = vor.u32 %v4024_v50, %v3067_v51 }
 0x1da   : > { %v4088_v56 = vld [vmem:[%s4991_s5 + $0x2ac] sm:$0xf]  ;;  %v3323_v57 = vld [vmem:[%s4991_s5 + $0x2b8] sm:$0xf0] }
 0x1db   : > { %2648 = vmatpush.bf16.msrb.mxu1 %v3706_v2  ;;  %2661 = vmatpush.bf16.msrb.mxu2 %v3834_v3  ;;  %v2382_v44 = vpop.f32.mrf.mxu0  ;;  %v2395_v47 = vpop.f32.mrf.mxu1  ;;  %v3625_v2 = vld [vmem:[%s4991_s5 + $0x508] sm:$0xf]  ;;  %v4166_v3 = vld [vmem:[%s4991_s5 + $0x514] sm:$0xf0]  ;;  %v4120_v59 = vld [vmem:[%s4991_s5 + $0x3ac] sm:$0xf] }
 0x1dc   : > { %2674 = vmatpush.bf16.msrb.mxu3 %v3962_v9  ;;  %v3881_v9 = vld [vmem:[%s4991_s5 + $0x708] sm:$0xf]  ;;  %v3626_v20 = vor.u32 %v4166_v3, %v3625_v2  ;;  %v2396_v32 = vadd.f32 %v2395_v47, %v2382_v44  ;;  %v3086_v44 = vor.u32 %v4028_v33, %v3083_v34  ;;  %v4052_v2 = vld [vmem:[%s4991_s5 + $0x18c] sm:$0xf]  ;;  %v3003_v51 = vld [vmem:[%s4991_s5 + $0x38] sm:$0xf0] }
 0x1dd   : > { %2636 = vmatpush.bf16.msrb.mxu0 %v3562_v15  ;;  %v3498_v15 = vor.u32 %v4134_v63, %v3497_v62  ;;  %v2410_v26 = vpop.f32.mrf.mxu2  ;;  %v3882_v27 = vor.u32 %v4230_v10, %v3881_v9  ;;  %v3198_v62 = vor.u32 %v4056_v52, %v3195_v55  ;;  %v3326_v63 = vor.u32 %v4088_v56, %v3323_v57  ;;  %v4116_v9 = vld [vmem:[%s4991_s5 + $0x38c] sm:$0xf]  ;;  %v3435_v10 = vld [vmem:[%s4991_s5 + $0x398] sm:$0xf0] }
 0x1de   : > { %v4112_v25 = vld [vmem:[%s4991_s5 + $0x36c] sm:$0xf]  ;;  %v3419_v26 = vld [vmem:[%s4991_s5 + $0x378] sm:$0xf0] }
 0x1df   : > { %2649 = vmatpush.bf16.msrb.mxu1 %v3690_v16  ;;  %2662 = vmatpush.bf16.msrb.mxu2 %v3818_v17  ;;  %v3227_v16 = vld [vmem:[%s4991_s5 + $0x1f8] sm:$0xf0]  ;;  %v4096_v17 = vld [vmem:[%s4991_s5 + $0x2ec] sm:$0xf] }
 0x1e0   : > { %2675 = vmatpush.bf16.msrb.mxu3 %v3946_v23  ;;  %v3754_v23 = vor.u32 %v4198_v8, %v3753_v4  ;;  %v3179_v4 = vld [vmem:[%s4991_s5 + $0x198] sm:$0xf0]  ;;  %v4044_v33 = vld [vmem:[%s4991_s5 + $0x14c] sm:$0xf] }
 0x1e1   : > { %2637 = vmatpush.bf16.msrb.mxu0 %v3546_v29  ;;  %v2423_v29 = vpop.f32.mrf.mxu3  ;;  %v3307_v8 = vld [vmem:[%s4991_s5 + $0x298] sm:$0xf0]  ;;  %v3182_v12 = vor.u32 %v4052_v2, %v3179_v4  ;;  %v4008_v50 = vld [vmem:[%s4991_s5 + $0x2c] sm:$0xf] }
 0x1e2   : > { %v4040_v52 = vld [vmem:[%s4991_s5 + $0x12c] sm:$0xf]  ;;  %v3006_v4 = vor.u32 %v4008_v50, %v3003_v51 }
 0x1e3   : > { %2650 = vmatpush.bf16.msrb.mxu1 %v3674_v30  ;;  %2663 = vmatpush.bf16.msrb.mxu2 %v3802_v31  ;;  %v2384_v14 = vpop.f32.mrf.mxu0  ;;  %v2397_v19 = vpop.f32.mrf.mxu1  ;;  %v3230_v30 = vor.u32 %v4064_v13, %v3227_v16  ;;  %v3358_v31 = vor.u32 %v4096_v17, %v3355_v18  ;;  %v4048_v16 = vld [vmem:[%s4991_s5 + $0x16c] sm:$0xf] }
 0x1e4   : > { %2676 = vmatpush.bf16.msrb.mxu3 %v3930_v35  ;;  %v4060_v35 = vld [vmem:[%s4991_s5 + $0x1cc] sm:$0xf]  ;;  %v3438_v19 = vor.u32 %v4116_v9, %v3435_v10 }
 0x1e5   : > { %2638 = vmatpush.bf16.msrb.mxu0 %v3530_v46  ;;  %v3467_v46 = vld [vmem:[%s4991_s5 + $0x3d8] sm:$0xf0]  ;;  %v3214_v47 = vor.u32 %v4060_v35, %v3211_v37  ;;  %v4016_v14 = vld [vmem:[%s4991_s5 + $0x6c] sm:$0xf]  ;;  %v3422_v35 = vor.u32 %v4112_v25, %v3419_v26 }
 0x1e6   : > { %v4076_v37 = vld [vmem:[%s4991_s5 + $0x24c] sm:$0xf]  ;;  %v3739_v25 = vld [vmem:[%s4991_s5 + $0x5f8] sm:$0xf0] }
 0x1e7   : > { %2651 = vmatpush.bf16.msrb.mxu1 %v3658_v48  ;;  %2664 = vmatpush.bf16.msrb.mxu2 %v3786_v49  ;;  %v3342_v48 = vor.u32 %v4092_v38, %v3339_v40  ;;  %v2409_v49 = vadd.f32 %v5409_v53, %v2396_v32  ;;  %v3451_v53 = vld [vmem:[%s4991_s5 + $0x3b8] sm:$0xf0]  ;;  %v4104_v2 = vld [vmem:[%s4991_s5 + $0x32c] sm:$0xf] }
 0x1e8   : > { %2677 = vmatpush.bf16.msrb.mxu3 %v3914_v54  ;;  %v3470_v54 = vor.u32 %v4124_v41, %v3467_v46  ;;  %v3454_v3 = vor.u32 %v4120_v59, %v3451_v53  ;;  %v3019_v32 = vld [vmem:[%s4991_s5 + $0x58] sm:$0xf0]  ;;  %v4108_v46 = vld [vmem:[%s4991_s5 + $0x34c] sm:$0xf]  ;;  %v5488_v53 = vld [vmem:[%s4989_s15 + $0x10] sm:$0xff] }
 0x1e9   : > { %2639 = vmatpush.bf16.msrb.mxu0 %v3514_v61  ;;  %v2422_v61 = vadd.f32 %v5414_v58, %v2409_v49  ;;  %v3275_v38 = vld [vmem:[%s4991_s5 + $0x258] sm:$0xf0]  ;;  %v5485_v59 = vld [vmem:[%s4989_s15 + $0x8] sm:$0xff] }
 0x1ea   : > { %v3278_v56 = vor.u32 %v4076_v37, %v3275_v38  ;;  %v4224_v26 = vld [vmem:[%s4991_s5 + $0x6ec] sm:$0xf]  ;;  %v3595_v37 = vld [vmem:[%s4991_s5 + $0x4d8] sm:$0xf0] }
 0x1eb   : > { %2652 = vmatpush.bf16.msrb.mxu1 %v3642_v0  ;;  %2665 = vmatpush.bf16.msrb.mxu2 %v3770_v1  ;;  %v4020_v0 = vld [vmem:[%s4991_s5 + $0x8c] sm:$0xf]  ;;  %v3051_v1 = vld [vmem:[%s4991_s5 + $0x98] sm:$0xf0] }
 0x1ec   : > { %2678 = vmatpush.bf16.msrb.mxu3 %v3898_v6  ;;  %v4084_v6 = vld [vmem:[%s4991_s5 + $0x28c] sm:$0xf]  ;;  %v3054_v58 = vor.u32 %v4020_v0, %v3051_v1  ;;  %v3259_v1 = vld [vmem:[%s4991_s5 + $0x238] sm:$0xf0] }
 0x1ed   : > { %2640 = vmatpush.bf16.msrb.mxu0 %v3498_v15  ;;  %v3310_v13 = vor.u32 %v4084_v6, %v3307_v8  ;;  %v3035_v15 = vld [vmem:[%s4991_s5 + $0x78] sm:$0xf0]  ;;  %v4072_v0 = vld [vmem:[%s4991_s5 + $0x22c] sm:$0xf] }
 0x1ee   : > { %v4004_v6 = vld [vmem:[%s4991_s5 + $0xc] sm:$0xf]  ;;  %v2987_v8 = vld [vmem:[%s4991_s5 + $0x18] sm:$0xf0]  ;;  %v3262_v10 = vor.u32 %v4072_v0, %v3259_v1 }
 0x1ef   : > { %2653 = vmatpush.bf16.msrb.mxu1 %v3626_v20  ;;  %2666 = vmatpush.bf16.msrb.mxu2 %v3754_v23  ;;  %v2434_v11 = vpop.f32.mrf.mxu0  ;;  %v3163_v20 = vld [vmem:[%s4991_s5 + $0x178] sm:$0xf0]  ;;  %v4080_v23 = vld [vmem:[%s4991_s5 + $0x26c] sm:$0xf] }
 0x1f0   : > { %2679 = vmatpush.bf16.msrb.mxu3 %v3882_v27  ;;  %2641 = vmatmul.bf16.vlgmr.msrb.gmra.mxu0 %v5160_v42  ;;  %v2435_v17 = vadd.f32 %v2434_v11, %v2422_v61  ;;  %v3166_v29 = vor.u32 %v4048_v16, %v3163_v20  ;;  %v3115_v11 = vld [vmem:[%s4991_s5 + $0x118] sm:$0xf0]  ;;  %v4100_v16 = vld [vmem:[%s4991_s5 + $0x30c] sm:$0xf] }
 0x1f1   : > { %2685 = vmatpush.bf16.msra.mxu0 %v3102_v28  ;;  %v2447_v18 = vpop.f32.mrf.mxu1  ;;  %v3038_v28 = vor.u32 %v4016_v14, %v3035_v15  ;;  %v3243_v15 = vld [vmem:[%s4991_s5 + $0x218] sm:$0xf0]  ;;  %v4188_v38 = vld [vmem:[%s4991_s5 + $0x5cc] sm:$0xf] }
 0x1f2   : > { %2667 = vmatmul.bf16.vlgmr.msrb.gmra.mxu2 %v5156_v39  ;;  %2654 = vmatmul.bf16.vlgmr.msrb.gmra.mxu1 %v5164_v45  ;;  %v2448_v27 = vadd.f32 %v2447_v18, %v2435_v17  ;;  %v3371_v17 = vld [vmem:[%s4991_s5 + $0x318] sm:$0xf0] }
 0x1f3   : > { %2698 = vmatpush.bf16.msra.mxu1 %v3230_v30  ;;  %2711 = vmatpush.bf16.msra.mxu2 %v3358_v31  ;;  %v3294_v30 = vor.u32 %v4080_v23, %v3291_v24  ;;  %v4012_v31 = vld [vmem:[%s4991_s5 + $0x4c] sm:$0xf]  ;;  %v3611_v20 = vld [vmem:[%s4991_s5 + $0x4f8] sm:$0xf0]  ;;  %v2990_v24 = vor.u32 %v4004_v6, %v2987_v8 }
 0x1f4   : > { %2724 = vmatpush.bf16.msra.mxu3 %v3486_v36  ;;  %v3147_v36 = vld [vmem:[%s4991_s5 + $0x158] sm:$0xf0]  ;;  %v4192_v23 = vld [vmem:[%s4991_s5 + $0x5ec] sm:$0xf] }
 0x1f5   : > { %2680 = vmatmul.bf16.vlgmr.msrb.gmra.mxu3 %v5162_v43  ;;  %2686 = vmatpush.bf16.msra.mxu0 %v3086_v44  ;;  %v2460_v34 = vpop.f32.mrf.mxu2  ;;  %v3403_v44 = vld [vmem:[%s4991_s5 + $0x358] sm:$0xf0]  ;;  %v3150_v55 = vor.u32 %v4044_v33, %v3147_v36  ;;  %v4156_v36 = vld [vmem:[%s4991_s5 + $0x4cc] sm:$0xf] }
 0x1f6   : > { %v2461_v40 = vadd.f32 %v2460_v34, %v2448_v27  ;;  %v3406_v61 = vor.u32 %v4108_v46, %v3403_v44  ;;  %v3867_v27 = vld [vmem:[%s4991_s5 + $0x6f8] sm:$0xf0]  ;;  %v3742_v34 = vor.u32 %v4192_v23, %v3739_v25  ;;  %v4220_v46 = vld [vmem:[%s4991_s5 + $0x6cc] sm:$0xf] }
 0x1f7   : > { %2699 = vmatpush.bf16.msra.mxu1 %v3214_v47  ;;  %2712 = vmatpush.bf16.msra.mxu2 %v3342_v48  ;;  %v801_v47 = vld [vmem:[%s4989_s15] sm:$0xff]  ;;  %v3022_v48 = vor.u32 %v4012_v31, %v3019_v32  ;;  %v3995_v31 = vld [vmem:[%s4991_s5 + $0x7f8] sm:$0xf0]  ;;  %v3374_v32 = vor.u32 %v4100_v16, %v3371_v17  ;;  %v4176_v16 = vld [vmem:[%s4991_s5 + $0x56c] sm:$0xf] }
 0x1f8   : > { %2725 = vmatpush.bf16.msra.mxu3 %v3470_v54  ;;  %v2473_v41 = vpop.f32.mrf.mxu3  ;;  %v2436_v54 = vpop.f32.mrf.mxu0  ;;  %v3851_v44 = vld [vmem:[%s4991_s5 + $0x6d8] sm:$0xf0] }
 0x1f9   : > { %2687 = vmatpush.bf16.msra.mxu0 %v3070_v60  ;;  %v2474_v49 = vadd.f32 %v2473_v41, %v2461_v40  ;;  %v2449_v57 = vpop.f32.mrf.mxu1  ;;  %v5491_v60 = vld [vmem:[%s4989_s15 + $0x18] sm:$0xff]  ;;  %v3854_v51 = vor.u32 %v4220_v46, %v3851_v44 }
 0x1fa   : > { %v3723_v41 = vld [vmem:[%s4991_s5 + $0x5d8] sm:$0xf0] }
 0x1fb   : > { %2700 = vmatpush.bf16.msra.mxu1 %v3198_v62  ;;  %2713 = vmatpush.bf16.msra.mxu2 %v3326_v63  ;;  %v2789_v62 = vadd.f32 %v2474_v49, %v801_v47  ;;  %v3131_v63 = vld [vmem:[%s4991_s5 + $0x138] sm:$0xf0]  ;;  %v4252_v47 = vld [vmem:[%s4991_s5 + $0x7cc] sm:$0xf]  ;;  %v3598_v49 = vor.u32 %v4156_v36, %v3595_v37  ;;  %v3726_v50 = vor.u32 %v4188_v38, %v3723_v41 }
 0x1fc   : > { %2726 = vmatpush.bf16.msra.mxu3 %v3454_v3  ;;  %v3387_v3 = vld [vmem:[%s4991_s5 + $0x338] sm:$0xf0]  ;;  %v3134_v9 = vor.u32 %v4040_v52, %v3131_v63  ;;  %v4152_v52 = vld [vmem:[%s4991_s5 + $0x4ac] sm:$0xf] }
 0x1fd   : > { %2688 = vmatpush.bf16.msra.mxu0 %v3054_v58  ;;  %2793 = vst [vmem:[%s4989_s15] sm:$0xff] %v2789_v62  ;;  %v4036_v58 = vld [vmem:[%s4991_s5 + $0x10c] sm:$0xf]  ;;  %v3390_v14 = vor.u32 %v4104_v2, %v3387_v3  ;;  %v3579_v54 = vld [vmem:[%s4991_s5 + $0x4b8] sm:$0xf0] }
 0x1fe   : > { %v3707_v57 = vld [vmem:[%s4991_s5 + $0x5b8] sm:$0xf0]  ;;  %v4248_v63 = vld [vmem:[%s4991_s5 + $0x7ac] sm:$0xf]  ;;  %v3582_v1 = vor.u32 %v4152_v52, %v3579_v54 }
 0x1ff   : > { %2701 = vmatpush.bf16.msra.mxu1 %v3182_v12  ;;  %2714 = vmatpush.bf16.msra.mxu2 %v3310_v13  ;;  %v4068_v12 = vld [vmem:[%s4991_s5 + $0x20c] sm:$0xf]  ;;  %v2462_v13 = vpop.f32.mrf.mxu2  ;;  %v3835_v62 = vld [vmem:[%s4991_s5 + $0x6b8] sm:$0xf0] }
 0x200   : > { %2727 = vmatpush.bf16.msra.mxu3 %v3438_v19  ;;  %v2475_v18 = vpop.f32.mrf.mxu3  ;;  %v4160_v19 = vld [vmem:[%s4991_s5 + $0x4ec] sm:$0xf]  ;;  %v3963_v0 = vld [vmem:[%s4991_s5 + $0x7b8] sm:$0xf0] }
 0x201   : > { %2689 = vmatpush.bf16.msra.mxu0 %v3038_v28  ;;  %v3118_v28 = vor.u32 %v4036_v58, %v3115_v11  ;;  %v3614_v33 = vor.u32 %v4160_v19, %v3611_v20  ;;  %v4148_v3 = vld [vmem:[%s4991_s5 + $0x48c] sm:$0xf]  ;;  %v3966_v6 = vor.u32 %v4248_v63, %v3963_v0  ;;  %v3691_v8 = vld [vmem:[%s4991_s5 + $0x598] sm:$0xf0] }
 0x202   : > { %v3947_v58 = vld [vmem:[%s4991_s5 + $0x798] sm:$0xf0]  ;;  %v4208_v20 = vld [vmem:[%s4991_s5 + $0x66c] sm:$0xf] }
 0x203   : > { %2702 = vmatpush.bf16.msra.mxu1 %v3166_v29  ;;  %2715 = vmatpush.bf16.msra.mxu2 %v3294_v30  ;;  %v3246_v29 = vor.u32 %v4068_v12, %v3243_v15  ;;  %v4256_v30 = vld [vmem:[%s4991_s5 + $0x7ec] sm:$0xf]  ;;  %v3547_v15 = vld [vmem:[%s4991_s5 + $0x478] sm:$0xf0] }
 0x204   : > { %2728 = vmatpush.bf16.msra.mxu3 %v3422_v35  ;;  %v3870_v35 = vor.u32 %v4224_v26, %v3867_v27  ;;  %v3998_v40 = vor.u32 %v4256_v30, %v3995_v31  ;;  %v3675_v19 = vld [vmem:[%s4991_s5 + $0x578] sm:$0xf0]  ;;  %v4172_v31 = vld [vmem:[%s4991_s5 + $0x54c] sm:$0xf] }
 0x205   : > { %2690 = vmatpush.bf16.msra.mxu0 %v3022_v48  ;;  %v3979_v48 = vld [vmem:[%s4991_s5 + $0x7d8] sm:$0xf0]  ;;  %v3678_v27 = vor.u32 %v4176_v16, %v3675_v19  ;;  %v4236_v38 = vld [vmem:[%s4991_s5 + $0x74c] sm:$0xf] }
 0x206   : > { %v3803_v23 = vld [vmem:[%s4991_s5 + $0x678] sm:$0xf0] }
 0x207   : > { %2703 = vmatpush.bf16.msra.mxu1 %v3150_v55  ;;  %2716 = vmatpush.bf16.msra.mxu2 %v3278_v56  ;;  %v4184_v55 = vld [vmem:[%s4991_s5 + $0x5ac] sm:$0xf]  ;;  %v3982_v56 = vor.u32 %v4252_v47, %v3979_v48  ;;  %v3931_v25 = vld [vmem:[%s4991_s5 + $0x778] sm:$0xf0] }
 0x208   : > { %2729 = vmatpush.bf16.msra.mxu3 %v3406_v61  ;;  %v4216_v61 = vld [vmem:[%s4991_s5 + $0x6ac] sm:$0xf]  ;;  %v3531_v30 = vld [vmem:[%s4991_s5 + $0x458] sm:$0xf0] }
 0x209   : > { %2691 = vmatpush.bf16.msra.mxu0 %v3006_v4  ;;  %v3838_v2 = vor.u32 %v4216_v61, %v3835_v62  ;;  %v3563_v4 = vld [vmem:[%s4991_s5 + $0x498] sm:$0xf0]  ;;  %v4136_v48 = vld [vmem:[%s4991_s5 + $0x42c] sm:$0xf] }
 0x20a   : > { %v3787_v36 = vld [vmem:[%s4991_s5 + $0x658] sm:$0xf0] }
 0x20b   : > { %2704 = vmatpush.bf16.msra.mxu1 %v3134_v9  ;;  %2717 = vmatpush.bf16.msra.mxu2 %v3262_v10  ;;  %v3819_v9 = vld [vmem:[%s4991_s5 + $0x698] sm:$0xf0]  ;;  %v4244_v10 = vld [vmem:[%s4991_s5 + $0x78c] sm:$0xf] }
 0x20c   : > { %2730 = vmatpush.bf16.msra.mxu3 %v3390_v14  ;;  %v4144_v14 = vld [vmem:[%s4991_s5 + $0x46c] sm:$0xf]  ;;  %v3950_v18 = vor.u32 %v4244_v10, %v3947_v58  ;;  %v3643_v54 = vld [vmem:[%s4991_s5 + $0x538] sm:$0xf0] }
 0x20d   : > { %2692 = vmatpush.bf16.msra.mxu0 %v2990_v24  ;;  %v5543_v11 = vpop.f32.mrf.mxu0  ;;  %v4240_v24 = vld [vmem:[%s4991_s5 + $0x76c] sm:$0xf]  ;;  %v3550_v26 = vor.u32 %v4144_v14, %v3547_v15  ;;  %v3899_v61 = vld [vmem:[%s4991_s5 + $0x738] sm:$0xf0] }
 0x20e   : > { %v3883_v10 = vld [vmem:[%s4991_s5 + $0x718] sm:$0xf0] }
 0x20f   : > { %2705 = vmatpush.bf16.msra.mxu1 %v3118_v28  ;;  %2718 = vmatpush.bf16.msra.mxu2 %v3246_v29  ;;  %v5548_v17 = vpop.f32.mrf.mxu1  ;;  %v3806_v28 = vor.u32 %v4208_v20, %v3803_v23  ;;  %v4140_v29 = vld [vmem:[%s4991_s5 + $0x44c] sm:$0xf] }
 0x210   : > { %2731 = vmatpush.bf16.msra.mxu3 %v3374_v32  ;;  %2693 = vmatmul.bf16.vlgmr.msra.gmra.mxu0 %v5101_v21  ;;  %v4212_v21 = vld [vmem:[%s4991_s5 + $0x68c] sm:$0xf]  ;;  %v3534_v41 = vor.u32 %v4140_v29, %v3531_v30  ;;  %v2500_v14 = vadd.f32 %v5548_v17, %v5543_v11 }
 0x211   : > { %2737 = vmatpush.bf16.msrb.mxu0 %v3614_v33  ;;  %v3822_v13 = vor.u32 %v4212_v21, %v3819_v9  ;;  %v3934_v33 = vor.u32 %v4240_v24, %v3931_v25  ;;  %v4228_v9 = vld [vmem:[%s4991_s5 + $0x70c] sm:$0xf] }
 0x212   : > { %2719 = vmatmul.bf16.vlgmr.msra.gmra.mxu2 %v5087_v5  ;;  %2706 = vmatmul.bf16.vlgmr.msra.gmra.mxu1 %v5104_v22  ;;  %v3710_v5 = vor.u32 %v4184_v55, %v3707_v57  ;;  %v3566_v22 = vor.u32 %v4148_v3, %v3563_v4  ;;  %v4200_v55 = vld [vmem:[%s4991_s5 + $0x62c] sm:$0xf] }
 0x213   : > { %2750 = vmatpush.bf16.msrb.mxu1 %v3742_v34  ;;  %2763 = vmatpush.bf16.msrb.mxu2 %v3870_v35  ;;  %v3659_v34 = vld [vmem:[%s4991_s5 + $0x558] sm:$0xf0]  ;;  %v4204_v35 = vld [vmem:[%s4991_s5 + $0x64c] sm:$0xf] }
 0x214   : > { %2776 = vmatpush.bf16.msrb.mxu3 %v3998_v40  ;;  %v3915_v40 = vld [vmem:[%s4991_s5 + $0x758] sm:$0xf0]  ;;  %v3662_v44 = vor.u32 %v4172_v31, %v3659_v34  ;;  %v3790_v47 = vor.u32 %v4204_v35, %v3787_v36  ;;  %v4232_v57 = vld [vmem:[%s4991_s5 + $0x72c] sm:$0xf] }
 0x215   : > { %2732 = vmatmul.bf16.vlgmr.msra.gmra.mxu3 %v5090_v7  ;;  %2738 = vmatpush.bf16.msrb.mxu0 %v3598_v49  ;;  %v4180_v7 = vld [vmem:[%s4991_s5 + $0x58c] sm:$0xf]  ;;  %v2512_v32 = vpop.f32.mrf.mxu2  ;;  %v2488_v46 = vpop.f32.mrf.mxu0  ;;  %v3515_v49 = vld [vmem:[%s4991_s5 + $0x438] sm:$0xf0]  ;;  %v3918_v52 = vor.u32 %v4236_v38, %v3915_v40  ;;  %v3902_v4 = vor.u32 %v4232_v57, %v3899_v61 }
 0x216   : > { %v3694_v12 = vor.u32 %v4180_v7, %v3691_v8  ;;  %v3518_v62 = vor.u32 %v4136_v48, %v3515_v49  ;;  %v3627_v7 = vld [vmem:[%s4991_s5 + $0x518] sm:$0xf0]  ;;  %v2513_v15 = vadd.f32 %v2512_v32, %v2500_v14 }
 0x217   : > { %2751 = vmatpush.bf16.msrb.mxu1 %v3726_v50  ;;  %2764 = vmatpush.bf16.msrb.mxu2 %v3854_v51  ;;  %v4168_v50 = vld [vmem:[%s4991_s5 + $0x52c] sm:$0xf]  ;;  %v2501_v51 = vpop.f32.mrf.mxu1  ;;  %v3755_v8 = vld [vmem:[%s4991_s5 + $0x618] sm:$0xf0] }
 0x218   : > { %2777 = vmatpush.bf16.msrb.mxu3 %v3982_v56  ;;  %v2525_v37 = vpop.f32.mrf.mxu3  ;;  %v3771_v56 = vld [vmem:[%s4991_s5 + $0x638] sm:$0xf0]  ;;  %v3646_v63 = vor.u32 %v4168_v50, %v3643_v54 }
 0x219   : > { %2739 = vmatpush.bf16.msrb.mxu0 %v3582_v1  ;;  %v3774_v0 = vor.u32 %v4200_v55, %v3771_v56  ;;  %v4132_v1 = vld [vmem:[%s4991_s5 + $0x40c] sm:$0xf]  ;;  %v2526_v16 = vadd.f32 %v2525_v37, %v2513_v15 }
 0x21b   : > { %2752 = vmatpush.bf16.msrb.mxu1 %v3710_v5  ;;  %2765 = vmatpush.bf16.msrb.mxu2 %v3838_v2  ;;  %v3499_v5 = vld [vmem:[%s4991_s5 + $0x418] sm:$0xf0]  ;;  %v4164_v2 = vld [vmem:[%s4991_s5 + $0x50c] sm:$0xf] }
 0x21c   : > { %2778 = vmatpush.bf16.msrb.mxu3 %v3966_v6  ;;  %v4196_v6 = vld [vmem:[%s4991_s5 + $0x60c] sm:$0xf]  ;;  %v3502_v58 = vor.u32 %v4132_v1, %v3499_v5 }
 0x21d   : > { %2740 = vmatpush.bf16.msrb.mxu0 %v3566_v22  ;;  %v2514_v3 = vpop.f32.mrf.mxu2  ;;  %v3630_v22 = vor.u32 %v4164_v2, %v3627_v7 }
 0x21f   : > { %2753 = vmatpush.bf16.msrb.mxu1 %v3694_v12  ;;  %2766 = vmatpush.bf16.msrb.mxu2 %v3822_v13  ;;  %v3758_v12 = vor.u32 %v4196_v6, %v3755_v8  ;;  %v3886_v13 = vor.u32 %v4228_v9, %v3883_v10 }
 0x220   : > { %2779 = vmatpush.bf16.msrb.mxu3 %v3950_v18  ;;  %v2527_v21 = vpop.f32.mrf.mxu3 }
 0x221   : > { %2741 = vmatpush.bf16.msrb.mxu0 %v3550_v26 }
 0x223   : > { %2754 = vmatpush.bf16.msrb.mxu1 %v3678_v27  ;;  %2767 = vmatpush.bf16.msrb.mxu2 %v3806_v28 }
 0x224   : > { %2780 = vmatpush.bf16.msrb.mxu3 %v3934_v33 }
 0x225   : > { %2742 = vmatpush.bf16.msrb.mxu0 %v3534_v41 }
 0x227   : > { %2755 = vmatpush.bf16.msrb.mxu1 %v3662_v44  ;;  %2768 = vmatpush.bf16.msrb.mxu2 %v3790_v47 }
 0x228   : > { %2781 = vmatpush.bf16.msrb.mxu3 %v3918_v52 }
 0x229   : > { %2743 = vmatpush.bf16.msrb.mxu0 %v3518_v62 }
 0x22b   : > { %2756 = vmatpush.bf16.msrb.mxu1 %v3646_v63  ;;  %2769 = vmatpush.bf16.msrb.mxu2 %v3774_v0 }
 0x22c   : > { %2782 = vmatpush.bf16.msrb.mxu3 %v3902_v4 }
 0x22d   : > { %2744 = vmatpush.bf16.msrb.mxu0 %v3502_v58  ;;  %v2538_v18 = vpop.f32.mrf.mxu0 }
 0x22e   : > { %v2539_v19 = vadd.f32 %v2538_v18, %v2526_v16 }
 0x22f   : > { %2757 = vmatpush.bf16.msrb.mxu1 %v3630_v22  ;;  %2770 = vmatpush.bf16.msrb.mxu2 %v3758_v12  ;;  %v2551_v20 = vpop.f32.mrf.mxu1 }
 0x230   : > { %2783 = vmatpush.bf16.msrb.mxu3 %v3886_v13  ;;  %2745 = vmatmul.bf16.vlgmr.msrb.gmra.mxu0 %v5160_v42  ;;  %v2552_v23 = vadd.f32 %v2551_v20, %v2539_v19 }
 0x232   : > { %2758 = vmatmul.bf16.vlgmr.msrb.gmra.mxu1 %v5164_v45  ;;  %2771 = vmatmul.bf16.vlgmr.msrb.gmra.mxu2 %v5156_v39 }
 0x233   : > { %2784 = vmatmul.bf16.vlgmr.msrb.gmra.mxu3 %v5162_v43 }
 0x235   : > { %v2564_v11 = vpop.f32.mrf.mxu2  ;;  %v2540_v26 = vpop.f32.mrf.mxu0 }
 0x236   : > { %v2565_v17 = vadd.f32 %v2564_v11, %v2552_v23 }
 0x237   : > { %v2553_v27 = vpop.f32.mrf.mxu1 }
 0x238   : > { %v2577_v24 = vpop.f32.mrf.mxu3 }
 0x239   : > { %v2578_v25 = vadd.f32 %v2577_v24, %v2565_v17 }
 0x23b   : > { %v2790_v42 = vadd.f32 %v2578_v25, %v5485_v59 }
 0x23d   : > { %2794 = vst [vmem:[%s4989_s15 + $0x8] sm:$0xff] %v2790_v42  ;;  %v2566_v28 = vpop.f32.mrf.mxu2 }
 0x240   : > { %v2579_v45 = vpop.f32.mrf.mxu3 }
 0x24d   : > { %v2590_v29 = vpop.f32.mrf.mxu0 }
 0x24f   : > { %v2603_v39 = vpop.f32.mrf.mxu1 }
 0x250   : > { %v2604_v35 = vadd.f32 %v2603_v39, %v2590_v29 }
 0x255   : > { %v2616_v30 = vpop.f32.mrf.mxu2  ;;  %v2592_v31 = vpop.f32.mrf.mxu0 }
 0x256   : > { %v2617_v36 = vadd.f32 %v2616_v30, %v2604_v35 }
 0x257   : > { %v2605_v32 = vpop.f32.mrf.mxu1 }
 0x258   : > { %v2629_v43 = vpop.f32.mrf.mxu3 }
 0x259   : > { %v2630_v37 = vadd.f32 %v2629_v43, %v2617_v36 }
 0x25d   : > { %v2618_v33 = vpop.f32.mrf.mxu2 }
 0x260   : > { %v2631_v34 = vpop.f32.mrf.mxu3 }
 0x26d   : > { %v2642_v38 = vpop.f32.mrf.mxu0 }
 0x26e   : > { %v2643_v40 = vadd.f32 %v2642_v38, %v2630_v37 }
 0x26f   : > { %v2655_v41 = vpop.f32.mrf.mxu1 }
 0x270   : > { %v2656_v46 = vadd.f32 %v2655_v41, %v2643_v40 }
 0x275   : > { %v2668_v59 = vpop.f32.mrf.mxu2  ;;  %v2644_v49 = vpop.f32.mrf.mxu0 }
 0x276   : > { %v2669_v44 = vadd.f32 %v2668_v59, %v2656_v46 }
 0x277   : > { %v2657_v50 = vpop.f32.mrf.mxu1 }
 0x278   : > { %v2681_v47 = vpop.f32.mrf.mxu3 }
 0x279   : > { %v2682_v48 = vadd.f32 %v2681_v47, %v2669_v44 }
 0x27b   : > { %v2791_v51 = vadd.f32 %v2682_v48, %v5488_v53 }
 0x27d   : > { %2795 = vst [vmem:[%s4989_s15 + $0x10] sm:$0xff] %v2791_v51  ;;  %v2670_v52 = vpop.f32.mrf.mxu2 }
 0x280   : > { %v2683_v54 = vpop.f32.mrf.mxu3 }
 0x28d   : > { %v2694_v55 = vpop.f32.mrf.mxu0 }
 0x28f   : > { %v2707_v56 = vpop.f32.mrf.mxu1 }
 0x290   : > { %v2708_v5 = vadd.f32 %v2707_v56, %v2694_v55 }
 0x295   : > { %v2720_v57 = vpop.f32.mrf.mxu2  ;;  %v2696_v62 = vpop.f32.mrf.mxu0 }
 0x296   : > { %v2721_v2 = vadd.f32 %v2720_v57, %v2708_v5 }
 0x297   : > { %v2709_v63 = vpop.f32.mrf.mxu1 }
 0x298   : > { %v2733_v61 = vpop.f32.mrf.mxu3 }
 0x299   : > { %v2734_v3 = vadd.f32 %v2733_v61, %v2721_v2 }
 0x29d   : > { %v2722_v0 = vpop.f32.mrf.mxu2 }
 0x2a0   : > { %v2735_v1 = vpop.f32.mrf.mxu3 }
 0x2ad   : > { %v2746_v4 = vpop.f32.mrf.mxu0 }
 0x2ae   : > { %v2747_v6 = vadd.f32 %v2746_v4, %v2734_v3 }
 0x2af   : > { %v2759_v7 = vpop.f32.mrf.mxu1 }
 0x2b0   : > { %v2760_v8 = vadd.f32 %v2759_v7, %v2747_v6 }
 0x2b5   : > { %v2772_v53 = vpop.f32.mrf.mxu2  ;;  %v2748_v10 = vpop.f32.mrf.mxu0 }
 0x2b6   : > { %v2773_v21 = vadd.f32 %v2772_v53, %v2760_v8  ;;  %v2785_v9 = vpop.f32.mrf.mxu3 }
 0x2b7   : > { %v2761_v58 = vpop.f32.mrf.mxu1 }
 0x2b8   : > { %v2786_v22 = vadd.f32 %v2785_v9, %v2773_v21 }
 0x2ba   : > { %v2792_v12 = vadd.f32 %v2786_v22, %v5491_v60  ;;  %2800 = sbr.rel (%p3999_p13) target bundleno = 716 (0x2cc), region = 63 }
 0x2bc   : > { %2796 = vst [vmem:[%s4989_s15 + $0x18] sm:$0xff] %v2792_v12 }
 0x2bd   : > { %v2774_v13 = vpop.f32.mrf.mxu2 }
 0x2be   : > { %v2787_v14 = vpop.f32.mrf.mxu3 }
 0x2bf   : > { %v2801_v15 = vld [vmem:[%s4989_s15] sm:$0xff]  ;;  %v2802_v16 = vld [vmem:[%s4989_s15 + $0x8] sm:$0xff]  ;;  %v2803_v18 = vld [vmem:[%s4989_s15 + $0x10] sm:$0xff] }
 0x2c0   : > { %v2805_v60 = vld [vmem:[%s781_s12] sm:$0xf] }
 0x2c1   : > { %v2807_v20 = vperm.slane %v2805_v60, 0  ;;  %v2808_v23 = vperm.slane %v2805_v60, 1  ;;  %v2809_v11 = vperm.slane %v2805_v60, 2  ;;  %v2810_v17 = vperm.slane %v2805_v60, 3 }
 0x2c3   : > { %v2804_v19 = vld [vmem:[%s4989_s15 + $0x18] sm:$0xff]  ;;  %v2815_v24 = vadd.f32 %v2807_v20, %v2801_v15  ;;  %v2816_v25 = vadd.f32 %v2808_v23, %v2802_v16  ;;  %v2817_v26 = vadd.f32 %v2809_v11, %v2803_v18 }
 0x2c4   : > { %v2818_v27 = vadd.f32 %v2810_v17, %v2804_v19 }
 0x2c5   : > { %vm2819_vm0 = vcmp.ge.f32.partialorder %v2815_v24, 0.0  ;;  %v2823_v42 = vmul.f32 0.01, %v2815_v24  ;;  %vm2820_vm1 = vcmp.ge.f32.partialorder %v2816_v25, 0.0  ;;  %v2824_v28 = vmul.f32 0.01, %v2816_v25 }
 0x2c6   : > { %vm2821_vm2 = vcmp.ge.f32.partialorder %v2817_v26, 0.0  ;;  %v2825_v45 = vmul.f32 0.01, %v2817_v26  ;;  %vm2822_vm3 = vcmp.ge.f32.partialorder %v2818_v27, 0.0  ;;  %v2826_v29 = vmul.f32 0.01, %v2818_v27 }
 0x2c7   : > { %v2827_v39 = vsel %vm2819_vm0, %v2815_v24, %v2823_v42  ;;  %v2828_v30 = vsel %vm2820_vm1, %v2816_v25, %v2824_v28 }
 0x2c8   : > { %2831 = vst [vmem:[%s4989_s15] sm:$0xff] %v2827_v39  ;;  %v2829_v43 = vsel %vm2821_vm2, %v2817_v26, %v2825_v45  ;;  %v2830_v31 = vsel %vm2822_vm3, %v2818_v27, %v2826_v29 }
 0x2c9   : > { %2832 = vst [vmem:[%s4989_s15 + $0x8] sm:$0xff] %v2828_v30 }
 0x2ca   : > { %2833 = vst [vmem:[%s4989_s15 + $0x10] sm:$0xff] %v2829_v43 }
 0x2cb   : > { %2834 = vst [vmem:[%s4989_s15 + $0x18] sm:$0xff] %v2830_v31 }
 0x2cc PF: > { %s13_s18 = sadd.s32 1, %s4370_s18   ;;  %s5630_s12 = smov %s4350_s13 }
 0x2cd   : > { %p10_p0 = scmp.ge.s32.totalorder %s13_s18, 12   ;;  %s5631_s13 = smov %s4444_s25 }
 0x2ce   : > { %s5632_s14 = smov %s4362_s16  ;;  %s5633_s15 = smov %s4366_s17 }
 0x2cf   : > { %s5634_s16 = smov %s5637_s19  ;;  %s5635_s17 = smov %s5641_s20 }
 0x2d0   :  { %12 = sbr.rel (!%p10_p0) target bundleno = 4 (0x4), region = 104 }

// kernel: period_discriminator_forward.11
= control target key start
LH: loop header
LB: loop body
LE: loop exit
PB: predicated region body
PF: predicated region fallthrough
CT: control target
= control target key end

     0   :  { %s1443_s14 = smov 0   ;;  %s1445_s15 = smov 0   ;;  %s1569_s0 = inlined_call_operand.vmem [shape: bf16[8,3072], index: 0, kind: input, shape index: {}]   ;;  %s1570_s1 = inlined_call_operand.vmem [shape: bf16[3072,1], index: 1, kind: input, shape index: {}]   ;;  %s1571_s2 = inlined_call_operand.<no memory space> [shape: f32[1,1], index: 2, kind: input, shape index: {}]   ;;  %s1572_s3 = inlined_call_operand.vmem [shape: f32[8,1], index: 3, kind: output, shape index: {}]  }
   0x1   :  { %v8_v0 = vstv %s1571_s2  ;;  %s1447_s16 = smov 0  }
   0x2   :  { %9 = vst [vmem:[#allocation2] sm:$0x1] %v8_v0 }
   0x3 LB: > { %s27_s2 = sadd.s32 1, %s1413_s15  ;;  %p1039_p0 = scmp.ge.s32.totalorder %s1417_s16, 1  ;;  %s1417_s16 = sphi %s1447_s16, %s15_s16   ;;  %s1413_s15 = sphi %s1445_s15, %s1574_s15   ;;  %s1409_s14 = sphi %s1443_s14, %s1573_s14  }
   0x4   : > { %p28_p1 = scmp.ge.s32.totalorder %s27_s2, 3  ;;  %p191_p2 = scmp.lt.s32.totalorder %s1417_s16, 4 }
   0x6   : > { %s1576_s2 = smov (%p28_p1, %s27_s2), 0  ;;  %p192_p3 = pnand %p1039_p0, %p191_p2 }
   0x7   : > { %s1040_s17 = sshll.u32 (!%p192_p3), %s1409_s14, 3  ;;  %s1042_s18 = sshll.u32 (!%p192_p3), %s1409_s14, 7 }
   0x8   : > { %195 = sbr.rel (%p192_p3) target bundleno = 238 (0xee), region = 32  ;;  %p235_p4 = scmp.lt.s32.totalorder (!%p192_p3), %s1040_s17, 23 }
   0x9   : > { %p243_p5 = scmp.lt.s32.totalorder (!%p192_p3), %s1042_s18, 383  ;;  %p1044_p6 = scmp.ne.s32.totalorder (!%p192_p3), %s1409_s14, 0 }
   0xd   : > { %s1578_s17 = smov (!%p235_p4, %s1040_s17), 23  ;;  %s1580_s18 = smov (!%p243_p5, %s1042_s18), 383 }
   0xe   : > { %s1041_s19 = sshll.u32 %s1578_s17, 2  ;;  %s1043_s23 = sshll.u32 %s1580_s18, 2 }
   0xf   : > { %s1468_s22 = scalar_lea.vmem %s1569_s0, %s1041_s19  ;;  %s1473_s26 = scalar_lea.vmem %s1570_s1, %s1043_s23 }
  0x10   : > { %264 = sbr.rel (%p1044_p6) target bundleno = 23 (0x17), region = 36 }
  0x15   : > { %vm265_vm0 = vcmask 7168   ;;  %v1419_v1 = vmov 0.0  }
  0x16   : > { %266 = vst.msk [vmem:[%s1572_s3] sm:$0xff] %vm265_vm0, %v1419_v1 }
  0x17 PF: > { %v1312_v2 = vld [vmem:[%s1473_s26 + $0x38] sm:$0xff]  ;;  %v1311_v6 = vld [vmem:[%s1473_s26 + $0x30] sm:$0xff]  ;;  %v1310_v10 = vld [vmem:[%s1473_s26 + $0x28] sm:$0xff]  ;;  %vm917_vm1 = vcmask 7168   ;;  %p1301_p7 = scmp.ne.s32.totalorder %s1409_s14, 2 }
  0x18   : > { %v1320_v3 = vld [vmem:[%s1473_s26 + $0x78] sm:$0xff]  ;;  %812 = vmatpush.bf16.msra.mxu0 %v1312_v2  ;;  %v1319_v7 = vld [vmem:[%s1473_s26 + $0x70] sm:$0xff]  ;;  %v1318_v11 = vld [vmem:[%s1473_s26 + $0x68] sm:$0xff] }
  0x19   : > { %v1328_v4 = vld [vmem:[%s1473_s26 + $0xb8] sm:$0xff]  ;;  %825 = vmatpush.bf16.msra.mxu1 %v1320_v3  ;;  %v1327_v8 = vld [vmem:[%s1473_s26 + $0xb0] sm:$0xff]  ;;  %v1326_v12 = vld [vmem:[%s1473_s26 + $0xa8] sm:$0xff] }
  0x1a   : > { %v1336_v5 = vld [vmem:[%s1473_s26 + $0xf8] sm:$0xff]  ;;  %838 = vmatpush.bf16.msra.mxu2 %v1328_v4  ;;  %v1335_v9 = vld [vmem:[%s1473_s26 + $0xf0] sm:$0xff]  ;;  %v1334_v13 = vld [vmem:[%s1473_s26 + $0xe8] sm:$0xff] }
  0x1b   : > { %851 = vmatpush.bf16.msra.mxu3 %v1336_v5  ;;  %v1309_v14 = vld [vmem:[%s1473_s26 + $0x20] sm:$0xff]  ;;  %v1308_v18 = vld [vmem:[%s1473_s26 + $0x18] sm:$0xff]  ;;  %v1307_v22 = vld [vmem:[%s1473_s26 + $0x10] sm:$0xff] }
  0x1c   : > { %813 = vmatpush.bf16.msra.mxu0 %v1311_v6  ;;  %v1317_v15 = vld [vmem:[%s1473_s26 + $0x60] sm:$0xff]  ;;  %v1316_v19 = vld [vmem:[%s1473_s26 + $0x58] sm:$0xff]  ;;  %v1315_v23 = vld [vmem:[%s1473_s26 + $0x50] sm:$0xff] }
  0x1d   : > { %826 = vmatpush.bf16.msra.mxu1 %v1319_v7  ;;  %v1325_v16 = vld [vmem:[%s1473_s26 + $0xa0] sm:$0xff]  ;;  %v1324_v20 = vld [vmem:[%s1473_s26 + $0x98] sm:$0xff]  ;;  %v1323_v24 = vld [vmem:[%s1473_s26 + $0x90] sm:$0xff] }
  0x1e   : > { %839 = vmatpush.bf16.msra.mxu2 %v1327_v8  ;;  %v1333_v17 = vld [vmem:[%s1473_s26 + $0xe0] sm:$0xff]  ;;  %v1332_v21 = vld [vmem:[%s1473_s26 + $0xd8] sm:$0xff]  ;;  %v1331_v25 = vld [vmem:[%s1473_s26 + $0xd0] sm:$0xff] }
  0x1f   : > { %852 = vmatpush.bf16.msra.mxu3 %v1335_v9  ;;  %v1306_v26 = vld [vmem:[%s1473_s26 + $0x8] sm:$0xff]  ;;  %v268_v31 = vld [vmem:[%s1468_s22] sm:$0xff]  ;;  %v1344_v40 = vld [vmem:[%s1473_s26 + $0x138] sm:$0xff] }
  0x20   : > { %814 = vmatpush.bf16.msra.mxu0 %v1310_v10  ;;  %v1314_v27 = vld [vmem:[%s1473_s26 + $0x48] sm:$0xff]  ;;  %v1305_v32 = vld [vmem:[%s1473_s26] sm:$0xff]  ;;  %v404_v38 = vunpack.c.l.b16 %v268_v31  ;;  %v405_v39 = vunpack.c.h.b16 %v268_v31  ;;  %v1352_v41 = vld [vmem:[%s1473_s26 + $0x178] sm:$0xff] }
  0x21   : > { %827 = vmatpush.bf16.msra.mxu1 %v1318_v11  ;;  %v1322_v28 = vld [vmem:[%s1473_s26 + $0x88] sm:$0xff]  ;;  %v1313_v33 = vld [vmem:[%s1473_s26 + $0x40] sm:$0xff]  ;;  %v1360_v42 = vld [vmem:[%s1473_s26 + $0x1b8] sm:$0xff] }
  0x22   : > { %840 = vmatpush.bf16.msra.mxu2 %v1326_v12  ;;  %v1330_v29 = vld [vmem:[%s1473_s26 + $0xc8] sm:$0xff]  ;;  %v1321_v36 = vld [vmem:[%s1473_s26 + $0x80] sm:$0xff]  ;;  %v1368_v43 = vld [vmem:[%s1473_s26 + $0x1f8] sm:$0xff]  ;;  %v412_v46 = vpack.c.b16 %v404_v38, %v404_v38  ;;  %v413_v47 = vpack.c.b16 %v405_v39, %v405_v39 }
  0x23   : > { %853 = vmatpush.bf16.msra.mxu3 %v1334_v13  ;;  %v269_v30 = vld [vmem:[%s1468_s22 + $0x8] sm:$0xff]  ;;  %v1329_v37 = vld [vmem:[%s1473_s26 + $0xc0] sm:$0xff]  ;;  %v1343_v48 = vld [vmem:[%s1473_s26 + $0x130] sm:$0xff] }
  0x24   : > { %815 = vmatpush.bf16.msra.mxu0 %v1309_v14  ;;  %v406_v34 = vunpack.c.l.b16 %v269_v30  ;;  %v407_v35 = vunpack.c.h.b16 %v269_v30  ;;  %v1351_v49 = vld [vmem:[%s1473_s26 + $0x170] sm:$0xff]  ;;  %v1342_v52 = vld [vmem:[%s1473_s26 + $0x128] sm:$0xff]  ;;  %v1341_v56 = vld [vmem:[%s1473_s26 + $0x120] sm:$0xff] }
  0x25   : > { %828 = vmatpush.bf16.msra.mxu1 %v1317_v15  ;;  %v1359_v50 = vld [vmem:[%s1473_s26 + $0x1b0] sm:$0xff]  ;;  %v1350_v53 = vld [vmem:[%s1473_s26 + $0x168] sm:$0xff]  ;;  %v1349_v57 = vld [vmem:[%s1473_s26 + $0x160] sm:$0xff] }
  0x26   : > { %841 = vmatpush.bf16.msra.mxu2 %v1325_v16  ;;  %v414_v44 = vpack.c.b16 %v406_v34, %v406_v34  ;;  %v415_v45 = vpack.c.b16 %v407_v35, %v407_v35  ;;  %v1367_v51 = vld [vmem:[%s1473_s26 + $0x1f0] sm:$0xff]  ;;  %v1358_v54 = vld [vmem:[%s1473_s26 + $0x1a8] sm:$0xff]  ;;  %v1357_v58 = vld [vmem:[%s1473_s26 + $0x1a0] sm:$0xff] }
  0x27   : > { %854 = vmatpush.bf16.msra.mxu3 %v1333_v17  ;;  %v1366_v55 = vld [vmem:[%s1473_s26 + $0x1e8] sm:$0xff]  ;;  %v1365_v59 = vld [vmem:[%s1473_s26 + $0x1e0] sm:$0xff]  ;;  %v1340_v60 = vld [vmem:[%s1473_s26 + $0x118] sm:$0xff] }
  0x28   : > { %816 = vmatpush.bf16.msra.mxu0 %v1308_v18  ;;  %v1348_v61 = vld [vmem:[%s1473_s26 + $0x158] sm:$0xff]  ;;  %v1339_v0 = vld [vmem:[%s1473_s26 + $0x110] sm:$0xff]  ;;  %v1338_v4 = vld [vmem:[%s1473_s26 + $0x108] sm:$0xff] }
  0x29   : > { %829 = vmatpush.bf16.msra.mxu1 %v1316_v19  ;;  %v1356_v62 = vld [vmem:[%s1473_s26 + $0x198] sm:$0xff]  ;;  %v1347_v1 = vld [vmem:[%s1473_s26 + $0x150] sm:$0xff]  ;;  %v1346_v5 = vld [vmem:[%s1473_s26 + $0x148] sm:$0xff] }
  0x2a   : > { %842 = vmatpush.bf16.msra.mxu2 %v1324_v20  ;;  %v1364_v63 = vld [vmem:[%s1473_s26 + $0x1d8] sm:$0xff]  ;;  %v1355_v2 = vld [vmem:[%s1473_s26 + $0x190] sm:$0xff]  ;;  %v1354_v7 = vld [vmem:[%s1473_s26 + $0x188] sm:$0xff] }
  0x2b   : > { %855 = vmatpush.bf16.msra.mxu3 %v1332_v21  ;;  %v1363_v3 = vld [vmem:[%s1473_s26 + $0x1d0] sm:$0xff]  ;;  %v1362_v8 = vld [vmem:[%s1473_s26 + $0x1c8] sm:$0xff]  ;;  %v271_v9 = vld [vmem:[%s1468_s22 + $0x18] sm:$0xff] }
  0x2c   : > { %817 = vmatpush.bf16.msra.mxu0 %v1307_v22  ;;  %v270_v6 = vld [vmem:[%s1468_s22 + $0x10] sm:$0xff]  ;;  %v1337_v12 = vld [vmem:[%s1473_s26 + $0x100] sm:$0xff]  ;;  %v410_v14 = vunpack.c.l.b16 %v271_v9  ;;  %v411_v15 = vunpack.c.h.b16 %v271_v9 }
  0x2d   : > { %830 = vmatpush.bf16.msra.mxu1 %v1315_v23  ;;  %v408_v10 = vunpack.c.l.b16 %v270_v6  ;;  %v409_v11 = vunpack.c.h.b16 %v270_v6  ;;  %v1345_v13 = vld [vmem:[%s1473_s26 + $0x140] sm:$0xff] }
  0x2e   : > { %843 = vmatpush.bf16.msra.mxu2 %v1323_v24  ;;  %v1353_v16 = vld [vmem:[%s1473_s26 + $0x180] sm:$0xff]  ;;  %v418_v20 = vpack.c.b16 %v410_v14, %v410_v14  ;;  %v419_v21 = vpack.c.b16 %v411_v15, %v411_v15 }
  0x2f   : > { %856 = vmatpush.bf16.msra.mxu3 %v1331_v25  ;;  %v1361_v17 = vld [vmem:[%s1473_s26 + $0x1c0] sm:$0xff]  ;;  %v416_v18 = vpack.c.b16 %v408_v10, %v408_v10  ;;  %v417_v19 = vpack.c.b16 %v409_v11, %v409_v11 }
  0x30   : > { %818 = vmatpush.bf16.msra.mxu0 %v1306_v26 }
  0x31   : > { %831 = vmatpush.bf16.msra.mxu1 %v1314_v27 }
  0x32   : > { %844 = vmatpush.bf16.msra.mxu2 %v1322_v28 }
  0x33   : > { %857 = vmatpush.bf16.msra.mxu3 %v1330_v29 }
  0x34   : > { %819 = vmatpush.bf16.msra.mxu0 %v1305_v32 }
  0x35   : > { %832 = vmatpush.bf16.msra.mxu1 %v1313_v33 }
  0x36   : > { %845 = vmatpush.bf16.msra.mxu2 %v1321_v36 }
  0x37   : > { %858 = vmatpush.bf16.msra.mxu3 %v1329_v37  ;;  %820 = vmatmul.bf16.vlgmr.msra.gmra.mxu0 %v412_v46 }
  0x38   : > { %864 = vmatpush.bf16.msrb.mxu0 %v1344_v40  ;;  %833 = vmatmul.bf16.vlgmr.msra.gmra.mxu1 %v413_v47 }
  0x39   : > { %877 = vmatpush.bf16.msrb.mxu1 %v1352_v41  ;;  %846 = vmatmul.bf16.vlgmr.msra.gmra.mxu2 %v414_v44 }
  0x3a   : > { %890 = vmatpush.bf16.msrb.mxu2 %v1360_v42  ;;  %859 = vmatmul.bf16.vlgmr.msra.gmra.mxu3 %v415_v45  ;;  %v267_v42 = vld [vmem:[%s1572_s3] sm:$0xff] }
  0x3b   : > { %903 = vmatpush.bf16.msrb.mxu3 %v1368_v43 }
  0x3c   : > { %865 = vmatpush.bf16.msrb.mxu0 %v1343_v48 }
  0x3d   : > { %878 = vmatpush.bf16.msrb.mxu1 %v1351_v49 }
  0x3e   : > { %891 = vmatpush.bf16.msrb.mxu2 %v1359_v50 }
  0x3f   : > { %904 = vmatpush.bf16.msrb.mxu3 %v1367_v51 }
  0x40   : > { %866 = vmatpush.bf16.msrb.mxu0 %v1342_v52 }
  0x41   : > { %879 = vmatpush.bf16.msrb.mxu1 %v1350_v53 }
  0x42   : > { %892 = vmatpush.bf16.msrb.mxu2 %v1358_v54 }
  0x43   : > { %905 = vmatpush.bf16.msrb.mxu3 %v1366_v55 }
  0x44   : > { %867 = vmatpush.bf16.msrb.mxu0 %v1341_v56 }
  0x45   : > { %880 = vmatpush.bf16.msrb.mxu1 %v1349_v57 }
  0x46   : > { %893 = vmatpush.bf16.msrb.mxu2 %v1357_v58 }
  0x47   : > { %906 = vmatpush.bf16.msrb.mxu3 %v1365_v59 }
  0x48   : > { %868 = vmatpush.bf16.msrb.mxu0 %v1340_v60 }
  0x49   : > { %881 = vmatpush.bf16.msrb.mxu1 %v1348_v61 }
  0x4a   : > { %894 = vmatpush.bf16.msrb.mxu2 %v1356_v62 }
  0x4b   : > { %907 = vmatpush.bf16.msrb.mxu3 %v1364_v63 }
  0x4c   : > { %869 = vmatpush.bf16.msrb.mxu0 %v1339_v0 }
  0x4d   : > { %882 = vmatpush.bf16.msrb.mxu1 %v1347_v1 }
  0x4e   : > { %895 = vmatpush.bf16.msrb.mxu2 %v1355_v2 }
  0x4f   : > { %908 = vmatpush.bf16.msrb.mxu3 %v1363_v3 }
  0x50   : > { %870 = vmatpush.bf16.msrb.mxu0 %v1338_v4 }
  0x51   : > { %883 = vmatpush.bf16.msrb.mxu1 %v1346_v5 }
  0x52   : > { %896 = vmatpush.bf16.msrb.mxu2 %v1354_v7 }
  0x53   : > { %909 = vmatpush.bf16.msrb.mxu3 %v1362_v8 }
  0x54   : > { %871 = vmatpush.bf16.msrb.mxu0 %v1337_v12 }
  0x55   : > { %884 = vmatpush.bf16.msrb.mxu1 %v1345_v13 }
  0x56   : > { %897 = vmatpush.bf16.msrb.mxu2 %v1353_v16 }
  0x57   : > { %910 = vmatpush.bf16.msrb.mxu3 %v1361_v17  ;;  %872 = vmatmul.bf16.vlgmr.msrb.gmra.mxu0 %v416_v18 }
  0x58   : > { %885 = vmatmul.bf16.vlgmr.msrb.gmra.mxu1 %v417_v19 }
  0x59   : > { %898 = vmatmul.bf16.vlgmr.msrb.gmra.mxu2 %v418_v20 }
  0x5a   : > { %911 = vmatmul.bf16.vlgmr.msrb.gmra.mxu3 %v419_v21 }
  0xb4   : > { %v821_v22 = vpop.f32.mrf.mxu0 }
  0xb5   : > { %v834_v23 = vpop.f32.mrf.mxu1 }
  0xb6   : > { %v835_v30 = vadd.f32 %v834_v23, %v821_v22 }
  0xbc   : > { %v847_v24 = vpop.f32.mrf.mxu2  ;;  %v823_v26 = vpop.f32.mrf.mxu0 }
  0xbd   : > { %v860_v25 = vpop.f32.mrf.mxu3  ;;  %v836_v27 = vpop.f32.mrf.mxu1  ;;  %v848_v31 = vadd.f32 %v847_v24, %v835_v30 }
  0xbf   : > { %v861_v32 = vadd.f32 %v860_v25, %v848_v31 }
  0xc4   : > { %v849_v28 = vpop.f32.mrf.mxu2 }
  0xc5   : > { %v862_v29 = vpop.f32.mrf.mxu3 }
  0xd4   : > { %v873_v33 = vpop.f32.mrf.mxu0 }
  0xd5   : > { %v886_v34 = vpop.f32.mrf.mxu1  ;;  %v874_v35 = vadd.f32 %v873_v33, %v861_v32 }
  0xd7   : > { %v887_v36 = vadd.f32 %v886_v34, %v874_v35 }
  0xdc   : > { %v899_v37 = vpop.f32.mrf.mxu2  ;;  %v875_v40 = vpop.f32.mrf.mxu0 }
  0xdd   : > { %v912_v38 = vpop.f32.mrf.mxu3  ;;  %v900_v39 = vadd.f32 %v899_v37, %v887_v36  ;;  %v888_v41 = vpop.f32.mrf.mxu1 }
  0xdf   : > { %v913_v43 = vadd.f32 %v912_v38, %v900_v39 }
  0xe1   : > { %v916_v44 = vadd.f32 %v913_v43, %v267_v42  ;;  %922 = sbr.rel (%p1301_p7) target bundleno = 238 (0xee), region = 40 }
  0xe3   : > { %918 = vst.msk [vmem:[%s1572_s3] sm:$0xff] %vm917_vm1, %v916_v44 }
  0xe4   : > { %v901_v45 = vpop.f32.mrf.mxu2 }
  0xe5   : > { %v914_v46 = vpop.f32.mrf.mxu3 }
  0xe6   : > { %v1394_v48 = vld [vmem:[#allocation2] ss:$0 sm:$0xff] }
  0xea   : > { %v923_v47 = vld [vmem:[%s1572_s3] sm:$0xff] }
  0xeb   : > { %v928_v49 = vadd.f32 %v1394_v48, %v923_v47 }
  0xed   : > { %929 = vst.msk [vmem:[%s1572_s3] sm:$0xff] %vm917_vm1, %v928_v49 }
  0xee PF: > { %s15_s16 = sadd.s32 1, %s1417_s16   ;;  %s1573_s14 = smov %s1413_s15 }
  0xef   : > { %p12_p8 = scmp.ge.s32.totalorder %s15_s16, 5   ;;  %s1574_s15 = smov %s1576_s2 }
  0xf1   :  { %14 = sbr.rel (!%p12_p8) target bundleno = 3 (0x3), region = 76 }

</bundles_post_ra>
